<compile_context>
chip_gen: v7x
topology: tpu7x:2x2x1
jax: 0.10.0
libtpu: 0.0.40
codegen_flags: <defaults>
</compile_context>

<pallas_src>
import functools
import math

import jax
import jax.numpy as jnp
from jax.experimental import pallas as pl
from jax.experimental.pallas import tpu as pltpu

# ---------------------------------------------------------------------------
# configuration
# ---------------------------------------------------------------------------

C_IN = 3
C_IN_PAD = 8          # pad image channels 3 -> 8 (clean K for the MXU)
C_FEAT = 32           # real feature channels
C_PAD = 128           # lane-dense channel padding for feature / fused head outputs
N_ANCHOR = 9          # 3 scales x 3 ratios
N_CLASS = 4           # foreground classes; heads emit n_class + 1
ROI_OUT = 7
FC_DIM = 64
N_ROI = 32
FEAT_STRIDE = 1
TM = 128              # M tile (rows per grid step) for the conv kernels

RPN_LOC_N = N_ANCHOR * 4            # 36
RPN_SC_N = N_ANCHOR * 2             # 18
RPN_HEAD_N = RPN_LOC_N + RPN_SC_N   # 54  (fused, padded to C_PAD)
HEAD_LOC_N = (N_CLASS + 1) * 4      # 20
HEAD_SC_N = N_CLASS + 1             # 5
HEAD_N = HEAD_LOC_N + HEAD_SC_N     # 25  (fused, padded to C_PAD)

_VMEM_LIMIT = 32 * 1024 * 1024
LOG_RATIO_CLAMP = float(math.log(1000.0 / 16.0))

# ---------------------------------------------------------------------------
# Pallas kernels
# ---------------------------------------------------------------------------


def _accumulate_conv_taps(x_ref, w_ref, base, tm, w_img, cout):
    """3x3 conv for one M-tile: 9 shifted matmuls accumulated in f32.

    x_ref : (H*W + 2*(W+1), Cin) f32 flat input, zero-padded front/back by W+1 rows,
            resident in VMEM.  For output row m and tap (ki,kj) the input row is
            m + ki*W + kj (boundary columns zeroed via a lane-invariant row mask).
    w_ref : (9, Cin, cout) bf16 tap weights.
    """
    row = base + jax.lax.broadcasted_iota(jnp.int32, (tm, 1), 0)
    j = row % w_img
    mask_l = j > 0                # kj == 0 reads column j-1
    mask_r = j < (w_img - 1)      # kj == 2 reads column j+1
    acc = jnp.zeros((tm, cout), jnp.float32)
    for ki in range(3):
        for kj in range(3):
            off = ki * w_img + kj
            patch = x_ref[pl.ds(base + off, tm), :]
            if kj == 0:
                patch = jnp.where(mask_l, patch, jnp.zeros_like(patch))
            elif kj == 2:
                patch = jnp.where(mask_r, patch, jnp.zeros_like(patch))
            acc += jnp.dot(patch.astype(jnp.bfloat16), w_ref[ki * 3 + kj],
                           preferred_element_type=jnp.float32)
    return acc


def _conv3x3_relu_kernel(x_ref, w_ref, b_ref, o_ref, *, w_img, tm):
    """Extractor: conv3x3 + bias + ReLU, output channels padded to 128 lanes."""
    base = pl.multiple_of(pl.program_id(0) * tm, tm)
    acc = _accumulate_conv_taps(x_ref, w_ref, base, tm, w_img, o_ref.shape[1])
    o_ref[...] = jnp.maximum(acc + b_ref[...], 0.0)


def _rpn_fused_kernel(x_ref, wmid_ref, bmid_ref, whead_ref, bhead_ref, o_ref, *, w_img, tm):
    """RPN: conv3x3 + ReLU (mid stays in registers/VMEM) + fused loc|score 1x1 heads."""
    base = pl.multiple_of(pl.program_id(0) * tm, tm)
    mid = _accumulate_conv_taps(x_ref, wmid_ref, base, tm, w_img, wmid_ref.shape[2])
    mid = jnp.maximum(mid + bmid_ref[...], 0.0)
    out = jnp.dot(mid.astype(jnp.bfloat16), whead_ref[...],
                  preferred_element_type=jnp.float32) + bhead_ref[...]
    o_ref[...] = out


def _head_fused_kernel(p_ref, w1_ref, b1_ref, w2_ref, b2_ref, w3_ref, b3_ref, o_ref):
    """Detection head: fc1 -> ReLU -> fc2 -> ReLU -> fused (cls_loc | score), one call."""
    h1 = jnp.maximum(
        jnp.dot(p_ref[...], w1_ref[...], preferred_element_type=jnp.float32) + b1_ref[...], 0.0)
    h2 = jnp.maximum(
        jnp.dot(h1.astype(jnp.bfloat16), w2_ref[...],
                preferred_element_type=jnp.float32) + b2_ref[...], 0.0)
    o_ref[...] = jnp.dot(h2.astype(jnp.bfloat16), w3_ref[...],
                         preferred_element_type=jnp.float32) + b3_ref[...]


def _decode_clip_kernel(pk_ref, o_ref, *, img_h, img_w):
    """loc2bbox + clip.  pk_ref rows 0..3 = anchors (y1,x1,y2,x2), rows 4..7 = deltas."""
    ay1 = pk_ref[0:1, :]
    ax1 = pk_ref[1:2, :]
    ay2 = pk_ref[2:3, :]
    ax2 = pk_ref[3:4, :]
    dy = pk_ref[4:5, :]
    dx = pk_ref[5:6, :]
    dh = jnp.minimum(pk_ref[6:7, :], LOG_RATIO_CLAMP)
    dw = jnp.minimum(pk_ref[7:8, :], LOG_RATIO_CLAMP)

    h = ay2 - ay1
    w = ax2 - ax1
    cy = ay1 + 0.5 * h
    cx = ax1 + 0.5 * w
    ncy = dy * h + cy
    ncx = dx * w + cx
    nh = jnp.exp(dh) * h
    nw = jnp.exp(dw) * w

    o_ref[0:1, :] = jnp.clip(ncy - 0.5 * nh, 0.0, float(img_h))
    o_ref[1:2, :] = jnp.clip(ncx - 0.5 * nw, 0.0, float(img_w))
    o_ref[2:3, :] = jnp.clip(ncy + 0.5 * nh, 0.0, float(img_h))
    o_ref[3:4, :] = jnp.clip(ncx + 0.5 * nw, 0.0, float(img_w))


# ---------------------------------------------------------------------------
# pallas_call wrappers
# ---------------------------------------------------------------------------


def conv3x3_relu(x_flat_pad, w_taps, bias, *, w_img, m):
    lp, cin = x_flat_pad.shape
    cout = w_taps.shape[2]
    tm = TM if m % TM == 0 else m
    return pl.pallas_call(
        functools.partial(_conv3x3_relu_kernel, w_img=w_img, tm=tm),
        out_shape=jax.ShapeDtypeStruct((m, cout), jnp.float32),
        grid=(m // tm,),
        in_specs=[
            pl.BlockSpec((lp, cin), lambda i: (0, 0)),          # resident flat input
            pl.BlockSpec((9, cin, cout), lambda i: (0, 0, 0)),  # resident tap weights
            pl.BlockSpec((1, cout), lambda i: (0, 0)),
        ],
        out_specs=pl.BlockSpec((tm, cout), lambda i: (i, 0)),
        compiler_params=pltpu.CompilerParams(
            dimension_semantics=("parallel",), vmem_limit_bytes=_VMEM_LIMIT),
    )(x_flat_pad, w_taps, bias.reshape(1, cout))


def rpn_conv_heads(x_flat_pad, wmid_taps, bmid, whead, bhead, *, w_img, m):
    lp, cin = x_flat_pad.shape
    cmid = wmid_taps.shape[2]
    nout = whead.shape[1]
    tm = TM if m % TM == 0 else m
    return pl.pallas_call(
        functools.partial(_rpn_fused_kernel, w_img=w_img, tm=tm),
        out_shape=jax.ShapeDtypeStruct((m, nout), jnp.float32),
        grid=(m // tm,),
        in_specs=[
            pl.BlockSpec((lp, cin), lambda i: (0, 0)),
            pl.BlockSpec((9, cin, cmid), lambda i: (0, 0, 0)),
            pl.BlockSpec((1, cmid), lambda i: (0, 0)),
            pl.BlockSpec((cmid, nout), lambda i: (0, 0)),
            pl.BlockSpec((1, nout), lambda i: (0, 0)),
        ],
        out_specs=pl.BlockSpec((tm, nout), lambda i: (i, 0)),
        compiler_params=pltpu.CompilerParams(
            dimension_semantics=("parallel",), vmem_limit_bytes=_VMEM_LIMIT),
    )(x_flat_pad, wmid_taps, bmid.reshape(1, cmid), whead, bhead.reshape(1, nout))


def head_fused(pooled, w1, b1, w2, b2, w3, b3):
    r = pooled.shape[0]
    nout = w3.shape[1]
    return pl.pallas_call(
        _head_fused_kernel,
        out_shape=jax.ShapeDtypeStruct((r, nout), jnp.float32),
        grid=(1,),
        in_specs=[
            pl.BlockSpec(pooled.shape, lambda i: (0, 0)),
            pl.BlockSpec(w1.shape, lambda i: (0, 0)),
            pl.BlockSpec((1, w1.shape[1]), lambda i: (0, 0)),
            pl.BlockSpec(w2.shape, lambda i: (0, 0)),
            pl.BlockSpec((1, w2.shape[1]), lambda i: (0, 0)),
            pl.BlockSpec(w3.shape, lambda i: (0, 0)),
            pl.BlockSpec((1, w3.shape[1]), lambda i: (0, 0)),
        ],
        out_specs=pl.BlockSpec((r, nout), lambda i: (0, 0)),
        compiler_params=pltpu.CompilerParams(vmem_limit_bytes=_VMEM_LIMIT),
    )(pooled, w1, b1.reshape(1, -1), w2, b2.reshape(1, -1), w3, b3.reshape(1, -1))


def decode_and_clip(packed_8xA, img_size):
    a = packed_8xA.shape[1]
    return pl.pallas_call(
        functools.partial(_decode_clip_kernel, img_h=img_size[0], img_w=img_size[1]),
        out_shape=jax.ShapeDtypeStruct((4, a), jnp.float32),
        grid=(1,),
        in_specs=[pl.BlockSpec((8, a), lambda i: (0, 0))],
        out_specs=pl.BlockSpec((4, a), lambda i: (0, 0)),
    )(packed_8xA)


# ---------------------------------------------------------------------------
# glue: anchors, RoI pooling
# ---------------------------------------------------------------------------


def generate_anchors_4xA(fh, fw, stride, scales, ratios):
    """Anchors in coordinate-major (4, A) layout; pixel-major / base-anchor-minor order.

    Base anchors centred at stride/2 + corner shifts i*stride (== the common
    simple-faster-rcnn reference enumeration).
    """
    hs, ws = [], []
    for r in ratios:
        for s in scales:
            hs.append(s * stride * math.sqrt(r))
            ws.append(s * stride / math.sqrt(r))
    hs = jnp.asarray(hs, jnp.float32)
    ws = jnp.asarray(ws, jnp.float32)
    cy = (jnp.arange(fh, dtype=jnp.float32) + 0.5) * stride
    cx = (jnp.arange(fw, dtype=jnp.float32) + 0.5) * stride
    yy, xx = jnp.meshgrid(cy, cx, indexing="ij")
    cyf = yy.reshape(-1, 1)
    cxf = xx.reshape(-1, 1)
    y1 = (cyf - 0.5 * hs[None, :]).reshape(1, -1)
    x1 = (cxf - 0.5 * ws[None, :]).reshape(1, -1)
    y2 = (cyf + 0.5 * hs[None, :]).reshape(1, -1)
    x2 = (cxf + 0.5 * ws[None, :]).reshape(1, -1)
    return jnp.concatenate([y1, x1, y2, x2], axis=0)  # (4, A)


def roi_pool_nearest(feat_flat, fh, fw, rois, out_size=ROI_OUT):
    """Nearest-neighbour 7x7 RoI pooling on the flat (H*W, C_PAD) feature."""
    # TODO(synk): data-dependent gather stays in plain JAX; a Pallas version would need a
    # PrefetchScalarGridSpec / manual-DMA gather (low priority at this toy size).
    c = feat_flat.shape[1]
    r = rois.shape[0]
    y1, x1, y2, x2 = rois[:, 0], rois[:, 1], rois[:, 2], rois[:, 3]
    grid = (jnp.arange(out_size, dtype=jnp.float32) + 0.5) / out_size
    ys = y1[:, None] + grid[None, :] * (y2 - y1)[:, None]
    xs = x1[:, None] + grid[None, :] * (x2 - x1)[:, None]
    iy = jnp.clip(jnp.floor(ys / FEAT_STRIDE), 0, fh - 1).astype(jnp.int32)
    ix = jnp.clip(jnp.floor(xs / FEAT_STRIDE), 0, fw - 1).astype(jnp.int32)
    flat_idx = (iy[:, :, None] * fw + ix[:, None, :]).reshape(-1)
    pooled = jnp.take(feat_flat, flat_idx, axis=0)              # (R*49, C_PAD)
    return pooled.reshape(r, out_size * out_size * c)


# ---------------------------------------------------------------------------
# parameters (deterministic synthetic init; PyTorch layouts converted once up-front)
# ---------------------------------------------------------------------------


def init_params(key):
    def normal(k, shape, scale=0.05):
        return scale * jax.random.normal(k, shape, jnp.float32)

    ks = jax.random.split(key, 8)
    p = {}

    # extractor conv3x3 (OIHW) -> tap matrices (9, C_IN_PAD, C_PAD), zero-padded, bf16
    ext_w = normal(ks[0], (C_FEAT, C_IN, 3, 3))
    ext_taps = jnp.transpose(ext_w, (2, 3, 1, 0)).reshape(9, C_IN, C_FEAT)
    p["ext_w_taps"] = jnp.pad(
        ext_taps, ((0, 0), (0, C_IN_PAD - C_IN), (0, C_PAD - C_FEAT))).astype(jnp.bfloat16)
    p["ext_b"] = jnp.zeros((C_PAD,), jnp.float32)

    # rpn mid conv3x3 consuming the channel-padded feature: (9, C_PAD, C_FEAT)
    rpn_mid_w = normal(ks[1], (C_FEAT, C_FEAT, 3, 3))
    mid_taps = jnp.transpose(rpn_mid_w, (2, 3, 1, 0)).reshape(9, C_FEAT, C_FEAT)
    p["rpn_mid_w_taps"] = jnp.pad(
        mid_taps, ((0, 0), (0, C_PAD - C_FEAT), (0, 0))).astype(jnp.bfloat16)
    p["rpn_mid_b"] = jnp.zeros((C_FEAT,), jnp.float32)

    # fused RPN 1x1 heads: [loc (36) | score (18)] -> lane-padded to 128
    rpn_loc_w = normal(ks[2], (C_FEAT, RPN_LOC_N), scale=0.01)
    rpn_sc_w = normal(ks[3], (C_FEAT, RPN_SC_N), scale=0.01)
    rpn_head_w = jnp.concatenate([rpn_loc_w, rpn_sc_w], axis=1)
    p["rpn_head_w"] = jnp.pad(
        rpn_head_w, ((0, 0), (0, C_PAD - RPN_HEAD_N))).astype(jnp.bfloat16)
    p["rpn_head_b"] = jnp.zeros((C_PAD,), jnp.float32)

    # head fc1: logical (49*C_FEAT, 64) expanded to the channel-padded pooled layout
    fc1_w = normal(ks[4], (ROI_OUT * ROI_OUT * C_FEAT, FC_DIM))
    fc1_exp = jnp.pad(
        fc1_w.reshape(ROI_OUT * ROI_OUT, C_FEAT, FC_DIM),
        ((0, 0), (0, C_PAD - C_FEAT), (0, 0))).reshape(ROI_OUT * ROI_OUT * C_PAD, FC_DIM)
    p["fc1_w"] = fc1_exp.astype(jnp.bfloat16)
    p["fc1_b"] = jnp.zeros((FC_DIM,), jnp.float32)

    p["fc2_w"] = normal(ks[5], (FC_DIM, FC_DIM)).astype(jnp.bfloat16)
    p["fc2_b"] = jnp.zeros((FC_DIM,), jnp.float32)

    # fused detection-head outputs: [cls_loc (20) | score (5)] -> lane-padded to 128
    cls_loc_w = normal(ks[6], (FC_DIM, HEAD_LOC_N), scale=0.01)
    score_w = normal(ks[7], (FC_DIM, HEAD_SC_N), scale=0.01)
    head_w = jnp.concatenate([cls_loc_w, score_w], axis=1)
    p["head_w"] = jnp.pad(head_w, ((0, 0), (0, C_PAD - HEAD_N))).astype(jnp.bfloat16)
    p["head_b"] = jnp.zeros((C_PAD,), jnp.float32)
    return p


# ---------------------------------------------------------------------------
# FasterRCNN forward
# ---------------------------------------------------------------------------


def extractor_forward(p, x_nchw):
    n, c, h, w = x_nchw.shape
    # TODO(synk): batch > 1 not supported (matches the single-image RPN/proposal path).
    assert n == 1
    x_flat = jnp.transpose(x_nchw[0], (1, 2, 0)).reshape(h * w, c).astype(jnp.float32)
    x_flat = jnp.pad(x_flat, ((0, 0), (0, C_IN_PAD - c)))
    pad = w + 1
    x_flat_pad = jnp.pad(x_flat, ((pad, pad), (0, 0)))
    feat = conv3x3_relu(x_flat_pad, p["ext_w_taps"], p["ext_b"], w_img=w, m=h * w)
    return feat  # (h*w, C_PAD); channels 0:C_FEAT valid, rest exactly zero


def rpn_forward(p, feat_flat, fh, fw, img_size):
    m = fh * fw
    pad = fw + 1
    x_pad = jnp.pad(feat_flat, ((pad, pad), (0, 0)))
    out = rpn_conv_heads(x_pad, p["rpn_mid_w_taps"], p["rpn_mid_b"],
                         p["rpn_head_w"], p["rpn_head_b"], w_img=fw, m=m)   # (m, 128)
    rpn_loc = out[:, :RPN_LOC_N].reshape(m * N_ANCHOR, 4)
    rpn_score = out[:, RPN_LOC_N:RPN_HEAD_N].reshape(m * N_ANCHOR, 2)

    anchors_4a = generate_anchors_4xA(fh, fw, FEAT_STRIDE,
                                      scales=(2.0, 4.0, 8.0), ratios=(0.5, 1.0, 2.0))
    packed = jnp.concatenate([anchors_4a, rpn_loc.T], axis=0)               # (8, A)
    proposals = decode_and_clip(packed, img_size)                           # (4, A)

    fg = jax.nn.softmax(rpn_score, axis=1)[:, 1]
    # TODO(synk): full ProposalCreator applies NMS; toy RPN keeps top-N by fg score only.
    _, idx = jax.lax.top_k(fg, N_ROI)
    roi = proposals[:, idx].T                                               # (N_ROI, 4)
    return roi, anchors_4a.T, rpn_loc, rpn_score


def head_forward(p, feat_flat, fh, fw, roi):
    pooled = roi_pool_nearest(feat_flat, fh, fw, roi).astype(jnp.bfloat16)  # (R, 49*C_PAD)
    out = head_fused(pooled, p["fc1_w"], p["fc1_b"], p["fc2_w"], p["fc2_b"],
                     p["head_w"], p["head_b"])                              # (R, 128)
    head_loc = out[:, :HEAD_LOC_N]
    head_score = out[:, HEAD_LOC_N:HEAD_N]
    return head_loc, head_score


def faster_rcnn_forward(params, x_nchw):
    """Mirrors FasterRCNN.forward: returns (roi, head_loc, head_score)."""
    n, c, h, w = x_nchw.shape
    img_size = (h, w)
    feat = extractor_forward(params, x_nchw)
    roi, anchor, rpn_loc, rpn_score = rpn_forward(params, feat, h, w, img_size)
    head_loc, head_score = head_forward(params, feat, h, w, roi)
    return roi, head_loc, head_score


# ---------------------------------------------------------------------------


if __name__ == "__main__":
    key = jax.random.PRNGKey(0)
    x = jax.random.normal(key, (1, C_IN, 16, 16), jnp.float32)  # NCHW, batch=1
    params = init_params(jax.random.PRNGKey(42))

    fwd = jax.jit(faster_rcnn_forward)
    roi, head_loc, head_score = fwd(params, x)
    jax.block_until_ready((roi, head_loc, head_score))

    assert roi.shape == (N_ROI, 4)
    assert head_loc.shape == (N_ROI, HEAD_LOC_N)
    assert head_score.shape == (N_ROI, HEAD_SC_N)
    assert bool(jnp.all(jnp.isfinite(roi)))
    assert bool(jnp.all(jnp.isfinite(head_loc)))
    assert bool(jnp.all(jnp.isfinite(head_score)))
    print("KERNEL_OK")
</pallas_src>

<mosaic_0001>
module attributes {stable_mosaic.version = 11 : i64} {
  func.func @_conv3x3_relu_kernel(%arg0: i32, %arg1: memref<290x8xf32, #tpu.memory_space<vmem>>, %arg2: memref<9x8x128xbf16, #tpu.memory_space<vmem>>, %arg3: memref<1x128xf32, #tpu.memory_space<vmem>>, %arg4: memref<128x128xf32, #tpu.memory_space<vmem>>) attributes {dimension_semantics = [#tpu.dimension_semantics<parallel>], iteration_bounds = array<i64: 2>, scalar_prefetch = 0 : i64, scratch_operands = 0 : i64, tpu.core_type = #tpu.core_type<tc>, window_params = [{pipeline_mode = #tpu.pipeline_mode<synchronous>, transform_indices = @transform_0, window_bounds = array<i64: 290, 8>}, {pipeline_mode = #tpu.pipeline_mode<synchronous>, transform_indices = @transform_1, window_bounds = array<i64: 9, 8, 128>}, {pipeline_mode = #tpu.pipeline_mode<synchronous>, transform_indices = @transform_2, window_bounds = array<i64: 1, 128>}, {transform_indices = @transform_3, window_bounds = array<i64: 128, 128>}]} {
    %c128_i32 = arith.constant 128 : i32
    %0 = arith.muli %arg0, %c128_i32 : i32
    %1 = tpu.assume_multiple %0, 128 : i32
    %2 = tpu.iota {dimensions = array<i32: 0>} : vector<128x1xi32>
    %3 = vector.broadcast %1 : i32 to vector<128x1xi32>
    %4 = arith.addi %3, %2 : vector<128x1xi32>
    %c16_i32 = arith.constant 16 : i32
    %c0_i32 = arith.constant 0 : i32
    %5 = arith.cmpi eq, %c16_i32, %c0_i32 : i32
    %c1_i32 = arith.constant 1 : i32
    %6 = arith.select %5, %c1_i32, %c16_i32 : i32
    %7 = vector.broadcast %6 : i32 to vector<128x1xi32>
    %8 = arith.remsi %4, %7 : vector<128x1xi32>
    %c0_i32_0 = arith.constant 0 : i32
    %9 = vector.broadcast %c0_i32_0 : i32 to vector<128x1xi32>
    %10 = arith.cmpi ne, %8, %9 : vector<128x1xi32>
    %c0_i32_1 = arith.constant 0 : i32
    %11 = vector.broadcast %c0_i32_1 : i32 to vector<128x1xi32>
    %12 = arith.cmpi slt, %8, %11 : vector<128x1xi32>
    %c0_i32_2 = arith.constant 0 : i32
    %13 = arith.cmpi slt, %6, %c0_i32_2 : i32
    %14 = vector.broadcast %13 : i1 to vector<128x1xi1>
    %15 = vector.broadcast %14 : vector<128x1xi1> to vector<128x1xi1>
    %16 = arith.xori %12, %15 : vector<128x1xi1>
    %17 = arith.andi %16, %10 : vector<128x1xi1>
    %18 = vector.broadcast %6 : i32 to vector<128x1xi32>
    %19 = arith.addi %8, %18 : vector<128x1xi32>
    %20 = arith.select %17, %19, %8 : vector<128x1xi1>, vector<128x1xi32>
    %c0_i32_3 = arith.constant 0 : i32
    %21 = vector.broadcast %c0_i32_3 : i32 to vector<128x1xi32>
    %22 = arith.cmpi sgt, %20, %21 : vector<128x1xi32>
    %c15_i32 = arith.constant 15 : i32
    %23 = vector.broadcast %c15_i32 : i32 to vector<128x1xi32>
    %24 = arith.cmpi slt, %20, %23 : vector<128x1xi32>
    %cst = arith.constant 0.000000e+00 : f32
    %25 = vector.broadcast %cst : f32 to vector<128x128xf32>
    %c0_i32_4 = arith.constant 0 : i32
    %26 = arith.addi %1, %c0_i32_4 : i32
    %27 = arith.index_cast %26 : i32 to index
    %c0 = arith.constant 0 : index
    %28 = vector.load %arg1[%27, %c0] : memref<290x8xf32, #tpu.memory_space<vmem>>, vector<128x8xf32>
    %cst_5 = arith.constant 0.000000e+00 : f32
    %29 = vector.broadcast %cst_5 : f32 to vector<128x8xf32>
    %30 = vector.shape_cast %22 : vector<128x1xi1> to vector<128x1xi1>
    %31 = vector.broadcast %30 : vector<128x1xi1> to vector<128x8xi1>
    %32 = arith.select %31, %28, %29 : vector<128x8xi1>, vector<128x8xf32>
    %33 = arith.truncf %32 : vector<128x8xf32> to vector<128x8xbf16>
    %c0_6 = arith.constant 0 : index
    %c0_7 = arith.constant 0 : index
    %c0_8 = arith.constant 0 : index
    %34 = vector.load %arg2[%c0_6, %c0_7, %c0_8] : memref<9x8x128xbf16, #tpu.memory_space<vmem>>, vector<1x8x128xbf16>
    %35 = vector.shape_cast %34 : vector<1x8x128xbf16> to vector<8x128xbf16>
    %cst_9 = arith.constant dense<0.000000e+00> : vector<128x128xf32>
    %36 = tpu.matmul %33, %35, %cst_9 {dimension_numbers = #tpu.dot_dimension_numbers<[1], [0], [0], [1], [0, 0, 1, 1], [], []>} : vector<128x8xbf16>, vector<8x128xbf16>, vector<128x128xf32> -> vector<128x128xf32>
    %37 = arith.addf %25, %36 : vector<128x128xf32>
    %c1_i32_10 = arith.constant 1 : i32
    %38 = arith.addi %1, %c1_i32_10 : i32
    %39 = arith.index_cast %38 : i32 to index
    %c0_11 = arith.constant 0 : index
    %40 = vector.load %arg1[%39, %c0_11] : memref<290x8xf32, #tpu.memory_space<vmem>>, vector<128x8xf32>
    %41 = arith.truncf %40 : vector<128x8xf32> to vector<128x8xbf16>
    %c1 = arith.constant 1 : index
    %c0_12 = arith.constant 0 : index
    %c0_13 = arith.constant 0 : index
    %42 = vector.load %arg2[%c1, %c0_12, %c0_13] : memref<9x8x128xbf16, #tpu.memory_space<vmem>>, vector<1x8x128xbf16>
    %43 = vector.shape_cast %42 : vector<1x8x128xbf16> to vector<8x128xbf16>
    %cst_14 = arith.constant dense<0.000000e+00> : vector<128x128xf32>
    %44 = tpu.matmul %41, %43, %cst_14 {dimension_numbers = #tpu.dot_dimension_numbers<[1], [0], [0], [1], [0, 0, 1, 1], [], []>} : vector<128x8xbf16>, vector<8x128xbf16>, vector<128x128xf32> -> vector<128x128xf32>
    %45 = arith.addf %37, %44 : vector<128x128xf32>
    %c2_i32 = arith.constant 2 : i32
    %46 = arith.addi %1, %c2_i32 : i32
    %47 = arith.index_cast %46 : i32 to index
    %c0_15 = arith.constant 0 : index
    %48 = vector.load %arg1[%47, %c0_15] : memref<290x8xf32, #tpu.memory_space<vmem>>, vector<128x8xf32>
    %cst_16 = arith.constant 0.000000e+00 : f32
    %49 = vector.broadcast %cst_16 : f32 to vector<128x8xf32>
    %50 = vector.shape_cast %24 : vector<128x1xi1> to vector<128x1xi1>
    %51 = vector.broadcast %50 : vector<128x1xi1> to vector<128x8xi1>
    %52 = arith.select %51, %48, %49 : vector<128x8xi1>, vector<128x8xf32>
    %53 = arith.truncf %52 : vector<128x8xf32> to vector<128x8xbf16>
    %c2 = arith.constant 2 : index
    %c0_17 = arith.constant 0 : index
    %c0_18 = arith.constant 0 : index
    %54 = vector.load %arg2[%c2, %c0_17, %c0_18] : memref<9x8x128xbf16, #tpu.memory_space<vmem>>, vector<1x8x128xbf16>
    %55 = vector.shape_cast %54 : vector<1x8x128xbf16> to vector<8x128xbf16>
    %cst_19 = arith.constant dense<0.000000e+00> : vector<128x128xf32>
    %56 = tpu.matmul %53, %55, %cst_19 {dimension_numbers = #tpu.dot_dimension_numbers<[1], [0], [0], [1], [0, 0, 1, 1], [], []>} : vector<128x8xbf16>, vector<8x128xbf16>, vector<128x128xf32> -> vector<128x128xf32>
    %57 = arith.addf %45, %56 : vector<128x128xf32>
    %c16_i32_20 = arith.constant 16 : i32
    %58 = arith.addi %1, %c16_i32_20 : i32
    %59 = arith.index_cast %58 : i32 to index
    %c0_21 = arith.constant 0 : index
    %60 = vector.load %arg1[%59, %c0_21] : memref<290x8xf32, #tpu.memory_space<vmem>>, vector<128x8xf32>
    %cst_22 = arith.constant 0.000000e+00 : f32
    %61 = vector.broadcast %cst_22 : f32 to vector<128x8xf32>
    %62 = vector.shape_cast %22 : vector<128x1xi1> to vector<128x1xi1>
    %63 = vector.broadcast %62 : vector<128x1xi1> to vector<128x8xi1>
    %64 = arith.select %63, %60, %61 : vector<128x8xi1>, vector<128x8xf32>
    %65 = arith.truncf %64 : vector<128x8xf32> to vector<128x8xbf16>
    %c3 = arith.constant 3 : index
    %c0_23 = arith.constant 0 : index
    %c0_24 = arith.constant 0 : index
    %66 = vector.load %arg2[%c3, %c0_23, %c0_24] : memref<9x8x128xbf16, #tpu.memory_space<vmem>>, vector<1x8x128xbf16>
    %67 = vector.shape_cast %66 : vector<1x8x128xbf16> to vector<8x128xbf16>
    %cst_25 = arith.constant dense<0.000000e+00> : vector<128x128xf32>
    %68 = tpu.matmul %65, %67, %cst_25 {dimension_numbers = #tpu.dot_dimension_numbers<[1], [0], [0], [1], [0, 0, 1, 1], [], []>} : vector<128x8xbf16>, vector<8x128xbf16>, vector<128x128xf32> -> vector<128x128xf32>
    %69 = arith.addf %57, %68 : vector<128x128xf32>
    %c17_i32 = arith.constant 17 : i32
    %70 = arith.addi %1, %c17_i32 : i32
    %71 = arith.index_cast %70 : i32 to index
    %c0_26 = arith.constant 0 : index
    %72 = vector.load %arg1[%71, %c0_26] : memref<290x8xf32, #tpu.memory_space<vmem>>, vector<128x8xf32>
    %73 = arith.truncf %72 : vector<128x8xf32> to vector<128x8xbf16>
    %c4 = arith.constant 4 : index
    %c0_27 = arith.constant 0 : index
    %c0_28 = arith.constant 0 : index
    %74 = vector.load %arg2[%c4, %c0_27, %c0_28] : memref<9x8x128xbf16, #tpu.memory_space<vmem>>, vector<1x8x128xbf16>
    %75 = vector.shape_cast %74 : vector<1x8x128xbf16> to vector<8x128xbf16>
    %cst_29 = arith.constant dense<0.000000e+00> : vector<128x128xf32>
    %76 = tpu.matmul %73, %75, %cst_29 {dimension_numbers = #tpu.dot_dimension_numbers<[1], [0], [0], [1], [0, 0, 1, 1], [], []>} : vector<128x8xbf16>, vector<8x128xbf16>, vector<128x128xf32> -> vector<128x128xf32>
    %77 = arith.addf %69, %76 : vector<128x128xf32>
    %c18_i32 = arith.constant 18 : i32
    %78 = arith.addi %1, %c18_i32 : i32
    %79 = arith.index_cast %78 : i32 to index
    %c0_30 = arith.constant 0 : index
    %80 = vector.load %arg1[%79, %c0_30] : memref<290x8xf32, #tpu.memory_space<vmem>>, vector<128x8xf32>
    %cst_31 = arith.constant 0.000000e+00 : f32
    %81 = vector.broadcast %cst_31 : f32 to vector<128x8xf32>
    %82 = vector.shape_cast %24 : vector<128x1xi1> to vector<128x1xi1>
    %83 = vector.broadcast %82 : vector<128x1xi1> to vector<128x8xi1>
    %84 = arith.select %83, %80, %81 : vector<128x8xi1>, vector<128x8xf32>
    %85 = arith.truncf %84 : vector<128x8xf32> to vector<128x8xbf16>
    %c5 = arith.constant 5 : index
    %c0_32 = arith.constant 0 : index
    %c0_33 = arith.constant 0 : index
    %86 = vector.load %arg2[%c5, %c0_32, %c0_33] : memref<9x8x128xbf16, #tpu.memory_space<vmem>>, vector<1x8x128xbf16>
    %87 = vector.shape_cast %86 : vector<1x8x128xbf16> to vector<8x128xbf16>
    %cst_34 = arith.constant dense<0.000000e+00> : vector<128x128xf32>
    %88 = tpu.matmul %85, %87, %cst_34 {dimension_numbers = #tpu.dot_dimension_numbers<[1], [0], [0], [1], [0, 0, 1, 1], [], []>} : vector<128x8xbf16>, vector<8x128xbf16>, vector<128x128xf32> -> vector<128x128xf32>
    %89 = arith.addf %77, %88 : vector<128x128xf32>
    %c32_i32 = arith.constant 32 : i32
    %90 = arith.addi %1, %c32_i32 : i32
    %91 = arith.index_cast %90 : i32 to index
    %c0_35 = arith.constant 0 : index
    %92 = vector.load %arg1[%91, %c0_35] : memref<290x8xf32, #tpu.memory_space<vmem>>, vector<128x8xf32>
    %cst_36 = arith.constant 0.000000e+00 : f32
    %93 = vector.broadcast %cst_36 : f32 to vector<128x8xf32>
    %94 = vector.shape_cast %22 : vector<128x1xi1> to vector<128x1xi1>
    %95 = vector.broadcast %94 : vector<128x1xi1> to vector<128x8xi1>
    %96 = arith.select %95, %92, %93 : vector<128x8xi1>, vector<128x8xf32>
    %97 = arith.truncf %96 : vector<128x8xf32> to vector<128x8xbf16>
    %c6 = arith.constant 6 : index
    %c0_37 = arith.constant 0 : index
    %c0_38 = arith.constant 0 : index
    %98 = vector.load %arg2[%c6, %c0_37, %c0_38] : memref<9x8x128xbf16, #tpu.memory_space<vmem>>, vector<1x8x128xbf16>
    %99 = vector.shape_cast %98 : vector<1x8x128xbf16> to vector<8x128xbf16>
    %cst_39 = arith.constant dense<0.000000e+00> : vector<128x128xf32>
    %100 = tpu.matmul %97, %99, %cst_39 {dimension_numbers = #tpu.dot_dimension_numbers<[1], [0], [0], [1], [0, 0, 1, 1], [], []>} : vector<128x8xbf16>, vector<8x128xbf16>, vector<128x128xf32> -> vector<128x128xf32>
    %101 = arith.addf %89, %100 : vector<128x128xf32>
    %c33_i32 = arith.constant 33 : i32
    %102 = arith.addi %1, %c33_i32 : i32
    %103 = arith.index_cast %102 : i32 to index
    %c0_40 = arith.constant 0 : index
    %104 = vector.load %arg1[%103, %c0_40] : memref<290x8xf32, #tpu.memory_space<vmem>>, vector<128x8xf32>
    %105 = arith.truncf %104 : vector<128x8xf32> to vector<128x8xbf16>
    %c7 = arith.constant 7 : index
    %c0_41 = arith.constant 0 : index
    %c0_42 = arith.constant 0 : index
    %106 = vector.load %arg2[%c7, %c0_41, %c0_42] : memref<9x8x128xbf16, #tpu.memory_space<vmem>>, vector<1x8x128xbf16>
    %107 = vector.shape_cast %106 : vector<1x8x128xbf16> to vector<8x128xbf16>
    %cst_43 = arith.constant dense<0.000000e+00> : vector<128x128xf32>
    %108 = tpu.matmul %105, %107, %cst_43 {dimension_numbers = #tpu.dot_dimension_numbers<[1], [0], [0], [1], [0, 0, 1, 1], [], []>} : vector<128x8xbf16>, vector<8x128xbf16>, vector<128x128xf32> -> vector<128x128xf32>
    %109 = arith.addf %101, %108 : vector<128x128xf32>
    %c34_i32 = arith.constant 34 : i32
    %110 = arith.addi %1, %c34_i32 : i32
    %111 = arith.index_cast %110 : i32 to index
    %c0_44 = arith.constant 0 : index
    %112 = vector.load %arg1[%111, %c0_44] : memref<290x8xf32, #tpu.memory_space<vmem>>, vector<128x8xf32>
    %cst_45 = arith.constant 0.000000e+00 : f32
    %113 = vector.broadcast %cst_45 : f32 to vector<128x8xf32>
    %114 = vector.shape_cast %24 : vector<128x1xi1> to vector<128x1xi1>
    %115 = vector.broadcast %114 : vector<128x1xi1> to vector<128x8xi1>
    %116 = arith.select %115, %112, %113 : vector<128x8xi1>, vector<128x8xf32>
    %117 = arith.truncf %116 : vector<128x8xf32> to vector<128x8xbf16>
    %c8 = arith.constant 8 : index
    %c0_46 = arith.constant 0 : index
    %c0_47 = arith.constant 0 : index
    %118 = vector.load %arg2[%c8, %c0_46, %c0_47] : memref<9x8x128xbf16, #tpu.memory_space<vmem>>, vector<1x8x128xbf16>
    %119 = vector.shape_cast %118 : vector<1x8x128xbf16> to vector<8x128xbf16>
    %cst_48 = arith.constant dense<0.000000e+00> : vector<128x128xf32>
    %120 = tpu.matmul %117, %119, %cst_48 {dimension_numbers = #tpu.dot_dimension_numbers<[1], [0], [0], [1], [0, 0, 1, 1], [], []>} : vector<128x8xbf16>, vector<8x128xbf16>, vector<128x128xf32> -> vector<128x128xf32>
    %121 = arith.addf %109, %120 : vector<128x128xf32>
    %c0_49 = arith.constant 0 : index
    %c0_50 = arith.constant 0 : index
    %122 = vector.load %arg3[%c0_49, %c0_50] : memref<1x128xf32, #tpu.memory_space<vmem>>, vector<1x128xf32>
    %123 = vector.broadcast %122 : vector<1x128xf32> to vector<128x128xf32>
    %124 = arith.addf %121, %123 : vector<128x128xf32>
    %cst_51 = arith.constant 0.000000e+00 : f32
    %125 = vector.broadcast %cst_51 : f32 to vector<128x128xf32>
    %126 = arith.maximumf %124, %125 : vector<128x128xf32>
    %c0_52 = arith.constant 0 : index
    %c0_53 = arith.constant 0 : index
    %127 = vector.load %arg4[%c0_52, %c0_53] : memref<128x128xf32, #tpu.memory_space<vmem>>, vector<128x128xf32>
    tpu.vector_store %arg4[%c0_52, %c0_53], %126 {strides = array<i32>} : memref<128x128xf32, #tpu.memory_space<vmem>>, vector<128x128xf32>,
    return
  }
  func.func @transform_0(%arg0: i32) -> (i32, i32) {
    %c0_i32 = arith.constant 0 : i32
    %c0_i32_0 = arith.constant 0 : i32
    %c0_i32_1 = arith.constant 0 : i32
    return %c0_i32, %c0_i32_0 : i32, i32
  }
  func.func @transform_1(%arg0: i32) -> (i32, i32, i32) {
    %c0_i32 = arith.constant 0 : i32
    %c0_i32_0 = arith.constant 0 : i32
    %c0_i32_1 = arith.constant 0 : i32
    %c0_i32_2 = arith.constant 0 : i32
    return %c0_i32, %c0_i32_0, %c0_i32_1 : i32, i32, i32
  }
  func.func @transform_2(%arg0: i32) -> (i32, i32) {
    %c0_i32 = arith.constant 0 : i32
    %c0_i32_0 = arith.constant 0 : i32
    %c0_i32_1 = arith.constant 0 : i32
    return %c0_i32, %c0_i32_0 : i32, i32
  }
  func.func @transform_3(%arg0: i32) -> (i32, i32) {
    %c0_i32 = arith.constant 0 : i32
    %c0_i32_0 = arith.constant 0 : i32
    return %arg0, %c0_i32 : i32, i32
  }
}

module attributes {stable_mosaic.version = 11 : i64} {
  func.func @_rpn_fused_kernel(%arg0: i32, %arg1: memref<290x128xf32, #tpu.memory_space<vmem>>, %arg2: memref<9x128x32xbf16, #tpu.memory_space<vmem>>, %arg3: memref<1x32xf32, #tpu.memory_space<vmem>>, %arg4: memref<32x128xbf16, #tpu.memory_space<vmem>>, %arg5: memref<1x128xf32, #tpu.memory_space<vmem>>, %arg6: memref<128x128xf32, #tpu.memory_space<vmem>>) attributes {dimension_semantics = [#tpu.dimension_semantics<parallel>], iteration_bounds = array<i64: 2>, scalar_prefetch = 0 : i64, scratch_operands = 0 : i64, tpu.core_type = #tpu.core_type<tc>, window_params = [{pipeline_mode = #tpu.pipeline_mode<synchronous>, transform_indices = @transform_0, window_bounds = array<i64: 290, 128>}, {pipeline_mode = #tpu.pipeline_mode<synchronous>, transform_indices = @transform_1, window_bounds = array<i64: 9, 128, 32>}, {pipeline_mode = #tpu.pipeline_mode<synchronous>, transform_indices = @transform_2, window_bounds = array<i64: 1, 32>}, {pipeline_mode = #tpu.pipeline_mode<synchronous>, transform_indices = @transform_3, window_bounds = array<i64: 32, 128>}, {pipeline_mode = #tpu.pipeline_mode<synchronous>, transform_indices = @transform_4, window_bounds = array<i64: 1, 128>}, {transform_indices = @transform_5, window_bounds = array<i64: 128, 128>}]} {
    %c128_i32 = arith.constant 128 : i32
    %0 = arith.muli %arg0, %c128_i32 : i32
    %1 = tpu.assume_multiple %0, 128 : i32
    %2 = tpu.iota {dimensions = array<i32: 0>} : vector<128x1xi32>
    %3 = vector.broadcast %1 : i32 to vector<128x1xi32>
    %4 = arith.addi %3, %2 : vector<128x1xi32>
    %c16_i32 = arith.constant 16 : i32
    %c0_i32 = arith.constant 0 : i32
    %5 = arith.cmpi eq, %c16_i32, %c0_i32 : i32
    %c1_i32 = arith.constant 1 : i32
    %6 = arith.select %5, %c1_i32, %c16_i32 : i32
    %7 = vector.broadcast %6 : i32 to vector<128x1xi32>
    %8 = arith.remsi %4, %7 : vector<128x1xi32>
    %c0_i32_0 = arith.constant 0 : i32
    %9 = vector.broadcast %c0_i32_0 : i32 to vector<128x1xi32>
    %10 = arith.cmpi ne, %8, %9 : vector<128x1xi32>
    %c0_i32_1 = arith.constant 0 : i32
    %11 = vector.broadcast %c0_i32_1 : i32 to vector<128x1xi32>
    %12 = arith.cmpi slt, %8, %11 : vector<128x1xi32>
    %c0_i32_2 = arith.constant 0 : i32
    %13 = arith.cmpi slt, %6, %c0_i32_2 : i32
    %14 = vector.broadcast %13 : i1 to vector<128x1xi1>
    %15 = vector.broadcast %14 : vector<128x1xi1> to vector<128x1xi1>
    %16 = arith.xori %12, %15 : vector<128x1xi1>
    %17 = arith.andi %16, %10 : vector<128x1xi1>
    %18 = vector.broadcast %6 : i32 to vector<128x1xi32>
    %19 = arith.addi %8, %18 : vector<128x1xi32>
    %20 = arith.select %17, %19, %8 : vector<128x1xi1>, vector<128x1xi32>
    %c0_i32_3 = arith.constant 0 : i32
    %21 = vector.broadcast %c0_i32_3 : i32 to vector<128x1xi32>
    %22 = arith.cmpi sgt, %20, %21 : vector<128x1xi32>
    %c15_i32 = arith.constant 15 : i32
    %23 = vector.broadcast %c15_i32 : i32 to vector<128x1xi32>
    %24 = arith.cmpi slt, %20, %23 : vector<128x1xi32>
    %cst = arith.constant 0.000000e+00 : f32
    %25 = vector.broadcast %cst : f32 to vector<128x32xf32>
    %c0_i32_4 = arith.constant 0 : i32
    %26 = arith.addi %1, %c0_i32_4 : i32
    %27 = arith.index_cast %26 : i32 to index
    %c0 = arith.constant 0 : index
    %28 = vector.load %arg1[%27, %c0] : memref<290x128xf32, #tpu.memory_space<vmem>>, vector<128x128xf32>
    %cst_5 = arith.constant 0.000000e+00 : f32
    %29 = vector.broadcast %cst_5 : f32 to vector<128x128xf32>
    %30 = vector.shape_cast %22 : vector<128x1xi1> to vector<128x1xi1>
    %31 = vector.broadcast %30 : vector<128x1xi1> to vector<128x128xi1>
    %32 = arith.select %31, %28, %29 : vector<128x128xi1>, vector<128x128xf32>
    %33 = arith.truncf %32 : vector<128x128xf32> to vector<128x128xbf16>
    %c0_6 = arith.constant 0 : index
    %c0_7 = arith.constant 0 : index
    %c0_8 = arith.constant 0 : index
    %34 = vector.load %arg2[%c0_6, %c0_7, %c0_8] : memref<9x128x32xbf16, #tpu.memory_space<vmem>>, vector<1x128x32xbf16>
    %35 = vector.shape_cast %34 : vector<1x128x32xbf16> to vector<128x32xbf16>
    %cst_9 = arith.constant dense<0.000000e+00> : vector<128x32xf32>
    %36 = tpu.matmul %33, %35, %cst_9 {dimension_numbers = #tpu.dot_dimension_numbers<[1], [0], [0], [1], [0, 0, 1, 1], [], []>} : vector<128x128xbf16>, vector<128x32xbf16>, vector<128x32xf32> -> vector<128x32xf32>
    %37 = arith.addf %25, %36 : vector<128x32xf32>
    %c1_i32_10 = arith.constant 1 : i32
    %38 = arith.addi %1, %c1_i32_10 : i32
    %39 = arith.index_cast %38 : i32 to index
    %c0_11 = arith.constant 0 : index
    %40 = vector.load %arg1[%39, %c0_11] : memref<290x128xf32, #tpu.memory_space<vmem>>, vector<128x128xf32>
    %41 = arith.truncf %40 : vector<128x128xf32> to vector<128x128xbf16>
    %c1 = arith.constant 1 : index
    %c0_12 = arith.constant 0 : index
    %c0_13 = arith.constant 0 : index
    %42 = vector.load %arg2[%c1, %c0_12, %c0_13] : memref<9x128x32xbf16, #tpu.memory_space<vmem>>, vector<1x128x32xbf16>
    %43 = vector.shape_cast %42 : vector<1x128x32xbf16> to vector<128x32xbf16>
    %cst_14 = arith.constant dense<0.000000e+00> : vector<128x32xf32>
    %44 = tpu.matmul %41, %43, %cst_14 {dimension_numbers = #tpu.dot_dimension_numbers<[1], [0], [0], [1], [0, 0, 1, 1], [], []>} : vector<128x128xbf16>, vector<128x32xbf16>, vector<128x32xf32> -> vector<128x32xf32>
    %45 = arith.addf %37, %44 : vector<128x32xf32>
    %c2_i32 = arith.constant 2 : i32
    %46 = arith.addi %1, %c2_i32 : i32
    %47 = arith.index_cast %46 : i32 to index
    %c0_15 = arith.constant 0 : index
    %48 = vector.load %arg1[%47, %c0_15] : memref<290x128xf32, #tpu.memory_space<vmem>>, vector<128x128xf32>
    %cst_16 = arith.constant 0.000000e+00 : f32
    %49 = vector.broadcast %cst_16 : f32 to vector<128x128xf32>
    %50 = vector.shape_cast %24 : vector<128x1xi1> to vector<128x1xi1>
    %51 = vector.broadcast %50 : vector<128x1xi1> to vector<128x128xi1>
    %52 = arith.select %51, %48, %49 : vector<128x128xi1>, vector<128x128xf32>
    %53 = arith.truncf %52 : vector<128x128xf32> to vector<128x128xbf16>
    %c2 = arith.constant 2 : index
    %c0_17 = arith.constant 0 : index
    %c0_18 = arith.constant 0 : index
    %54 = vector.load %arg2[%c2, %c0_17, %c0_18] : memref<9x128x32xbf16, #tpu.memory_space<vmem>>, vector<1x128x32xbf16>
    %55 = vector.shape_cast %54 : vector<1x128x32xbf16> to vector<128x32xbf16>
    %cst_19 = arith.constant dense<0.000000e+00> : vector<128x32xf32>
    %56 = tpu.matmul %53, %55, %cst_19 {dimension_numbers = #tpu.dot_dimension_numbers<[1], [0], [0], [1], [0, 0, 1, 1], [], []>} : vector<128x128xbf16>, vector<128x32xbf16>, vector<128x32xf32> -> vector<128x32xf32>
    %57 = arith.addf %45, %56 : vector<128x32xf32>
    %c16_i32_20 = arith.constant 16 : i32
    %58 = arith.addi %1, %c16_i32_20 : i32
    %59 = arith.index_cast %58 : i32 to index
    %c0_21 = arith.constant 0 : index
    %60 = vector.load %arg1[%59, %c0_21] : memref<290x128xf32, #tpu.memory_space<vmem>>, vector<128x128xf32>
    %cst_22 = arith.constant 0.000000e+00 : f32
    %61 = vector.broadcast %cst_22 : f32 to vector<128x128xf32>
    %62 = vector.shape_cast %22 : vector<128x1xi1> to vector<128x1xi1>
    %63 = vector.broadcast %62 : vector<128x1xi1> to vector<128x128xi1>
    %64 = arith.select %63, %60, %61 : vector<128x128xi1>, vector<128x128xf32>
    %65 = arith.truncf %64 : vector<128x128xf32> to vector<128x128xbf16>
    %c3 = arith.constant 3 : index
    %c0_23 = arith.constant 0 : index
    %c0_24 = arith.constant 0 : index
    %66 = vector.load %arg2[%c3, %c0_23, %c0_24] : memref<9x128x32xbf16, #tpu.memory_space<vmem>>, vector<1x128x32xbf16>
    %67 = vector.shape_cast %66 : vector<1x128x32xbf16> to vector<128x32xbf16>
    %cst_25 = arith.constant dense<0.000000e+00> : vector<128x32xf32>
    %68 = tpu.matmul %65, %67, %cst_25 {dimension_numbers = #tpu.dot_dimension_numbers<[1], [0], [0], [1], [0, 0, 1, 1], [], []>} : vector<128x128xbf16>, vector<128x32xbf16>, vector<128x32xf32> -> vector<128x32xf32>
    %69 = arith.addf %57, %68 : vector<128x32xf32>
    %c17_i32 = arith.constant 17 : i32
    %70 = arith.addi %1, %c17_i32 : i32
    %71 = arith.index_cast %70 : i32 to index
    %c0_26 = arith.constant 0 : index
    %72 = vector.load %arg1[%71, %c0_26] : memref<290x128xf32, #tpu.memory_space<vmem>>, vector<128x128xf32>
    %73 = arith.truncf %72 : vector<128x128xf32> to vector<128x128xbf16>
    %c4 = arith.constant 4 : index
    %c0_27 = arith.constant 0 : index
    %c0_28 = arith.constant 0 : index
    %74 = vector.load %arg2[%c4, %c0_27, %c0_28] : memref<9x128x32xbf16, #tpu.memory_space<vmem>>, vector<1x128x32xbf16>
    %75 = vector.shape_cast %74 : vector<1x128x32xbf16> to vector<128x32xbf16>
    %cst_29 = arith.constant dense<0.000000e+00> : vector<128x32xf32>
    %76 = tpu.matmul %73, %75, %cst_29 {dimension_numbers = #tpu.dot_dimension_numbers<[1], [0], [0], [1], [0, 0, 1, 1], [], []>} : vector<128x128xbf16>, vector<128x32xbf16>, vector<128x32xf32> -> vector<128x32xf32>
    %77 = arith.addf %69, %76 : vector<128x32xf32>
    %c18_i32 = arith.constant 18 : i32
    %78 = arith.addi %1, %c18_i32 : i32
    %79 = arith.index_cast %78 : i32 to index
    %c0_30 = arith.constant 0 : index
    %80 = vector.load %arg1[%79, %c0_30] : memref<290x128xf32, #tpu.memory_space<vmem>>, vector<128x128xf32>
    %cst_31 = arith.constant 0.000000e+00 : f32
    %81 = vector.broadcast %cst_31 : f32 to vector<128x128xf32>
    %82 = vector.shape_cast %24 : vector<128x1xi1> to vector<128x1xi1>
    %83 = vector.broadcast %82 : vector<128x1xi1> to vector<128x128xi1>
    %84 = arith.select %83, %80, %81 : vector<128x128xi1>, vector<128x128xf32>
    %85 = arith.truncf %84 : vector<128x128xf32> to vector<128x128xbf16>
    %c5 = arith.constant 5 : index
    %c0_32 = arith.constant 0 : index
    %c0_33 = arith.constant 0 : index
    %86 = vector.load %arg2[%c5, %c0_32, %c0_33] : memref<9x128x32xbf16, #tpu.memory_space<vmem>>, vector<1x128x32xbf16>
    %87 = vector.shape_cast %86 : vector<1x128x32xbf16> to vector<128x32xbf16>
    %cst_34 = arith.constant dense<0.000000e+00> : vector<128x32xf32>
    %88 = tpu.matmul %85, %87, %cst_34 {dimension_numbers = #tpu.dot_dimension_numbers<[1], [0], [0], [1], [0, 0, 1, 1], [], []>} : vector<128x128xbf16>, vector<128x32xbf16>, vector<128x32xf32> -> vector<128x32xf32>
    %89 = arith.addf %77, %88 : vector<128x32xf32>
    %c32_i32 = arith.constant 32 : i32
    %90 = arith.addi %1, %c32_i32 : i32
    %91 = arith.index_cast %90 : i32 to index
    %c0_35 = arith.constant 0 : index
    %92 = vector.load %arg1[%91, %c0_35] : memref<290x128xf32, #tpu.memory_space<vmem>>, vector<128x128xf32>
    %cst_36 = arith.constant 0.000000e+00 : f32
    %93 = vector.broadcast %cst_36 : f32 to vector<128x128xf32>
    %94 = vector.shape_cast %22 : vector<128x1xi1> to vector<128x1xi1>
    %95 = vector.broadcast %94 : vector<128x1xi1> to vector<128x128xi1>
    %96 = arith.select %95, %92, %93 : vector<128x128xi1>, vector<128x128xf32>
    %97 = arith.truncf %96 : vector<128x128xf32> to vector<128x128xbf16>
    %c6 = arith.constant 6 : index
    %c0_37 = arith.constant 0 : index
    %c0_38 = arith.constant 0 : index
    %98 = vector.load %arg2[%c6, %c0_37, %c0_38] : memref<9x128x32xbf16, #tpu.memory_space<vmem>>, vector<1x128x32xbf16>
    %99 = vector.shape_cast %98 : vector<1x128x32xbf16> to vector<128x32xbf16>
    %cst_39 = arith.constant dense<0.000000e+00> : vector<128x32xf32>
    %100 = tpu.matmul %97, %99, %cst_39 {dimension_numbers = #tpu.dot_dimension_numbers<[1], [0], [0], [1], [0, 0, 1, 1], [], []>} : vector<128x128xbf16>, vector<128x32xbf16>, vector<128x32xf32> -> vector<128x32xf32>
    %101 = arith.addf %89, %100 : vector<128x32xf32>
    %c33_i32 = arith.constant 33 : i32
    %102 = arith.addi %1, %c33_i32 : i32
    %103 = arith.index_cast %102 : i32 to index
    %c0_40 = arith.constant 0 : index
    %104 = vector.load %arg1[%103, %c0_40] : memref<290x128xf32, #tpu.memory_space<vmem>>, vector<128x128xf32>
    %105 = arith.truncf %104 : vector<128x128xf32> to vector<128x128xbf16>
    %c7 = arith.constant 7 : index
    %c0_41 = arith.constant 0 : index
    %c0_42 = arith.constant 0 : index
    %106 = vector.load %arg2[%c7, %c0_41, %c0_42] : memref<9x128x32xbf16, #tpu.memory_space<vmem>>, vector<1x128x32xbf16>
    %107 = vector.shape_cast %106 : vector<1x128x32xbf16> to vector<128x32xbf16>
    %cst_43 = arith.constant dense<0.000000e+00> : vector<128x32xf32>
    %108 = tpu.matmul %105, %107, %cst_43 {dimension_numbers = #tpu.dot_dimension_numbers<[1], [0], [0], [1], [0, 0, 1, 1], [], []>} : vector<128x128xbf16>, vector<128x32xbf16>, vector<128x32xf32> -> vector<128x32xf32>
    %109 = arith.addf %101, %108 : vector<128x32xf32>
    %c34_i32 = arith.constant 34 : i32
    %110 = arith.addi %1, %c34_i32 : i32
    %111 = arith.index_cast %110 : i32 to index
    %c0_44 = arith.constant 0 : index
    %112 = vector.load %arg1[%111, %c0_44] : memref<290x128xf32, #tpu.memory_space<vmem>>, vector<128x128xf32>
    %cst_45 = arith.constant 0.000000e+00 : f32
    %113 = vector.broadcast %cst_45 : f32 to vector<128x128xf32>
    %114 = vector.shape_cast %24 : vector<128x1xi1> to vector<128x1xi1>
    %115 = vector.broadcast %114 : vector<128x1xi1> to vector<128x128xi1>
    %116 = arith.select %115, %112, %113 : vector<128x128xi1>, vector<128x128xf32>
    %117 = arith.truncf %116 : vector<128x128xf32> to vector<128x128xbf16>
    %c8 = arith.constant 8 : index
    %c0_46 = arith.constant 0 : index
    %c0_47 = arith.constant 0 : index
    %118 = vector.load %arg2[%c8, %c0_46, %c0_47] : memref<9x128x32xbf16, #tpu.memory_space<vmem>>, vector<1x128x32xbf16>
    %119 = vector.shape_cast %118 : vector<1x128x32xbf16> to vector<128x32xbf16>
    %cst_48 = arith.constant dense<0.000000e+00> : vector<128x32xf32>
    %120 = tpu.matmul %117, %119, %cst_48 {dimension_numbers = #tpu.dot_dimension_numbers<[1], [0], [0], [1], [0, 0, 1, 1], [], []>} : vector<128x128xbf16>, vector<128x32xbf16>, vector<128x32xf32> -> vector<128x32xf32>
    %121 = arith.addf %109, %120 : vector<128x32xf32>
    %c0_49 = arith.constant 0 : index
    %c0_50 = arith.constant 0 : index
    %122 = vector.load %arg3[%c0_49, %c0_50] : memref<1x32xf32, #tpu.memory_space<vmem>>, vector<1x32xf32>
    %123 = vector.broadcast %122 : vector<1x32xf32> to vector<128x32xf32>
    %124 = arith.addf %121, %123 : vector<128x32xf32>
    %cst_51 = arith.constant 0.000000e+00 : f32
    %125 = vector.broadcast %cst_51 : f32 to vector<128x32xf32>
    %126 = arith.maximumf %124, %125 : vector<128x32xf32>
    %127 = arith.truncf %126 : vector<128x32xf32> to vector<128x32xbf16>
    %c0_52 = arith.constant 0 : index
    %c0_53 = arith.constant 0 : index
    %128 = vector.load %arg4[%c0_52, %c0_53] : memref<32x128xbf16, #tpu.memory_space<vmem>>, vector<32x128xbf16>
    %cst_54 = arith.constant dense<0.000000e+00> : vector<128x128xf32>
    %129 = tpu.matmul %127, %128, %cst_54 {dimension_numbers = #tpu.dot_dimension_numbers<[1], [0], [0], [1], [0, 0, 1, 1], [], []>} : vector<128x32xbf16>, vector<32x128xbf16>, vector<128x128xf32> -> vector<128x128xf32>
    %c0_55 = arith.constant 0 : index
    %c0_56 = arith.constant 0 : index
    %130 = vector.load %arg5[%c0_55, %c0_56] : memref<1x128xf32, #tpu.memory_space<vmem>>, vector<1x128xf32>
    %131 = vector.broadcast %130 : vector<1x128xf32> to vector<128x128xf32>
    %132 = arith.addf %129, %131 : vector<128x128xf32>
    %c0_57 = arith.constant 0 : index
    %c0_58 = arith.constant 0 : index
    %133 = vector.load %arg6[%c0_57, %c0_58] : memref<128x128xf32, #tpu.memory_space<vmem>>, vector<128x128xf32>
    tpu.vector_store %arg6[%c0_57, %c0_58], %132 {strides = array<i32>} : memref<128x128xf32, #tpu.memory_space<vmem>>, vector<128x128xf32>,
    return
  }
  func.func @transform_0(%arg0: i32) -> (i32, i32) {
    %c0_i32 = arith.constant 0 : i32
    %c0_i32_0 = arith.constant 0 : i32
    %c0_i32_1 = arith.constant 0 : i32
    return %c0_i32, %c0_i32_0 : i32, i32
  }
  func.func @transform_1(%arg0: i32) -> (i32, i32, i32) {
    %c0_i32 = arith.constant 0 : i32
    %c0_i32_0 = arith.constant 0 : i32
    %c0_i32_1 = arith.constant 0 : i32
    %c0_i32_2 = arith.constant 0 : i32
    return %c0_i32, %c0_i32_0, %c0_i32_1 : i32, i32, i32
  }
  func.func @transform_2(%arg0: i32) -> (i32, i32) {
    %c0_i32 = arith.constant 0 : i32
    %c0_i32_0 = arith.constant 0 : i32
    %c0_i32_1 = arith.constant 0 : i32
    return %c0_i32, %c0_i32_0 : i32, i32
  }
  func.func @transform_3(%arg0: i32) -> (i32, i32) {
    %c0_i32 = arith.constant 0 : i32
    %c0_i32_0 = arith.constant 0 : i32
    %c0_i32_1 = arith.constant 0 : i32
    return %c0_i32, %c0_i32_0 : i32, i32
  }
  func.func @transform_4(%arg0: i32) -> (i32, i32) {
    %c0_i32 = arith.constant 0 : i32
    %c0_i32_0 = arith.constant 0 : i32
    %c0_i32_1 = arith.constant 0 : i32
    return %c0_i32, %c0_i32_0 : i32, i32
  }
  func.func @transform_5(%arg0: i32) -> (i32, i32) {
    %c0_i32 = arith.constant 0 : i32
    %c0_i32_0 = arith.constant 0 : i32
    return %arg0, %c0_i32 : i32, i32
  }
}

module attributes {stable_mosaic.version = 11 : i64} {
  func.func @_decode_clip_kernel(%arg0: i32, %arg1: memref<8x2304xf32, #tpu.memory_space<vmem>>, %arg2: memref<4x2304xf32, #tpu.memory_space<vmem>>) attributes {dimension_semantics = [#tpu.dimension_semantics<arbitrary>], iteration_bounds = array<i64: 1>, scalar_prefetch = 0 : i64, scratch_operands = 0 : i64, tpu.core_type = #tpu.core_type<tc>, window_params = [{pipeline_mode = #tpu.pipeline_mode<synchronous>, transform_indices = @transform_0, window_bounds = array<i64: 8, 2304>}, {pipeline_mode = #tpu.pipeline_mode<synchronous>, transform_indices = @transform_1, window_bounds = array<i64: 4, 2304>}]} {
    %c0 = arith.constant 0 : index
    %c0_0 = arith.constant 0 : index
    %0 = vector.load %arg1[%c0, %c0_0] : memref<8x2304xf32, #tpu.memory_space<vmem>>, vector<1x2304xf32>
    %c1 = arith.constant 1 : index
    %c0_1 = arith.constant 0 : index
    %1 = vector.load %arg1[%c1, %c0_1] : memref<8x2304xf32, #tpu.memory_space<vmem>>, vector<1x2304xf32>
    %c2 = arith.constant 2 : index
    %c0_2 = arith.constant 0 : index
    %2 = vector.load %arg1[%c2, %c0_2] : memref<8x2304xf32, #tpu.memory_space<vmem>>, vector<1x2304xf32>
    %c3 = arith.constant 3 : index
    %c0_3 = arith.constant 0 : index
    %3 = vector.load %arg1[%c3, %c0_3] : memref<8x2304xf32, #tpu.memory_space<vmem>>, vector<1x2304xf32>
    %c4 = arith.constant 4 : index
    %c0_4 = arith.constant 0 : index
    %4 = vector.load %arg1[%c4, %c0_4] : memref<8x2304xf32, #tpu.memory_space<vmem>>, vector<1x2304xf32>
    %c5 = arith.constant 5 : index
    %c0_5 = arith.constant 0 : index
    %5 = vector.load %arg1[%c5, %c0_5] : memref<8x2304xf32, #tpu.memory_space<vmem>>, vector<1x2304xf32>
    %c6 = arith.constant 6 : index
    %c0_6 = arith.constant 0 : index
    %6 = vector.load %arg1[%c6, %c0_6] : memref<8x2304xf32, #tpu.memory_space<vmem>>, vector<1x2304xf32>
    %cst = arith.constant 4.13516665 : f32
    %7 = vector.broadcast %cst : f32 to vector<1x2304xf32>
    %8 = arith.minimumf %6, %7 : vector<1x2304xf32>
    %c7 = arith.constant 7 : index
    %c0_7 = arith.constant 0 : index
    %9 = vector.load %arg1[%c7, %c0_7] : memref<8x2304xf32, #tpu.memory_space<vmem>>, vector<1x2304xf32>
    %cst_8 = arith.constant 4.13516665 : f32
    %10 = vector.broadcast %cst_8 : f32 to vector<1x2304xf32>
    %11 = arith.minimumf %9, %10 : vector<1x2304xf32>
    %12 = arith.subf %2, %0 : vector<1x2304xf32>
    %13 = arith.subf %3, %1 : vector<1x2304xf32>
    %cst_9 = arith.constant 5.000000e-01 : f32
    %14 = vector.broadcast %cst_9 : f32 to vector<1x2304xf32>
    %15 = arith.mulf %14, %12 : vector<1x2304xf32>
    %16 = arith.addf %0, %15 : vector<1x2304xf32>
    %cst_10 = arith.constant 5.000000e-01 : f32
    %17 = vector.broadcast %cst_10 : f32 to vector<1x2304xf32>
    %18 = arith.mulf %17, %13 : vector<1x2304xf32>
    %19 = arith.addf %1, %18 : vector<1x2304xf32>
    %20 = arith.mulf %4, %12 : vector<1x2304xf32>
    %21 = arith.addf %20, %16 : vector<1x2304xf32>
    %22 = arith.mulf %5, %13 : vector<1x2304xf32>
    %23 = arith.addf %22, %19 : vector<1x2304xf32>
    %24 = math.exp %8 : vector<1x2304xf32>
    %25 = arith.mulf %24, %12 : vector<1x2304xf32>
    %26 = math.exp %11 : vector<1x2304xf32>
    %27 = arith.mulf %26, %13 : vector<1x2304xf32>
    %cst_11 = arith.constant 5.000000e-01 : f32
    %28 = vector.broadcast %cst_11 : f32 to vector<1x2304xf32>
    %29 = arith.mulf %28, %25 : vector<1x2304xf32>
    %30 = arith.subf %21, %29 : vector<1x2304xf32>
    %cst_12 = arith.constant 0.000000e+00 : f32
    %cst_13 = arith.constant 1.600000e+01 : f32
    %31 = vector.broadcast %cst_12 : f32 to vector<1x2304xf32>
    %32 = arith.maximumf %31, %30 : vector<1x2304xf32>
    %33 = vector.broadcast %cst_13 : f32 to vector<1x2304xf32>
    %34 = arith.minimumf %33, %32 : vector<1x2304xf32>
    %c0_14 = arith.constant 0 : index
    %c0_15 = arith.constant 0 : index
    %35 = vector.load %arg2[%c0_14, %c0_15] : memref<4x2304xf32, #tpu.memory_space<vmem>>, vector<1x2304xf32>
    tpu.vector_store %arg2[%c0_14, %c0_15], %34 {strides = array<i32>} : memref<4x2304xf32, #tpu.memory_space<vmem>>, vector<1x2304xf32>,
    %cst_16 = arith.constant 5.000000e-01 : f32
    %36 = vector.broadcast %cst_16 : f32 to vector<1x2304xf32>
    %37 = arith.mulf %36, %27 : vector<1x2304xf32>
    %38 = arith.subf %23, %37 : vector<1x2304xf32>
    %cst_17 = arith.constant 0.000000e+00 : f32
    %cst_18 = arith.constant 1.600000e+01 : f32
    %39 = vector.broadcast %cst_17 : f32 to vector<1x2304xf32>
    %40 = arith.maximumf %39, %38 : vector<1x2304xf32>
    %41 = vector.broadcast %cst_18 : f32 to vector<1x2304xf32>
    %42 = arith.minimumf %41, %40 : vector<1x2304xf32>
    %c1_19 = arith.constant 1 : index
    %c0_20 = arith.constant 0 : index
    %43 = vector.load %arg2[%c1_19, %c0_20] : memref<4x2304xf32, #tpu.memory_space<vmem>>, vector<1x2304xf32>
    tpu.vector_store %arg2[%c1_19, %c0_20], %42 {strides = array<i32>} : memref<4x2304xf32, #tpu.memory_space<vmem>>, vector<1x2304xf32>,
    %cst_21 = arith.constant 5.000000e-01 : f32
    %44 = vector.broadcast %cst_21 : f32 to vector<1x2304xf32>
    %45 = arith.mulf %44, %25 : vector<1x2304xf32>
    %46 = arith.addf %21, %45 : vector<1x2304xf32>
    %cst_22 = arith.constant 0.000000e+00 : f32
    %cst_23 = arith.constant 1.600000e+01 : f32
    %47 = vector.broadcast %cst_22 : f32 to vector<1x2304xf32>
    %48 = arith.maximumf %47, %46 : vector<1x2304xf32>
    %49 = vector.broadcast %cst_23 : f32 to vector<1x2304xf32>
    %50 = arith.minimumf %49, %48 : vector<1x2304xf32>
    %c2_24 = arith.constant 2 : index
    %c0_25 = arith.constant 0 : index
    %51 = vector.load %arg2[%c2_24, %c0_25] : memref<4x2304xf32, #tpu.memory_space<vmem>>, vector<1x2304xf32>
    tpu.vector_store %arg2[%c2_24, %c0_25], %50 {strides = array<i32>} : memref<4x2304xf32, #tpu.memory_space<vmem>>, vector<1x2304xf32>,
    %cst_26 = arith.constant 5.000000e-01 : f32
    %52 = vector.broadcast %cst_26 : f32 to vector<1x2304xf32>
    %53 = arith.mulf %52, %27 : vector<1x2304xf32>
    %54 = arith.addf %23, %53 : vector<1x2304xf32>
    %cst_27 = arith.constant 0.000000e+00 : f32
    %cst_28 = arith.constant 1.600000e+01 : f32
    %55 = vector.broadcast %cst_27 : f32 to vector<1x2304xf32>
    %56 = arith.maximumf %55, %54 : vector<1x2304xf32>
    %57 = vector.broadcast %cst_28 : f32 to vector<1x2304xf32>
    %58 = arith.minimumf %57, %56 : vector<1x2304xf32>
    %c3_29 = arith.constant 3 : index
    %c0_30 = arith.constant 0 : index
    %59 = vector.load %arg2[%c3_29, %c0_30] : memref<4x2304xf32, #tpu.memory_space<vmem>>, vector<1x2304xf32>
    tpu.vector_store %arg2[%c3_29, %c0_30], %58 {strides = array<i32>} : memref<4x2304xf32, #tpu.memory_space<vmem>>, vector<1x2304xf32>,
    return
  }
  func.func @transform_0(%arg0: i32) -> (i32, i32) {
    %c0_i32 = arith.constant 0 : i32
    %c0_i32_0 = arith.constant 0 : i32
    %c0_i32_1 = arith.constant 0 : i32
    return %c0_i32, %c0_i32_0 : i32, i32
  }
  func.func @transform_1(%arg0: i32) -> (i32, i32) {
    %c0_i32 = arith.constant 0 : i32
    %c0_i32_0 = arith.constant 0 : i32
    %c0_i32_1 = arith.constant 0 : i32
    return %c0_i32, %c0_i32_0 : i32, i32
  }
}

module attributes {stable_mosaic.version = 11 : i64} {
  func.func @_head_fused_kernel(%arg0: i32, %arg1: memref<32x6272xbf16, #tpu.memory_space<vmem>>, %arg2: memref<6272x64xbf16, #tpu.memory_space<vmem>>, %arg3: memref<1x64xf32, #tpu.memory_space<vmem>>, %arg4: memref<64x64xbf16, #tpu.memory_space<vmem>>, %arg5: memref<1x64xf32, #tpu.memory_space<vmem>>, %arg6: memref<64x128xbf16, #tpu.memory_space<vmem>>, %arg7: memref<1x128xf32, #tpu.memory_space<vmem>>, %arg8: memref<32x128xf32, #tpu.memory_space<vmem>>) attributes {dimension_semantics = [#tpu.dimension_semantics<arbitrary>], iteration_bounds = array<i64: 1>, scalar_prefetch = 0 : i64, scratch_operands = 0 : i64, tpu.core_type = #tpu.core_type<tc>, window_params = [{pipeline_mode = #tpu.pipeline_mode<synchronous>, transform_indices = @transform_0, window_bounds = array<i64: 32, 6272>}, {pipeline_mode = #tpu.pipeline_mode<synchronous>, transform_indices = @transform_1, window_bounds = array<i64: 6272, 64>}, {pipeline_mode = #tpu.pipeline_mode<synchronous>, transform_indices = @transform_2, window_bounds = array<i64: 1, 64>}, {pipeline_mode = #tpu.pipeline_mode<synchronous>, transform_indices = @transform_3, window_bounds = array<i64: 64, 64>}, {pipeline_mode = #tpu.pipeline_mode<synchronous>, transform_indices = @transform_4, window_bounds = array<i64: 1, 64>}, {pipeline_mode = #tpu.pipeline_mode<synchronous>, transform_indices = @transform_5, window_bounds = array<i64: 64, 128>}, {pipeline_mode = #tpu.pipeline_mode<synchronous>, transform_indices = @transform_6, window_bounds = array<i64: 1, 128>}, {pipeline_mode = #tpu.pipeline_mode<synchronous>, transform_indices = @transform_7, window_bounds = array<i64: 32, 128>}]} {
    %c0 = arith.constant 0 : index
    %c0_0 = arith.constant 0 : index
    %0 = vector.load %arg1[%c0, %c0_0] : memref<32x6272xbf16, #tpu.memory_space<vmem>>, vector<32x6272xbf16>
    %c0_1 = arith.constant 0 : index
    %c0_2 = arith.constant 0 : index
    %1 = vector.load %arg2[%c0_1, %c0_2] : memref<6272x64xbf16, #tpu.memory_space<vmem>>, vector<6272x64xbf16>
    %cst = arith.constant dense<0.000000e+00> : vector<32x64xf32>
    %2 = tpu.matmul %0, %1, %cst {dimension_numbers = #tpu.dot_dimension_numbers<[1], [0], [0], [1], [0, 0, 1, 1], [], []>} : vector<32x6272xbf16>, vector<6272x64xbf16>, vector<32x64xf32> -> vector<32x64xf32>
    %c0_3 = arith.constant 0 : index
    %c0_4 = arith.constant 0 : index
    %3 = vector.load %arg3[%c0_3, %c0_4] : memref<1x64xf32, #tpu.memory_space<vmem>>, vector<1x64xf32>
    %4 = vector.broadcast %3 : vector<1x64xf32> to vector<32x64xf32>
    %5 = arith.addf %2, %4 : vector<32x64xf32>
    %cst_5 = arith.constant 0.000000e+00 : f32
    %6 = vector.broadcast %cst_5 : f32 to vector<32x64xf32>
    %7 = arith.maximumf %5, %6 : vector<32x64xf32>
    %8 = arith.truncf %7 : vector<32x64xf32> to vector<32x64xbf16>
    %c0_6 = arith.constant 0 : index
    %c0_7 = arith.constant 0 : index
    %9 = vector.load %arg4[%c0_6, %c0_7] : memref<64x64xbf16, #tpu.memory_space<vmem>>, vector<64x64xbf16>
    %cst_8 = arith.constant dense<0.000000e+00> : vector<32x64xf32>
    %10 = tpu.matmul %8, %9, %cst_8 {dimension_numbers = #tpu.dot_dimension_numbers<[1], [0], [0], [1], [0, 0, 1, 1], [], []>} : vector<32x64xbf16>, vector<64x64xbf16>, vector<32x64xf32> -> vector<32x64xf32>
    %c0_9 = arith.constant 0 : index
    %c0_10 = arith.constant 0 : index
    %11 = vector.load %arg5[%c0_9, %c0_10] : memref<1x64xf32, #tpu.memory_space<vmem>>, vector<1x64xf32>
    %12 = vector.broadcast %11 : vector<1x64xf32> to vector<32x64xf32>
    %13 = arith.addf %10, %12 : vector<32x64xf32>
    %cst_11 = arith.constant 0.000000e+00 : f32
    %14 = vector.broadcast %cst_11 : f32 to vector<32x64xf32>
    %15 = arith.maximumf %13, %14 : vector<32x64xf32>
    %16 = arith.truncf %15 : vector<32x64xf32> to vector<32x64xbf16>
    %c0_12 = arith.constant 0 : index
    %c0_13 = arith.constant 0 : index
    %17 = vector.load %arg6[%c0_12, %c0_13] : memref<64x128xbf16, #tpu.memory_space<vmem>>, vector<64x128xbf16>
    %cst_14 = arith.constant dense<0.000000e+00> : vector<32x128xf32>
    %18 = tpu.matmul %16, %17, %cst_14 {dimension_numbers = #tpu.dot_dimension_numbers<[1], [0], [0], [1], [0, 0, 1, 1], [], []>} : vector<32x64xbf16>, vector<64x128xbf16>, vector<32x128xf32> -> vector<32x128xf32>
    %c0_15 = arith.constant 0 : index
    %c0_16 = arith.constant 0 : index
    %19 = vector.load %arg7[%c0_15, %c0_16] : memref<1x128xf32, #tpu.memory_space<vmem>>, vector<1x128xf32>
    %20 = vector.broadcast %19 : vector<1x128xf32> to vector<32x128xf32>
    %21 = arith.addf %18, %20 : vector<32x128xf32>
    %c0_17 = arith.constant 0 : index
    %c0_18 = arith.constant 0 : index
    %22 = vector.load %arg8[%c0_17, %c0_18] : memref<32x128xf32, #tpu.memory_space<vmem>>, vector<32x128xf32>
    tpu.vector_store %arg8[%c0_17, %c0_18], %21 {strides = array<i32>} : memref<32x128xf32, #tpu.memory_space<vmem>>, vector<32x128xf32>,
    return
  }
  func.func @transform_0(%arg0: i32) -> (i32, i32) {
    %c0_i32 = arith.constant 0 : i32
    %c0_i32_0 = arith.constant 0 : i32
    %c0_i32_1 = arith.constant 0 : i32
    return %c0_i32, %c0_i32_0 : i32, i32
  }
  func.func @transform_1(%arg0: i32) -> (i32, i32) {
    %c0_i32 = arith.constant 0 : i32
    %c0_i32_0 = arith.constant 0 : i32
    %c0_i32_1 = arith.constant 0 : i32
    return %c0_i32, %c0_i32_0 : i32, i32
  }
  func.func @transform_2(%arg0: i32) -> (i32, i32) {
    %c0_i32 = arith.constant 0 : i32
    %c0_i32_0 = arith.constant 0 : i32
    %c0_i32_1 = arith.constant 0 : i32
    return %c0_i32, %c0_i32_0 : i32, i32
  }
  func.func @transform_3(%arg0: i32) -> (i32, i32) {
    %c0_i32 = arith.constant 0 : i32
    %c0_i32_0 = arith.constant 0 : i32
    %c0_i32_1 = arith.constant 0 : i32
    return %c0_i32, %c0_i32_0 : i32, i32
  }
  func.func @transform_4(%arg0: i32) -> (i32, i32) {
    %c0_i32 = arith.constant 0 : i32
    %c0_i32_0 = arith.constant 0 : i32
    %c0_i32_1 = arith.constant 0 : i32
    return %c0_i32, %c0_i32_0 : i32, i32
  }
  func.func @transform_5(%arg0: i32) -> (i32, i32) {
    %c0_i32 = arith.constant 0 : i32
    %c0_i32_0 = arith.constant 0 : i32
    %c0_i32_1 = arith.constant 0 : i32
    return %c0_i32, %c0_i32_0 : i32, i32
  }
  func.func @transform_6(%arg0: i32) -> (i32, i32) {
    %c0_i32 = arith.constant 0 : i32
    %c0_i32_0 = arith.constant 0 : i32
    %c0_i32_1 = arith.constant 0 : i32
    return %c0_i32, %c0_i32_0 : i32, i32
  }
  func.func @transform_7(%arg0: i32) -> (i32, i32) {
    %c0_i32 = arith.constant 0 : i32
    %c0_i32_0 = arith.constant 0 : i32
    %c0_i32_1 = arith.constant 0 : i32
    return %c0_i32, %c0_i32_0 : i32, i32
  }
}

</mosaic_0001>

<bundles_post_ra>
// kernel: sub.28
= control target key start
LH: loop header
LB: loop body
LE: loop exit
PB: predicated region body
PF: predicated region fallthrough
CT: control target
= control target key end

     0   :  { %s7_s6 = smov 3  ;;  %s21_s9 = smov 3  ;;  %vm4_vm0 = vcmask 130048   ;;  %vm11_vm1 = vcmask 1048448   ;;  %vm18_vm2 = vcmask 917248   ;;  %vm25_vm3 = vcmask 786048   ;;  %s119_s0 = inlined_call_operand.vmem [shape: f32[16,16], index: 0, kind: input, shape index: {}]   ;;  %s120_s1 = inlined_call_operand.vmem [shape: f32[256], index: 1, kind: output, shape index: {}]  }
   0x1   :  { %v61_v0 = vld [vmem:[%s119_s0 + $0x7] ss:$8 sm:%s7_s6]   ;;  %s75_s10 = smov 112   ;;  %v63_v1 = vld [vmem:[%s119_s0 + $0x5] ss:$8 sm:%s21_s9]   ;;  %s14_s13 = smov 3 }
   0x2   :  { %9 = vrot.lane.b32.xlu0 %v61_v0, %s75_s10  ;;  %s76_s14 = smov 80   ;;  %v62_v2 = vld [vmem:[%s119_s0 + $0x6] ss:$8 sm:%s14_s13]   ;;  %s28_s17 = smov 3  ;;  %vm32_vm4 = vcmask 654848   ;;  %vm39_vm5 = vcmask 523648  }
   0x3   :  { %23 = vrot.lane.b32.xlu1 %v63_v1, %s76_s14  ;;  %v64_v3 = vld [vmem:[%s119_s0 + $0x4] ss:$8 sm:%s28_s17]   ;;  %s35_s20 = smov 3  ;;  %s42_s21 = smov 3  ;;  %vm46_vm6 = vcmask 392448   ;;  %vm53_vm7 = vcmask 261248  }
   0x4   :  { %s77_s22 = smov 96   ;;  %s78_s23 = smov 64   ;;  %v65_v4 = vld [vmem:[%s119_s0 + $0x3] ss:$8 sm:%s35_s20]   ;;  %v66_v5 = vld [vmem:[%s119_s0 + $0x2] ss:$8 sm:%s42_s21]  }
   0x5   :  { %s2_s26 = smov 3  ;;  %s49_s29 = smov 3 }
   0x6   :  { %16 = vrot.lane.b32.xlu0 %v62_v2, %s77_s22  ;;  %v3_v6 = vld [vmem:[%s119_s0] ss:$8 sm:%s2_s26]   ;;  %s79_s3 = smov 48   ;;  %s80_s4 = smov 32  }
   0x7   :  { %30 = vrot.lane.b32.xlu1 %v64_v3, %s78_s23  ;;  %5 = vst.msk [vmem:[#allocation0] sm:$0x3] %vm4_vm0, %v3_v6   ;;  %v67_v7 = vld [vmem:[%s119_s0 + $0x1] ss:$8 sm:%s49_s29]   ;;  %s81_s0 = smov 16  }
   0xa   :  { %37 = vrot.lane.b32.xlu0 %v65_v4, %s79_s3 }
   0xb   :  { %44 = vrot.lane.b32.xlu1 %v66_v5, %s80_s4 }
   0xe   :  { %51 = vrot.lane.b32.xlu0 %v67_v7, %s81_s0 }
  0x74   :  { %v10_v8 = vpop.permute.xlu0 %9  }
  0x75   :  { %12 = vst.msk [vmem:[#allocation0] sm:$0x3] %vm11_vm1, %v10_v8   ;;  %v24_v9 = vpop.permute.xlu1 %23  }
  0x78   :  { %v17_v10 = vpop.permute.xlu0 %16  }
  0x79   :  { %19 = vst.msk [vmem:[#allocation0] sm:$0x3] %vm18_vm2, %v17_v10   ;;  %v31_v11 = vpop.permute.xlu1 %30  }
  0x7a   :  { %26 = vst.msk [vmem:[#allocation0] sm:$0x3] %vm25_vm3, %v24_v9  }
  0x7b   :  { %33 = vst.msk [vmem:[#allocation0] sm:$0x3] %vm32_vm4, %v31_v11  }
  0x7c   :  { %v38_v12 = vpop.permute.xlu0 %37  }
  0x7d   :  { %40 = vst.msk [vmem:[#allocation0] sm:$0x3] %vm39_vm5, %v38_v12   ;;  %v45_v13 = vpop.permute.xlu1 %44  }
  0x7e   :  { %47 = vst.msk [vmem:[#allocation0] sm:$0x3] %vm46_vm6, %v45_v13  }
  0x80   :  { %v52_v14 = vpop.permute.xlu0 %51  }
  0x81   :  { %54 = vst.msk [vmem:[#allocation0] sm:$0x3] %vm53_vm7, %v52_v14  }
  0x88   :  { %v58_v15 = vld [vmem:[#allocation0] sm:$0x3] }
  0x89   :  { %60 = vst [vmem:[%s120_s1] sm:$0x3] %v58_v15 }

// kernel: faster_rcnn_forward.4
= control target key start
LH: loop header
LB: loop body
LE: loop exit
PB: predicated region body
PF: predicated region fallthrough
CT: control target
= control target key end

     0   :  { %8 = vsyncpa [#allocation3], 0  ;;  %s3936_s0 = inlined_call_operand.vmem [shape: f32[290,8], index: 0, kind: input, shape index: {}]   ;;  %s3937_s1 = inlined_call_operand.hbm [shape: bf16[9,8,128], index: 1, kind: input, shape index: {}]   ;;  %s3938_s2 = inlined_call_operand.hbm [shape: f32[1,128], index: 2, kind: input, shape index: {}]   ;;  %s3939_s3 = inlined_call_operand.vmem [shape: f32[256,128], index: 3, kind: output, shape index: {}]  }
   0x1   :  { %9 = vsyncpa [#allocation5], 0  ;;  %s2975_s12 = smov 0  }
   0x2 LB: > { %s2981_s13 = sadd.s32 4294967295, %s2949_s12   ;;  %p2229_p0 = scmp.ge.s32.totalorder %s2949_s12, 1  ;;  %s2949_s12 = sphi %s2975_s12, %s15_s12  }
   0x3   : > { %p109_p1 = scmp.lt.s32.totalorder %s2949_s12, 3  ;;  %s2951_s14 = smov [#allocation2]  }
   0x4   : > { %s124_s15 = sshll.u32 %s2951_s14, 4  ;;  %p3940_p3 = scmp.eq.s32.totalorder %s2981_s13, 0  ;;  %s125_s15 = int_to_ptr.vmem [resolvable:$true] %s124_s15 }
   0x5   : > { %p2985_p2 = pnand %p2229_p0, %p109_p1  ;;  %s2952_s17 = smov [#allocation4]  }
   0x6   : > { %s138_s18 = sshll.u32 %s2952_s17, 4  ;;  %s2879_s22 = scalar_lea.hbm %s3937_s1, 576  ;;  %s2998_s18 = int_to_ptr.vmem [resolvable:$true] %s138_s18 }
   0x7   : > { %s3976_s16 = scalar_select %p2985_p2, 1, 0 }
   0x8   : > { %p2856_p4 = pneg %p2985_p2  ;;  %p2880_p6 = scmp.ne.s32.totalorder %s3937_s1, %s2879_s22 }
   0x9   : > { %p2886_p10 = scmp.lt.u32.totalorder %s2879_s22, %s3937_s1 }
   0xa   : > { %p2994_p5 = pnand %p3940_p3, %p2856_p4 }
   0xc   : > { %p2881_p7 = pneg %p2994_p5 }
   0xe   : > { %p2882_p8 = pnand %p2881_p7, %p2880_p6 }
  0x10   : > { %p2883_p9 = pneg %p2882_p8 }
  0x12   : > { %p2888_p11 = pnand %p2886_p10, %p2883_p9 }
  0x14   : > { %2891 = shalt.err (!%p2888_p11)
}
  0x15   : > { %s2892_s27 = scalar_lea.vmem %s125_s15, 576  ;;  %p2900_p1 = scmp.lt.s32.totalorder %s125_s15, %s125_s15 }
  0x16   : > { %p2893_p12 = scmp.ne.s32.totalorder %s125_s15, %s2892_s27  ;;  %p2901_p4 = scmp.lt.s32.totalorder %s2892_s27, %s2892_s27 }
  0x18   : > { %p2895_p13 = pnand %p2893_p12, %p2881_p7  ;;  %p2902_p3 = por %p2901_p4, %p2900_p1 }
  0x1a   : > { %p2896_p0 = pneg %p2895_p13 }
  0x1c   : > { %p2903_p2 = pnand %p2902_p3, %p2896_p0 }
  0x1e   : > { %2906 = shalt.err (!%p2903_p2)
}
  0x1f   : > { %s2953_s28 = smov 64   ;;  %s2954_s29 = smov 4  }
  0x20   : > { %2859 = dma.hbm_to_vmem [thread:$0]  (!%p2994_p5), %s3937_s1, 576, %s125_s15, [#allocation3], %s2953_s28, %s2953_s28, %s2954_s29  }
  0x21   : > { %s2907_s7 = scalar_lea.hbm %s3938_s2, 16 }
  0x22   : > { %p2908_p6 = scmp.ne.s32.totalorder %s3938_s2, %s2907_s7  ;;  %p2914_p8 = scmp.lt.u32.totalorder %s2907_s7, %s3938_s2 }
  0x24   : > { %p2910_p2 = pnand %p2908_p6, %p2881_p7 }
  0x26   : > { %p2911_p3 = pneg %p2910_p2 }
  0x28   : > { %p2916_p9 = pnand %p2914_p8, %p2911_p3 }
  0x2a   : > { %2919 = shalt.err (!%p2916_p9)
}
  0x2b   : > { %s2920_s14 = scalar_lea.vmem %s2998_s18, 16  ;;  %s2927_s15 = scalar_lea.vmem %s2998_s18, 32 }
  0x2c   : > { %p2921_p10 = scmp.ne.s32.totalorder %s2998_s18, %s2920_s14  ;;  %p2928_p13 = scmp.lt.s32.totalorder %s2998_s18, %s2998_s18 }
  0x2d   : > { %p2929_p0 = scmp.lt.s32.totalorder %s2927_s15, %s2920_s14 }
  0x2e   : > { %p2923_p11 = pnand %p2921_p10, %p2881_p7 }
  0x2f   : > { %p2930_p1 = por %p2929_p0, %p2928_p13 }
  0x30   : > { %p2924_p12 = pneg %p2923_p11 }
  0x32   : > { %p2931_p4 = pnand %p2930_p1, %p2924_p12 }
  0x34   : > { %2934 = shalt.err (!%p2931_p4)
}
  0x35   : > { %2862 = dma.hbm_to_vmem [thread:$0]  (!%p2994_p5), %s3938_s2, 16, %s2998_s18, [#allocation5]  }
  0x36   : > { %p3978_p6 = scmp.ne.s32.totalorder %s3976_s16, 0 }
  0x38   : > { %151 = sbr.rel (%p3978_p6) target bundleno = 466 (0x1d2), region = 32 }
  0x3f   : > { %p3979_p7 = scmp.eq.s32.totalorder %s2981_s13, 0 }
  0x41   : > { %2940 = dma.done.wait (%p3979_p7), [#allocation3], 576   ;;  %p3980_p2 = pmov %p3979_p7 }
  0x43   : > { %2942 = vsyncadd (%p3980_p2), [#allocation3], 4294966720  ;;  %p3981_p3 = pmov %p3980_p2 }
  0x44   : > { %p3982_p8 = pmov %p3980_p2 }
  0x45   : > { %2944 = dma.done.wait (%p3981_p3), [#allocation5], 16  }
  0x46   : > { %2946 = vsyncadd (%p3982_p8), [#allocation5], 4294967280  ;;  %s2237_s19 = sshll.u32 %s2981_s13, 7  ;;  %v182_v0 = vlaneseq  ;;  %vm3955_vm0 = vcmask 1043456   ;;  %vm542_vm1 = vcmask 64512   ;;  %s2235_s22 = sshll.u32 %s2981_s13, 4 }
  0x47   : > { %v3059_v1 = vstv %s2237_s19  ;;  %s3066_s21 = scalar_lea.vmem %s3936_s0, %s2237_s19  ;;  %v541_v13 = vld [vmem:[#allocation2 + $0x4] sm:$0xf]  ;;  %v3083_v14 = vld [vmem:[#allocation2 + $0x10] sm:$0xf]  ;;  %v513_v28 = vld [vmem:[#allocation2] sm:$0xf] }
  0x48   : > { %v3061_v2 = vshrl.u32 %v182_v0, 7  ;;  %v2255_v15 = vld [vmem:[%s3066_s21 + $0x1] sm:$0xff]  ;;  %2838 = vmatprep.subr.msk.bf16.mxu1 %vm3955_vm0, %v541_v13  ;;  %2842 = vmatprep.subr.msk.bf16.mxu0 %vm3955_vm0, %v3083_v14  ;;  %v569_v19 = vsel %vm3955_vm0, %v541_v13, 0  ;;  %v3102_v20 = vsel %vm3955_vm0, %v3083_v14, 0  ;;  %v2256_v21 = vld [vmem:[%s3066_s21 + $0x9] sm:$0xff]  ;;  %v2338_v22 = vld [vmem:[%s3066_s21 + $0x11] sm:$0xff] }
  0x49   : > { %3983 = vst [vmem:[#allocation8_spill] sm:$0xff] %v3102_v20  ;;  %v2339_v23 = vld [vmem:[%s3066_s21 + $0x19] sm:$0xff]  ;;  %2547 = vmatpush3.bf16.msra.mxu1 %v569_v19  ;;  %2619 = vmatpush3.bf16.msra.mxu0 %v3102_v20  ;;  %v532_v26 = vpack.c.bf16 %v2256_v21, %v2255_v15  ;;  %v2340_v29 = vld [vmem:[%s3066_s21 + $0x21] sm:$0xff]  ;;  %v2341_v30 = vld [vmem:[%s3066_s21 + $0x29] sm:$0xff]  ;;  %v693_v34 = vsel %vm3955_vm0, %v513_v28, 0  ;;  %p175_p5 = scmp.lt.s32.totalorder %s2235_s22, 31 }
  0x4a   : > { %v184_v3 = vadd.s32 8, %v3061_v2  ;;  %v3071_v4 = vadd.s32 %v3059_v1, %v3061_v2  ;;  %v185_v5 = vadd.s32 16, %v3061_v2  ;;  %v186_v6 = vadd.s32 24, %v3061_v2  ;;  %2839 = vmatprep.subr.msk.bf16.mxu1 %vm3955_vm0, %v513_v28  ;;  %v1403_v33 = vld [vmem:[#allocation2 + $0x14] sm:$0xf]  ;;  %v2343_v36 = vld [vmem:[%s3066_s21 + $0x39] sm:$0xff] }
  0x4b   : > { %v187_v7 = vadd.s32 32, %v3061_v2  ;;  %v188_v8 = vadd.s32 40, %v3061_v2  ;;  %v189_v11 = vadd.s32 48, %v3061_v2  ;;  %v190_v12 = vadd.s32 56, %v3061_v2  ;;  %v2342_v35 = vld [vmem:[%s3066_s21 + $0x31] sm:$0xff]  ;;  %2548 = vmatprep.mubr.msk.bf16.mxu1 %vm542_vm1, %v532_v26  ;;  %v2344_v41 = vld [vmem:[%s3066_s21 + $0x41] sm:$0xff]  ;;  %2844 = vmatprep.subr.msk.bf16.mxu0 %vm3955_vm0, %v1403_v33 }
  0x4c   : > { %v3078_v9 = vadd.s32 %v3059_v1, %v184_v3  ;;  %v217_v10 = vsub.s32 0, %v3071_v4  ;;  %vm216_vm2 = vcmp.lt.s32.totalorder %v3071_v4, 0  ;;  %v3088_v16 = vadd.s32 %v3059_v1, %v185_v5  ;;  %v2345_v42 = vld [vmem:[%s3066_s21 + $0x49] sm:$0xff]  ;;  %v2265_v47 = vld [vmem:[%s3066_s21 + $0x51] sm:$0xff]  ;;  %v2266_v48 = vld [vmem:[%s3066_s21 + $0x59] sm:$0xff]  ;;  %s4052_s22 = smov (!%p175_p5, %s2235_s22), 31 }
  0x4d   : > { %v3091_v17 = vadd.s32 %v3059_v1, %v186_v6  ;;  %v3094_v18 = vadd.s32 %v3059_v1, %v187_v7  ;;  %v3109_v25 = vadd.s32 %v3059_v1, %v188_v8  ;;  %v1210_v27 = vpack.c.bf16 %v2339_v23, %v2338_v22  ;;  %v1587_v54 = vld [vmem:[#allocation2 + $0x18] sm:$0xf]  ;;  %v2267_v57 = vld [vmem:[%s3066_s21 + $0x61] sm:$0xff]  ;;  %v2268_v58 = vld [vmem:[%s3066_s21 + $0x69] sm:$0xff]  ;;  %s2236_s23 = sshll.u32 %s4052_s22, 3 }
  0x4e   : > { %v2238_v24 = vmin.u32 %v217_v10, %v3071_v4  ;;  %vm223_vm3 = vcmp.lt.s32.totalorder %v3078_v9, 0  ;;  %v224_v31 = vsub.s32 0, %v3078_v9  ;;  %v3117_v32 = vpack.c.bf16 %v2341_v30, %v2340_v29  ;;  %v3172_v6 = vld [vmem:[%s3066_s21 + $0x12] sm:$0xff]  ;;  %v3181_v13 = vld [vmem:[%s3066_s21 + $0x1a] sm:$0xff]  ;;  %v3196_v26 = vld [vmem:[#allocation2 + $0x8] sm:$0xf]  ;;  %s3900_s13 = scalar_lea.vmem %s3939_s3, %s2236_s23 }
  0x4f   : > { %vm230_vm4 = vcmp.lt.s32.totalorder %v3088_v16, 0  ;;  %v3124_v38 = vadd.s32 %v3059_v1, %v189_v11  ;;  %2620 = vmatprep.mubr.msk.bf16.mxu0 %vm542_vm1, %v1210_v27  ;;  %v1429_v39 = vsel %vm3955_vm0, %v1403_v33, 0  ;;  %v3129_v40 = vpack.c.bf16 %v2343_v36, %v2342_v35  ;;  %2549 = vmatmul.mubr.msk.bf16.vlgmr.msra.gmra.mrb[0].mxu1 %vm542_vm1, %v1210_v27  ;;  %v2269_v10 = vld [vmem:[%s3066_s21 + $0x71] sm:$0xff]  ;;  %v2270_v11 = vld [vmem:[%s3066_s21 + $0x79] sm:$0xff] }
  0x50   : > { %v220_v37 = vand.u32 15, %v2238_v24  ;;  %v2239_v43 = vmin.u32 %v224_v31, %v3078_v9  ;;  %v231_v44 = vsub.s32 0, %v3088_v16  ;;  %2621 = vmatmul.mubr.msk.bf16.vlgmr.msra.gmra.mrb[0].mxu0 %vm542_vm1, %v3117_v32  ;;  %v3138_v45 = vpack.c.bf16 %v2345_v42, %v2344_v41  ;;  %2565 = vmatpush3.bf16.msra.mxu1 %v693_v34  ;;  %v3211_v34 = vld [vmem:[%s3066_s21 + $0x22] sm:$0xff]  ;;  %v2289_v20 = vld [vmem:[%s3066_s21 + $0xa] sm:$0xff] }
  0x51   : > { %v238_v49 = vsub.s32 0, %v3091_v17  ;;  %v3144_v50 = vadd.s32 %v3059_v1, %v190_v12  ;;  %v3147_v52 = vpack.c.bf16 %v2266_v48, %v2265_v47  ;;  %vm237_vm5 = vcmp.lt.s32.totalorder %v3091_v17, 0  ;;  %2637 = vmatpush3.bf16.msra.mxu0 %v1429_v39  ;;  %2552 = vmatprep.mubr.msk.bf16.mxu1 %vm542_vm1, %v3117_v32  ;;  %3990 = vst [vmem:[#allocation15_spill] sm:$0xff] %v3211_v34 }
  0x52   : > { %3984 = vst [vmem:[#allocation9_spill] sm:$0xff] %v3138_v45  ;;  %v221_v46 = vsub.s32 0, %v220_v37  ;;  %v227_v51 = vand.u32 15, %v2239_v43  ;;  %v2240_v53 = vmin.u32 %v231_v44, %v3088_v16  ;;  %vm244_vm6 = vcmp.lt.s32.totalorder %v3094_v18, 0  ;;  %2624 = vmatprep.mubr.msk.bf16.mxu0 %vm542_vm1, %v3129_v40  ;;  %2845 = vmatprep.subr.msk.bf16.mxu0 %vm3955_vm0, %v1587_v54 }
  0x53   : > { %3985 = vst [vmem:[#allocation10_spill] sm:$0xff] %v3147_v52  ;;  %v2241_v56 = vmin.u32 %v238_v49, %v3091_v17  ;;  %v245_v59 = vsub.s32 0, %v3094_v18  ;;  %v3164_v0 = vsel %vm3955_vm0, %v1587_v54, 0  ;;  %v3174_v7 = vpack.c.bf16 %v2268_v58, %v2267_v57  ;;  %2840 = vmatprep.subr.msk.bf16.mxu1 %vm3955_vm0, %v3196_v26  ;;  %v3214_v17 = vld [vmem:[%s3066_s21 + $0x2a] sm:$0xff]  ;;  %v441_v54 = vld [vmem:[%s3066_s21] sm:$0xff] }
  0x54   : > { %v222_v55 = vsel %vm216_vm2, %v221_v46, %v220_v37  ;;  %v228_v60 = vsub.s32 0, %v227_v51  ;;  %v234_v62 = vand.u32 15, %v2240_v53  ;;  %v252_v8 = vsub.s32 0, %v3109_v25  ;;  %3991 = vst [vmem:[#allocation16_spill] sm:$0xff] %v3214_v17  ;;  %v3235_v46 = vld [vmem:[%s3066_s21 + $0x32] sm:$0xff] }
  0x55   : > { %vm328_vm7 = vcmp.ne.s32.totalorder %v222_v55, 0  ;;  %vm344_vm8 = vcmp.lt.s32.totalorder %v222_v55, 0  ;;  %v376_v61 = vadd.s32 16, %v222_v55  ;;  %v241_v63 = vand.u32 15, %v2241_v56  ;;  %3987 = vst [vmem:[#allocation12_spill] sm:$0xff] %v3174_v7 }
  0x56   : > { %vm360_vm9 = vmand %vm344_vm8, %vm328_vm7  ;;  %v2242_v3 = vmin.u32 %v245_v59, %v3094_v18  ;;  %v229_v4 = vsel %vm223_vm3, %v228_v60, %v227_v51  ;;  %v235_v9 = vsub.s32 0, %v234_v62  ;;  %vm251_vm14 = vcmp.lt.s32.totalorder %v3109_v25, 0  ;;  %v3251_v57 = vld [vmem:[#allocation2 + $0x1c] sm:$0xf] }
  0x57   : > { %v3169_v5 = vsel %vm360_vm9, %v376_v61, %v222_v55  ;;  %vm329_vm10 = vcmp.ne.s32.totalorder %v229_v4, 0  ;;  %vm345_vm11 = vcmp.lt.s32.totalorder %v229_v4, 0  ;;  %v377_v12 = vadd.s32 16, %v229_v4  ;;  %2553 = vmatmul.mubr.msk.bf16.gmra.mrb[4].mxu1 %vm542_vm1, %v3129_v40  ;;  %v442_v55 = vld [vmem:[%s3066_s21 + $0x8] sm:$0xff] }
  0x58   : > { %3986 = vst [vmem:[#allocation11_spill] sm:$0xff] %v3169_v5  ;;  %vm3971_vm12 = vcmp.lt.s32.totalorder %v3169_v5, 15  ;;  %vm361_vm13 = vmand %vm345_vm11, %vm329_vm10  ;;  %v242_v15 = vsub.s32 0, %v241_v63  ;;  %v248_v19 = vand.u32 15, %v2242_v3  ;;  %2625 = vmatmul.mubr.msk.bf16.gmra.mrb[4].mxu0 %vm542_vm1, %v3138_v45  ;;  %v2243_v23 = vmin.u32 %v252_v8, %v3109_v25  ;;  %2556 = vmatprep.mubr.msk.bf16.mxu1 %vm542_vm1, %v3138_v45  ;;  %v3255_v25 = vld [vmem:[%s3066_s21 + $0x3a] sm:$0xff] }
  0x59   : > { %v3188_v21 = vsel %vm361_vm13, %v377_v12, %v229_v4  ;;  %v1378_v22 = vsel %vm3971_vm12, %v3172_v6, 0.0  ;;  %v3194_v24 = vpack.c.bf16 %v2270_v11, %v2269_v10  ;;  %v236_v27 = vsel %vm230_vm4, %v235_v9, %v234_v62  ;;  %v3280_v9 = vld [vmem:[%s3066_s21 + $0x10] sm:$0xff] }
  0x5a   : > { %3988 = vst [vmem:[#allocation13_spill] sm:$0xff] %v3188_v21  ;;  %vm3970_vm15 = vcmp.lt.s32.totalorder %v3188_v21, 15  ;;  %v243_v28 = vsel %vm237_vm5, %v242_v15, %v241_v63  ;;  %v249_v29 = vsub.s32 0, %v248_v19  ;;  %vm330_vm2 = vcmp.ne.s32.totalorder %v236_v27, 0 }
  0x5b   : > { %3989 = vst [vmem:[#allocation14_spill] sm:$0xff] %v3194_v24  ;;  %v1379_v30 = vsel %vm3970_vm15, %v3181_v13, 0.0  ;;  %vm331_vm3 = vcmp.ne.s32.totalorder %v243_v28, 0  ;;  %vm346_vm7 = vcmp.lt.s32.totalorder %v236_v27, 0  ;;  %vm347_vm8 = vcmp.lt.s32.totalorder %v243_v28, 0 }
  0x5c   : > { %v1394_v31 = vpack.c.bf16 %v1379_v30, %v1378_v22  ;;  %vm362_vm9 = vmand %vm346_vm7, %vm330_vm2  ;;  %v378_v16 = vadd.s32 16, %v236_v27  ;;  %v379_v33 = vadd.s32 16, %v243_v28  ;;  %v250_v35 = vsel %vm244_vm6, %v249_v29, %v248_v19  ;;  %v3295_v30 = vld [vmem:[%s3066_s21 + $0x18] sm:$0xff] }
  0x5d   : > { %vm363_vm4 = vmand %vm347_vm8, %vm331_vm3  ;;  %v255_v36 = vand.u32 15, %v2243_v23  ;;  %vm258_vm5 = vcmp.lt.s32.totalorder %v3124_v38, 0  ;;  %v259_v37 = vsub.s32 0, %v3124_v38  ;;  %vm332_vm10 = vcmp.ne.s32.totalorder %v250_v35, 0 }
  0x5e   : > { %2638 = vmatprep.mubr.msk.bf16.mxu0 %vm542_vm1, %v1394_v31  ;;  %v3221_v39 = vsel %vm362_vm9, %v378_v16, %v236_v27  ;;  %v3223_v41 = vsel %vm363_vm4, %v379_v33, %v243_v28  ;;  %vm348_vm11 = vcmp.lt.s32.totalorder %v250_v35, 0  ;;  %vm265_vm13 = vcmp.lt.s32.totalorder %v3144_v50, 0 }
  0x5f   : > { %vm3945_vm2 = vcmp.lt.s32.totalorder %v3221_v39, 15  ;;  %vm3944_vm6 = vcmp.lt.s32.totalorder %v3223_v41, 15  ;;  %v256_v18 = vsub.s32 0, %v255_v36  ;;  %vm364_vm3 = vmand %vm348_vm11, %vm332_vm10  ;;  %v380_v42 = vadd.s32 16, %v250_v35  ;;  %2557 = vmatmul.mubr.msk.bf16.gmra.mrb[8].mxu1 %vm542_vm1, %v3147_v52  ;;  %v2288_v52 = vld [vmem:[%s3066_s21 + $0x2] sm:$0xff] }
  0x60   : > { %v1380_v43 = vsel %vm3945_vm2, %v3211_v34, 0.0  ;;  %v1381_v44 = vsel %vm3944_vm6, %v3214_v17, 0.0  ;;  %v2244_v47 = vmin.u32 %v259_v37, %v3124_v38  ;;  %v266_v48 = vsub.s32 0, %v3144_v50  ;;  %2560 = vmatprep.mubr.msk.bf16.mxu1 %vm542_vm1, %v3174_v7  ;;  %v3292_v38 = vld [vmem:[%s3066_s21 + $0x42] sm:$0xff] }
  0x61   : > { %v1395_v49 = vpack.c.bf16 %v1381_v44, %v1380_v43  ;;  %v257_v51 = vsel %vm251_vm14, %v256_v18, %v255_v36  ;;  %v3243_v53 = vsel %vm364_vm3, %v380_v42, %v250_v35  ;;  %vm408_vm7 = vcmp.gt.s32.totalorder %v3169_v5, 0 }
  0x62   : > { %vm333_vm8 = vcmp.ne.s32.totalorder %v257_v51, 0  ;;  %vm349_vm9 = vcmp.lt.s32.totalorder %v257_v51, 0  ;;  %v381_v56 = vadd.s32 16, %v257_v51  ;;  %vm3943_vm4 = vcmp.lt.s32.totalorder %v3243_v53, 15 }
  0x63   : > { %2639 = vmatmul.mubr.msk.bf16.vlgmr.msra.gmra.mrb[0].mxu0 %vm542_vm1, %v1395_v49  ;;  %vm365_vm10 = vmand %vm349_vm9, %vm333_vm8  ;;  %v1382_v58 = vsel %vm3943_vm4, %v3235_v46, 0.0  ;;  %v262_v59 = vand.u32 15, %v2244_v47  ;;  %v2245_v60 = vmin.u32 %v266_v48, %v3144_v50  ;;  %vm3961_vm14 = vcmp.gt.s32.totalorder %v3188_v21, 0  ;;  %v3305_v50 = vld [vmem:[%s3066_s21 + $0x4a] sm:$0xff] }
  0x64   : > { %2655 = vmatpush3.bf16.msra.mxu0 %v3164_v0  ;;  %v3263_v61 = vsel %vm365_vm10, %v381_v56, %v257_v51  ;;  %v489_v62 = vsel %vm408_vm7, %v441_v54, 0.0  ;;  %v490_v63 = vsel %vm3961_vm14, %v442_v55, 0.0  ;;  %v191_v3 = vadd.s32 64, %v3061_v2  ;;  %v3325_v56 = vld [vmem:[%s3066_s21 + $0x20] sm:$0xff] }
  0x65   : > { %vm3942_vm11 = vcmp.lt.s32.totalorder %v3263_v61, 15  ;;  %v263_v4 = vsub.s32 0, %v262_v59  ;;  %v269_v8 = vand.u32 15, %v2245_v60  ;;  %v505_v10 = vpack.c.bf16 %v490_v63, %v489_v62  ;;  %2846 = vmatprep.subr.msk.bf16.mxu0 %vm3955_vm0, %v3251_v57 }
  0x66   : > { %v1383_v0 = vsel %vm3942_vm11, %v3255_v25, 0.0  ;;  %v192_v11 = vadd.s32 72, %v3061_v2  ;;  %v208_v12 = vadd.s32 %v3059_v1, %v191_v3  ;;  %vm3951_vm3 = vcmp.gt.s32.totalorder %v3221_v39, 0 }
  0x67   : > { %v1396_v15 = vpack.c.bf16 %v1383_v0, %v1382_v58  ;;  %v264_v19 = vsel %vm258_vm5, %v263_v4, %v262_v59  ;;  %v270_v22 = vsub.s32 0, %v269_v8  ;;  %vm3950_vm8 = vcmp.gt.s32.totalorder %v3223_v41, 0  ;;  %2561 = vmatmul.mubr.msk.bf16.gmra.mrb[12].mxu1 %vm542_vm1, %v3194_v24  ;;  %v3328_v58 = vld [vmem:[%s3066_s21 + $0x28] sm:$0xff]  ;;  %v3497_v24 = vld [vmem:[%s3066_s21 + $0x78] sm:$0xff] }
  0x68   : > { %vm334_vm9 = vcmp.ne.s32.totalorder %v264_v19, 0  ;;  %vm350_vm10 = vcmp.lt.s32.totalorder %v264_v19, 0  ;;  %v382_v23 = vadd.s32 16, %v264_v19  ;;  %v209_v27 = vadd.s32 %v3059_v1, %v192_v11  ;;  %2566 = vmatprep.mubr.msk.bf16.mxu1 %vm542_vm1, %v505_v10  ;;  %v3333_v4 = vld [vmem:[#allocation2 + $0xc] sm:$0xf] }
  0x69   : > { %2642 = vmatprep.mubr.msk.bf16.mxu0 %vm542_vm1, %v1396_v15  ;;  %v271_v28 = vsel %vm265_vm13, %v270_v22, %v269_v8  ;;  %vm366_vm11 = vmand %vm350_vm10, %vm334_vm9  ;;  %vm272_vm5 = vcmp.lt.s32.totalorder %v208_v12, 0  ;;  %v273_v29 = vsub.s32 0, %v208_v12  ;;  %v491_v31 = vsel %vm3951_vm3, %v3280_v9, 0.0 }
  0x6a   : > { %vm335_vm4 = vcmp.ne.s32.totalorder %v271_v28, 0  ;;  %vm351_vm6 = vcmp.lt.s32.totalorder %v271_v28, 0  ;;  %v383_v16 = vadd.s32 16, %v271_v28  ;;  %v3300_v33 = vsel %vm366_vm11, %v382_v23, %v264_v19  ;;  %v3346_v19 = vld [vmem:[%s3066_s21 + $0x52] sm:$0xff] }
  0x6b   : > { %vm367_vm2 = vmand %vm351_vm6, %vm335_vm4  ;;  %vm3947_vm13 = vcmp.lt.s32.totalorder %v3300_v33, 15  ;;  %v2246_v35 = vmin.u32 %v273_v29, %v208_v12  ;;  %vm279_vm9 = vcmp.lt.s32.totalorder %v209_v27, 0  ;;  %v280_v36 = vsub.s32 0, %v209_v27 }
  0x6c   : > { %v3307_v37 = vsel %vm367_vm2, %v383_v16, %v271_v28  ;;  %v1384_v18 = vsel %vm3947_vm13, %v3292_v38, 0.0  ;;  %v492_v42 = vsel %vm3950_vm8, %v3295_v30, 0.0  ;;  %v193_v43 = vadd.s32 80, %v3061_v2 }
  0x6d   : > { %vm3946_vm6 = vcmp.lt.s32.totalorder %v3307_v37, 15  ;;  %v276_v44 = vand.u32 15, %v2246_v35  ;;  %v2247_v47 = vmin.u32 %v280_v36, %v209_v27  ;;  %v506_v48 = vpack.c.bf16 %v492_v42, %v491_v31  ;;  %v3354_v27 = vld [vmem:[%s3066_s21 + $0x5a] sm:$0xff]  ;;  %v3359_v36 = vld [vmem:[%s3066_s21 + $0x30] sm:$0xff] }
  0x6e   : > { %v1385_v49 = vsel %vm3946_vm6, %v3305_v50, 0.0  ;;  %v194_v51 = vadd.s32 88, %v3061_v2  ;;  %v210_v54 = vadd.s32 %v3059_v1, %v193_v43  ;;  %v893_v55 = vsel %vm3955_vm0, %v3196_v26, 0 }
  0x6f   : > { %v1397_v59 = vpack.c.bf16 %v1385_v49, %v1384_v18  ;;  %v277_v60 = vsub.s32 0, %v276_v44  ;;  %v283_v62 = vand.u32 15, %v2247_v47  ;;  %vm3948_vm2 = vcmp.gt.s32.totalorder %v3243_v53, 0  ;;  %2567 = vmatmul.mubr.msk.bf16.vlgmr.msra.gmra.mrb[0].mxu1 %vm542_vm1, %v506_v48 }
  0x70   : > { %v211_v63 = vadd.s32 %v3059_v1, %v194_v51  ;;  %vm286_vm4 = vcmp.lt.s32.totalorder %v210_v54, 0  ;;  %v287_v3 = vsub.s32 0, %v210_v54  ;;  %vm3949_vm11 = vcmp.gt.s32.totalorder %v3263_v61, 0  ;;  %2583 = vmatpush3.bf16.msra.mxu1 %v893_v55  ;;  %v3376_v55 = vld [vmem:[%s3066_s21 + $0x38] sm:$0xff] }
  0x71   : > { %2643 = vmatmul.mubr.msk.bf16.gmra.mrb[4].mxu0 %vm542_vm1, %v1397_v59  ;;  %v278_v26 = vsel %vm272_vm5, %v277_v60, %v276_v44  ;;  %v284_v8 = vsub.s32 0, %v283_v62  ;;  %v493_v10 = vsel %vm3948_vm2, %v3325_v56, 0.0  ;;  %v494_v0 = vsel %vm3949_vm11, %v3328_v58, 0.0  ;;  %2841 = vmatprep.subr.msk.bf16.mxu1 %vm3955_vm0, %v3333_v4 }
  0x72   : > { %vm336_vm10 = vcmp.ne.s32.totalorder %v278_v26, 0  ;;  %vm352_vm6 = vcmp.lt.s32.totalorder %v278_v26, 0  ;;  %v384_v11 = vadd.s32 16, %v278_v26  ;;  %v2248_v15 = vmin.u32 %v287_v3, %v210_v54 }
  0x73   : > { %v285_v12 = vsel %vm279_vm9, %v284_v8, %v283_v62  ;;  %vm368_vm5 = vmand %vm352_vm6, %vm336_vm10  ;;  %vm293_vm13 = vcmp.lt.s32.totalorder %v211_v63, 0  ;;  %v294_v22 = vsub.s32 0, %v211_v63  ;;  %v507_v23 = vpack.c.bf16 %v494_v0, %v493_v10  ;;  %v3385_v0 = vld [vmem:[%s3066_s21 + $0x62] sm:$0xff] }
  0x74   : > { %vm337_vm2 = vcmp.ne.s32.totalorder %v285_v12, 0  ;;  %vm353_vm11 = vcmp.lt.s32.totalorder %v285_v12, 0  ;;  %v385_v28 = vadd.s32 16, %v285_v12  ;;  %v3350_v29 = vsel %vm368_vm5, %v384_v11, %v278_v26 }
  0x75   : > { %vm369_vm8 = vmand %vm353_vm11, %vm337_vm2  ;;  %vm3953_vm3 = vcmp.lt.s32.totalorder %v3350_v29, 15  ;;  %v290_v31 = vand.u32 15, %v2248_v15  ;;  %v2249_v16 = vmin.u32 %v294_v22, %v211_v63  ;;  %2570 = vmatprep.mubr.msk.bf16.mxu1 %vm542_vm1, %v507_v23  ;;  %v195_v35 = vadd.s32 96, %v3061_v2  ;;  %v3394_v22 = vld [vmem:[%s3066_s21 + $0x6a] sm:$0xff] }
  0x76   : > { %v3361_v18 = vsel %vm369_vm8, %v385_v28, %v285_v12  ;;  %v1386_v42 = vsel %vm3953_vm3, %v3346_v19, 0.0  ;;  %v196_v43 = vadd.s32 104, %v3061_v2  ;;  %vm3954_vm9 = vcmp.gt.s32.totalorder %v3300_v33, 0 }
  0x77   : > { %vm3952_vm6 = vcmp.lt.s32.totalorder %v3361_v18, 15  ;;  %v291_v44 = vsub.s32 0, %v290_v31  ;;  %v297_v47 = vand.u32 15, %v2249_v16  ;;  %v212_v48 = vadd.s32 %v3059_v1, %v195_v35 }
  0x78   : > { %v1387_v49 = vsel %vm3952_vm6, %v3354_v27, 0.0  ;;  %v213_v51 = vadd.s32 %v3059_v1, %v196_v43  ;;  %vm415_vm8 = vcmp.gt.s32.totalorder %v3307_v37, 0  ;;  %v495_v59 = vsel %vm3954_vm9, %v3359_v36, 0.0 }
  0x79   : > { %v1398_v60 = vpack.c.bf16 %v1387_v49, %v1386_v42  ;;  %v292_v62 = vsel %vm286_vm4, %v291_v44, %v290_v31  ;;  %v298_v3 = vsub.s32 0, %v297_v47  ;;  %vm300_vm2 = vcmp.lt.s32.totalorder %v212_v48, 0 }
  0x7a   : > { %vm338_vm11 = vcmp.ne.s32.totalorder %v292_v62, 0  ;;  %vm354_vm10 = vcmp.lt.s32.totalorder %v292_v62, 0  ;;  %v386_v26 = vadd.s32 16, %v292_v62  ;;  %v301_v8 = vsub.s32 0, %v212_v48 }
  0x7b   : > { %2646 = vmatprep.mubr.msk.bf16.mxu0 %vm542_vm1, %v1398_v60  ;;  %v299_v10 = vsel %vm293_vm13, %v298_v3, %v297_v47  ;;  %vm370_vm5 = vmand %vm354_vm10, %vm338_vm11  ;;  %vm307_vm6 = vcmp.lt.s32.totalorder %v213_v51, 0  ;;  %v308_v11 = vsub.s32 0, %v213_v51  ;;  %v496_v54 = vsel %vm415_vm8, %v3376_v55, 0.0  ;;  %v3413_v60 = vld [vmem:[%s3066_s21 + $0x40] sm:$0xff] }
  0x7c   : > { %vm339_vm4 = vcmp.ne.s32.totalorder %v299_v10, 0  ;;  %vm355_vm3 = vcmp.lt.s32.totalorder %v299_v10, 0  ;;  %v387_v15 = vadd.s32 16, %v299_v10  ;;  %v3390_v12 = vsel %vm370_vm5, %v386_v26, %v292_v62 }
  0x7d   : > { %vm371_vm9 = vmand %vm355_vm3, %vm339_vm4  ;;  %vm3957_vm0 = vcmp.lt.s32.totalorder %v3390_v12, 15  ;;  %v2250_v63 = vmin.u32 %v301_v8, %v212_v48  ;;  %v2251_v23 = vmin.u32 %v308_v11, %v213_v51  ;;  %v508_v28 = vpack.c.bf16 %v496_v54, %v495_v59 }
  0x7e   : > { %v3396_v31 = vsel %vm371_vm9, %v387_v15, %v299_v10  ;;  %v1388_v16 = vsel %vm3957_vm0, %v3385_v0, 0.0  ;;  %v197_v35 = vadd.s32 112, %v3061_v2  ;;  %v198_v42 = vadd.s32 120, %v3061_v2  ;;  %v3416_v2 = vld [vmem:[%s3066_s21 + $0x48] sm:$0xff] }
  0x7f   : > { %vm3956_vm3 = vcmp.lt.s32.totalorder %v3396_v31, 15  ;;  %v304_v43 = vand.u32 15, %v2250_v63  ;;  %v311_v44 = vand.u32 15, %v2251_v23  ;;  %2571 = vmatmul.mubr.msk.bf16.gmra.mrb[4].mxu1 %vm542_vm1, %v508_v28  ;;  %vm416_vm13 = vcmp.gt.s32.totalorder %v3350_v29, 0  ;;  %v3428_v28 = vld [vmem:[%s3066_s21 + $0x50] sm:$0xff] }
  0x80   : > { %v1389_v47 = vsel %vm3956_vm3, %v3394_v22, 0.0  ;;  %v214_v49 = vadd.s32 %v3059_v1, %v197_v35  ;;  %v215_v59 = vadd.s32 %v3059_v1, %v198_v42  ;;  %vm3958_vm9 = vcmp.gt.s32.totalorder %v3361_v18, 0  ;;  %v3434_v35 = vld [vmem:[%s3066_s21 + $0x7a] sm:$0xff] }
  0x81   : > { %v1399_v62 = vpack.c.bf16 %v1389_v47, %v1388_v16  ;;  %v305_v3 = vsub.s32 0, %v304_v43  ;;  %v312_v26 = vsub.s32 0, %v311_v44  ;;  %v497_v54 = vsel %vm416_vm13, %v3413_v60, 0.0  ;;  %v3431_v16 = vld [vmem:[%s3066_s21 + $0x72] sm:$0xff] }
  0x82   : > { %v315_v8 = vsub.s32 0, %v214_v49  ;;  %v322_v10 = vsub.s32 0, %v215_v59  ;;  %v498_v15 = vsel %vm3958_vm9, %v3416_v2, 0.0  ;;  %vm418_vm0 = vcmp.gt.s32.totalorder %v3390_v12, 0 }
  0x83   : > { %2647 = vmatmul.mubr.msk.bf16.gmra.mrb[8].mxu0 %vm542_vm1, %v1399_v62  ;;  %v306_v11 = vsel %vm300_vm2, %v305_v3, %v304_v43  ;;  %v313_v1 = vsel %vm307_vm6, %v312_v26, %v311_v44  ;;  %vm314_vm2 = vcmp.lt.s32.totalorder %v214_v49, 0  ;;  %v509_v42 = vpack.c.bf16 %v498_v15, %v497_v54  ;;  %v3443_v3 = vld [vmem:[%s3066_s21 + $0x58] sm:$0xff] }
  0x84   : > { %vm340_vm11 = vcmp.ne.s32.totalorder %v306_v11, 0  ;;  %vm341_vm10 = vcmp.ne.s32.totalorder %v313_v1, 0  ;;  %vm356_vm5 = vcmp.lt.s32.totalorder %v306_v11, 0  ;;  %vm357_vm4 = vcmp.lt.s32.totalorder %v313_v1, 0 }
  0x85   : > { %vm372_vm3 = vmand %vm356_vm5, %vm340_vm11  ;;  %v388_v63 = vadd.s32 16, %v306_v11  ;;  %v389_v48 = vadd.s32 16, %v313_v1  ;;  %v2252_v23 = vmin.u32 %v315_v8, %v214_v49  ;;  %v2253_v51 = vmin.u32 %v322_v10, %v215_v59  ;;  %2574 = vmatprep.mubr.msk.bf16.mxu1 %vm542_vm1, %v509_v42  ;;  %v3468_v42 = vld [vmem:[%s3066_s21 + $0x60] sm:$0xff] }
  0x86   : > { %vm373_vm6 = vmand %vm357_vm4, %vm341_vm10  ;;  %vm419_vm9 = vcmp.gt.s32.totalorder %v3396_v31, 0  ;;  %vm321_vm5 = vcmp.lt.s32.totalorder %v215_v59, 0  ;;  %v499_v26 = vsel %vm418_vm0, %v3428_v28, 0.0  ;;  %v1562_v59 = vsel %vm408_vm7, %v3325_v56, 0.0 }
  0x87   : > { %v3438_v43 = vsel %vm372_vm3, %v388_v63, %v306_v11  ;;  %v3440_v44 = vsel %vm373_vm6, %v389_v48, %v313_v1  ;;  %v318_v47 = vand.u32 15, %v2252_v23  ;;  %v325_v62 = vand.u32 15, %v2253_v51 }
  0x88   : > { %vm3960_vm11 = vcmp.lt.s32.totalorder %v3438_v43, 15  ;;  %vm3959_vm10 = vcmp.lt.s32.totalorder %v3440_v44, 15  ;;  %v500_v15 = vsel %vm419_vm9, %v3443_v3, 0.0  ;;  %v1563_v23 = vsel %vm3961_vm14, %v3328_v58, 0.0 }
  0x89   : > { %v1390_v8 = vsel %vm3960_vm11, %v3431_v16, 0.0  ;;  %v1391_v10 = vsel %vm3959_vm10, %v3434_v35, 0.0  ;;  %v319_v11 = vsub.s32 0, %v318_v47  ;;  %v326_v1 = vsub.s32 0, %v325_v62 }
  0x8a   : > { %v1400_v54 = vpack.c.bf16 %v1391_v10, %v1390_v8  ;;  %v510_v51 = vpack.c.bf16 %v500_v15, %v499_v26  ;;  %v3472_v8 = vld [vmem:[%s3066_s21 + $0x68] sm:$0xff]  ;;  %vm421_vm14 = vcmp.gt.s32.totalorder %v3440_v44, 0  ;;  %v1578_v15 = vpack.c.bf16 %v1563_v23, %v1562_v59 }
  0x8b   : > { %v320_v63 = vsel %vm314_vm2, %v319_v11, %v318_v47  ;;  %v327_v48 = vsel %vm321_vm5, %v326_v1, %v325_v62  ;;  %v3475_v62 = vld [vmem:[%s3066_s21 + $0x82] sm:$0xff]  ;;  %vm420_vm5 = vcmp.gt.s32.totalorder %v3438_v43, 0  ;;  %v3480_v26 = vld [vmem:[%s3066_s21 + $0x8a] sm:$0xff] }
  0x8c   : > { %2650 = vmatprep.mubr.msk.bf16.mxu0 %vm542_vm1, %v1400_v54  ;;  %vm342_vm3 = vcmp.ne.s32.totalorder %v320_v63, 0  ;;  %vm343_vm4 = vcmp.ne.s32.totalorder %v327_v48, 0  ;;  %vm358_vm6 = vcmp.lt.s32.totalorder %v320_v63, 0  ;;  %vm359_vm10 = vcmp.lt.s32.totalorder %v327_v48, 0  ;;  %2575 = vmatmul.mubr.msk.bf16.gmra.mrb[8].mxu1 %vm542_vm1, %v510_v51  ;;  %v3487_v11 = vld [vmem:[%s3066_s21 + $0x70] sm:$0xff] }
  0x8d   : > { %vm374_vm2 = vmand %vm358_vm6, %vm342_vm3  ;;  %v390_v49 = vadd.s32 16, %v320_v63  ;;  %v391_v47 = vadd.s32 16, %v327_v48  ;;  %v501_v10 = vsel %vm420_vm5, %v3468_v42, 0.0  ;;  %v502_v51 = vsel %vm421_vm14, %v3472_v8, 0.0 }
  0x8e   : > { %vm375_vm11 = vmand %vm359_vm10, %vm343_vm4  ;;  %v511_v7 = vpack.c.bf16 %v502_v51, %v501_v10  ;;  %v842_v10 = vsel %vm3971_vm12, %v2288_v52, 0.0  ;;  %v843_v51 = vsel %vm3970_vm15, %v2289_v20, 0.0  ;;  %vm3992_vm6 = vcmp.lt.s32.totalorder %v3221_v39, 15 }
  0x8f   : > { %v3489_v1 = vsel %vm374_vm2, %v390_v49, %v320_v63  ;;  %v3491_v54 = vsel %vm375_vm11, %v391_v47, %v327_v48  ;;  %v858_v45 = vpack.c.bf16 %v843_v51, %v842_v10  ;;  %vm3993_vm2 = vcmp.gt.s32.totalorder %v3221_v39, 0 }
  0x90   : > { %vm438_vm10 = vcmp.lt.s32.totalorder %v3489_v1, 15  ;;  %vm3969_vm3 = vcmp.lt.s32.totalorder %v3491_v54, 15  ;;  %vm422_vm4 = vcmp.gt.s32.totalorder %v3489_v1, 0  ;;  %vm423_vm11 = vcmp.gt.s32.totalorder %v3491_v54, 0  ;;  %2578 = vmatprep.mubr.msk.bf16.mxu1 %vm542_vm1, %v511_v7  ;;  %v4038_v1 = vld [vmem:[#allocation8_spill] sm:$0xff] }
  0x91   : > { %v1392_v63 = vsel %vm438_vm10, %v3475_v62, 0.0  ;;  %v1393_v59 = vsel %vm3969_vm3, %v3480_v26, 0.0  ;;  %v503_v48 = vsel %vm422_vm4, %v3487_v11, 0.0  ;;  %v504_v49 = vsel %vm423_vm11, %v3497_v24, 0.0 }
  0x92   : > { %v1401_v23 = vpack.c.bf16 %v1393_v59, %v1392_v63  ;;  %v512_v47 = vpack.c.bf16 %v504_v49, %v503_v48  ;;  %v844_v63 = vsel %vm3992_vm6, %v3172_v6, 0.0  ;;  %v1564_v7 = vsel %vm3993_vm2, %v3359_v36, 0.0 }
  0x93   : > { %vm3994_vm3 = vcmp.gt.s32.totalorder %v3223_v41, 0  ;;  %vm3995_vm15 = vcmp.lt.s32.totalorder %v3223_v41, 15  ;;  %vm3996_vm12 = vcmp.gt.s32.totalorder %v3243_v53, 0  ;;  %vm3997_vm6 = vcmp.gt.s32.totalorder %v3263_v61, 0 }
  0x94   : > { %2651 = vmatmul.mubr.msk.bf16.gmra.mrb[12].mxu0 %vm542_vm1, %v1401_v23  ;;  %v1565_v52 = vsel %vm3994_vm3, %v3376_v55, 0.0  ;;  %2579 = vmatmul.mubr.msk.bf16.gmra.mrb[12].mxu1 %vm542_vm1, %v512_v47  ;;  %v845_v20 = vsel %vm3995_vm15, %v3181_v13, 0.0  ;;  %v1566_v6 = vsel %vm3996_vm12, %v3413_v60, 0.0  ;;  %vm3998_vm3 = vcmp.lt.s32.totalorder %v3243_v53, 15 }
  0x95   : > { %2656 = vmatprep.mubr.msk.bf16.mxu0 %vm542_vm1, %v1578_v15  ;;  %v1567_v15 = vsel %vm3997_vm6, %v3416_v2, 0.0  ;;  %2584 = vmatprep.mubr.msk.bf16.mxu1 %vm542_vm1, %v858_v45  ;;  %v859_v59 = vpack.c.bf16 %v845_v20, %v844_v63  ;;  %v1579_v48 = vpack.c.bf16 %v1565_v52, %v1564_v7  ;;  %v846_v23 = vsel %vm3998_vm3, %v3211_v34, 0.0  ;;  %v3574_v20 = vld [vmem:[#allocation2 + $0x20] sm:$0xf] }
  0x96   : > { %vm3999_vm2 = vcmp.lt.s32.totalorder %v3263_v61, 15  ;;  %v1580_v49 = vpack.c.bf16 %v1567_v15, %v1566_v6  ;;  %vm4000_vm15 = vcmask 1043456   ;;  %vm4001_vm12 = vcmp.gt.s32.totalorder %v3300_v33, 0 }
  0x97   : > { %v847_v13 = vsel %vm3999_vm2, %v3214_v17, 0.0  ;;  %v1781_v47 = vsel %vm4000_vm15, %v3251_v57, 0  ;;  %v1568_v10 = vsel %vm4001_vm12, %v3428_v28, 0.0  ;;  %v1569_v45 = vsel %vm415_vm8, %v3443_v3, 0.0  ;;  %vm4003_vm3 = vmmov %vm4000_vm15 }
  0x98   : > { %v1570_v51 = vsel %vm416_vm13, %v3468_v42, 0.0  ;;  %vm4002_vm6 = vcmp.gt.s32.totalorder %v3361_v18, 0  ;;  %v3567_v57 = vsel %vm418_vm0, %v3487_v11, 0.0  ;;  %v3572_v7 = vsel %vm419_vm9, %v3497_v24, 0.0 }
  0x99   : > { %v1571_v63 = vsel %vm4002_vm6, %v3472_v8, 0.0  ;;  %v860_v52 = vpack.c.bf16 %v847_v13, %v846_v23  ;;  %v1077_v6 = vsel %vm4003_vm3, %v3333_v4, 0  ;;  %vm4004_vm2 = vcmp.lt.s32.totalorder %v3300_v33, 15  ;;  %v2400_v13 = vld [vmem:[%s3066_s21 + $0x80] sm:$0xff] }
  0x9a   : > { %v848_v15 = vsel %vm4004_vm2, %v3235_v46, 0.0  ;;  %vm4005_vm15 = vcmp.lt.s32.totalorder %v3307_v37, 15  ;;  %v3588_v34 = vsel %vm408_vm7, %v3280_v9, 0.0  ;;  %vm4006_vm12 = vcmp.lt.s32.totalorder %v3350_v29, 15 }
  0x9b   : > { %v849_v17 = vsel %vm4005_vm15, %v3255_v25, 0.0  ;;  %v850_v4 = vsel %vm4006_vm12, %v3292_v38, 0.0  ;;  %vm4007_vm6 = vcmp.gt.s32.totalorder %v3188_v21, 0  ;;  %vm4008_vm3 = vcmp.gt.s32.totalorder %v3221_v39, 0 }
  0x9c   : > { %2657 = vmatmul.mubr.msk.bf16.vlgmr.msra.gmra.mrb[0].mxu0 %vm542_vm1, %v1579_v48  ;;  %v3597_v48 = vsel %vm4007_vm6, %v3295_v30, 0.0  ;;  %v3602_v23 = vsel %vm4008_vm3, %v3325_v56, 0.0  ;;  %vm4009_vm7 = vcmp.gt.s32.totalorder %v3223_v41, 0  ;;  %2585 = vmatmul.mubr.msk.bf16.vlgmr.msra.gmra.mrb[0].mxu1 %vm542_vm1, %v859_v59  ;;  %vm4010_vm2 = vcmask 1043456  }
  0x9d   : > { %2673 = vmatpush3.bf16.msra.mxu0 %v1781_v47  ;;  %2660 = vmatprep.mubr.msk.bf16.mxu0 %vm542_vm1, %v1580_v49  ;;  %v3607_v9 = vsel %vm4009_vm7, %v3328_v58, 0.0  ;;  %v2401_v49 = vld [vmem:[%s3066_s21 + $0x88] sm:$0xff]  ;;  %vm4011_vm15 = vcmp.gt.s32.totalorder %v3243_v53, 0  ;;  %vm4012_vm12 = vcmp.gt.s32.totalorder %v3263_v61, 0  ;;  %vm4013_vm6 = vcmp.lt.s32.totalorder %v3361_v18, 15  ;;  %vm4015_vm7 = vmmov %vm4010_vm2 }
  0x9e   : > { %2847 = vmatprep.subr.msk.bf16.mxu0 %vm4010_vm2, %v3574_v20  ;;  %v3621_v56 = vsel %vm4011_vm15, %v3359_v36, 0.0  ;;  %v3626_v58 = vsel %vm4012_vm12, %v3376_v55, 0.0  ;;  %2601 = vmatpush3.bf16.msra.mxu1 %v1077_v6  ;;  %v851_v59 = vsel %vm4013_vm6, %v3305_v50, 0.0  ;;  %vm4014_vm3 = vcmp.gt.s32.totalorder %v3300_v33, 0 }
  0x9f   : > { %2588 = vmatprep.mubr.msk.bf16.mxu1 %vm542_vm1, %v860_v52  ;;  %v3637_v36 = vsel %vm4014_vm3, %v3413_v60, 0.0  ;;  %v3642_v55 = vsel %vm415_vm8, %v3416_v2, 0.0  ;;  %v1581_v6 = vpack.c.bf16 %v1569_v45, %v1568_v10  ;;  %v1582_v30 = vpack.c.bf16 %v1571_v63, %v1570_v51  ;;  %2843 = vmatprep.subr.msk.bf16.mxu1 %vm4015_vm7, %v3083_v14 }
  0xa0   : > { %v1583_v52 = vpack.c.bf16 %v3572_v7, %v3567_v57  ;;  %v1045_v47 = vpack.c.bf16 %v3642_v55, %v3637_v36  ;;  %v1574_v60 = vsel %vm420_vm5, %v2400_v13, 0.0  ;;  %v1575_v21 = vsel %vm421_vm14, %v2401_v49, 0.0  ;;  %v2427_v36 = vld [vmem:[%s3066_s21 + $0x91] sm:$0xff]  ;;  %v4044_v55 = vld [vmem:[#allocation15_spill] sm:$0xff] }
  0xa1   : > { %v861_v5 = vpack.c.bf16 %v849_v17, %v848_v15  ;;  %v3657_v2 = vsel %vm418_vm0, %v3468_v42, 0.0  ;;  %v862_v10 = vpack.c.bf16 %v851_v59, %v850_v4  ;;  %v3662_v14 = vsel %vm419_vm9, %v3472_v8, 0.0  ;;  %v2402_v59 = vld [vmem:[%s3066_s21 + $0x90] sm:$0xff] }
  0xa2   : > { %vm4016_vm8 = vcmp.lt.s32.totalorder %v3221_v39, 15  ;;  %vm4017_vm2 = vcmp.lt.s32.totalorder %v3223_v41, 15  ;;  %vm4018_vm0 = vcmp.lt.s32.totalorder %v3390_v12, 15  ;;  %vm4019_vm15 = vcmp.lt.s32.totalorder %v3396_v31, 15 }
  0xa3   : > { %v3667_v45 = vsel %vm4016_vm8, %v3235_v46, 0.0  ;;  %v3672_v17 = vsel %vm4017_vm2, %v3255_v25, 0.0  ;;  %v852_v42 = vsel %vm4018_vm0, %v3346_v19, 0.0  ;;  %v853_v8 = vsel %vm4019_vm15, %v3354_v27, 0.0 }
  0xa4   : > { %v1047_v51 = vpack.c.bf16 %v3662_v14, %v3657_v2  ;;  %v1931_v39 = vpack.c.bf16 %v3672_v17, %v3667_v45  ;;  %2661 = vmatmul.mubr.msk.bf16.gmra.mrb[4].mxu0 %vm542_vm1, %v1581_v6  ;;  %vm4020_vm9 = vcmp.lt.s32.totalorder %v3438_v43, 15  ;;  %vm4021_vm12 = vcmp.lt.s32.totalorder %v3243_v53, 15  ;;  %2589 = vmatmul.mubr.msk.bf16.gmra.mrb[4].mxu1 %vm542_vm1, %v861_v5  ;;  %v2403_v6 = vld [vmem:[%s3066_s21 + $0x98] sm:$0xff] }
  0xa5   : > { %v854_v41 = vsel %vm4020_vm9, %v3385_v0, 0.0  ;;  %v3691_v46 = vsel %vm4021_vm12, %v3292_v38, 0.0  ;;  %vm4022_vm6 = vcmp.lt.s32.totalorder %v3263_v61, 15  ;;  %v3700_v63 = vsel %vm422_vm4, %v2400_v13, 0.0  ;;  %2664 = vmatprep.mubr.msk.bf16.mxu0 %vm542_vm1, %v1582_v30  ;;  %v2452_v38 = vld [vmem:[%s3066_s21 + $0x92] sm:$0xff]  ;;  %2592 = vmatprep.mubr.msk.bf16.mxu1 %vm542_vm1, %v862_v10 }
  0xa6   : > { %v3696_v25 = vsel %vm4022_vm6, %v3305_v50, 0.0  ;;  %v3707_v7 = vsel %vm423_vm11, %v2401_v49, 0.0  ;;  %vm4023_vm3 = vcmp.lt.s32.totalorder %v3300_v33, 15  ;;  %vm4024_vm7 = vcmp.lt.s32.totalorder %v3307_v37, 15 }
  0xa7   : > { %v1932_v57 = vpack.c.bf16 %v3696_v25, %v3691_v46  ;;  %v3712_v53 = vsel %vm4023_vm3, %v3346_v19, 0.0  ;;  %v3717_v61 = vsel %vm4024_vm7, %v3354_v27, 0.0  ;;  %vm4025_vm8 = vcmp.lt.s32.totalorder %v3440_v44, 15  ;;  %v2453_v19 = vld [vmem:[%s3066_s21 + $0x9a] sm:$0xff]  ;;  %v2346_v44 = vld [vmem:[%s3066_s21 + $0x51] sm:$0xff] }
  0xa8   : > { %v855_v50 = vsel %vm4025_vm8, %v3394_v22, 0.0  ;;  %v1049_v15 = vpack.c.bf16 %v3707_v7, %v3700_v63  ;;  %v1933_v33 = vpack.c.bf16 %v3717_v61, %v3712_v53  ;;  %vm4026_vm2 = vcmp.lt.s32.totalorder %v3350_v29, 15  ;;  %vm4031_vm6 = vmmov %vm4025_vm8  ;;  %v3894_v7 = vld [vmem:[#allocation4] ss:$0 sm:$0xff] }
  0xa9   : > { %v3731_v37 = vsel %vm4026_vm2, %v3385_v0, 0.0  ;;  %vm4027_vm0 = vcmp.lt.s32.totalorder %v3361_v18, 15  ;;  %vm4028_vm15 = vcmp.lt.s32.totalorder %v3390_v12, 15  ;;  %vm4029_vm9 = vcmp.lt.s32.totalorder %v3396_v31, 15 }
  0xaa   : > { %v3738_v5 = vsel %vm4027_vm0, %v3394_v22, 0.0  ;;  %v3743_v27 = vsel %vm4028_vm15, %v3431_v16, 0.0  ;;  %v3748_v4 = vsel %vm4029_vm9, %v3434_v35, 0.0  ;;  %vm4030_vm12 = vcmp.lt.s32.totalorder %v3438_v43, 15  ;;  %v4048_v43 = vld [vmem:[#allocation13_spill] sm:$0xff] }
  0xab   : > { %v3753_v0 = vsel %vm4030_vm12, %v3475_v62, 0.0  ;;  %v1934_v13 = vpack.c.bf16 %v3738_v5, %v3731_v37  ;;  %v3762_v12 = vsel %vm4031_vm6, %v3480_v26, 0.0  ;;  %v3766_v31 = vsel %vm438_vm10, %v2452_v38, 0.0 }
  0xac   : > { %v1584_v49 = vpack.c.bf16 %v1575_v21, %v1574_v60  ;;  %v1936_v62 = vpack.c.bf16 %v3762_v12, %v3753_v0  ;;  %vm4032_vm3 = vcmp.lt.s32.totalorder %v3491_v54, 15  ;;  %v863_v10 = vpack.c.bf16 %v853_v8, %v852_v42  ;;  %2665 = vmatmul.mubr.msk.bf16.gmra.mrb[8].mxu0 %vm542_vm1, %v1583_v52 }
  0xad   : > { %v3772_v30 = vsel %vm4032_vm3, %v2453_v19, 0.0  ;;  %v864_v26 = vpack.c.bf16 %v855_v50, %v854_v41  ;;  %v1576_v21 = vsel %vm422_vm4, %v2402_v59, 0.0  ;;  %v1577_v60 = vsel %vm423_vm11, %v2403_v6, 0.0  ;;  %vm4033_vm7 = vmmov %vm4032_vm3  ;;  %v4045_v50 = vld [vmem:[#allocation11_spill] sm:$0xff] }
  0xae   : > { %v1937_v22 = vpack.c.bf16 %v3772_v30, %v3766_v31  ;;  %2668 = vmatprep.mubr.msk.bf16.mxu0 %vm542_vm1, %v1584_v49  ;;  %2593 = vmatmul.mubr.msk.bf16.gmra.mrb[8].mxu1 %vm542_vm1, %v863_v10  ;;  %v856_v42 = vsel %vm438_vm10, %v3431_v16, 0.0  ;;  %v857_v52 = vsel %vm4033_vm7, %v3434_v35, 0.0  ;;  %v1585_v8 = vpack.c.bf16 %v1577_v60, %v1576_v21  ;;  %v4036_v35 = vld [vmem:[#allocation9_spill] sm:$0xff]  ;;  %v4047_v31 = vld [vmem:[#allocation16_spill] sm:$0xff]  ;;  %v2347_v49 = vld [vmem:[%s3066_s21 + $0x59] sm:$0xff] }
  0xaf   : > { %2596 = vmatprep.mubr.msk.bf16.mxu1 %vm542_vm1, %v864_v26  ;;  %v865_v41 = vpack.c.bf16 %v857_v52, %v856_v42  ;;  %v4034_v38 = vpack.c.bf16 %v3597_v48, %v3588_v34  ;;  %vm4035_vm10 = vcmask 1043456   ;;  %v4039_v34 = vpack.c.bf16 %v3626_v58, %v3621_v56  ;;  %v4041_v48 = vld [vmem:[#allocation10_spill] sm:$0xff]  ;;  %v2426_v56 = vld [vmem:[%s3066_s21 + $0x89] sm:$0xff] }
  0xb0   : > { %v1965_v16 = vsel %vm4035_vm10, %v3574_v20, 0  ;;  %vm4040_vm4 = vcmp.gt.s32.totalorder %v3361_v18, 0  ;;  %v1038_v29 = vsel %vm420_vm5, %v3487_v11, 0.0  ;;  %v1039_v18 = vsel %vm421_vm14, %v3497_v24, 0.0  ;;  %v4043_v58 = vld [vmem:[#allocation14_spill] sm:$0xff] }
  0xb1   : > { %v1035_v54 = vsel %vm4040_vm4, %v3443_v3, 0.0  ;;  %v1048_v3 = vpack.c.bf16 %v1039_v18, %v1038_v29  ;;  %vm4049_vm5 = vcmp.lt.s32.totalorder %v4048_v43, 15  ;;  %v1214_v59 = vpack.c.bf16 %v2347_v49, %v2346_v44 }
  0xb2   : > { %v1915_v11 = vsel %vm4049_vm5, %v4047_v31, 0.0  ;;  %v4050_v2 = vpack.c.bf16 %v3748_v4, %v3743_v27 }
  0xb4   : > { %2669 = vmatmul.mubr.msk.bf16.gmra.mrb[12].mxu0 %vm542_vm1, %v1585_v8 }
  0xb5   : > { %2674 = vmatprep.mubr.msk.bf16.mxu0 %vm542_vm1, %v3117_v32  ;;  %v4037_v32 = vpack.c.bf16 %v3607_v9, %v3602_v23  ;;  %v4042_v23 = vld [vmem:[#allocation12_spill] sm:$0xff] }
  0xb6   : > { %2597 = vmatmul.mubr.msk.bf16.gmra.mrb[12].mxu1 %vm542_vm1, %v865_v41  ;;  %v2425_v9 = vld [vmem:[%s3066_s21 + $0x81] sm:$0xff] }
  0xb7   : > { %2602 = vmatprep.mubr.msk.bf16.mxu1 %vm542_vm1, %v4034_v38 }
  0xbc   : > { %2675 = vmatmul.mubr.msk.bf16.vlgmr.msra.gmra.mrb[0].mxu0 %vm542_vm1, %v3129_v40  ;;  %v1034_v40 = vsel %vm416_vm13, %v3428_v28, 0.0  ;;  %v1752_v28 = vpack.c.bf16 %v2426_v56, %v2425_v9  ;;  %vm4046_vm13 = vcmp.lt.s32.totalorder %v4045_v50, 15 }
  0xbd   : > { %2691 = vmatpush3.bf16.msra.mxu0 %v1965_v16  ;;  %2678 = vmatprep.mubr.msk.bf16.mxu0 %vm542_vm1, %v4036_v35  ;;  %v1046_v20 = vpack.c.bf16 %v1035_v54, %v1034_v40  ;;  %v1914_v19 = vsel %vm4046_vm13, %v4044_v55, 0.0 }
  0xbe   : > { %2603 = vmatmul.mubr.msk.bf16.vlgmr.msra.gmra.mrb[0].mxu1 %vm542_vm1, %v4037_v32  ;;  %v1930_v30 = vpack.c.bf16 %v1915_v11, %v1914_v19 }
  0xbf   : > { %2709 = vmatpush3.bf16.msra.mxu1 %v4038_v1  ;;  %2606 = vmatprep.mubr.msk.bf16.mxu1 %vm542_vm1, %v4039_v34 }
  0xc4   : > { %2679 = vmatmul.mubr.msk.bf16.gmra.mrb[4].mxu0 %vm542_vm1, %v4041_v48 }
  0xc5   : > { %2682 = vmatprep.mubr.msk.bf16.mxu0 %vm542_vm1, %v4042_v23 }
  0xc6   : > { %2607 = vmatmul.mubr.msk.bf16.gmra.mrb[4].mxu1 %vm542_vm1, %v1045_v47  ;;  %v2428_v47 = vld [vmem:[%s3066_s21 + $0x99] sm:$0xff] }
  0xc7   : > { %2610 = vmatprep.mubr.msk.bf16.mxu1 %vm542_vm1, %v1046_v20  ;;  %v1753_v24 = vpack.c.bf16 %v2428_v47, %v2427_v36 }
  0xcc   : > { %2683 = vmatmul.mubr.msk.bf16.gmra.mrb[8].mxu0 %vm542_vm1, %v4043_v58 }
  0xcd   : > { %2686 = vmatprep.mubr.msk.bf16.mxu0 %vm542_vm1, %v1752_v28 }
  0xce   : > { %2611 = vmatmul.mubr.msk.bf16.gmra.mrb[8].mxu1 %vm542_vm1, %v1047_v51 }
  0xcf   : > { %2614 = vmatprep.mubr.msk.bf16.mxu1 %vm542_vm1, %v1048_v3 }
  0xd4   : > { %2687 = vmatmul.mubr.msk.bf16.gmra.mrb[12].mxu0 %vm542_vm1, %v1753_v24 }
  0xd5   : > { %2692 = vmatprep.mubr.msk.bf16.mxu0 %vm542_vm1, %v1930_v30 }
  0xd6   : > { %2615 = vmatmul.mubr.msk.bf16.gmra.mrb[12].mxu1 %vm542_vm1, %v1049_v15 }
  0xd7   : > { %2628 = vmatprep.mubr.msk.bf16.mxu1 %vm542_vm1, %v1214_v59 }
  0xdc   : > { %2693 = vmatmul.mubr.msk.bf16.vlgmr.msra.gmra.mrb[0].mxu0 %vm542_vm1, %v1931_v39 }
  0xdd   : > { %2696 = vmatprep.mubr.msk.bf16.mxu0 %vm542_vm1, %v1932_v57 }
  0xde   : > { %2629 = vmatmul.mubr.msk.bf16.vlgmr.msra.gmra.mrb[8].mxu1 %vm542_vm1, %v4042_v23 }
  0xdf   : > { %2632 = vmatprep.mubr.msk.bf16.mxu1 %vm542_vm1, %v4043_v58 }
  0xe4   : > { %2697 = vmatmul.mubr.msk.bf16.gmra.mrb[4].mxu0 %vm542_vm1, %v1933_v33 }
  0xe5   : > { %2700 = vmatprep.mubr.msk.bf16.mxu0 %vm542_vm1, %v1934_v13 }
  0xe6   : > { %2633 = vmatmul.mubr.msk.bf16.gmra.mrb[12].mxu1 %vm542_vm1, %v1752_v28 }
  0xec   : > { %2701 = vmatmul.mubr.msk.bf16.gmra.mrb[8].mxu0 %vm542_vm1, %v4050_v2 }
  0xed   : > { %2704 = vmatprep.mubr.msk.bf16.mxu0 %vm542_vm1, %v1936_v62 }
  0xf4   : > { %2705 = vmatmul.mubr.msk.bf16.gmra.mrb[12].mxu0 %vm542_vm1, %v1937_v22 }
 0x191   : > { %v2604_v14 = vpop.f32.mrb[0].mxu1 }
 0x192   : > { %v1113_v45 = vpop.f32.mrb[1].mxu1 }
 0x193   : > { %v2605_v17 = vpop.f32.mrb[2].mxu1 }
 0x194   : > { %v1116_v51 = vpop.f32.mrb[3].mxu1 }
 0x199   : > { %v2608_v39 = vpop.f32.mrb[4].mxu1 }
 0x19a   : > { %v1129_v46 = vpop.f32.mrb[5].mxu1 }
 0x19b   : > { %v2609_v25 = vpop.f32.mrb[6].mxu1 }
 0x19c   : > { %v1132_v63 = vpop.f32.mrb[7].mxu1 }
 0x1af   : > { %v2694_v57 = vpop.f32.mrb[0].mxu0 }
 0x1b0   : > { %v2710_v53 = vadd.f32 %v2694_v57, %v2604_v14  ;;  %v2001_v61 = vpop.f32.mrb[1].mxu0 }
 0x1b1   : > { %v2711_v15 = vadd.f32 %v2001_v61, %v1113_v45  ;;  %v2695_v33 = vpop.f32.mrb[2].mxu0  ;;  %v2630_v37 = vpop.f32.mrb[8].mxu1 }
 0x1b2   : > { %v2089_v5 = vadd.f32 %v2710_v53, %v3894_v7  ;;  %v2712_v27 = vadd.f32 %v2695_v33, %v2605_v17  ;;  %v2004_v4 = vpop.f32.mrb[3].mxu0  ;;  %v1313_v0 = vpop.f32.mrb[9].mxu1 }
 0x1b3   : > { %v2087_v13 = vadd.f32 %v2711_v15, %v3894_v7  ;;  %v2713_v22 = vadd.f32 %v2004_v4, %v1116_v51  ;;  %v2631_v12 = vpop.f32.mrb[10].mxu1 }
 0x1b4   : > { %v2105_v62 = vmax.f32 %v2089_v5, 0.0  ;;  %v2090_v6 = vadd.f32 %v2712_v27, %v3894_v7  ;;  %v1316_v10 = vpop.f32.mrb[11].mxu1 }
 0x1b5   : > { %v2103_v26 = vmax.f32 %v2087_v13, 0.0  ;;  %v2088_v21 = vadd.f32 %v2713_v22, %v3894_v7 }
 0x1b6   : > { %2121 = vst [vmem:[%s3900_s13 + $0x10] sm:$0xff] %v2105_v62  ;;  %v2106_v60 = vmax.f32 %v2090_v6, 0.0 }
 0x1b7   : > { %2119 = vst [vmem:[%s3900_s13] sm:$0xff] %v2103_v26  ;;  %v2104_v42 = vmax.f32 %v2088_v21, 0.0  ;;  %v2698_v52 = vpop.f32.mrb[4].mxu0 }
 0x1b8   : > { %2122 = vst [vmem:[%s3900_s13 + $0x18] sm:$0xff] %v2106_v60  ;;  %v2714_v8 = vadd.f32 %v2698_v52, %v2608_v39  ;;  %v2017_v41 = vpop.f32.mrb[5].mxu0 }
 0x1b9   : > { %2120 = vst [vmem:[%s3900_s13 + $0x8] sm:$0xff] %v2104_v42  ;;  %v2715_v38 = vadd.f32 %v2017_v41, %v1129_v46  ;;  %v2699_v16 = vpop.f32.mrb[6].mxu0  ;;  %v2634_v35 = vpop.f32.mrb[12].mxu1 }
 0x1ba   : > { %v2093_v32 = vadd.f32 %v2714_v8, %v3894_v7  ;;  %v2716_v1 = vadd.f32 %v2699_v16, %v2609_v25  ;;  %v2020_v34 = vpop.f32.mrb[7].mxu0  ;;  %v1329_v40 = vpop.f32.mrb[13].mxu1 }
 0x1bb   : > { %v2091_v54 = vadd.f32 %v2715_v38, %v3894_v7  ;;  %v2717_v20 = vadd.f32 %v2020_v34, %v1132_v63  ;;  %v2635_v48 = vpop.f32.mrb[14].mxu1 }
 0x1bc   : > { %v2109_v23 = vmax.f32 %v2093_v32, 0.0  ;;  %v2094_v9 = vadd.f32 %v2716_v1, %v3894_v7  ;;  %v1332_v56 = vpop.f32.mrb[15].mxu1 }
 0x1bd   : > { %v2107_v29 = vmax.f32 %v2091_v54, 0.0  ;;  %v2092_v18 = vadd.f32 %v2717_v20, %v3894_v7 }
 0x1be   : > { %2125 = vst [vmem:[%s3900_s13 + $0x30] sm:$0xff] %v2109_v23  ;;  %v2110_v28 = vmax.f32 %v2094_v9, 0.0 }
 0x1bf   : > { %2123 = vst [vmem:[%s3900_s13 + $0x20] sm:$0xff] %v2107_v29  ;;  %v2108_v3 = vmax.f32 %v2092_v18, 0.0  ;;  %v2702_v58 = vpop.f32.mrb[8].mxu0 }
 0x1c0   : > { %2126 = vst [vmem:[%s3900_s13 + $0x38] sm:$0xff] %v2110_v28  ;;  %v2718_v36 = vadd.f32 %v2702_v58, %v2630_v37  ;;  %v2033_v47 = vpop.f32.mrb[9].mxu0 }
 0x1c1   : > { %2124 = vst [vmem:[%s3900_s13 + $0x28] sm:$0xff] %v2108_v3  ;;  %v2719_v55 = vadd.f32 %v2033_v47, %v1313_v0  ;;  %v2703_v50 = vpop.f32.mrb[10].mxu0 }
 0x1c2   : > { %v2097_v19 = vadd.f32 %v2718_v36, %v3894_v7  ;;  %v2720_v31 = vadd.f32 %v2703_v50, %v2631_v12  ;;  %v2036_v43 = vpop.f32.mrb[11].mxu0 }
 0x1c3   : > { %v2095_v11 = vadd.f32 %v2719_v55, %v3894_v7  ;;  %v2721_v24 = vadd.f32 %v2036_v43, %v1316_v10 }
 0x1c4   : > { %v2113_v44 = vmax.f32 %v2097_v19, 0.0  ;;  %v2098_v49 = vadd.f32 %v2720_v31, %v3894_v7 }
 0x1c5   : > { %v2111_v30 = vmax.f32 %v2095_v11, 0.0  ;;  %v2096_v59 = vadd.f32 %v2721_v24, %v3894_v7 }
 0x1c6   : > { %2129 = vst [vmem:[%s3900_s13 + $0x50] sm:$0xff] %v2113_v44  ;;  %v2114_v2 = vmax.f32 %v2098_v49, 0.0 }
 0x1c7   : > { %2127 = vst [vmem:[%s3900_s13 + $0x40] sm:$0xff] %v2111_v30  ;;  %v2112_v14 = vmax.f32 %v2096_v59, 0.0  ;;  %v2706_v45 = vpop.f32.mrb[12].mxu0 }
 0x1c8   : > { %2130 = vst [vmem:[%s3900_s13 + $0x58] sm:$0xff] %v2114_v2  ;;  %v2722_v17 = vadd.f32 %v2706_v45, %v2634_v35  ;;  %v2049_v51 = vpop.f32.mrb[13].mxu0 }
 0x1c9   : > { %2128 = vst [vmem:[%s3900_s13 + $0x48] sm:$0xff] %v2112_v14  ;;  %v2723_v39 = vadd.f32 %v2049_v51, %v1329_v40  ;;  %v2707_v46 = vpop.f32.mrb[14].mxu0 }
 0x1ca   : > { %v2101_v25 = vadd.f32 %v2722_v17, %v3894_v7  ;;  %v2724_v63 = vadd.f32 %v2707_v46, %v2635_v48  ;;  %v2052_v57 = vpop.f32.mrb[15].mxu0 }
 0x1cb   : > { %v2099_v53 = vadd.f32 %v2723_v39, %v3894_v7  ;;  %v2725_v61 = vadd.f32 %v2052_v57, %v1332_v56 }
 0x1cc   : > { %v2117_v15 = vmax.f32 %v2101_v25, 0.0  ;;  %v2102_v33 = vadd.f32 %v2724_v63, %v3894_v7 }
 0x1cd   : > { %v2115_v37 = vmax.f32 %v2099_v53, 0.0  ;;  %v2100_v5 = vadd.f32 %v2725_v61, %v3894_v7 }
 0x1ce   : > { %2133 = vst [vmem:[%s3900_s13 + $0x70] sm:$0xff] %v2117_v15  ;;  %v2118_v27 = vmax.f32 %v2102_v33, 0.0 }
 0x1cf   : > { %2131 = vst [vmem:[%s3900_s13 + $0x60] sm:$0xff] %v2115_v37  ;;  %v2116_v4 = vmax.f32 %v2100_v5, 0.0 }
 0x1d0   : > { %2134 = vst [vmem:[%s3900_s13 + $0x78] sm:$0xff] %v2118_v27 }
 0x1d1   : > { %2132 = vst [vmem:[%s3900_s13 + $0x68] sm:$0xff] %v2116_v4 }
 0x1d2 PF: > { %s15_s12 = sadd.s32 1, %s2949_s12  }
 0x1d3   : > { %p12_p9 = scmp.ge.s32.totalorder %s15_s12, 4  }
 0x1d5   :  { %14 = sbr.rel (!%p12_p9) target bundleno = 2 (0x2), region = 85 }
 0x1dc   :  { %2157 = vsyncpa [#allocation3], 1 }
 0x1dd   :  { %2159 = vsyncpa [#allocation3 + $0x1], 1 }
 0x1de   :  { %2160 = vsyncpa [#allocation5], 1 }

// kernel: faster_rcnn_forward.5
= control target key start
LH: loop header
LB: loop body
LE: loop exit
PB: predicated region body
PF: predicated region fallthrough
CT: control target
= control target key end

     0   :  { %s3933_s18 = smov 0   ;;  %s4996_s0 = inlined_call_operand.vmem [shape: f32[290,128], index: 0, kind: input, shape index: {}]   ;;  %s4997_s1 = inlined_call_operand.vmem [shape: bf16[9,128,32], index: 1, kind: input, shape index: {}]   ;;  %s4998_s2 = inlined_call_operand.vmem [shape: f32[1,32], index: 2, kind: input, shape index: {}]   ;;  %s4999_s3 = inlined_call_operand.vmem [shape: bf16[32,128], index: 3, kind: input, shape index: {}]   ;;  %s5000_s4 = inlined_call_operand.vmem [shape: f32[1,128], index: 4, kind: input, shape index: {}]   ;;  %s5001_s5 = inlined_call_operand.vmem [shape: f32[256,128], index: 5, kind: output, shape index: {}]  }
   0x1 LB: > { %s2706_s19 = sadd.s32 4294967295, %s3901_s18   ;;  %p2709_p0 = scmp.ge.s32.totalorder %s3901_s18, 1  ;;  %s3901_s18 = sphi %s3933_s18, %s15_s18  }
   0x2   : > { %p177_p1 = scmp.lt.s32.totalorder %s3901_s18, 3 }
   0x4   : > { %p178_p2 = pnand %p2709_p0, %p177_p1 }
   0x5   : > { %v3821_v0 = vld [vmem:[%s4997_s1 + $0x40] sm:$0xff] (!%p178_p2)   ;;  %v208_v1 = vlaneseq (!%p178_p2)  ;;  %v3823_v3 = vld [vmem:[%s4997_s1 + $0x48] sm:$0xff] (!%p178_p2)   ;;  %s2712_s26 = sshll.u32 (!%p178_p2), %s2706_s19, 7  ;;  %v3825_v7 = vld [vmem:[%s4997_s1 + $0x50] sm:$0xff] (!%p178_p2)   ;;  %s2710_s15 = sshll.u32 (!%p178_p2), %s2706_s19, 4 }
   0x6   : > { %181 = sbr.rel (%p178_p2) target bundleno = 633 (0x279), region = 40  ;;  %v3822_v2 = vld [vmem:[%s4997_s1 + $0x100] sm:$0xff] (!%p178_p2)   ;;  %3377 = vmatprep.subr.bf16.mxu1 (!%p178_p2), %v3821_v0  ;;  %v3824_v4 = vld [vmem:[%s4997_s1 + $0x108] sm:$0xff] (!%p178_p2)   ;;  %v3957_v6 = vstv (!%p178_p2), %s2712_s26  ;;  %v3826_v8 = vld [vmem:[%s4997_s1 + $0x110] sm:$0xff] (!%p178_p2)   ;;  %s3987_s20 = scalar_lea.vmem (!%p178_p2), %s4996_s0, %s2712_s26 }
   0x7   : > { %3505 = vmatprep.subr.bf16.mxu0 (!%p178_p2), %v3822_v2  ;;  %3378 = vmatpush3.bf16.msra.mxu1 (!%p178_p2), %v3821_v0  ;;  %v3955_v5 = vshrl.u32 (!%p178_p2), %v208_v1, 7  ;;  %v3827_v11 = vld [vmem:[%s4997_s1 + $0x58] sm:$0xff] (!%p178_p2)   ;;  %v3829_v16 = vld [vmem:[%s4997_s1 + $0x60] sm:$0xff] (!%p178_p2)   ;;  %v3831_v19 = vld [vmem:[%s4997_s1 + $0x68] sm:$0xff] (!%p178_p2)   ;;  %p201_p3 = scmp.lt.s32.totalorder (!%p178_p2), %s2710_s15, 31 }
   0x8   : > { %3506 = vmatpush3.bf16.msra.mxu0 (!%p178_p2), %v3822_v2  ;;  %3379 = vmatprep.subr.bf16.mxu1 (!%p178_p2), %v3823_v3  ;;  %v3828_v12 = vld [vmem:[%s4997_s1 + $0x118] sm:$0xff] (!%p178_p2)   ;;  %v3830_v17 = vld [vmem:[%s4997_s1 + $0x120] sm:$0xff] (!%p178_p2)   ;;  %v3832_v21 = vld [vmem:[%s4997_s1 + $0x128] sm:$0xff] (!%p178_p2)  }
   0x9   : > { %3507 = vmatprep.subr.bf16.mxu0 (!%p178_p2), %v3824_v4  ;;  %v226_v9 = vadd.s32 (!%p178_p2), %v3957_v6, %v3955_v5  ;;  %v210_v10 = vadd.s32 (!%p178_p2), 8, %v3955_v5  ;;  %v211_v15 = vadd.s32 (!%p178_p2), 16, %v3955_v5  ;;  %v212_v18 = vadd.s32 (!%p178_p2), 24, %v3955_v5  ;;  %v2730_v24 = vld [vmem:[%s3987_s20 + $0x1] sm:$0xff] (!%p178_p2)  ;;  %v2731_v25 = vld [vmem:[%s3987_s20 + $0x9] sm:$0xff] (!%p178_p2)  ;;  %v2933_v26 = vld [vmem:[%s3987_s20 + $0x11] sm:$0xff] (!%p178_p2) }
   0xa   : > { %v573_v27 = vpack.c.bf16 (!%p178_p2), %v2731_v25, %v2730_v24  ;;  %v2934_v28 = vld [vmem:[%s3987_s20 + $0x19] sm:$0xff] (!%p178_p2)  ;;  %v3833_v34 = vld [vmem:[%s4997_s1 + $0x70] sm:$0xff] (!%p178_p2)   ;;  %v213_v40 = vadd.s32 (!%p178_p2), 32, %v3955_v5  ;;  %v214_v42 = vadd.s32 (!%p178_p2), 40, %v3955_v5  ;;  %v215_v46 = vadd.s32 (!%p178_p2), 48, %v3955_v5  ;;  %v2935_v48 = vld [vmem:[%s3987_s20 + $0x21] sm:$0xff] (!%p178_p2) }
   0xb   : > { %3380 = vmatpush3.bf16.msra.mxu1 (!%p178_p2), %v3823_v3  ;;  %v243_v13 = vsub.s32 (!%p178_p2), 0, %v226_v9  ;;  %v3975_v14 = vadd.s32 (!%p178_p2), %v3957_v6, %v210_v10  ;;  %v3998_v23 = vadd.s32 (!%p178_p2), %v3957_v6, %v211_v15  ;;  %v4005_v29 = vadd.s32 (!%p178_p2), %v3957_v6, %v212_v18  ;;  %v3834_v35 = vld [vmem:[%s4997_s1 + $0x130] sm:$0xff] (!%p178_p2)   ;;  %v3835_v41 = vld [vmem:[%s4997_s1 + $0x78] sm:$0xff] (!%p178_p2)   ;;  %v3837_v47 = vld [vmem:[%s4997_s1] sm:$0xff] (!%p178_p2)  }
   0xc   : > { %3508 = vmatpush3.bf16.msra.mxu0 (!%p178_p2), %v3824_v4  ;;  %3381 = vmatprep.subr.bf16.mxu1 (!%p178_p2), %v3825_v7  ;;  %v4007_v30 = vpack.c.bf16 (!%p178_p2), %v2934_v28, %v2933_v26  ;;  %vm242_vm0 = vcmp.lt.s32.totalorder (!%p178_p2), %v226_v9, 0  ;;  %v3836_v43 = vld [vmem:[%s4997_s1 + $0x138] sm:$0xff] (!%p178_p2)   ;;  %v4038_v51 = vadd.s32 (!%p178_p2), %v3957_v6, %v213_v40  ;;  %v2936_v52 = vld [vmem:[%s3987_s20 + $0x29] sm:$0xff] (!%p178_p2)  ;;  %v4043_v53 = vadd.s32 (!%p178_p2), %v3957_v6, %v214_v42  ;;  %v3838_v54 = vld [vmem:[%s4997_s1 + $0x140] sm:$0xff] (!%p178_p2)  }
   0xd   : > { %3509 = vmatprep.subr.bf16.mxu0 %v3826_v8  ;;  %v2713_v20 = vmin.u32 %v243_v13, %v226_v9  ;;  %v250_v22 = vsub.s32 0, %v3975_v14  ;;  %3393 = vmatprep.mubr.bf16.mxu1 %v573_v27  ;;  %v257_v33 = vsub.s32 0, %v3998_v23  ;;  %v264_v36 = vsub.s32 0, %v4005_v29  ;;  %v2937_v55 = vld [vmem:[%s3987_s20 + $0x31] sm:$0xff]  ;;  %v2938_v57 = vld [vmem:[%s3987_s20 + $0x39] sm:$0xff]  ;;  %v3839_v0 = vld [vmem:[%s4997_s1 + $0x8] sm:$0xff]  }
   0xe   : > { %3521 = vmatprep.mubr.bf16.mxu0 %v4007_v30  ;;  %vm249_vm1 = vcmp.lt.s32.totalorder %v3975_v14, 0  ;;  %vm256_vm2 = vcmp.lt.s32.totalorder %v3998_v23, 0  ;;  %v4056_v59 = vadd.s32 %v3957_v6, %v215_v46  ;;  %v1379_v60 = vpack.c.bf16 %v2936_v52, %v2935_v48  ;;  %v3840_v1 = vld [vmem:[%s4997_s1 + $0x148] sm:$0xff]   ;;  %v3841_v9 = vld [vmem:[%s4997_s1 + $0x10] sm:$0xff]   ;;  %v4115_v27 = vld [vmem:[%s4997_s1 + $0x158] sm:$0xff]   ;;  %s5086_s15 = smov (!%p201_p3, %s2710_s15), 31 }
   0xf   : > { %3382 = vmatpush3.bf16.msra.mxu1 %v3825_v7  ;;  %v246_v31 = vand.u32 15, %v2713_v20  ;;  %v2714_v32 = vmin.u32 %v250_v22, %v3975_v14  ;;  %v2715_v39 = vmin.u32 %v257_v33, %v3998_v23  ;;  %v2716_v44 = vmin.u32 %v264_v36, %v4005_v29  ;;  %v3842_v18 = vld [vmem:[%s4997_s1 + $0x150] sm:$0xff]   ;;  %v4103_v20 = vld [vmem:[%s4997_s1 + $0x18] sm:$0xff]   ;;  %v2943_v28 = vld [vmem:[%s3987_s20 + $0x61] sm:$0xff]  ;;  %s2711_s16 = sshll.u32 %s5086_s15, 3 }
  0x10   : > { %3510 = vmatpush3.bf16.msra.mxu0 %v3826_v8  ;;  %3383 = vmatprep.subr.bf16.mxu1 %v3827_v11  ;;  %v271_v63 = vsub.s32 0, %v4038_v51  ;;  %vm263_vm5 = vcmp.lt.s32.totalorder %v4005_v29, 0  ;;  %v278_v2 = vsub.s32 0, %v4043_v53  ;;  %v216_v7 = vadd.s32 56, %v3955_v5  ;;  %v2942_v22 = vld [vmem:[%s3987_s20 + $0x59] sm:$0xff]  ;;  %v2944_v29 = vld [vmem:[%s3987_s20 + $0x69] sm:$0xff]  ;;  %s4975_s24 = scalar_lea.vmem %s5001_s5, %s2711_s16 }
  0x11   : > { %3511 = vmatprep.subr.bf16.mxu0 %v3828_v12  ;;  %v247_v37 = vsub.s32 0, %v246_v31  ;;  %v253_v38 = vand.u32 15, %v2714_v32  ;;  %v260_v50 = vand.u32 15, %v2715_v39  ;;  %v267_v56 = vand.u32 15, %v2716_v44  ;;  %v2946_v32 = vld [vmem:[%s3987_s20 + $0x79] sm:$0xff]  ;;  %v4125_v33 = vld [vmem:[%s3987_s20 + $0x81] sm:$0xff] }
  0x12   : > { %v2717_v4 = vmin.u32 %v271_v63, %v4038_v51  ;;  %v1380_v8 = vpack.c.bf16 %v2938_v57, %v2937_v55  ;;  %v4079_v10 = vmin.u32 %v278_v2, %v4043_v53  ;;  %v4088_v15 = vadd.s32 %v3957_v6, %v216_v7  ;;  %v4145_v40 = vld [vmem:[%s4997_s1 + $0x20] sm:$0xff]   ;;  %v4161_v44 = vld [vmem:[%s3987_s20 + $0x8] sm:$0xff]  ;;  %v2974_v55 = vld [vmem:[%s3987_s20 + $0x12] sm:$0xff] }
  0x13   : > { %3384 = vmatpush3.bf16.msra.mxu1 %v3827_v11  ;;  %v4029_v45 = vsel %vm242_vm0, %v247_v37, %v246_v31  ;;  %v254_v49 = vsub.s32 0, %v253_v38  ;;  %v261_v62 = vsub.s32 0, %v260_v50  ;;  %v268_v3 = vsub.s32 0, %v267_v56  ;;  %v4172_v48 = vld [vmem:[%s4997_s1 + $0x160] sm:$0xff]   ;;  %v470_v2 = vld [vmem:[%s3987_s20 + $0x18] sm:$0xff] }
  0x14   : > { %3512 = vmatpush3.bf16.msra.mxu0 %v3828_v12  ;;  %3385 = vmatprep.subr.bf16.mxu1 %v3829_v16  ;;  %vm354_vm3 = vcmp.ne.s32.totalorder %v4029_v45, 0  ;;  %vm370_vm4 = vcmp.lt.s32.totalorder %v4029_v45, 0  ;;  %v4053_v58 = vadd.s32 16, %v4029_v45  ;;  %v285_v11 = vsub.s32 0, %v4056_v59  ;;  %v2939_v12 = vld [vmem:[%s3987_s20 + $0x41] sm:$0xff] }
  0x15   : > { %3513 = vmatprep.subr.bf16.mxu0 %v3830_v17  ;;  %v4060_v61 = vsel %vm249_vm1, %v254_v49, %v253_v38  ;;  %v4085_v13 = vsel %vm256_vm2, %v261_v62, %v260_v50  ;;  %v274_v14 = vand.u32 15, %v2717_v4  ;;  %vm270_vm10 = vcmp.lt.s32.totalorder %v4038_v51, 0  ;;  %vm4131_vm11 = vmand %vm370_vm4, %vm354_vm3  ;;  %v4139_v38 = vld [vmem:[%s3987_s20 + $0x89] sm:$0xff] }
  0x16   : > { %vm355_vm6 = vcmp.ne.s32.totalorder %v4060_v61, 0  ;;  %vm371_vm7 = vcmp.lt.s32.totalorder %v4060_v61, 0  ;;  %v403_v23 = vadd.s32 16, %v4060_v61  ;;  %vm356_vm8 = vcmp.ne.s32.totalorder %v4085_v13, 0  ;;  %v3847_v4 = vld [vmem:[%s4997_s1 + $0x28] sm:$0xff]  }
  0x17   : > { %3386 = vmatpush3.bf16.msra.mxu1 %v3829_v16  ;;  %v2940_v16 = vld [vmem:[%s3987_s20 + $0x49] sm:$0xff]  ;;  %v275_v24 = vsub.s32 0, %v274_v14  ;;  %v4110_v25 = vmin.u32 %v285_v11, %v4056_v59  ;;  %vm372_vm9 = vcmp.lt.s32.totalorder %v4085_v13, 0  ;;  %v292_v31 = vsub.s32 0, %v4088_v15  ;;  %vm4153_vm14 = vmand %vm371_vm7, %vm355_vm6 }
  0x18   : > { %3514 = vmatpush3.bf16.msra.mxu0 %v3830_v17  ;;  %3387 = vmatprep.subr.bf16.mxu1 %v3831_v19  ;;  %v281_v17 = vand.u32 15, %v4079_v10  ;;  %v1381_v26 = vpack.c.bf16 %v2940_v16, %v2939_v12  ;;  %vm277_vm13 = vcmp.lt.s32.totalorder %v4043_v53, 0  ;;  %v217_v39 = vadd.s32 64, %v3955_v5  ;;  %vm4186_vm0 = vmand %vm372_vm9, %vm356_vm8  ;;  %v3848_v12 = vld [vmem:[%s4997_s1 + $0x168] sm:$0xff]  }
  0x19   : > { %3515 = vmatprep.subr.bf16.mxu0 %v3832_v21  ;;  %v4166_v46 = vsel %vm270_vm10, %v275_v24, %v274_v14  ;;  %v4180_v50 = vsel %vm4131_vm11, %v4053_v58, %v4029_v45  ;;  %v1385_v45 = vpack.c.bf16 %v4139_v38, %v4125_v33  ;;  %vm284_vm1 = vcmp.lt.s32.totalorder %v4056_v59, 0  ;;  %v4275_v14 = vld [vmem:[%s4997_s1 + $0x30] sm:$0xff]   ;;  %v471_v24 = vld [vmem:[%s3987_s20 + $0x20] sm:$0xff] }
  0x1a   : > { %v282_v36 = vsub.s32 0, %v281_v17  ;;  %vm291_vm2 = vcmp.lt.s32.totalorder %v4088_v15, 0  ;;  %vm358_vm4 = vcmp.ne.s32.totalorder %v4166_v46, 0  ;;  %v4224_v62 = vsel %vm4153_vm14, %v403_v23, %v4060_v61 }
  0x1b   : > { %3388 = vmatpush3.bf16.msra.mxu1 %v3831_v19  ;;  %v4098_v19 = vsel %vm263_vm5, %v268_v3, %v267_v56  ;;  %v2975_v56 = vld [vmem:[%s3987_s20 + $0x1a] sm:$0xff]  ;;  %vm374_vm5 = vcmp.lt.s32.totalorder %v4166_v46, 0  ;;  %vm434_vm6 = vcmp.gt.s32.totalorder %v4180_v50, 0  ;;  %v406_v3 = vadd.s32 16, %v4166_v46 }
  0x1c   : > { %3516 = vmatpush3.bf16.msra.mxu0 %v3832_v21  ;;  %3389 = vmatprep.subr.bf16.mxu1 %v3833_v34  ;;  %v2941_v21 = vld [vmem:[%s3987_s20 + $0x51] sm:$0xff]  ;;  %vm357_vm12 = vcmp.ne.s32.totalorder %v4098_v19, 0  ;;  %vm373_vm15 = vcmp.lt.s32.totalorder %v4098_v19, 0  ;;  %v405_v52 = vadd.s32 16, %v4098_v19  ;;  %v4201_v57 = vsel %vm277_vm13, %v282_v36, %v281_v17  ;;  %vm4253_vm9 = vmand %vm374_vm5, %vm358_vm4  ;;  %v2976_v17 = vld [vmem:[%s3987_s20 + $0x22] sm:$0xff] }
  0x1d   : > { %3517 = vmatprep.subr.bf16.mxu0 %v3834_v35  ;;  %v1382_v37 = vpack.c.bf16 %v2942_v22, %v2941_v21  ;;  %vm4212_vm3 = vmand %vm373_vm15, %vm357_vm12  ;;  %vm359_vm7 = vcmp.ne.s32.totalorder %v4201_v57, 0  ;;  %vm375_vm8 = vcmp.lt.s32.totalorder %v4201_v57, 0  ;;  %v218_v10 = vadd.s32 72, %v3955_v5  ;;  %v2977_v21 = vld [vmem:[%s3987_s20 + $0x2a] sm:$0xff] }
  0x1e   : > { %v4247_v7 = vsel %vm4212_vm3, %v405_v52, %v4098_v19  ;;  %vm435_vm10 = vcmp.gt.s32.totalorder %v4224_v62, 0  ;;  %vm450_vm11 = vcmp.lt.s32.totalorder %v4180_v50, 15  ;;  %v407_v59 = vadd.s32 16, %v4201_v57  ;;  %vm4285_vm13 = vmand %vm375_vm8, %vm359_vm7 }
  0x1f   : > { %3390 = vmatpush3.bf16.msra.mxu1 %v3833_v34  ;;  %vm451_vm12 = vcmp.lt.s32.totalorder %v4224_v62, 15  ;;  %vm437_vm15 = vcmp.gt.s32.totalorder %v4247_v7, 0  ;;  %v4298_v22 = vsel %vm4253_vm9, %v406_v3, %v4166_v46  ;;  %v220_v23 = vadd.s32 88, %v3955_v5  ;;  %v473_v3 = vld [vmem:[%s3987_s20 + $0x30] sm:$0xff] }
  0x20   : > { %3518 = vmatpush3.bf16.msra.mxu0 %v3834_v35  ;;  %3391 = vmatprep.subr.bf16.mxu1 %v3835_v41  ;;  %v404_v35 = vadd.s32 16, %v4085_v13  ;;  %vm453_vm4 = vcmp.lt.s32.totalorder %v4247_v7, 15  ;;  %vm438_vm8 = vcmp.gt.s32.totalorder %v4298_v22, 0  ;;  %v222_v33 = vadd.s32 104, %v3955_v5 }
  0x21   : > { %3519 = vmatprep.subr.bf16.mxu0 %v3836_v43  ;;  %v5040_v7 = vmov 0 }
  0x22   : > { %v4230_v63 = vsel %vm4186_vm0, %v404_v35, %v4085_v13  ;;  %v4269_v13 = vpack.c.bf16 %v2975_v56, %v2974_v55  ;;  %v4375_v55 = vld [vmem:[%s4997_s1 + $0x80] sm:$0xff]   ;;  %v2978_v56 = vld [vmem:[%s3987_s20 + $0x32] sm:$0xff] }
  0x23   : > { %3392 = vmatpush3.bf16.msra.mxu1 %v3835_v41  ;;  %v4147_v41 = vpack.c.bf16 %v2944_v29, %v2943_v28  ;;  %vm436_vm14 = vcmp.gt.s32.totalorder %v4230_v63, 0  ;;  %vm452_vm3 = vcmp.lt.s32.totalorder %v4230_v63, 15  ;;  %v3850_v29 = vld [vmem:[%s4997_s1 + $0x170] sm:$0xff]  }
  0x24   : > { %3520 = vmatpush3.bf16.msra.mxu0 %v3836_v43  ;;  %3409 = vmatprep.subr.bf16.mxu1 %v3837_v47  ;;  %v4158_v43 = vld [vmem:[%s3987_s20] sm:$0xff] }
  0x25   : > { %3537 = vmatprep.subr.bf16.mxu0 %v3838_v54  ;;  %v2779_v58 = vpack.c.bf16 %v4161_v44, %v4158_v43  ;;  %v4441_v44 = vld [vmem:[%s4997_s1 + $0x88] sm:$0xff]  }
  0x26   : > { %3394 = vmatmul.mubr.bf16.vlgmr.msra.gmra.mrb[0].mxu1 %v4007_v30  ;;  %v2945_v30 = vld [vmem:[%s3987_s20 + $0x71] sm:$0xff]  ;;  %v3113_v43 = vld [vmem:[%s3987_s20 + $0x69] sm:$0xff] }
  0x27   : > { %3522 = vmatmul.mubr.bf16.vlgmr.msra.gmra.mrb[0].mxu0 %v1379_v60  ;;  %3410 = vmatpush3.bf16.msra.mxu1 %v3837_v47  ;;  %v288_v47 = vand.u32 15, %v4110_v25  ;;  %v4174_v49 = vpack.c.bf16 %v2946_v32, %v2945_v30  ;;  %v472_v25 = vld [vmem:[%s3987_s20 + $0x28] sm:$0xff]  ;;  %v4321_v30 = vsel %vm4285_vm13, %v407_v59, %v4201_v57  ;;  %v2979_v57 = vld [vmem:[%s3987_s20 + $0x3a] sm:$0xff] }
  0x28   : > { %3538 = vmatpush3.bf16.msra.mxu0 %v3838_v54  ;;  %3411 = vmatprep.subr.bf16.mxu1 %v3839_v0  ;;  %v4192_v54 = vmin.u32 %v292_v31, %v4088_v15  ;;  %v4325_v31 = vpack.c.bf16 %v2977_v21, %v2976_v17  ;;  %v4460_v59 = vpack.c.bf16 %v2979_v57, %v2978_v56  ;;  %v475_v32 = vld [vmem:[%s3987_s20 + $0x40] sm:$0xff]  ;;  %v224_v56 = vadd.s32 120, %v3955_v5 }
  0x29   : > { %3539 = vmatprep.subr.bf16.mxu0 %v3840_v1  ;;  %3397 = vmatprep.mubr.bf16.mxu1 %v1379_v60  ;;  %v4219_v60 = vadd.s32 %v3957_v6, %v217_v39  ;;  %v4342_v39 = vpack.c.bf16 %v472_v25, %v471_v24  ;;  %v2981_v24 = vld [vmem:[%s3987_s20 + $0x4a] sm:$0xff] }
  0x2a   : > { %3525 = vmatprep.mubr.bf16.mxu0 %v1380_v8  ;;  %v295_v61 = vand.u32 15, %v4192_v54  ;;  %v221_v54 = vadd.s32 96, %v3955_v5 }
  0x2b   : > { %3412 = vmatpush3.bf16.msra.mxu1 %v3839_v0  ;;  %v289_v0 = vsub.s32 0, %v288_v47  ;;  %v299_v11 = vsub.s32 0, %v4219_v60  ;;  %vm298_vm13 = vcmp.lt.s32.totalorder %v4219_v60, 0 }
  0x2c   : > { %3540 = vmatpush3.bf16.msra.mxu0 %v3840_v1  ;;  %3413 = vmatprep.subr.bf16.mxu1 %v3841_v9  ;;  %v469_v1 = vld [vmem:[%s3987_s20 + $0x10] sm:$0xff]  ;;  %v296_v19 = vsub.s32 0, %v295_v61 }
  0x2d   : > { %3541 = vmatprep.subr.bf16.mxu0 %v3842_v18  ;;  %v4278_v16 = vpack.c.bf16 %v470_v2, %v469_v1  ;;  %v2721_v28 = vmin.u32 %v299_v11, %v4219_v60  ;;  %v4406_v60 = vld [vmem:[%s4997_s1 + $0x180] sm:$0xff]   ;;  %v3159_v2 = vld [vmem:[%s3987_s20 + $0x92] sm:$0xff] }
  0x2e   : > { %3398 = vmatmul.mubr.bf16.gmra.mrb[4].mxu1 %v1380_v8  ;;  %v3160_v11 = vld [vmem:[%s3987_s20 + $0x9a] sm:$0xff] }
  0x2f   : > { %3526 = vmatmul.mubr.bf16.gmra.mrb[4].mxu0 %v1381_v26  ;;  %3414 = vmatpush3.bf16.msra.mxu1 %v3841_v9  ;;  %v4259_v9 = vsel %vm284_vm1, %v289_v0, %v288_v47  ;;  %v302_v35 = vand.u32 15, %v2721_v28  ;;  %v3852_v47 = vld [vmem:[%s4997_s1 + $0x178] sm:$0xff]   ;;  %v3207_v21 = vpack.c.bf16 %v3160_v11, %v3159_v2 }
  0x30   : > { %3542 = vmatpush3.bf16.msra.mxu0 %v3842_v18  ;;  %3415 = vmatprep.subr.bf16.mxu1 %v4103_v20  ;;  %vm360_vm0 = vcmp.ne.s32.totalorder %v4259_v9, 0  ;;  %vm376_vm1 = vcmp.lt.s32.totalorder %v4259_v9, 0  ;;  %v408_v15 = vadd.s32 16, %v4259_v9 }
  0x31   : > { %3543 = vmatprep.subr.bf16.mxu0 %v4115_v27  ;;  %3401 = vmatprep.mubr.bf16.mxu1 %v1381_v26  ;;  %v297_v26 = vsel %vm291_vm2, %v296_v19, %v295_v61  ;;  %vm4331_vm2 = vmand %vm376_vm1, %vm360_vm0  ;;  %vm439_vm0 = vcmp.gt.s32.totalorder %v4321_v30, 0  ;;  %v303_v42 = vsub.s32 0, %v302_v35  ;;  %v474_v61 = vld [vmem:[%s3987_s20 + $0x38] sm:$0xff] }
  0x32   : > { %3529 = vmatprep.mubr.bf16.mxu0 %v1382_v37  ;;  %vm361_vm5 = vcmp.ne.s32.totalorder %v297_v26, 0  ;;  %vm377_vm7 = vcmp.lt.s32.totalorder %v297_v26, 0  ;;  %v409_v34 = vadd.s32 16, %v297_v26  ;;  %v4382_v53 = vsel %vm4331_vm2, %v408_v15, %v4259_v9 }
  0x33   : > { %3416 = vmatpush3.bf16.msra.mxu1 %v4103_v20  ;;  %v219_v20 = vadd.s32 80, %v3955_v5  ;;  %vm4344_vm9 = vmand %vm377_vm7, %vm361_vm5  ;;  %v304_v1 = vsel %vm298_vm13, %v303_v42, %v302_v35  ;;  %v4444_v9 = vadd.s32 %v3957_v6, %v221_v54  ;;  %v477_v54 = vld [vmem:[%s3987_s20 + $0x50] sm:$0xff] }
  0x34   : > { %3544 = vmatpush3.bf16.msra.mxu0 %v4115_v27  ;;  %3417 = vmatprep.subr.bf16.mxu1 %v4145_v40  ;;  %v4311_v27 = vadd.s32 %v3957_v6, %v218_v10  ;;  %vm4363_vm5 = vmpackc.low %vm435_vm10, %vm434_vm6  ;;  %v4386_v0 = vsel %vm4344_vm9, %v409_v34, %v297_v26  ;;  %vm362_vm2 = vcmp.ne.s32.totalorder %v304_v1, 0  ;;  %vm378_vm9 = vcmp.lt.s32.totalorder %v304_v1, 0  ;;  %v476_v34 = vld [vmem:[%s3987_s20 + $0x48] sm:$0xff] }
  0x35   : > { %3545 = vmatprep.subr.bf16.mxu0 %v4172_v48  ;;  %v4336_v36 = vadd.s32 %v3957_v6, %v219_v20  ;;  %vm4399_vm6 = vmpackc.low %vm451_vm12, %vm450_vm11  ;;  %v410_v50 = vadd.s32 16, %v304_v1  ;;  %vm440_vm11 = vcmp.gt.s32.totalorder %v4382_v53, 0  ;;  %vm441_vm12 = vcmp.gt.s32.totalorder %v4386_v0, 0 }
  0x36   : > { %3402 = vmatmul.mubr.bf16.gmra.mrb[8].mxu1 %v1382_v37  ;;  %v3851_v37 = vld [vmem:[%s4997_s1 + $0x38] sm:$0xff]   ;;  %v306_v46 = vsub.s32 0, %v4311_v27  ;;  %vm4422_vm7 = vmand %vm378_vm9, %vm362_vm2  ;;  %v223_v10 = vadd.s32 112, %v3955_v5  ;;  %v4481_v20 = vadd.s32 %v3957_v6, %v222_v33  ;;  %vm5043_vm2 = vcmp.lt.s32.totalorder %v4298_v22, 15  ;;  %v4500_v22 = vld [vmem:[%s4997_s1 + $0x90] sm:$0xff]  }
  0x37   : > { %3530 = vmatmul.mubr.bf16.gmra.mrb[8].mxu0 %v4147_v41  ;;  %3418 = vmatpush3.bf16.msra.mxu1 %v4145_v40  ;;  %v313_v51 = vsub.s32 0, %v4336_v36  ;;  %vm312_vm1 = vcmp.lt.s32.totalorder %v4336_v36, 0  ;;  %vm4434_vm10 = vmpackc.low %vm437_vm15, %vm436_vm14  ;;  %v4478_v18 = vsel %vm4422_vm7, %v410_v50, %v304_v1  ;;  %v327_v28 = vsub.s32 0, %v4444_v9  ;;  %v2983_v40 = vld [vmem:[%s3987_s20 + $0x5a] sm:$0xff] }
  0x38   : > { %3546 = vmatpush3.bf16.msra.mxu0 %v4172_v48  ;;  %3419 = vmatprep.subr.bf16.mxu1 %v3847_v4  ;;  %vm4451_vm14 = vmpackc.low %vm453_vm4, %vm452_vm3  ;;  %vm5042_vm4 = vcmp.lt.s32.totalorder %v4311_v27, 0  ;;  %v4556_v57 = vpack.c.bf16 %v476_v34, %v475_v32  ;;  %v5053_v5 = vmov 0  ;;  %v3864_v32 = vld [vmem:[%s4997_s1 + $0x1a8] sm:$0xff]   ;;  %v2987_v34 = vld [vmem:[%s3987_s20 + $0x7a] sm:$0xff] }
  0x39   : > { %3547 = vmatprep.subr.bf16.mxu0 %v3848_v12  ;;  %3405 = vmatprep.mubr.bf16.mxu1 %v4147_v41  ;;  %v4350_v41 = vadd.s32 %v3957_v6, %v220_v23  ;;  %vm4470_vm3 = vmpackc.low %vm439_vm0, %vm438_vm8  ;;  %vm5044_vm8 = vcmp.lt.s32.totalorder %v4321_v30, 15  ;;  %v2980_v23 = vld [vmem:[%s3987_s20 + $0x42] sm:$0xff]  ;;  %v4516_v30 = vld [vmem:[%s4997_s1 + $0x190] sm:$0xff]  }
  0x3a   : > { %3533 = vmatprep.mubr.bf16.mxu0 %v4174_v49  ;;  %v5041_v7 = vsel %vm4470_vm3, 4294967295, %v5040_v7  ;;  %vm4488_vm0 = vmpackc.low %vm5044_vm8, %vm5043_vm2  ;;  %v3110_v48 = vld [vmem:[%s3987_s20 + $0x51] sm:$0xff] }
  0x3b   : > { %3420 = vmatpush3.bf16.msra.mxu1 %v3847_v4  ;;  %v320_v52 = vsub.s32 0, %v4350_v41  ;;  %vm319_vm15 = vcmp.lt.s32.totalorder %v4350_v41, 0  ;;  %v4602_v4 = vld [vmem:[%s4997_s1 + $0xa0] sm:$0xff]  }
  0x3c   : > { %3548 = vmatpush3.bf16.msra.mxu0 %v3848_v12  ;;  %3421 = vmatprep.subr.bf16.mxu1 %v4275_v14  ;;  %v4458_v12 = vld [vmem:[%s4997_s1 + $0x188] sm:$0xff]  }
  0x3d   : > { %3549 = vmatprep.subr.bf16.mxu0 %v3850_v29  ;;  %v2724_v62 = vmin.u32 %v320_v52, %v4350_v41  ;;  %v5049_v52 = vmov 0 }
  0x3e   : > { %3406 = vmatmul.mubr.bf16.gmra.mrb[12].mxu1 %v4174_v49  ;;  %v2722_v49 = vmin.u32 %v306_v46, %v4311_v27 }
  0x3f   : > { %3534 = vmatmul.mubr.bf16.gmra.mrb[12].mxu0 %v1385_v45  ;;  %3422 = vmatpush3.bf16.msra.mxu1 %v4275_v14  ;;  %v2723_v45 = vmin.u32 %v313_v51, %v4336_v36  ;;  %v4462_v14 = vpack.c.bf16 %v474_v61, %v473_v3  ;;  %v323_v63 = vand.u32 15, %v2724_v62  ;;  %v4524_v36 = vpack.c.bf16 %v2981_v24, %v2980_v23  ;;  %v3859_v3 = vld [vmem:[%s4997_s1 + $0x98] sm:$0xff]   ;;  %v479_v23 = vld [vmem:[%s3987_s20 + $0x60] sm:$0xff]  ;;  %v480_v24 = vld [vmem:[%s3987_s20 + $0x68] sm:$0xff] }
  0x40   : > { %3550 = vmatpush3.bf16.msra.mxu0 %v3850_v29  ;;  %3423 = vmatprep.subr.bf16.mxu1 %v3851_v37  ;;  %v309_v38 = vand.u32 15, %v2722_v49  ;;  %v4507_v29 = vadd.s32 %v3957_v6, %v223_v10  ;;  %v334_v51 = vsub.s32 0, %v4481_v20  ;;  %v5058_v10 = vmov 0 }
  0x41   : > { %3551 = vmatprep.subr.bf16.mxu0 %v3852_v47  ;;  %3425 = vmatprep.mubr.msk.bf16.mxu1 %vm4363_vm5, %v2779_v58  ;;  %v316_v8 = vand.u32 15, %v2723_v45  ;;  %v324_v26 = vsub.s32 0, %v323_v63 }
  0x42   : > { %3553 = vmatprep.mubr.msk.bf16.mxu0 %vm4399_vm6, %v4269_v13  ;;  %v310_v58 = vsub.s32 0, %v309_v38  ;;  %v2726_v49 = vmin.u32 %v334_v51, %v4481_v20  ;;  %v481_v51 = vld [vmem:[%s3987_s20 + $0x70] sm:$0xff] }
  0x43   : > { %3424 = vmatpush3.bf16.msra.mxu1 %v3851_v37  ;;  %v317_v19 = vsub.s32 0, %v316_v8  ;;  %v325_v35 = vsel %vm319_vm15, %v324_v26, %v323_v63  ;;  %v2982_v37 = vld [vmem:[%s3987_s20 + $0x52] sm:$0xff]  ;;  %v3862_v63 = vld [vmem:[%s4997_s1 + $0x1a0] sm:$0xff]  }
  0x44   : > { %3552 = vmatpush3.bf16.msra.mxu0 %v3852_v47  ;;  %3441 = vmatprep.subr.bf16.mxu1 %v4375_v55  ;;  %v311_v17 = vsel %vm5042_vm4, %v310_v58, %v309_v38  ;;  %v413_v46 = vadd.s32 16, %v325_v35  ;;  %v2725_v47 = vmin.u32 %v327_v28, %v4444_v9  ;;  %v4578_v38 = vadd.s32 %v3957_v6, %v224_v56 }
  0x45   : > { %3569 = vmatprep.subr.bf16.mxu0 %v4406_v60  ;;  %vm363_vm9 = vcmp.ne.s32.totalorder %v311_v17, 0  ;;  %vm379_vm7 = vcmp.lt.s32.totalorder %v311_v17, 0  ;;  %v411_v25 = vadd.s32 16, %v311_v17  ;;  %v318_v27 = vsel %vm312_vm1, %v317_v19, %v316_v8 }
  0x46   : > { %3426 = vmatmul.mubr.msk.bf16.vlgmr.msra.gmra.mrb[0].mxu1 %vm4434_vm10, %v4278_v16  ;;  %vm395_vm2 = vmand %vm379_vm7, %vm363_vm9  ;;  %vm364_vm1 = vcmp.ne.s32.totalorder %v318_v27, 0  ;;  %vm380_vm8 = vcmp.lt.s32.totalorder %v318_v27, 0  ;;  %vm365_vm7 = vcmp.ne.s32.totalorder %v325_v35, 0  ;;  %v412_v42 = vadd.s32 16, %v318_v27 }
  0x47   : > { %3554 = vmatmul.mubr.msk.bf16.vlgmr.msra.gmra.mrb[0].mxu0 %vm4451_vm14, %v4325_v31  ;;  %3442 = vmatpush3.bf16.msra.mxu1 %v4375_v55  ;;  %v427_v15 = vsel %vm395_vm2, %v411_v25, %v311_v17  ;;  %vm381_vm2 = vcmp.lt.s32.totalorder %v325_v35, 0  ;;  %vm4533_vm15 = vmand %vm380_vm8, %vm364_vm1  ;;  %vm458_vm8 = vcmp.lt.s32.totalorder %v4478_v18, 15  ;;  %v478_v55 = vld [vmem:[%s3987_s20 + $0x58] sm:$0xff]  ;;  %v330_v1 = vand.u32 15, %v2725_v47 }
  0x48   : > { %3570 = vmatpush3.bf16.msra.mxu0 %v4406_v60  ;;  %3443 = vmatprep.subr.bf16.mxu1 %v4441_v44  ;;  %vm4546_vm9 = vmpackc.low %vm441_vm12, %vm440_vm11  ;;  %vm443_vm1 = vcmp.gt.s32.totalorder %v427_v15, 0  ;;  %v341_v60 = vsub.s32 0, %v4507_v29  ;;  %vm5051_vm11 = vcmp.lt.s32.totalorder %v4382_v53, 15  ;;  %vm5052_vm12 = vcmp.lt.s32.totalorder %v4386_v0, 15  ;;  %v3860_v53 = vld [vmem:[%s4997_s1 + $0x198] sm:$0xff]  }
  0x49   : > { %3571 = vmatprep.subr.bf16.mxu0 %v4458_v12  ;;  %3429 = vmatprep.mubr.msk.bf16.mxu1 %vm4470_vm3, %v4342_v39  ;;  %v5050_v52 = vsel %vm4546_vm9, 4294967295, %v5049_v52  ;;  %vm397_vm13 = vmand %vm381_vm2, %vm365_vm7  ;;  %vm459_vm7 = vcmp.lt.s32.totalorder %v427_v15, 15  ;;  %v428_v61 = vsel %vm4533_vm15, %v412_v42, %v318_v27  ;;  %v4584_v0 = vpack.c.bf16 %v2983_v40, %v2982_v37  ;;  %v3863_v27 = vld [vmem:[%s4997_s1 + $0xa8] sm:$0xff]  }
  0x4a   : > { %3557 = vmatprep.mubr.msk.bf16.mxu0 %vm4488_vm0, %v4460_v59  ;;  %vm4568_vm4 = vmpackc.low %vm5052_vm12, %vm5051_vm11  ;;  %v429_v33 = vsel %vm397_vm13, %v413_v46, %v325_v35  ;;  %v331_v50 = vsub.s32 0, %v330_v1  ;;  %v337_v45 = vand.u32 15, %v2726_v49  ;;  %vm5055_vm13 = vcmp.gt.s32.totalorder %v4478_v18, 0  ;;  %v2988_v49 = vld [vmem:[%s3987_s20 + $0x82] sm:$0xff] }
  0x4b   : > { %3444 = vmatpush3.bf16.msra.mxu1 %v4441_v44  ;;  %v5054_v5 = vsel %vm4568_vm4, 4294967295, %v5053_v5  ;;  %vm4593_vm15 = vmpackc.low %vm443_vm1, %vm5055_vm13  ;;  %v5056_v6 = vmov 0  ;;  %v4597_v62 = vpack.c.bf16 %v478_v55, %v477_v54  ;;  %v2984_v44 = vld [vmem:[%s3987_s20 + $0x62] sm:$0xff]  ;;  %v2727_v58 = vmin.u32 %v341_v60, %v4507_v29  ;;  %v482_v54 = vld [vmem:[%s3987_s20 + $0x78] sm:$0xff] }
  0x4c   : > { %3572 = vmatpush3.bf16.msra.mxu0 %v4458_v12  ;;  %3445 = vmatprep.subr.bf16.mxu1 %v4500_v22  ;;  %v5057_v6 = vsel %vm4593_vm15, 4294967295, %v5056_v6  ;;  %v348_v8 = vsub.s32 0, %v4578_v38  ;;  %vm4615_vm1 = vmpackc.low %vm459_vm7, %vm458_vm8  ;;  %vm444_vm12 = vcmp.gt.s32.totalorder %v428_v61, 0  ;;  %v2985_v12 = vld [vmem:[%s3987_s20 + $0x6a] sm:$0xff]  ;;  %vm5060_vm11 = vcmp.lt.s32.totalorder %v4444_v9, 0  ;;  %v3892_v55 = vld [vmem:[%s4997_s1 + $0x238] sm:$0xff]  }
  0x4d   : > { %3573 = vmatprep.subr.bf16.mxu0 %v4516_v30  ;;  %v5059_v10 = vsel %vm4615_vm1, 4294967295, %v5058_v10  ;;  %v332_v17 = vsel %vm5060_vm11, %v331_v50, %v330_v1  ;;  %v338_v19 = vsub.s32 0, %v337_v45  ;;  %v344_v25 = vand.u32 15, %v2727_v58  ;;  %v2989_v60 = vld [vmem:[%s3987_s20 + $0x8a] sm:$0xff] }
  0x4e   : > { %3430 = vmatmul.mubr.msk.bf16.gmra.mrb[4].mxu1 %vm4546_vm9, %v4462_v14  ;;  %vm366_vm2 = vcmp.ne.s32.totalorder %v332_v17, 0  ;;  %vm382_vm9 = vcmp.lt.s32.totalorder %v332_v17, 0  ;;  %v414_v18 = vadd.s32 16, %v332_v17  ;;  %vm460_vm8 = vcmp.lt.s32.totalorder %v428_v61, 15  ;;  %v2804_v58 = vld [vmem:[%s3987_s20 + $0xa] sm:$0xff] }
  0x4f   : > { %3558 = vmatmul.mubr.msk.bf16.gmra.mrb[4].mxu0 %vm4568_vm4, %v4524_v36  ;;  %3446 = vmatpush3.bf16.msra.mxu1 %v4500_v22  ;;  %vm5061_vm11 = vcmp.lt.s32.totalorder %v4481_v20, 0  ;;  %vm398_vm13 = vmand %vm382_vm9, %vm366_vm2  ;;  %v2728_v26 = vmin.u32 %v348_v8, %v4578_v38  ;;  %vm5062_vm4 = vcmp.gt.s32.totalorder %v429_v33, 0  ;;  %v5063_v22 = vmov 0 }
  0x50   : > { %3574 = vmatpush3.bf16.msra.mxu0 %v4516_v30  ;;  %3447 = vmatprep.subr.bf16.mxu1 %v3859_v3  ;;  %v339_v9 = vsel %vm5061_vm11, %v338_v19, %v337_v45  ;;  %vm4639_vm3 = vmpackc.low %vm5062_vm4, %vm444_vm12  ;;  %v430_v28 = vsel %vm398_vm13, %v414_v18, %v332_v17  ;;  %v2986_v30 = vld [vmem:[%s3987_s20 + $0x72] sm:$0xff]  ;;  %v4647_v15 = vpack.c.bf16 %v2985_v12, %v2984_v44  ;;  %v345_v35 = vsub.s32 0, %v344_v25  ;;  %v2803_v44 = vld [vmem:[%s3987_s20 + $0x2] sm:$0xff] }
  0x51   : > { %3575 = vmatprep.subr.bf16.mxu0 %v3860_v53  ;;  %3433 = vmatprep.mubr.msk.bf16.mxu1 %vm4593_vm15, %v4556_v57  ;;  %v5064_v22 = vsel %vm4639_vm3, 4294967295, %v5063_v22  ;;  %vm367_vm7 = vcmp.ne.s32.totalorder %v339_v9, 0  ;;  %vm383_vm11 = vcmp.lt.s32.totalorder %v339_v9, 0  ;;  %v415_v20 = vadd.s32 16, %v339_v9  ;;  %v3868_v17 = vld [vmem:[%s4997_s1 + $0x1b8] sm:$0xff]   ;;  %v3869_v18 = vld [vmem:[%s4997_s1 + $0xc0] sm:$0xff]  }
  0x52   : > { %3561 = vmatprep.mubr.msk.bf16.mxu0 %vm4615_vm1, %v4584_v0  ;;  %vm399_vm4 = vmand %vm383_vm11, %vm367_vm7  ;;  %v351_v37 = vand.u32 15, %v2728_v26  ;;  %vm5065_vm2 = vcmp.lt.s32.totalorder %v429_v33, 15  ;;  %v4660_v42 = vpack.c.bf16 %v480_v24, %v479_v23  ;;  %vm462_vm13 = vcmp.lt.s32.totalorder %v430_v28, 15  ;;  %v3870_v23 = vld [vmem:[%s4997_s1 + $0x1c0] sm:$0xff]   ;;  %v3871_v24 = vld [vmem:[%s4997_s1 + $0xc8] sm:$0xff]  }
  0x53   : > { %3448 = vmatpush3.bf16.msra.mxu1 %v3859_v3  ;;  %vm4656_vm12 = vmpackc.low %vm5065_vm2, %vm460_vm8  ;;  %v431_v41 = vsel %vm399_vm4, %v415_v20, %v339_v9  ;;  %vm5068_vm15 = vcmp.lt.s32.totalorder %v4507_v29, 0  ;;  %vm5069_vm8 = vcmp.gt.s32.totalorder %v430_v28, 0  ;;  %v4675_v56 = vpack.c.bf16 %v2987_v34, %v2986_v30  ;;  %v3865_v29 = vld [vmem:[%s4997_s1 + $0xb0] sm:$0xff]   ;;  %v3875_v26 = vld [vmem:[%s4997_s1 + $0xd8] sm:$0xff]  }
  0x54   : > { %3576 = vmatpush3.bf16.msra.mxu0 %v3860_v53  ;;  %3449 = vmatprep.subr.bf16.mxu1 %v4602_v4  ;;  %vm447_vm11 = vcmp.gt.s32.totalorder %v431_v41, 0  ;;  %vm463_vm9 = vcmp.lt.s32.totalorder %v431_v41, 15  ;;  %v346_v46 = vsel %vm5068_vm15, %v345_v35, %v344_v25  ;;  %v352_v47 = vsub.s32 0, %v351_v37  ;;  %v3866_v53 = vld [vmem:[%s4997_s1 + $0x1b0] sm:$0xff]   ;;  %v3872_v25 = vld [vmem:[%s4997_s1 + $0x1c8] sm:$0xff]   ;;  %v3051_v20 = vld [vmem:[%s3987_s20 + $0x80] sm:$0xff] }
  0x55   : > { %3577 = vmatprep.subr.bf16.mxu0 %v3862_v63  ;;  %vm4671_vm4 = vmpackc.low %vm447_vm11, %vm5069_vm8  ;;  %vm368_vm2 = vcmp.ne.s32.totalorder %v346_v46, 0  ;;  %vm384_vm7 = vcmp.lt.s32.totalorder %v346_v46, 0  ;;  %v416_v1 = vadd.s32 16, %v346_v46  ;;  %vm5074_vm11 = vcmp.lt.s32.totalorder %v4578_v38, 0  ;;  %v3873_v9 = vld [vmem:[%s4997_s1 + $0xd0] sm:$0xff]   ;;  %v3052_v28 = vld [vmem:[%s3987_s20 + $0x88] sm:$0xff] }
  0x56   : > { %3434 = vmatmul.mubr.msk.bf16.gmra.mrb[8].mxu1 %vm4639_vm3, %v4597_v62  ;;  %vm4688_vm15 = vmpackc.low %vm463_vm9, %vm462_vm13  ;;  %v353_v61 = vsel %vm5074_vm11, %v352_v47, %v351_v37  ;;  %v4703_v45 = vpack.c.bf16 %v482_v54, %v481_v51  ;;  %v4710_v8 = vpack.c.bf16 %v2989_v60, %v2988_v49  ;;  %v2844_v19 = vpack.c.bf16 %v2804_v58, %v2803_v44  ;;  %v3879_v30 = vld [vmem:[%s4997_s1 + $0xe8] sm:$0xff]   ;;  %v3881_v35 = vld [vmem:[%s4997_s1 + $0xf0] sm:$0xff]  }
  0x57   : > { %3562 = vmatmul.mubr.msk.bf16.gmra.mrb[8].mxu0 %vm4656_vm12, %v4647_v15  ;;  %3450 = vmatpush3.bf16.msra.mxu1 %v4602_v4  ;;  %vm369_vm8 = vcmp.ne.s32.totalorder %v353_v61, 0  ;;  %vm385_vm3 = vcmp.lt.s32.totalorder %v353_v61, 0  ;;  %vm400_vm1 = vmand %vm384_vm7, %vm368_vm2  ;;  %v417_v33 = vadd.s32 16, %v353_v61  ;;  %v3867_v4 = vld [vmem:[%s4997_s1 + $0xb8] sm:$0xff]   ;;  %v4799_v34 = vpack.c.bf16 %v3052_v28, %v3051_v20  ;;  %v3053_v37 = vld [vmem:[%s3987_s20 + $0x90] sm:$0xff] }
  0x58   : > { %3578 = vmatpush3.bf16.msra.mxu0 %v3862_v63  ;;  %3451 = vmatprep.subr.bf16.mxu1 %v3863_v27  ;;  %vm401_vm9 = vmand %vm385_vm3, %vm369_vm8  ;;  %v432_v38 = vsel %vm400_vm1, %v416_v1, %v346_v46  ;;  %vm5079_vm8 = vnez %v5041_v7  ;;  %v3054_v41 = vld [vmem:[%s3987_s20 + $0x98] sm:$0xff]  ;;  %v3882_v46 = vld [vmem:[%s4997_s1 + $0x1f0] sm:$0xff]  }
  0x59   : > { %3579 = vmatprep.subr.bf16.mxu0 %v3864_v32  ;;  %3437 = vmatprep.mubr.msk.bf16.mxu1 %vm4671_vm4, %v4660_v42  ;;  %v433_v50 = vsel %vm401_vm9, %v417_v33, %v353_v61  ;;  %vm448_vm13 = vcmp.gt.s32.totalorder %v432_v38, 0  ;;  %vm464_vm7 = vcmp.lt.s32.totalorder %v432_v38, 15  ;;  %vm5080_vm9 = vnez %v5054_v5  ;;  %v3104_v51 = vld [vmem:[%s3987_s20 + $0x21] sm:$0xff]  ;;  %v3105_v54 = vld [vmem:[%s3987_s20 + $0x29] sm:$0xff]  ;;  %v3883_v1 = vld [vmem:[%s4997_s1 + $0xf8] sm:$0xff]  }
  0x5a   : > { %3565 = vmatprep.mubr.msk.bf16.mxu0 %vm4688_vm15, %v4675_v56  ;;  %vm449_vm2 = vcmp.gt.s32.totalorder %v433_v50, 0  ;;  %vm465_vm11 = vcmp.lt.s32.totalorder %v433_v50, 15  ;;  %v3101_v47 = vpack.c.bf16 %v3054_v41, %v3053_v37  ;;  %v2022_v49 = vpack.c.bf16 %v3105_v54, %v3104_v51  ;;  %v3106_v60 = vld [vmem:[%s3987_s20 + $0x31] sm:$0xff]  ;;  %v3107_v61 = vld [vmem:[%s3987_s20 + $0x39] sm:$0xff]  ;;  %v3109_v38 = vld [vmem:[%s3987_s20 + $0x49] sm:$0xff] }
  0x5b   : > { %3452 = vmatpush3.bf16.msra.mxu1 %v3863_v27  ;;  %vm4712_vm3 = vmpackc.low %vm449_vm2, %vm448_vm13  ;;  %vm5081_vm13 = vnez %v5050_v52  ;;  %v3877_v27 = vld [vmem:[%s4997_s1 + $0xe0] sm:$0xff]   ;;  %vm5083_vm2 = vnez %v5057_v6  ;;  %v2023_v50 = vpack.c.bf16 %v3107_v61, %v3106_v60  ;;  %v3887_v58 = vld [vmem:[%s4997_s1 + $0x210] sm:$0xff]  }
  0x5c   : > { %3580 = vmatpush3.bf16.msra.mxu0 %v3864_v32  ;;  %3453 = vmatprep.subr.bf16.mxu1 %v3865_v29  ;;  %vm4716_vm1 = vmpackc.low %vm465_vm11, %vm464_vm7  ;;  %vm5082_vm7 = vnez %v5059_v10  ;;  %v3880_v32 = vld [vmem:[%s4997_s1 + $0x1e8] sm:$0xff]   ;;  %vm5084_vm11 = vnez %v5064_v22  ;;  %v3885_v33 = vld [vmem:[%s4997_s1 + $0x200] sm:$0xff]  }
  0x5d   : > { %3581 = vmatprep.subr.bf16.mxu0 %v3866_v53  ;;  %v3111_v44 = vld [vmem:[%s3987_s20 + $0x59] sm:$0xff]  ;;  %v3114_v7 = vld [vmem:[%s3987_s20 + $0x71] sm:$0xff]  ;;  %v3117_v52 = vld [vmem:[%s3987_s20 + $0x89] sm:$0xff] }
  0x5e   : > { %3438 = vmatmul.mubr.msk.bf16.gmra.mrb[12].mxu1 %vm4712_vm3, %v4703_v45  ;;  %v3890_v6 = vld [vmem:[%s4997_s1 + $0x228] sm:$0xff]  }
  0x5f   : > { %3566 = vmatmul.mubr.msk.bf16.gmra.mrb[12].mxu0 %vm4716_vm1, %v4710_v8  ;;  %3454 = vmatpush3.bf16.msra.mxu1 %v3865_v29  ;;  %v3884_v29 = vld [vmem:[%s4997_s1 + $0x1f8] sm:$0xff]   ;;  %v3894_v5 = vld [vmem:[%s4999_s3 + $0x8] sm:$0xff]  }
  0x60   : > { %3582 = vmatpush3.bf16.msra.mxu0 %v3866_v53  ;;  %3455 = vmatprep.subr.bf16.mxu1 %v3867_v4  ;;  %v3108_v53 = vld [vmem:[%s3987_s20 + $0x41] sm:$0xff] }
  0x61   : > { %3583 = vmatprep.subr.bf16.mxu0 %v3868_v17  ;;  %3457 = vmatprep.mubr.msk.bf16.mxu1 %vm4399_vm6, %v2844_v19 }
  0x62   : > { %3585 = vmatprep.mubr.msk.bf16.mxu0 %vm4363_vm5, %v4342_v39 }
  0x63   : > { %3456 = vmatpush3.bf16.msra.mxu1 %v3867_v4  ;;  %v2024_v4 = vpack.c.bf16 %v3109_v38, %v3108_v53 }
  0x64   : > { %3584 = vmatpush3.bf16.msra.mxu0 %v3868_v17  ;;  %3473 = vmatprep.subr.bf16.mxu1 %v3869_v18  ;;  %v3112_v17 = vld [vmem:[%s3987_s20 + $0x61] sm:$0xff] }
  0x65   : > { %3601 = vmatprep.subr.bf16.mxu0 %v3870_v23  ;;  %v2026_v19 = vpack.c.bf16 %v3113_v43, %v3112_v17 }
  0x66   : > { %3458 = vmatmul.mubr.msk.bf16.vlgmr.msra.gmra.mrb[0].mxu1 %vm4451_vm14, %v4269_v13  ;;  %v3874_v13 = vld [vmem:[%s4997_s1 + $0x1d0] sm:$0xff]  }
  0x67   : > { %3586 = vmatmul.mubr.msk.bf16.vlgmr.msra.gmra.mrb[0].mxu0 %vm4434_vm10, %v4462_v14  ;;  %3474 = vmatpush3.bf16.msra.mxu1 %v3869_v18  ;;  %v3115_v18 = vld [vmem:[%s3987_s20 + $0x79] sm:$0xff] }
  0x68   : > { %3602 = vmatpush3.bf16.msra.mxu0 %v3870_v23  ;;  %3475 = vmatprep.subr.bf16.mxu1 %v3871_v24  ;;  %v3889_v23 = vld [vmem:[%s4997_s1 + $0x220] sm:$0xff]  }
  0x69   : > { %3603 = vmatprep.subr.bf16.mxu0 %v3872_v25  ;;  %3461 = vmatprep.mubr.msk.bf16.mxu1 %vm4488_vm0, %v4325_v31  ;;  %v3876_v31 = vld [vmem:[%s4997_s1 + $0x1d8] sm:$0xff]  }
  0x6a   : > { %3589 = vmatprep.mubr.msk.bf16.mxu0 %vm5079_vm8, %v4556_v57 }
  0x6b   : > { %3476 = vmatpush3.bf16.msra.mxu1 %v3871_v24  ;;  %v3116_v24 = vld [vmem:[%s3987_s20 + $0x81] sm:$0xff] }
  0x6c   : > { %3604 = vmatpush3.bf16.msra.mxu0 %v3872_v25  ;;  %3477 = vmatprep.subr.bf16.mxu1 %v3873_v9  ;;  %v2028_v25 = vpack.c.bf16 %v3117_v52, %v3116_v24 }
  0x6d   : > { %3605 = vmatprep.subr.bf16.mxu0 %v3874_v13 }
  0x6e   : > { %3462 = vmatmul.mubr.msk.bf16.gmra.mrb[4].mxu1 %vm5080_vm9, %v4460_v59  ;;  %v3878_v59 = vld [vmem:[%s4997_s1 + $0x1e0] sm:$0xff]  }
  0x6f   : > { %3590 = vmatmul.mubr.msk.bf16.gmra.mrb[4].mxu0 %vm5081_vm13, %v4597_v62  ;;  %3478 = vmatpush3.bf16.msra.mxu1 %v3873_v9  ;;  %v3119_v9 = vld [vmem:[%s3987_s20 + $0x99] sm:$0xff] }
  0x70   : > { %3606 = vmatpush3.bf16.msra.mxu0 %v3874_v13  ;;  %3479 = vmatprep.subr.bf16.mxu1 %v3875_v26  ;;  %v3891_v13 = vld [vmem:[%s4997_s1 + $0x230] sm:$0xff]  }
  0x71   : > { %3607 = vmatprep.subr.bf16.mxu0 %v3876_v31  ;;  %3465 = vmatprep.mubr.msk.bf16.mxu1 %vm5082_vm7, %v4524_v36 }
  0x72   : > { %3593 = vmatprep.mubr.msk.bf16.mxu0 %vm5083_vm2, %v4660_v42 }
  0x73   : > { %3480 = vmatpush3.bf16.msra.mxu1 %v3875_v26  ;;  %v3145_v26 = vld [vmem:[%s3987_s20 + $0x22] sm:$0xff] }
  0x74   : > { %3608 = vmatpush3.bf16.msra.mxu0 %v3876_v31  ;;  %3481 = vmatprep.subr.bf16.mxu1 %v3877_v27  ;;  %v3146_v31 = vld [vmem:[%s3987_s20 + $0x2a] sm:$0xff] }
  0x75   : > { %3609 = vmatprep.subr.bf16.mxu0 %v3878_v59 }
  0x76   : > { %3466 = vmatmul.mubr.msk.bf16.gmra.mrb[8].mxu1 %vm4656_vm12, %v4584_v0 }
  0x77   : > { %3594 = vmatmul.mubr.msk.bf16.gmra.mrb[8].mxu0 %vm5084_vm11, %v4703_v45  ;;  %3482 = vmatpush3.bf16.msra.mxu1 %v3877_v27  ;;  %v3148_v27 = vld [vmem:[%s3987_s20 + $0x3a] sm:$0xff] }
  0x78   : > { %3610 = vmatpush3.bf16.msra.mxu0 %v3878_v59  ;;  %3483 = vmatprep.subr.bf16.mxu1 %v3879_v30 }
  0x79   : > { %3611 = vmatprep.subr.bf16.mxu0 %v3880_v32  ;;  %3469 = vmatprep.mubr.msk.bf16.mxu1 %vm4688_vm15, %v4647_v15 }
  0x7a   : > { %3597 = vmatprep.mubr.msk.bf16.mxu0 %vm4671_vm4, %v4799_v34 }
  0x7b   : > { %3484 = vmatpush3.bf16.msra.mxu1 %v3879_v30 }
  0x7c   : > { %3612 = vmatpush3.bf16.msra.mxu0 %v3880_v32  ;;  %3485 = vmatprep.subr.bf16.mxu1 %v3881_v35 }
  0x7d   : > { %3613 = vmatprep.subr.bf16.mxu0 %v3882_v46 }
  0x7e   : > { %3470 = vmatmul.mubr.msk.bf16.gmra.mrb[12].mxu1 %vm4716_vm1, %v4675_v56 }
  0x7f   : > { %3598 = vmatmul.mubr.msk.bf16.gmra.mrb[12].mxu0 %vm4712_vm3, %v3101_v47  ;;  %3486 = vmatpush3.bf16.msra.mxu1 %v3881_v35 }
  0x80   : > { %3614 = vmatpush3.bf16.msra.mxu0 %v3882_v46  ;;  %3487 = vmatprep.subr.bf16.mxu1 %v3883_v1  ;;  %v4937_v46 = vld [vmem:[%s4998_s2] ss:$0 sm:$0xff] }
  0x81   : > { %3615 = vmatprep.subr.bf16.mxu0 %v3884_v29  ;;  %3489 = vmatprep.mubr.msk.bf16.mxu1 %vm4363_vm5, %v4278_v16  ;;  %v3886_v16 = vld [vmem:[%s4997_s1 + $0x208] sm:$0xff]   ;;  %vm2498_vm5 = vcmask 261120  }
  0x82   : > { %3617 = vmatprep.mubr.bf16.mxu0 %v2022_v49 }
  0x83   : > { %3488 = vmatpush3.bf16.msra.mxu1 %v3883_v1 }
  0x84   : > { %3616 = vmatpush3.bf16.msra.mxu0 %v3884_v29 }
  0x85   : > { %3633 = vmatprep.subr.bf16.mxu0 %v3885_v33 }
  0x86   : > { %3490 = vmatmul.mubr.msk.bf16.vlgmr.msra.gmra.mrb[0].mxu1 %vm4434_vm10, %v4342_v39  ;;  %v2025_v39 = vpack.c.bf16 %v3111_v44, %v3110_v48 }
  0x87   : > { %3618 = vmatmul.mubr.bf16.vlgmr.msra.gmra.mrb[0].mxu0 %v2023_v50  ;;  %3493 = vmatprep.mubr.msk.bf16.mxu1 %vm5079_vm8, %v4462_v14  ;;  %v3888_v14 = vld [vmem:[%s4997_s1 + $0x218] sm:$0xff]  }
  0x88   : > { %3634 = vmatpush3.bf16.msra.mxu0 %v3885_v33  ;;  %3621 = vmatprep.mubr.bf16.mxu0 %v2024_v4 }
  0x89   : > { %3635 = vmatprep.subr.bf16.mxu0 %v3886_v16 }
  0x8c   : > { %3636 = vmatpush3.bf16.msra.mxu0 %v3886_v16 }
  0x8d   : > { %3637 = vmatprep.subr.bf16.mxu0 %v3887_v58 }
  0x8e   : > { %3494 = vmatmul.mubr.msk.bf16.gmra.mrb[4].mxu1 %vm5081_vm13, %v4556_v57  ;;  %v2027_v57 = vpack.c.bf16 %v3115_v18, %v3114_v7 }
  0x8f   : > { %3622 = vmatmul.mubr.bf16.gmra.mrb[4].mxu0 %v2025_v39  ;;  %3497 = vmatprep.mubr.msk.bf16.mxu1 %vm5083_vm2, %v4597_v62  ;;  %v3118_v62 = vld [vmem:[%s3987_s20 + $0x91] sm:$0xff] }
  0x90   : > { %3638 = vmatpush3.bf16.msra.mxu0 %v3887_v58  ;;  %3625 = vmatprep.mubr.bf16.mxu0 %v2026_v19  ;;  %v2029_v22 = vpack.c.bf16 %v3119_v9, %v3118_v62 }
  0x91   : > { %3639 = vmatprep.subr.bf16.mxu0 %v3888_v14 }
  0x94   : > { %3640 = vmatpush3.bf16.msra.mxu0 %v3888_v14 }
  0x95   : > { %3641 = vmatprep.subr.bf16.mxu0 %v3889_v23 }
  0x96   : > { %3498 = vmatmul.mubr.msk.bf16.gmra.mrb[8].mxu1 %vm5084_vm11, %v4660_v42  ;;  %v3186_v42 = vpack.c.bf16 %v3146_v31, %v3145_v26 }
  0x97   : > { %3626 = vmatmul.mubr.bf16.gmra.mrb[8].mxu0 %v2027_v57  ;;  %3501 = vmatprep.mubr.msk.bf16.mxu1 %vm4671_vm4, %v4703_v45  ;;  %v3147_v45 = vld [vmem:[%s3987_s20 + $0x32] sm:$0xff] }
  0x98   : > { %3642 = vmatpush3.bf16.msra.mxu0 %v3889_v23  ;;  %3629 = vmatprep.mubr.bf16.mxu0 %v2028_v25  ;;  %v3189_v59 = vpack.c.bf16 %v3148_v27, %v3147_v45 }
  0x99   : > { %3643 = vmatprep.subr.bf16.mxu0 %v3890_v6 }
  0x9c   : > { %3644 = vmatpush3.bf16.msra.mxu0 %v3890_v6 }
  0x9d   : > { %3645 = vmatprep.subr.bf16.mxu0 %v3891_v13 }
  0x9e   : > { %3502 = vmatmul.mubr.msk.bf16.gmra.mrb[12].mxu1 %vm4712_vm3, %v4799_v34 }
  0x9f   : > { %3630 = vmatmul.mubr.bf16.gmra.mrb[12].mxu0 %v2029_v22 }
  0xa0   : > { %3646 = vmatpush3.bf16.msra.mxu0 %v3891_v13  ;;  %3649 = vmatprep.mubr.msk.bf16.mxu0 %vm4399_vm6, %v3186_v42 }
  0xa1   : > { %3647 = vmatprep.subr.bf16.mxu0 %v3892_v55 }
  0xa4   : > { %3648 = vmatpush3.bf16.msra.mxu0 %v3892_v55 }
  0xa7   : > { %3650 = vmatmul.mubr.msk.bf16.vlgmr.msra.gmra.mrb[0].mxu0 %vm4451_vm14, %v3189_v59 }
  0xa8   : > { %3653 = vmatprep.mubr.msk.bf16.mxu0 %vm4488_vm0, %v4524_v36  ;;  %v3893_v36 = vld [vmem:[%s4999_s3] sm:$0xff]  }
  0xa9   : > { %3665 = vmatprep.subr.bf16.mxu1 %v3893_v36 }
  0xaa   : > { %3666 = vmatpush3.bf16.msra.mxu1 %v3893_v36 }
  0xab   : > { %3667 = vmatprep.subr.bf16.mxu1 %v3894_v5 }
  0xae   : > { %3668 = vmatpush3.bf16.msra.mxu1 %v3894_v5 }
  0xaf   : > { %3654 = vmatmul.mubr.msk.bf16.gmra.mrb[4].mxu0 %vm5080_vm9, %v4584_v0 }
  0xb0   : > { %3657 = vmatprep.mubr.msk.bf16.mxu0 %vm5082_vm7, %v4647_v15 }
  0xb7   : > { %3658 = vmatmul.mubr.msk.bf16.gmra.mrb[8].mxu0 %vm4656_vm12, %v4675_v56 }
  0xb8   : > { %3661 = vmatprep.mubr.msk.bf16.mxu0 %vm4688_vm15, %v4710_v8 }
  0xbf   : > { %3662 = vmatmul.mubr.msk.bf16.gmra.mrb[12].mxu0 %vm4716_vm1, %v3207_v21 }
 0x159   : > { %v3491_v0 = vpop.f32.mrb[0].mxu1 }
 0x15a   : > { %v1281_v10 = vpop.f32.mrb[1].mxu1 }
 0x15b   : > { %v3492_v15 = vpop.f32.mrb[2].mxu1 }
 0x15c   : > { %v1284_v40 = vpop.f32.mrb[3].mxu1 }
 0x161   : > { %v3495_v56 = vpop.f32.mrb[4].mxu1 }
 0x162   : > { %v1297_v3 = vpop.f32.mrb[5].mxu1 }
 0x163   : > { %v3496_v8 = vpop.f32.mrb[6].mxu1 }
 0x164   : > { %v1300_v12 = vpop.f32.mrb[7].mxu1 }
 0x169   : > { %v3499_v63 = vpop.f32.mrb[8].mxu1 }
 0x16a   : > { %v1313_v20 = vpop.f32.mrb[9].mxu1 }
 0x16b   : > { %v3500_v28 = vpop.f32.mrb[10].mxu1 }
 0x16c   : > { %v1316_v30 = vpop.f32.mrb[11].mxu1 }
 0x171   : > { %v4926_v32 = vpop.f32.mrb[12].mxu1 }
 0x172   : > { %v4928_v34 = vpop.f32.mrb[13].mxu1 }
 0x173   : > { %v4930_v35 = vpop.f32.mrb[14].mxu1 }
 0x174   : > { %v4932_v37 = vpop.f32.mrb[15].mxu1 }
 0x17a   : > { %v3651_v41 = vpop.f32.mrb[0].mxu0 }
 0x17b   : > { %v3685_v47 = vadd.f32 %v3651_v41, %v3491_v0  ;;  %v2349_v51 = vpop.f32.mrb[1].mxu0 }
 0x17c   : > { %v3686_v54 = vadd.f32 %v2349_v51, %v1281_v10  ;;  %v3652_v1 = vpop.f32.mrb[2].mxu0 }
 0x17d   : > { %v2437_v29 = vadd.f32 %v3685_v47, %v4937_v46  ;;  %v3687_v49 = vadd.f32 %v3652_v1, %v3492_v15  ;;  %v2352_v60 = vpop.f32.mrb[3].mxu0 }
 0x17e   : > { %v2435_v61 = vadd.f32 %v3686_v54, %v4937_v46  ;;  %v3688_v33 = vadd.f32 %v2352_v60, %v1284_v40 }
 0x17f   : > { %v2438_v53 = vadd.f32 %v3687_v49, %v4937_v46  ;;  %v2453_v50 = vmax.f32 %v2437_v29, 0.0 }
 0x180   : > { %v2436_v38 = vadd.f32 %v3688_v33, %v4937_v46  ;;  %v2451_v16 = vmax.f32 %v2435_v61, 0.0 }
 0x181   : > { %v2454_v4 = vmax.f32 %v2438_v53, 0.0 }
 0x182   : > { %v2452_v48 = vmax.f32 %v2436_v38, 0.0  ;;  %v3655_v44 = vpop.f32.mrb[4].mxu0 }
 0x183   : > { %v2468_v58 = vpack.c.bf16 %v2454_v4, %v2453_v50  ;;  %v3689_v17 = vadd.f32 %v3655_v44, %v3495_v56  ;;  %v2365_v43 = vpop.f32.mrb[5].mxu0 }
 0x184   : > { %v2467_v39 = vpack.c.bf16 %v2452_v48, %v2451_v16  ;;  %v3690_v19 = vadd.f32 %v2365_v43, %v1297_v3  ;;  %v3656_v14 = vpop.f32.mrb[6].mxu0 }
 0x185   : > { %v2441_v7 = vadd.f32 %v3689_v17, %v4937_v46  ;;  %v3691_v18 = vadd.f32 %v3656_v14, %v3496_v8  ;;  %v2368_v23 = vpop.f32.mrb[7].mxu0 }
 0x186   : > { %v2439_v24 = vadd.f32 %v3690_v19, %v4937_v46  ;;  %v3692_v52 = vadd.f32 %v2368_v23, %v1300_v12  ;;  %3669 = vmatprep.mubr.msk.bf16.mxu1 %vm2498_vm5, %v2467_v39 }
 0x187   : > { %v2442_v57 = vadd.f32 %v3691_v18, %v4937_v46  ;;  %3670 = vmatmul.mubr.msk.bf16.vlgmr.msra.gmra.mrb[16].mxu1 %vm2498_vm5, %v2468_v58  ;;  %v2457_v6 = vmax.f32 %v2441_v7, 0.0 }
 0x188   : > { %v2440_v25 = vadd.f32 %v3692_v52, %v4937_v46  ;;  %v2455_v9 = vmax.f32 %v2439_v24, 0.0 }
 0x189   : > { %v2458_v62 = vmax.f32 %v2442_v57, 0.0 }
 0x18a   : > { %v2456_v13 = vmax.f32 %v2440_v25, 0.0  ;;  %v3659_v26 = vpop.f32.mrb[8].mxu0 }
 0x18b   : > { %v2470_v31 = vpack.c.bf16 %v2458_v62, %v2457_v6  ;;  %v3693_v22 = vadd.f32 %v3659_v26, %v3499_v63  ;;  %v2381_v42 = vpop.f32.mrb[9].mxu0 }
 0x18c   : > { %v2469_v55 = vpack.c.bf16 %v2456_v13, %v2455_v9  ;;  %v3694_v45 = vadd.f32 %v2381_v42, %v1313_v20  ;;  %v3660_v27 = vpop.f32.mrb[10].mxu0 }
 0x18d   : > { %v2445_v59 = vadd.f32 %v3693_v22, %v4937_v46  ;;  %v3695_v2 = vadd.f32 %v3660_v27, %v3500_v28  ;;  %v2384_v11 = vpop.f32.mrb[11].mxu0 }
 0x18e   : > { %v2443_v21 = vadd.f32 %v3694_v45, %v4937_v46  ;;  %v3696_v36 = vadd.f32 %v2384_v11, %v1316_v30  ;;  %3673 = vmatprep.mubr.msk.bf16.mxu1 %vm2498_vm5, %v2469_v55 }
 0x18f   : > { %v2446_v5 = vadd.f32 %v3695_v2, %v4937_v46  ;;  %3674 = vmatmul.mubr.msk.bf16.gmra.mrb[20].mxu1 %vm2498_vm5, %v2470_v31  ;;  %v2461_v10 = vmax.f32 %v2445_v59, 0.0 }
 0x190   : > { %v2444_v0 = vadd.f32 %v3696_v36, %v4937_v46  ;;  %v2459_v40 = vmax.f32 %v2443_v21, 0.0 }
 0x191   : > { %v2462_v15 = vmax.f32 %v2446_v5, 0.0 }
 0x192   : > { %v2460_v56 = vmax.f32 %v2444_v0, 0.0  ;;  %v3663_v3 = vpop.f32.mrb[12].mxu0 }
 0x193   : > { %v2472_v8 = vpack.c.bf16 %v2462_v15, %v2461_v10  ;;  %v3697_v12 = vadd.f32 %v3663_v3, %v4926_v32  ;;  %v2397_v63 = vpop.f32.mrb[13].mxu0 }
 0x194   : > { %v2471_v20 = vpack.c.bf16 %v2460_v56, %v2459_v40  ;;  %v3698_v28 = vadd.f32 %v2397_v63, %v4928_v34  ;;  %v3664_v30 = vpop.f32.mrb[14].mxu0 }
 0x195   : > { %v2449_v41 = vadd.f32 %v3697_v12, %v4937_v46  ;;  %v3699_v47 = vadd.f32 %v3664_v30, %v4930_v35  ;;  %v2400_v51 = vpop.f32.mrb[15].mxu0 }
 0x196   : > { %v2447_v54 = vadd.f32 %v3698_v28, %v4937_v46  ;;  %v3700_v1 = vadd.f32 %v2400_v51, %v4932_v37  ;;  %3677 = vmatprep.mubr.msk.bf16.mxu1 %vm2498_vm5, %v2471_v20  ;;  %v3210_v37 = vld [vmem:[%s5000_s4] ss:$0 sm:$0xff] }
 0x197   : > { %v2450_v29 = vadd.f32 %v3699_v47, %v4937_v46  ;;  %3678 = vmatmul.mubr.msk.bf16.gmra.mrb[24].mxu1 %vm2498_vm5, %v2472_v8  ;;  %v2465_v34 = vmax.f32 %v2449_v41, 0.0 }
 0x198   : > { %v2448_v32 = vadd.f32 %v3700_v1, %v4937_v46  ;;  %v2463_v60 = vmax.f32 %v2447_v54, 0.0 }
 0x199   : > { %v2466_v49 = vmax.f32 %v2450_v29, 0.0 }
 0x19a   : > { %v2464_v61 = vmax.f32 %v2448_v32, 0.0 }
 0x19b   : > { %v2474_v33 = vpack.c.bf16 %v2466_v49, %v2465_v34 }
 0x19c   : > { %v2473_v35 = vpack.c.bf16 %v2464_v61, %v2463_v60 }
 0x19e   : > { %3681 = vmatprep.mubr.msk.bf16.mxu1 %vm2498_vm5, %v2473_v35 }
 0x19f   : > { %3682 = vmatmul.mubr.msk.bf16.gmra.mrb[28].mxu1 %vm2498_vm5, %v2474_v33 }
 0x25a   : > { %v3671_v46 = vpop.f32.mrb[16].mxu1 }
 0x25b   : > { %v2566_v53 = vadd.f32 %v3671_v46, %v3210_v37  ;;  %v2557_v38 = vpop.f32.mrb[17].mxu1 }
 0x25c   : > { %v2558_v50 = vadd.f32 %v3210_v37, %v2557_v38  ;;  %v3672_v4 = vpop.f32.mrb[18].mxu1 }
 0x25d   : > { %2622 = vst [vmem:[%s4975_s24 + $0x10] sm:$0xff] %v2566_v53  ;;  %v2569_v16 = vadd.f32 %v3672_v4, %v3210_v37  ;;  %v2560_v48 = vpop.f32.mrb[19].mxu1 }
 0x25e   : > { %2620 = vst [vmem:[%s4975_s24] sm:$0xff] %v2558_v50  ;;  %v2561_v44 = vadd.f32 %v3210_v37, %v2560_v48 }
 0x25f   : > { %2623 = vst [vmem:[%s4975_s24 + $0x18] sm:$0xff] %v2569_v16 }
 0x260   : > { %2621 = vst [vmem:[%s4975_s24 + $0x8] sm:$0xff] %v2561_v44 }
 0x262   : > { %v3675_v58 = vpop.f32.mrb[20].mxu1 }
 0x263   : > { %v2582_v17 = vadd.f32 %v3675_v58, %v3210_v37  ;;  %v2573_v43 = vpop.f32.mrb[21].mxu1 }
 0x264   : > { %v2574_v39 = vadd.f32 %v3210_v37, %v2573_v43  ;;  %v3676_v19 = vpop.f32.mrb[22].mxu1 }
 0x265   : > { %2626 = vst [vmem:[%s4975_s24 + $0x30] sm:$0xff] %v2582_v17  ;;  %v2585_v14 = vadd.f32 %v3676_v19, %v3210_v37  ;;  %v2576_v7 = vpop.f32.mrb[23].mxu1 }
 0x266   : > { %2624 = vst [vmem:[%s4975_s24 + $0x20] sm:$0xff] %v2574_v39  ;;  %v2577_v18 = vadd.f32 %v3210_v37, %v2576_v7 }
 0x267   : > { %2627 = vst [vmem:[%s4975_s24 + $0x38] sm:$0xff] %v2585_v14 }
 0x268   : > { %2625 = vst [vmem:[%s4975_s24 + $0x28] sm:$0xff] %v2577_v18 }
 0x26a   : > { %v3679_v23 = vpop.f32.mrb[24].mxu1 }
 0x26b   : > { %v2598_v24 = vadd.f32 %v3679_v23, %v3210_v37  ;;  %v2589_v52 = vpop.f32.mrb[25].mxu1 }
 0x26c   : > { %v2590_v57 = vadd.f32 %v3210_v37, %v2589_v52  ;;  %v3680_v25 = vpop.f32.mrb[26].mxu1 }
 0x26d   : > { %2630 = vst [vmem:[%s4975_s24 + $0x50] sm:$0xff] %v2598_v24  ;;  %v2601_v6 = vadd.f32 %v3680_v25, %v3210_v37  ;;  %v2592_v62 = vpop.f32.mrb[27].mxu1 }
 0x26e   : > { %2628 = vst [vmem:[%s4975_s24 + $0x40] sm:$0xff] %v2590_v57  ;;  %v2593_v9 = vadd.f32 %v3210_v37, %v2592_v62 }
 0x26f   : > { %2631 = vst [vmem:[%s4975_s24 + $0x58] sm:$0xff] %v2601_v6 }
 0x270   : > { %2629 = vst [vmem:[%s4975_s24 + $0x48] sm:$0xff] %v2593_v9 }
 0x272   : > { %v3683_v13 = vpop.f32.mrb[28].mxu1 }
 0x273   : > { %v2614_v26 = vadd.f32 %v3683_v13, %v3210_v37  ;;  %v2605_v31 = vpop.f32.mrb[29].mxu1 }
 0x274   : > { %v2606_v22 = vadd.f32 %v3210_v37, %v2605_v31  ;;  %v3684_v42 = vpop.f32.mrb[30].mxu1 }
 0x275   : > { %2634 = vst [vmem:[%s4975_s24 + $0x70] sm:$0xff] %v2614_v26  ;;  %v2617_v55 = vadd.f32 %v3684_v42, %v3210_v37  ;;  %v2608_v45 = vpop.f32.mrb[31].mxu1 }
 0x276   : > { %2632 = vst [vmem:[%s4975_s24 + $0x60] sm:$0xff] %v2606_v22  ;;  %v2609_v27 = vadd.f32 %v3210_v37, %v2608_v45 }
 0x277   : > { %2635 = vst [vmem:[%s4975_s24 + $0x78] sm:$0xff] %v2617_v55 }
 0x278   : > { %2633 = vst [vmem:[%s4975_s24 + $0x68] sm:$0xff] %v2609_v27 }
 0x279 PF: > { %s15_s18 = sadd.s32 1, %s3901_s18  }
 0x27a   : > { %p12_p4 = scmp.ge.s32.totalorder %s15_s18, 4  }
 0x27c   :  { %14 = sbr.rel (!%p12_p4) target bundleno = 1 (0x1), region = 84 }

// kernel: faster_rcnn_forward.6
= control target key start
LH: loop header
LB: loop body
LE: loop exit
PB: predicated region body
PF: predicated region fallthrough
CT: control target
= control target key end

     0   :  { %s453_s0 = inlined_call_operand.vmem [shape: f32[8,2304], index: 0, kind: input, shape index: {}]   ;;  %s454_s1 = inlined_call_operand.vmem [shape: f32[4,2304], index: 1, kind: output, shape index: {}]  }
   0x1   :  { %v8_v0 = vld [vmem:[%s453_s0] ss:$8 sm:$0xf]  ;;  %v222_v2 = vld [vmem:[%s453_s0 + $0x2] ss:$8 sm:$0xf] }
   0x2   :  { %v9_v1 = vld [vmem:[%s453_s0] ss:$8 sm:$0xf0]  ;;  %v223_v3 = vld [vmem:[%s453_s0 + $0x2] ss:$8 sm:$0xf0] }
   0x3   :  { %v242_v4 = vld [vmem:[%s453_s0 + $0x6] ss:$8 sm:$0xf]  ;;  %v10_v6 = vor.u32 %v9_v1, %v8_v0  ;;  %v30_v7 = vor.u32 %v223_v3, %v222_v2  ;;  %v214_v9 = vld [vmem:[%s453_s0 + $0x40] ss:$8 sm:$0xf] }
   0x4   :  { %v243_v5 = vld [vmem:[%s453_s0 + $0x6] ss:$8 sm:$0xf0]  ;;  %v215_v10 = vld [vmem:[%s453_s0 + $0x40] ss:$8 sm:$0xf0] }
   0x5   :  { %v70_v8 = vor.u32 %v243_v5, %v242_v4  ;;  %v224_v11 = vld [vmem:[%s453_s0 + $0x42] ss:$8 sm:$0xf]  ;;  %v244_v14 = vld [vmem:[%s453_s0 + $0x46] ss:$8 sm:$0xf]  ;;  %v93_v15 = vsub.f32 %v30_v7, %v10_v6  ;;  %v14_v20 = vor.u32 %v215_v10, %v214_v9  ;;  %v156_v10 = vlaneseq }
   0x6   :  { %v225_v13 = vld [vmem:[%s453_s0 + $0x42] ss:$8 sm:$0xf0]  ;;  %v245_v17 = vld [vmem:[%s453_s0 + $0x46] ss:$8 sm:$0xf0] }
   0x7   :  { %v77_v12 = vmin.f32 %v70_v8, 4.1351666  ;;  %v232_v18 = vld [vmem:[%s453_s0 + $0x4] ss:$8 sm:$0xf]  ;;  %v34_v21 = vor.u32 %v225_v13, %v224_v11  ;;  %v74_v22 = vor.u32 %v245_v17, %v244_v14  ;;  %v99_v29 = vmul.f32 0.5, %v93_v15 }
   0x8   :  { %v233_v19 = vld [vmem:[%s453_s0 + $0x4] ss:$8 sm:$0xf0]  ;;  %v216_v23 = vld [vmem:[%s453_s0 + $0x80] ss:$8 sm:$0x3] }
   0x9   :  { %v123_v16 = vmul.f32 1.442695, %v77_v12  ;;  %v226_v24 = vld [vmem:[%s453_s0 + $0x82] ss:$8 sm:$0x3]  ;;  %v50_v28 = vor.u32 %v233_v19, %v232_v18  ;;  %v94_v32 = vsub.f32 %v34_v21, %v14_v20  ;;  %v102_v40 = vadd.f32 %v99_v29, %v10_v6 }
   0xa   :  { %v234_v25 = vld [vmem:[%s453_s0 + $0x44] ss:$8 sm:$0xf]  ;;  %v78_v26 = vmin.f32 %v74_v22, 4.1351666  ;;  %v95_v34 = vsub.f32 %v226_v24, %v216_v23  ;;  %vm405_vm0 = vcmp.lt.s32.totalorder %v156_v10, 256 }
   0xb   :  { %263 = vpow2.f32 %v123_v16  ;;  %v246_v27 = vld [vmem:[%s453_s0 + $0x86] ss:$8 sm:$0x3]  ;;  %v235_v30 = vld [vmem:[%s453_s0 + $0x44] ss:$8 sm:$0xf0]  ;;  %v111_v41 = vmul.f32 %v93_v15, %v50_v28 }
   0xc   :  { %v79_v31 = vmin.f32 %v246_v27, 4.1351666  ;;  %v125_v33 = vmul.f32 1.442695, %v78_v26  ;;  %v54_v42 = vor.u32 %v235_v30, %v234_v25  ;;  %v100_v45 = vmul.f32 0.5, %v94_v32 }
   0xd   :  { %v217_v35 = vld [vmem:[%s453_s0 + $0x1] ss:$8 sm:$0xf]  ;;  %v227_v38 = vld [vmem:[%s453_s0 + $0x3] ss:$8 sm:$0xf]  ;;  %v114_v57 = vadd.f32 %v111_v41, %v102_v40 }
   0xe   :  { %v127_v36 = vmul.f32 1.442695, %v79_v31  ;;  %v218_v37 = vld [vmem:[%s453_s0 + $0x1] ss:$8 sm:$0xf0]  ;;  %265 = vpow2.f32 %v125_v33  ;;  %v101_v46 = vmul.f32 0.5, %v95_v34  ;;  %v112_v58 = vmul.f32 %v94_v32, %v54_v42 }
   0xf   :  { %v228_v39 = vld [vmem:[%s453_s0 + $0x3] ss:$8 sm:$0xf0]  ;;  %v236_v43 = vld [vmem:[%s453_s0 + $0x84] ss:$8 sm:$0x3]  ;;  %v20_v48 = vor.u32 %v218_v37, %v217_v35  ;;  %v103_v62 = vadd.f32 %v100_v45, %v14_v20 }
  0x10   :  { %267 = vpow2.f32 %v127_v36  ;;  %v247_v44 = vld [vmem:[%s453_s0 + $0x7] ss:$8 sm:$0xf]  ;;  %v40_v49 = vor.u32 %v228_v39, %v227_v38  ;;  %v237_v50 = vld [vmem:[%s453_s0 + $0x5] ss:$8 sm:$0xf]  ;;  %v104_v63 = vadd.f32 %v216_v23, %v101_v46  ;;  %v113_v0 = vmul.f32 %v236_v43, %v95_v34 }
  0x11   :  { %v248_v47 = vld [vmem:[%s453_s0 + $0x7] ss:$8 sm:$0xf0]  ;;  %v238_v51 = vld [vmem:[%s453_s0 + $0x5] ss:$8 sm:$0xf0]  ;;  %v115_v17 = vadd.f32 %v112_v58, %v103_v62 }
  0x12   :  { %v83_v52 = vor.u32 %v248_v47, %v247_v44  ;;  %v219_v53 = vld [vmem:[%s453_s0 + $0x41] ss:$8 sm:$0xf]  ;;  %v229_v55 = vld [vmem:[%s453_s0 + $0x43] ss:$8 sm:$0xf]  ;;  %v96_v3 = vsub.f32 %v40_v49, %v20_v48  ;;  %v60_v7 = vor.u32 %v238_v51, %v237_v50  ;;  %v116_v18 = vadd.f32 %v113_v0, %v104_v63 }
  0x13   :  { %v220_v54 = vld [vmem:[%s453_s0 + $0x41] ss:$8 sm:$0xf0]  ;;  %v230_v60 = vld [vmem:[%s453_s0 + $0x43] ss:$8 sm:$0xf0] }
  0x14   :  { %v90_v59 = vmin.f32 %v83_v52, 4.1351666  ;;  %v249_v1 = vld [vmem:[%s453_s0 + $0x47] ss:$8 sm:$0xf]  ;;  %v24_v8 = vor.u32 %v220_v54, %v219_v53  ;;  %v44_v9 = vor.u32 %v230_v60, %v229_v55  ;;  %v105_v24 = vmul.f32 0.5, %v96_v3 }
  0x15   :  { %v264_v56 = vpop.eup %263  ;;  %v250_v2 = vld [vmem:[%s453_s0 + $0x47] ss:$8 sm:$0xf0]  ;;  %v239_v11 = vld [vmem:[%s453_s0 + $0x45] ss:$8 sm:$0xf]  ;;  %v117_v29 = vmul.f32 %v96_v3, %v60_v7 }
  0x16   :  { %v129_v61 = vmul.f32 %v264_v56, %v93_v15  ;;  %v132_v4 = vmul.f32 1.442695, %v90_v59  ;;  %v87_v5 = vor.u32 %v250_v2, %v249_v1  ;;  %v240_v12 = vld [vmem:[%s453_s0 + $0x45] ss:$8 sm:$0xf0]  ;;  %v97_v30 = vsub.f32 %v44_v9, %v24_v8 }
  0x17   :  { %v221_v14 = vld [vmem:[%s453_s0 + $0x81] ss:$8 sm:$0x3]  ;;  %v231_v19 = vld [vmem:[%s453_s0 + $0x83] ss:$8 sm:$0x3]  ;;  %v64_v38 = vor.u32 %v240_v12, %v239_v11  ;;  %v108_v41 = vadd.f32 %v105_v24, %v20_v48 }
  0x18   :  { %v141_v6 = vmul.f32 0.5, %v129_v61  ;;  %269 = vpow2.f32 %v132_v4  ;;  %v91_v13 = vmin.f32 %v87_v5, 4.1351666  ;;  %v266_v15 = vpop.eup %265  ;;  %v251_v20 = vld [vmem:[%s453_s0 + $0x87] ss:$8 sm:$0x3]  ;;  %v98_v33 = vsub.f32 %v231_v19, %v221_v14 }
  0x19   :  { %v130_v23 = vmul.f32 %v266_v15, %v94_v32  ;;  %v92_v26 = vmin.f32 %v251_v20, 4.1351666  ;;  %v241_v48 = vld [vmem:[%s453_s0 + $0x85] ss:$8 sm:$0x3]  ;;  %v120_v54 = vadd.f32 %v117_v29, %v108_v41  ;;  %v118_v55 = vmul.f32 %v97_v30, %v64_v38 }
  0x1a   :  { %v144_v16 = vsub.f32 %v114_v57, %v141_v6  ;;  %v180_v21 = vadd.f32 %v141_v6, %v114_v57  ;;  %v268_v22 = vpop.eup %267  ;;  %v134_v25 = vmul.f32 1.442695, %v91_v13  ;;  %v107_v46 = vmul.f32 0.5, %v98_v33 }
  0x1b   :  { %v131_v28 = vmul.f32 %v268_v22, %v95_v34  ;;  %v142_v31 = vmul.f32 0.5, %v130_v23  ;;  %v136_v35 = vmul.f32 1.442695, %v92_v26  ;;  %v106_v34 = vmul.f32 0.5, %v97_v30 }
  0x1c   :  { %v147_v27 = vmax.f32 %v144_v16, 0.0  ;;  %271 = vpow2.f32 %v134_v25  ;;  %v183_v39 = vmax.f32 %v180_v21, 0.0  ;;  %v110_v61 = vadd.f32 %v221_v14, %v107_v46 }
  0x1d   :  { %v143_v37 = vmul.f32 0.5, %v131_v28  ;;  %v145_v40 = vsub.f32 %v115_v17, %v142_v31  ;;  %273 = vpow2.f32 %v136_v35  ;;  %v181_v42 = vadd.f32 %v142_v31, %v115_v17 }
  0x1e   :  { %v150_v36 = vmin.f32 %v147_v27, 16.0  ;;  %v186_v43 = vmin.f32 %v183_v39, 16.0  ;;  %v109_v59 = vadd.f32 %v106_v34, %v24_v8  ;;  %v119_v62 = vmul.f32 %v241_v48, %v98_v33 }
  0x1f   :  { %v146_v32 = vsub.f32 %v116_v18, %v143_v37  ;;  %v182_v44 = vadd.f32 %v143_v37, %v116_v18  ;;  %v148_v45 = vmax.f32 %v145_v40, 0.0  ;;  %v184_v47 = vmax.f32 %v181_v42, 0.0 }
  0x20   :  { %153 = vst [vmem:[%s454_s1] ss:$4 sm:$0xff] %v150_v36  ;;  %257 = vst [vmem:[%s454_s1 + $0x2] ss:$4 sm:$0xff] %v186_v43  ;;  %v121_v2 = vadd.f32 %v118_v55, %v109_v59  ;;  %v122_v6 = vadd.f32 %v119_v62, %v110_v61 }
  0x21   :  { %v149_v49 = vmax.f32 %v146_v32, 0.0  ;;  %v185_v51 = vmax.f32 %v182_v44, 0.0  ;;  %v151_v53 = vmin.f32 %v148_v45, 16.0  ;;  %v187_v56 = vmin.f32 %v184_v47, 16.0 }
  0x22   :  { %v270_v52 = vpop.eup %269 }
  0x23   :  { %v152_v57 = vmin.f32 %v149_v49, 16.0  ;;  %v138_v58 = vmul.f32 %v270_v52, %v96_v3  ;;  %v188_v60 = vmin.f32 %v185_v51, 16.0  ;;  %252 = vst [vmem:[%s454_s1 + $0x20] ss:$4 sm:$0xff] %v151_v53  ;;  %258 = vst [vmem:[%s454_s1 + $0x22] ss:$4 sm:$0xff] %v187_v56 }
  0x25   :  { %253 = vst.msk [vmem:[%s454_s1 + $0x40] ss:$4 sm:$0x3] %vm405_vm0, %v152_v57  ;;  %v162_v63 = vmul.f32 0.5, %v138_v58 }
  0x26   :  { %259 = vst.msk [vmem:[%s454_s1 + $0x42] ss:$4 sm:$0x3] %vm405_vm0, %v188_v60  ;;  %v272_v0 = vpop.eup %271 }
  0x27   :  { %v165_v1 = vsub.f32 %v120_v54, %v162_v63  ;;  %v139_v3 = vmul.f32 %v272_v0, %v97_v30  ;;  %v195_v4 = vadd.f32 %v162_v63, %v120_v54  ;;  %v274_v5 = vpop.eup %273 }
  0x28   :  { %v140_v9 = vmul.f32 %v274_v5, %v98_v33 }
  0x29   :  { %v168_v7 = vmax.f32 %v165_v1, 0.0  ;;  %v163_v8 = vmul.f32 0.5, %v139_v3  ;;  %v198_v10 = vmax.f32 %v195_v4, 0.0 }
  0x2a   :  { %v164_v13 = vmul.f32 0.5, %v140_v9 }
  0x2b   :  { %v171_v11 = vmin.f32 %v168_v7, 16.0  ;;  %v166_v12 = vsub.f32 %v121_v2, %v163_v8  ;;  %v201_v14 = vmin.f32 %v198_v10, 16.0  ;;  %v196_v15 = vadd.f32 %v163_v8, %v121_v2 }
  0x2c   :  { %v167_v17 = vsub.f32 %v122_v6, %v164_v13  ;;  %v197_v18 = vadd.f32 %v164_v13, %v122_v6 }
  0x2d   :  { %254 = vst [vmem:[%s454_s1 + $0x1] ss:$4 sm:$0xff] %v171_v11  ;;  %v169_v16 = vmax.f32 %v166_v12, 0.0  ;;  %260 = vst [vmem:[%s454_s1 + $0x3] ss:$4 sm:$0xff] %v201_v14  ;;  %v199_v19 = vmax.f32 %v196_v15, 0.0 }
  0x2e   :  { %v170_v21 = vmax.f32 %v167_v17, 0.0  ;;  %v200_v22 = vmax.f32 %v197_v18, 0.0 }
  0x2f   :  { %v172_v20 = vmin.f32 %v169_v16, 16.0  ;;  %v202_v23 = vmin.f32 %v199_v19, 16.0 }
  0x30   :  { %v173_v24 = vmin.f32 %v170_v21, 16.0  ;;  %v203_v25 = vmin.f32 %v200_v22, 16.0 }
  0x31   :  { %255 = vst [vmem:[%s454_s1 + $0x21] ss:$4 sm:$0xff] %v172_v20  ;;  %261 = vst [vmem:[%s454_s1 + $0x23] ss:$4 sm:$0xff] %v202_v23 }
  0x32   :  { %256 = vst.msk [vmem:[%s454_s1 + $0x41] ss:$4 sm:$0x3] %vm405_vm0, %v173_v24  ;;  %262 = vst.msk [vmem:[%s454_s1 + $0x43] ss:$4 sm:$0x3] %vm405_vm0, %v203_v25 }

// kernel: faster_rcnn_forward.7
= control target key start
LH: loop header
LB: loop body
LE: loop exit
PB: predicated region body
PF: predicated region fallthrough
CT: control target
= control target key end

     0   :  { %vm5032_vm0 = vcmask 523264   ;;  %s8617_s1 = inlined_call_operand.vmem [shape: bf16[6272,64], index: 1, kind: input, shape index: {}]   ;;  %s8618_s0 = inlined_call_operand.vmem [shape: bf16[32,6272], index: 0, kind: input, shape index: {}]   ;;  %s8619_s2 = inlined_call_operand.vmem [shape: f32[1,64], index: 2, kind: input, shape index: {}]   ;;  %s8620_s3 = inlined_call_operand.vmem [shape: bf16[64,64], index: 3, kind: input, shape index: {}]   ;;  %s8621_s5 = inlined_call_operand.vmem [shape: bf16[64,128], index: 5, kind: input, shape index: {}]   ;;  %s8622_s4 = inlined_call_operand.vmem [shape: f32[1,64], index: 4, kind: input, shape index: {}]   ;;  %s8623_s6 = inlined_call_operand.vmem [shape: f32[1,128], index: 6, kind: input, shape index: {}]   ;;  %s8624_s7 = inlined_call_operand.vmem [shape: f32[32,128], index: 7, kind: output, shape index: {}]  }
   0x1   :  { %v6439_v0 = vld [vmem:[%s8617_s1 + $0x40] sm:$0xff]   ;;  %v6443_v4 = vld [vmem:[%s8617_s1 + $0x48] sm:$0xff]   ;;  %v6447_v8 = vld [vmem:[%s8617_s1 + $0x50] sm:$0xff]  }
   0x2   :  { %v6440_v1 = vld [vmem:[%s8617_s1] sm:$0xff]   ;;  %5701 = vmatprep.subr.bf16.mxu0 %v6439_v0  ;;  %v6444_v5 = vld [vmem:[%s8617_s1 + $0x8] sm:$0xff]   ;;  %v6448_v9 = vld [vmem:[%s8617_s1 + $0x10] sm:$0xff]  }
   0x3   :  { %v6441_v2 = vld [vmem:[%s8617_s1 + $0xc0] sm:$0xff]   ;;  %5702 = vmatpush3.bf16.msra.mxu0 %v6440_v1  ;;  %v6445_v6 = vld [vmem:[%s8617_s1 + $0xc8] sm:$0xff]   ;;  %v6449_v10 = vld [vmem:[%s8617_s1 + $0xd0] sm:$0xff]  }
   0x4   :  { %v6442_v3 = vld [vmem:[%s8617_s1 + $0x80] sm:$0xff]   ;;  %5729 = vmatprep.subr.bf16.mxu1 %v6441_v2  ;;  %5703 = vmatprep.subr.bf16.mxu0 %v6443_v4  ;;  %v6446_v7 = vld [vmem:[%s8617_s1 + $0x88] sm:$0xff]   ;;  %v6450_v11 = vld [vmem:[%s8617_s1 + $0x90] sm:$0xff]  }
   0x5   :  { %5730 = vmatpush3.bf16.msra.mxu1 %v6442_v3  ;;  %v6451_v12 = vld [vmem:[%s8617_s1 + $0x58] sm:$0xff]   ;;  %v6455_v16 = vld [vmem:[%s8617_s1 + $0x60] sm:$0xff]   ;;  %v6459_v20 = vld [vmem:[%s8617_s1 + $0x68] sm:$0xff]  }
   0x6   :  { %5731 = vmatprep.subr.bf16.mxu1 %v6445_v6  ;;  %v6452_v13 = vld [vmem:[%s8617_s1 + $0x18] sm:$0xff]   ;;  %v6456_v17 = vld [vmem:[%s8617_s1 + $0x20] sm:$0xff]   ;;  %v6460_v21 = vld [vmem:[%s8617_s1 + $0x28] sm:$0xff]  }
   0x7   :  { %5704 = vmatpush3.bf16.msra.mxu0 %v6444_v5  ;;  %v6453_v14 = vld [vmem:[%s8617_s1 + $0xd8] sm:$0xff]   ;;  %v6457_v18 = vld [vmem:[%s8617_s1 + $0xe0] sm:$0xff]   ;;  %v6461_v22 = vld [vmem:[%s8617_s1 + $0xe8] sm:$0xff]  }
   0x8   :  { %5705 = vmatprep.subr.bf16.mxu0 %v6447_v8  ;;  %v6454_v15 = vld [vmem:[%s8617_s1 + $0x98] sm:$0xff]   ;;  %v6458_v19 = vld [vmem:[%s8617_s1 + $0xa0] sm:$0xff]   ;;  %v6462_v23 = vld [vmem:[%s8617_s1 + $0xa8] sm:$0xff]  }
   0x9   :  { %5732 = vmatpush3.bf16.msra.mxu1 %v6446_v7  ;;  %v6463_v24 = vld [vmem:[%s8617_s1 + $0x70] sm:$0xff]   ;;  %v6467_v28 = vld [vmem:[%s8617_s1 + $0x78] sm:$0xff]   ;;  %v6470_v31 = vld [vmem:[%s8618_s0] ss:$196 sps:$4 sm:$0xff]  }
   0xa   :  { %5733 = vmatprep.subr.bf16.mxu1 %v6449_v10  ;;  %v6464_v25 = vld [vmem:[%s8617_s1 + $0x30] sm:$0xff]   ;;  %v6468_v29 = vld [vmem:[%s8617_s1 + $0x38] sm:$0xff]   ;;  %v6472_v32 = vld [vmem:[%s8618_s0 + $0x4] ss:$196 sps:$4 sm:$0xff]  }
   0xb   :  { %5706 = vmatpush3.bf16.msra.mxu0 %v6448_v9  ;;  %v6465_v26 = vld [vmem:[%s8617_s1 + $0xf0] sm:$0xff]   ;;  %v6469_v30 = vld [vmem:[%s8617_s1 + $0xf8] sm:$0xff]   ;;  %3794 = vmatprep.mubr.bf16.mxu0 %v6472_v32  ;;  %v6474_v34 = vld [vmem:[%s8617_s1 + $0x140] sm:$0xff]  }
   0xc   :  { %5707 = vmatprep.subr.bf16.mxu0 %v6451_v12  ;;  %v6466_v27 = vld [vmem:[%s8617_s1 + $0xb0] sm:$0xff]   ;;  %v6473_v33 = vld [vmem:[%s8617_s1 + $0xb8] sm:$0xff]   ;;  %v6475_v35 = vld [vmem:[%s8618_s0 + $0x8] ss:$196 sps:$4 sm:$0xff]  }
   0xd   :  { %5734 = vmatpush3.bf16.msra.mxu1 %v6450_v11  ;;  %v6477_v36 = vld [vmem:[%s8618_s0 + $0xc] ss:$196 sps:$4 sm:$0xff]   ;;  %v6478_v37 = vld [vmem:[%s8617_s1 + $0x100] sm:$0xff]   ;;  %v6489_v48 = vld [vmem:[%s8617_s1 + $0x158] sm:$0xff]  }
   0xe   :  { %5735 = vmatprep.subr.bf16.mxu1 %v6453_v14  ;;  %3843 = vmatprep.mubr.bf16.mxu1 %v6477_v36  ;;  %v6479_v38 = vld [vmem:[%s8617_s1 + $0x1c0] sm:$0xff]   ;;  %v6481_v40 = vld [vmem:[%s8617_s1 + $0x148] sm:$0xff]   ;;  %v6485_v44 = vld [vmem:[%s8617_s1 + $0x150] sm:$0xff]  }
   0xf   :  { %5708 = vmatpush3.bf16.msra.mxu0 %v6452_v13  ;;  %v6480_v39 = vld [vmem:[%s8617_s1 + $0x180] sm:$0xff]   ;;  %v6482_v41 = vld [vmem:[%s8617_s1 + $0x108] sm:$0xff]   ;;  %v6486_v45 = vld [vmem:[%s8617_s1 + $0x110] sm:$0xff]  }
  0x10   :  { %5709 = vmatprep.subr.bf16.mxu0 %v6455_v16  ;;  %v6483_v42 = vld [vmem:[%s8617_s1 + $0x1c8] sm:$0xff]   ;;  %v6487_v46 = vld [vmem:[%s8617_s1 + $0x1d0] sm:$0xff]   ;;  %v6490_v49 = vld [vmem:[%s8617_s1 + $0x118] sm:$0xff]  }
  0x11   :  { %5736 = vmatpush3.bf16.msra.mxu1 %v6454_v15  ;;  %v6484_v43 = vld [vmem:[%s8617_s1 + $0x188] sm:$0xff]   ;;  %v6488_v47 = vld [vmem:[%s8617_s1 + $0x190] sm:$0xff]   ;;  %v6491_v50 = vld [vmem:[%s8617_s1 + $0x1d8] sm:$0xff]  }
  0x12   :  { %5737 = vmatprep.subr.bf16.mxu1 %v6457_v18  ;;  %v6492_v51 = vld [vmem:[%s8617_s1 + $0x198] sm:$0xff]   ;;  %v6493_v52 = vld [vmem:[%s8617_s1 + $0x160] sm:$0xff]   ;;  %v6497_v56 = vld [vmem:[%s8617_s1 + $0x168] sm:$0xff]  }
  0x13   :  { %5710 = vmatpush3.bf16.msra.mxu0 %v6456_v17  ;;  %v6494_v53 = vld [vmem:[%s8617_s1 + $0x120] sm:$0xff]   ;;  %v6498_v57 = vld [vmem:[%s8618_s0 + $0x18c] ss:$196 sps:$4 sm:$0xff]   ;;  %v6503_v61 = vld [vmem:[%s8618_s0 + $0x194] ss:$196 sps:$4 sm:$0xff]  }
  0x14   :  { %5711 = vmatprep.subr.bf16.mxu0 %v6459_v20  ;;  %v6495_v54 = vld [vmem:[%s8617_s1 + $0x1e0] sm:$0xff]   ;;  %v6500_v58 = vld [vmem:[%s8617_s1 + $0x128] sm:$0xff]   ;;  %v6506_v63 = vld [vmem:[%s8618_s0 + $0x190] ss:$196 sps:$4 sm:$0xff]  }
  0x15   :  { %5738 = vmatpush3.bf16.msra.mxu1 %v6458_v19  ;;  %v6496_v55 = vld [vmem:[%s8617_s1 + $0x1a0] sm:$0xff]   ;;  %v6501_v59 = vld [vmem:[%s8618_s0 + $0x188] ss:$196 sps:$4 sm:$0xff]   ;;  %v6507_v0 = vld [vmem:[%s8617_s1 + $0x170] sm:$0xff]  }
  0x16   :  { %5739 = vmatprep.subr.bf16.mxu1 %v6461_v22  ;;  %v6502_v60 = vld [vmem:[%s8617_s1 + $0x1e8] sm:$0xff]   ;;  %v6508_v1 = vld [vmem:[%s8617_s1 + $0x130] sm:$0xff]   ;;  %v6511_v4 = vld [vmem:[%s8617_s1 + $0x178] sm:$0xff]  }
  0x17   :  { %5712 = vmatpush3.bf16.msra.mxu0 %v6460_v21  ;;  %v6505_v62 = vld [vmem:[%s8617_s1 + $0x1a8] sm:$0xff]   ;;  %v6509_v2 = vld [vmem:[%s8617_s1 + $0x1f0] sm:$0xff]   ;;  %v6512_v5 = vld [vmem:[%s8617_s1 + $0x138] sm:$0xff]  }
  0x18   :  { %5713 = vmatprep.subr.bf16.mxu0 %v6463_v24  ;;  %v6510_v3 = vld [vmem:[%s8617_s1 + $0x1b0] sm:$0xff]   ;;  %v6513_v6 = vld [vmem:[%s8617_s1 + $0x1f8] sm:$0xff]   ;;  %v6518_v10 = vld [vmem:[%s8617_s1 + $0x240] sm:$0xff]  }
  0x19   :  { %5740 = vmatpush3.bf16.msra.mxu1 %v6462_v23  ;;  %v6514_v7 = vld [vmem:[%s8618_s0 + $0x10] ss:$196 sps:$4 sm:$0xff]   ;;  %v6517_v9 = vld [vmem:[%s8617_s1 + $0x1b8] sm:$0xff]   ;;  %v6522_v13 = vld [vmem:[%s8617_s1 + $0x200] sm:$0xff]  }
  0x1a   :  { %5741 = vmatprep.subr.bf16.mxu1 %v6465_v26  ;;  %v6516_v8 = vld [vmem:[%s8618_s0 + $0x14] ss:$196 sps:$4 sm:$0xff]   ;;  %v6521_v12 = vld [vmem:[%s8618_s0 + $0x1c] ss:$196 sps:$4 sm:$0xff]   ;;  %v6525_v16 = vld [vmem:[%s8617_s1 + $0x248] sm:$0xff]  }
  0x1b   :  { %5714 = vmatpush3.bf16.msra.mxu0 %v6464_v25  ;;  %v6519_v11 = vld [vmem:[%s8618_s0 + $0x18] ss:$196 sps:$4 sm:$0xff]   ;;  %v6523_v14 = vld [vmem:[%s8617_s1 + $0x2c0] sm:$0xff]   ;;  %v6526_v17 = vld [vmem:[%s8617_s1 + $0x208] sm:$0xff]  }
  0x1c   :  { %5715 = vmatprep.subr.bf16.mxu0 %v6467_v28  ;;  %v6524_v15 = vld [vmem:[%s8617_s1 + $0x280] sm:$0xff]   ;;  %v6527_v18 = vld [vmem:[%s8617_s1 + $0x2c8] sm:$0xff]   ;;  %v6531_v21 = vld [vmem:[%s8618_s0 + $0x198] ss:$196 sps:$4 sm:$0xff]  }
  0x1d   :  { %5742 = vmatpush3.bf16.msra.mxu1 %v6466_v27  ;;  %v6528_v19 = vld [vmem:[%s8618_s0 + $0x19c] ss:$196 sps:$4 sm:$0xff]   ;;  %v6530_v20 = vld [vmem:[%s8617_s1 + $0x288] sm:$0xff]   ;;  %v6532_v22 = vld [vmem:[%s8617_s1 + $0x250] sm:$0xff]  }
  0x1e   :  { %5743 = vmatprep.subr.bf16.mxu1 %v6469_v30  ;;  %v6533_v23 = vld [vmem:[%s8618_s0 + $0x1a4] ss:$196 sps:$4 sm:$0xff]   ;;  %v6535_v24 = vld [vmem:[%s8617_s1 + $0x210] sm:$0xff]   ;;  %v6539_v28 = vld [vmem:[%s8617_s1 + $0x258] sm:$0xff]  }
  0x1f   :  { %5716 = vmatpush3.bf16.msra.mxu0 %v6468_v29  ;;  %v6536_v25 = vld [vmem:[%s8618_s0 + $0x1a0] ss:$196 sps:$4 sm:$0xff]   ;;  %v6537_v26 = vld [vmem:[%s8617_s1 + $0x2d0] sm:$0xff]   ;;  %v6540_v29 = vld [vmem:[%s8617_s1 + $0x218] sm:$0xff]  }
  0x20   :  { %5757 = vmatprep.subr.bf16.mxu0 %v6474_v34  ;;  %v6538_v27 = vld [vmem:[%s8617_s1 + $0x290] sm:$0xff]   ;;  %v6541_v30 = vld [vmem:[%s8617_s1 + $0x2d8] sm:$0xff]   ;;  %v6543_v32 = vld [vmem:[%s8617_s1 + $0x260] sm:$0xff]  }
  0x21   :  { %5744 = vmatpush3.bf16.msra.mxu1 %v6473_v33  ;;  %v6544_v33 = vld [vmem:[%s8617_s1 + $0x220] sm:$0xff]   ;;  %v6547_v36 = vld [vmem:[%s8617_s1 + $0x268] sm:$0xff]  }
  0x22   :  { %3795 = vmatmul.mubr.bf16.vlgmr.msra.gmra.mrb[0].mxu0 %v6470_v31  ;;  %5785 = vmatprep.subr.bf16.mxu1 %v6479_v38  ;;  %v6542_v31 = vld [vmem:[%s8617_s1 + $0x298] sm:$0xff]   ;;  %v6545_v34 = vld [vmem:[%s8617_s1 + $0x2e0] sm:$0xff]   ;;  %v6549_v38 = vld [vmem:[%s8617_s1 + $0x2e8] sm:$0xff]  }
  0x23   :  { %5758 = vmatpush3.bf16.msra.mxu0 %v6478_v37  ;;  %3802 = vmatprep.mubr.bf16.mxu0 %v6498_v57  ;;  %v6548_v37 = vld [vmem:[%s8617_s1 + $0x228] sm:$0xff]  }
  0x24   :  { %3844 = vmatmul.mubr.bf16.vlgmr.msra.gmra.mrb[0].mxu1 %v6475_v35  ;;  %5759 = vmatprep.subr.bf16.mxu0 %v6481_v40  ;;  %v6546_v35 = vld [vmem:[%s8617_s1 + $0x2a0] sm:$0xff]   ;;  %v6551_v40 = vld [vmem:[%s8617_s1 + $0x270] sm:$0xff]   ;;  %v6570_v57 = vld [vmem:[%s8617_s1 + $0x308] sm:$0xff]  }
  0x25   :  { %5786 = vmatpush3.bf16.msra.mxu1 %v6480_v39  ;;  %3851 = vmatprep.mubr.bf16.mxu1 %v6503_v61  ;;  %v6550_v39 = vld [vmem:[%s8617_s1 + $0x2a8] sm:$0xff]  }
  0x26   :  { %5787 = vmatprep.subr.bf16.mxu1 %v6483_v42  ;;  %v6553_v42 = vld [vmem:[%s8617_s1 + $0x2f0] sm:$0xff]   ;;  %v6575_v61 = vld [vmem:[%s8618_s0 + $0x1a8] ss:$196 sps:$4 sm:$0xff]  }
  0x27   :  { %5760 = vmatpush3.bf16.msra.mxu0 %v6482_v41  ;;  %v6552_v41 = vld [vmem:[%s8617_s1 + $0x230] sm:$0xff]  }
  0x28   :  { %5761 = vmatprep.subr.bf16.mxu0 %v6485_v44  ;;  %v6555_v44 = vld [vmem:[%s8617_s1 + $0x278] sm:$0xff]  }
  0x29   :  { %5788 = vmatpush3.bf16.msra.mxu1 %v6484_v43  ;;  %v6554_v43 = vld [vmem:[%s8617_s1 + $0x2b0] sm:$0xff]  }
  0x2a   :  { %5789 = vmatprep.subr.bf16.mxu1 %v6487_v46  ;;  %3803 = vmatmul.mubr.bf16.gmra.mrb[4].mxu0 %v6501_v59  ;;  %v6557_v46 = vld [vmem:[%s8617_s1 + $0x2f8] sm:$0xff]   ;;  %v6572_v59 = vld [vmem:[%s8618_s0 + $0x1ac] ss:$196 sps:$4 sm:$0xff]  }
  0x2b   :  { %5762 = vmatpush3.bf16.msra.mxu0 %v6486_v45  ;;  %3892 = vmatprep.mubr.bf16.mxu0 %v6516_v8  ;;  %v6556_v45 = vld [vmem:[%s8617_s1 + $0x238] sm:$0xff]   ;;  %v6587_v8 = vld [vmem:[%s8617_s1 + $0x360] sm:$0xff]  }
  0x2c   :  { %5763 = vmatprep.subr.bf16.mxu0 %v6489_v48  ;;  %3852 = vmatmul.mubr.bf16.gmra.mrb[4].mxu1 %v6506_v63  ;;  %v6560_v48 = vld [vmem:[%s8618_s0 + $0x24] ss:$196 sps:$4 sm:$0xff]   ;;  %v6577_v63 = vld [vmem:[%s8618_s0 + $0x1b4] ss:$196 sps:$4 sm:$0xff]  }
  0x2d   :  { %5790 = vmatpush3.bf16.msra.mxu1 %v6488_v47  ;;  %3941 = vmatprep.mubr.bf16.mxu1 %v6521_v12  ;;  %v6558_v47 = vld [vmem:[%s8618_s0 + $0x20] ss:$196 sps:$4 sm:$0xff]   ;;  %v6591_v12 = vld [vmem:[%s8617_s1 + $0x368] sm:$0xff]  }
  0x2e   :  { %5791 = vmatprep.subr.bf16.mxu1 %v6491_v50  ;;  %v6562_v50 = vld [vmem:[%s8617_s1 + $0x340] sm:$0xff]  }
  0x2f   :  { %5764 = vmatpush3.bf16.msra.mxu0 %v6490_v49  ;;  %v6561_v49 = vld [vmem:[%s8617_s1 + $0x2b8] sm:$0xff]  }
  0x30   :  { %5765 = vmatprep.subr.bf16.mxu0 %v6493_v52  ;;  %v6565_v52 = vld [vmem:[%s8618_s0 + $0x2c] ss:$196 sps:$4 sm:$0xff]  }
  0x31   :  { %5792 = vmatpush3.bf16.msra.mxu1 %v6492_v51  ;;  %v6563_v51 = vld [vmem:[%s8618_s0 + $0x28] ss:$196 sps:$4 sm:$0xff]  }
  0x32   :  { %5793 = vmatprep.subr.bf16.mxu1 %v6495_v54  ;;  %v6567_v54 = vld [vmem:[%s8617_s1 + $0x3c0] sm:$0xff]  }
  0x33   :  { %5766 = vmatpush3.bf16.msra.mxu0 %v6494_v53  ;;  %v6566_v53 = vld [vmem:[%s8617_s1 + $0x300] sm:$0xff]  }
  0x34   :  { %5767 = vmatprep.subr.bf16.mxu0 %v6497_v56  ;;  %v6569_v56 = vld [vmem:[%s8617_s1 + $0x348] sm:$0xff]  }
  0x35   :  { %5794 = vmatpush3.bf16.msra.mxu1 %v6496_v55  ;;  %v6568_v55 = vld [vmem:[%s8617_s1 + $0x380] sm:$0xff]  }
  0x36   :  { %5795 = vmatprep.subr.bf16.mxu1 %v6502_v60  ;;  %v6574_v60 = vld [vmem:[%s8617_s1 + $0x388] sm:$0xff]  }
  0x37   :  { %5768 = vmatpush3.bf16.msra.mxu0 %v6500_v58  ;;  %v6571_v58 = vld [vmem:[%s8617_s1 + $0x3c8] sm:$0xff]  }
  0x38   :  { %5769 = vmatprep.subr.bf16.mxu0 %v6507_v0  ;;  %v6579_v0 = vld [vmem:[%s8617_s1 + $0x310] sm:$0xff]  }
  0x39   :  { %5796 = vmatpush3.bf16.msra.mxu1 %v6505_v62  ;;  %v6576_v62 = vld [vmem:[%s8617_s1 + $0x350] sm:$0xff]  }
  0x3a   :  { %5797 = vmatprep.subr.bf16.mxu1 %v6509_v2  ;;  %v6581_v2 = vld [vmem:[%s8617_s1 + $0x3d0] sm:$0xff]  }
  0x3b   :  { %5770 = vmatpush3.bf16.msra.mxu0 %v6508_v1  ;;  %v6580_v1 = vld [vmem:[%s8618_s0 + $0x1b0] ss:$196 sps:$4 sm:$0xff]  }
  0x3c   :  { %5771 = vmatprep.subr.bf16.mxu0 %v6511_v4  ;;  %v6583_v4 = vld [vmem:[%s8617_s1 + $0x358] sm:$0xff]  }
  0x3d   :  { %5798 = vmatpush3.bf16.msra.mxu1 %v6510_v3  ;;  %v6582_v3 = vld [vmem:[%s8617_s1 + $0x390] sm:$0xff]  }
  0x3e   :  { %5799 = vmatprep.subr.bf16.mxu1 %v6513_v6  ;;  %v6585_v6 = vld [vmem:[%s8617_s1 + $0x3d8] sm:$0xff]  }
  0x3f   :  { %5772 = vmatpush3.bf16.msra.mxu0 %v6512_v5  ;;  %v6584_v5 = vld [vmem:[%s8617_s1 + $0x318] sm:$0xff]  }
  0x40   :  { %5813 = vmatprep.subr.bf16.mxu0 %v6518_v10  ;;  %v6589_v10 = vld [vmem:[%s8617_s1 + $0x3e0] sm:$0xff]  }
  0x41   :  { %5800 = vmatpush3.bf16.msra.mxu1 %v6517_v9  ;;  %v6588_v9 = vld [vmem:[%s8617_s1 + $0x320] sm:$0xff]  }
  0x42   :  { %3893 = vmatmul.mubr.bf16.vlgmr.msra.gmra.mrb[8].mxu0 %v6514_v7  ;;  %5841 = vmatprep.subr.bf16.mxu1 %v6523_v14  ;;  %v6586_v7 = vld [vmem:[%s8617_s1 + $0x398] sm:$0xff]   ;;  %v6593_v14 = vld [vmem:[%s8617_s1 + $0x3e8] sm:$0xff]  }
  0x43   :  { %5814 = vmatpush3.bf16.msra.mxu0 %v6522_v13  ;;  %3900 = vmatprep.mubr.bf16.mxu0 %v6528_v19  ;;  %v6592_v13 = vld [vmem:[%s8617_s1 + $0x328] sm:$0xff]   ;;  %v6598_v19 = vld [vmem:[%s8617_s1 + $0x3b0] sm:$0xff]  }
  0x44   :  { %3942 = vmatmul.mubr.bf16.vlgmr.msra.gmra.mrb[8].mxu1 %v6519_v11  ;;  %5815 = vmatprep.subr.bf16.mxu0 %v6525_v16  ;;  %v6590_v11 = vld [vmem:[%s8617_s1 + $0x3a0] sm:$0xff]   ;;  %v6595_v16 = vld [vmem:[%s8617_s1 + $0x370] sm:$0xff]  }
  0x45   :  { %5842 = vmatpush3.bf16.msra.mxu1 %v6524_v15  ;;  %3949 = vmatprep.mubr.bf16.mxu1 %v6533_v23  ;;  %v6594_v15 = vld [vmem:[%s8617_s1 + $0x3a8] sm:$0xff]   ;;  %v6602_v23 = vld [vmem:[%s8618_s0 + $0x30] ss:$196 sps:$4 sm:$0xff]  }
  0x46   :  { %5843 = vmatprep.subr.bf16.mxu1 %v6527_v18  ;;  %v6597_v18 = vld [vmem:[%s8617_s1 + $0x3f0] sm:$0xff]  }
  0x47   :  { %5816 = vmatpush3.bf16.msra.mxu0 %v6526_v17  ;;  %v6596_v17 = vld [vmem:[%s8617_s1 + $0x330] sm:$0xff]  }
  0x48   :  { %5817 = vmatprep.subr.bf16.mxu0 %v6532_v22  ;;  %v6601_v22 = vld [vmem:[%s8617_s1 + $0x3f8] sm:$0xff]  }
  0x49   :  { %5844 = vmatpush3.bf16.msra.mxu1 %v6530_v20  ;;  %v6599_v20 = vld [vmem:[%s8617_s1 + $0x378] sm:$0xff]  }
  0x4a   :  { %3901 = vmatmul.mubr.bf16.gmra.mrb[12].mxu0 %v6531_v21  ;;  %5845 = vmatprep.subr.bf16.mxu1 %v6537_v26  ;;  %v6600_v21 = vld [vmem:[%s8617_s1 + $0x338] sm:$0xff]   ;;  %v6606_v26 = vld [vmem:[%s8617_s1 + $0x440] sm:$0xff]  }
  0x4b   :  { %5818 = vmatpush3.bf16.msra.mxu0 %v6535_v24  ;;  %3990 = vmatprep.mubr.bf16.mxu0 %v6560_v48  ;;  %v6604_v24 = vld [vmem:[%s8618_s0 + $0x34] ss:$196 sps:$4 sm:$0xff]   ;;  %v6631_v48 = vld [vmem:[%s8617_s1 + $0x460] sm:$0xff]  }
  0x4c   :  { %3950 = vmatmul.mubr.bf16.gmra.mrb[12].mxu1 %v6536_v25  ;;  %5819 = vmatprep.subr.bf16.mxu0 %v6539_v28  ;;  %v6605_v25 = vld [vmem:[%s8617_s1 + $0x3b8] sm:$0xff]  }
  0x4d   :  { %5846 = vmatpush3.bf16.msra.mxu1 %v6538_v27  ;;  %4039 = vmatprep.mubr.bf16.mxu1 %v6565_v52  ;;  %v6607_v27 = vld [vmem:[%s8618_s0 + $0x38] ss:$196 sps:$4 sm:$0xff]   ;;  %v6635_v52 = vld [vmem:[%s8617_s1 + $0x468] sm:$0xff]  }
  0x4e   :  { %5847 = vmatprep.subr.bf16.mxu1 %v6541_v30  ;;  %v6609_v28 = vld [vmem:[%s8618_s0 + $0x3c] ss:$196 sps:$4 sm:$0xff]  }
  0x4f   :  { %5820 = vmatpush3.bf16.msra.mxu0 %v6540_v29  ;;  %v6610_v29 = vld [vmem:[%s8617_s1 + $0x400] sm:$0xff]  }
  0x50   :  { %5821 = vmatprep.subr.bf16.mxu0 %v6543_v32  ;;  %v6611_v30 = vld [vmem:[%s8617_s1 + $0x4c0] sm:$0xff]   ;;  %v6613_v32 = vld [vmem:[%s8617_s1 + $0x448] sm:$0xff]  }
  0x51   :  { %5848 = vmatpush3.bf16.msra.mxu1 %v6542_v31  ;;  %v6612_v31 = vld [vmem:[%s8617_s1 + $0x480] sm:$0xff]  }
  0x52   :  { %5849 = vmatprep.subr.bf16.mxu1 %v6545_v34  ;;  %v6615_v34 = vld [vmem:[%s8617_s1 + $0x4c8] sm:$0xff]  }
  0x53   :  { %5822 = vmatpush3.bf16.msra.mxu0 %v6544_v33  ;;  %v6614_v33 = vld [vmem:[%s8617_s1 + $0x408] sm:$0xff]  }
  0x54   :  { %5823 = vmatprep.subr.bf16.mxu0 %v6547_v36  ;;  %v6618_v36 = vld [vmem:[%s8617_s1 + $0x488] sm:$0xff]  }
  0x55   :  { %5850 = vmatpush3.bf16.msra.mxu1 %v6546_v35  ;;  %v6616_v35 = vld [vmem:[%s8618_s0 + $0x1bc] ss:$196 sps:$4 sm:$0xff]  }
  0x56   :  { %5851 = vmatprep.subr.bf16.mxu1 %v6549_v38  ;;  %v6620_v38 = vld [vmem:[%s8617_s1 + $0x450] sm:$0xff]  }
  0x57   :  { %5824 = vmatpush3.bf16.msra.mxu0 %v6548_v37  ;;  %v6619_v37 = vld [vmem:[%s8618_s0 + $0x1b8] ss:$196 sps:$4 sm:$0xff]  }
  0x58   :  { %5825 = vmatprep.subr.bf16.mxu0 %v6551_v40  ;;  %v6623_v40 = vld [vmem:[%s8617_s1 + $0x410] sm:$0xff]  }
  0x59   :  { %5852 = vmatpush3.bf16.msra.mxu1 %v6550_v39  ;;  %v6621_v39 = vld [vmem:[%s8618_s0 + $0x1c4] ss:$196 sps:$4 sm:$0xff]  }
  0x5a   :  { %5853 = vmatprep.subr.bf16.mxu1 %v6553_v42  ;;  %v6625_v42 = vld [vmem:[%s8617_s1 + $0x4d0] sm:$0xff]  }
  0x5b   :  { %5826 = vmatpush3.bf16.msra.mxu0 %v6552_v41  ;;  %v6624_v41 = vld [vmem:[%s8618_s0 + $0x1c0] ss:$196 sps:$4 sm:$0xff]  }
  0x5c   :  { %5827 = vmatprep.subr.bf16.mxu0 %v6555_v44  ;;  %v6627_v44 = vld [vmem:[%s8617_s1 + $0x458] sm:$0xff]  }
  0x5d   :  { %5854 = vmatpush3.bf16.msra.mxu1 %v6554_v43  ;;  %v6626_v43 = vld [vmem:[%s8617_s1 + $0x490] sm:$0xff]  }
  0x5e   :  { %5855 = vmatprep.subr.bf16.mxu1 %v6557_v46  ;;  %v6629_v46 = vld [vmem:[%s8617_s1 + $0x4d8] sm:$0xff]  }
  0x5f   :  { %5828 = vmatpush3.bf16.msra.mxu0 %v6556_v45  ;;  %v6628_v45 = vld [vmem:[%s8617_s1 + $0x418] sm:$0xff]  }
  0x60   :  { %5869 = vmatprep.subr.bf16.mxu0 %v6562_v50  ;;  %v6633_v50 = vld [vmem:[%s8617_s1 + $0x4e0] sm:$0xff]  }
  0x61   :  { %5856 = vmatpush3.bf16.msra.mxu1 %v6561_v49  ;;  %v6632_v49 = vld [vmem:[%s8617_s1 + $0x420] sm:$0xff]  }
  0x62   :  { %3991 = vmatmul.mubr.bf16.vlgmr.msra.gmra.mrb[16].mxu0 %v6558_v47  ;;  %5897 = vmatprep.subr.bf16.mxu1 %v6567_v54  ;;  %v6630_v47 = vld [vmem:[%s8617_s1 + $0x498] sm:$0xff]   ;;  %v6637_v54 = vld [vmem:[%s8617_s1 + $0x4e8] sm:$0xff]  }
  0x63   :  { %5870 = vmatpush3.bf16.msra.mxu0 %v6566_v53  ;;  %3998 = vmatprep.mubr.bf16.mxu0 %v6572_v59  ;;  %v6636_v53 = vld [vmem:[%s8617_s1 + $0x428] sm:$0xff]   ;;  %v6642_v59 = vld [vmem:[%s8617_s1 + $0x4b0] sm:$0xff]  }
  0x64   :  { %4040 = vmatmul.mubr.bf16.vlgmr.msra.gmra.mrb[16].mxu1 %v6563_v51  ;;  %5871 = vmatprep.subr.bf16.mxu0 %v6569_v56  ;;  %v6634_v51 = vld [vmem:[%s8617_s1 + $0x4a0] sm:$0xff]   ;;  %v6639_v56 = vld [vmem:[%s8617_s1 + $0x470] sm:$0xff]  }
  0x65   :  { %5898 = vmatpush3.bf16.msra.mxu1 %v6568_v55  ;;  %4047 = vmatprep.mubr.bf16.mxu1 %v6577_v63  ;;  %v6638_v55 = vld [vmem:[%s8617_s1 + $0x4a8] sm:$0xff]   ;;  %v6646_v63 = vld [vmem:[%s8618_s0 + $0x40] ss:$196 sps:$4 sm:$0xff]  }
  0x66   :  { %5899 = vmatprep.subr.bf16.mxu1 %v6571_v58  ;;  %v6641_v58 = vld [vmem:[%s8617_s1 + $0x4f0] sm:$0xff]  }
  0x67   :  { %5872 = vmatpush3.bf16.msra.mxu0 %v6570_v57  ;;  %v6640_v57 = vld [vmem:[%s8617_s1 + $0x430] sm:$0xff]  }
  0x68   :  { %5873 = vmatprep.subr.bf16.mxu0 %v6576_v62  ;;  %v6645_v62 = vld [vmem:[%s8617_s1 + $0x4f8] sm:$0xff]  }
  0x69   :  { %5900 = vmatpush3.bf16.msra.mxu1 %v6574_v60  ;;  %v6643_v60 = vld [vmem:[%s8617_s1 + $0x478] sm:$0xff]  }
  0x6a   :  { %3999 = vmatmul.mubr.bf16.gmra.mrb[20].mxu0 %v6575_v61  ;;  %5901 = vmatprep.subr.bf16.mxu1 %v6581_v2  ;;  %v6644_v61 = vld [vmem:[%s8617_s1 + $0x438] sm:$0xff]   ;;  %v6650_v2 = vld [vmem:[%s8617_s1 + $0x540] sm:$0xff]  }
  0x6b   :  { %5874 = vmatpush3.bf16.msra.mxu0 %v6579_v0  ;;  %4088 = vmatprep.mubr.bf16.mxu0 %v6604_v24  ;;  %v6648_v0 = vld [vmem:[%s8618_s0 + $0x44] ss:$196 sps:$4 sm:$0xff]  }
  0x6c   :  { %4048 = vmatmul.mubr.bf16.gmra.mrb[20].mxu1 %v6580_v1  ;;  %5875 = vmatprep.subr.bf16.mxu0 %v6583_v4  ;;  %v6649_v1 = vld [vmem:[%s8617_s1 + $0x4b8] sm:$0xff]   ;;  %v6653_v4 = vld [vmem:[%s8618_s0 + $0x4c] ss:$196 sps:$4 sm:$0xff]   ;;  %v6675_v24 = vld [vmem:[%s8617_s1 + $0x560] sm:$0xff]  }
  0x6d   :  { %5902 = vmatpush3.bf16.msra.mxu1 %v6582_v3  ;;  %4137 = vmatprep.mubr.bf16.mxu1 %v6609_v28  ;;  %v6651_v3 = vld [vmem:[%s8618_s0 + $0x48] ss:$196 sps:$4 sm:$0xff]  }
  0x6e   :  { %5903 = vmatprep.subr.bf16.mxu1 %v6585_v6  ;;  %v6655_v6 = vld [vmem:[%s8617_s1 + $0x5c0] sm:$0xff]   ;;  %v6679_v28 = vld [vmem:[%s8617_s1 + $0x568] sm:$0xff]  }
  0x6f   :  { %5876 = vmatpush3.bf16.msra.mxu0 %v6584_v5  ;;  %v6654_v5 = vld [vmem:[%s8617_s1 + $0x500] sm:$0xff]  }
  0x70   :  { %5877 = vmatprep.subr.bf16.mxu0 %v6587_v8  ;;  %v6657_v8 = vld [vmem:[%s8617_s1 + $0x548] sm:$0xff]  }
  0x71   :  { %5904 = vmatpush3.bf16.msra.mxu1 %v6586_v7  ;;  %v6656_v7 = vld [vmem:[%s8617_s1 + $0x580] sm:$0xff]  }
  0x72   :  { %5905 = vmatprep.subr.bf16.mxu1 %v6589_v10  ;;  %v6659_v10 = vld [vmem:[%s8617_s1 + $0x5c8] sm:$0xff]  }
  0x73   :  { %5878 = vmatpush3.bf16.msra.mxu0 %v6588_v9  ;;  %v6658_v9 = vld [vmem:[%s8617_s1 + $0x508] sm:$0xff]  }
  0x74   :  { %5879 = vmatprep.subr.bf16.mxu0 %v6591_v12  ;;  %v6662_v12 = vld [vmem:[%s8617_s1 + $0x588] sm:$0xff]  }
  0x75   :  { %5906 = vmatpush3.bf16.msra.mxu1 %v6590_v11  ;;  %v6660_v11 = vld [vmem:[%s8618_s0 + $0x1cc] ss:$196 sps:$4 sm:$0xff]  }
  0x76   :  { %5907 = vmatprep.subr.bf16.mxu1 %v6593_v14  ;;  %v6664_v14 = vld [vmem:[%s8617_s1 + $0x550] sm:$0xff]  }
  0x77   :  { %5880 = vmatpush3.bf16.msra.mxu0 %v6592_v13  ;;  %v6663_v13 = vld [vmem:[%s8618_s0 + $0x1c8] ss:$196 sps:$4 sm:$0xff]  }
  0x78   :  { %5881 = vmatprep.subr.bf16.mxu0 %v6595_v16  ;;  %v6667_v16 = vld [vmem:[%s8617_s1 + $0x510] sm:$0xff]  }
  0x79   :  { %5908 = vmatpush3.bf16.msra.mxu1 %v6594_v15  ;;  %v6665_v15 = vld [vmem:[%s8618_s0 + $0x1d4] ss:$196 sps:$4 sm:$0xff]  }
  0x7a   :  { %5909 = vmatprep.subr.bf16.mxu1 %v6597_v18  ;;  %v6669_v18 = vld [vmem:[%s8617_s1 + $0x5d0] sm:$0xff]  }
  0x7b   :  { %5882 = vmatpush3.bf16.msra.mxu0 %v6596_v17  ;;  %v6668_v17 = vld [vmem:[%s8618_s0 + $0x1d0] ss:$196 sps:$4 sm:$0xff]  }
  0x7c   :  { %5883 = vmatprep.subr.bf16.mxu0 %v6599_v20  ;;  %v6671_v20 = vld [vmem:[%s8617_s1 + $0x558] sm:$0xff]  }
  0x7d   :  { %5910 = vmatpush3.bf16.msra.mxu1 %v6598_v19  ;;  %v6670_v19 = vld [vmem:[%s8617_s1 + $0x590] sm:$0xff]  }
  0x7e   :  { %5911 = vmatprep.subr.bf16.mxu1 %v6601_v22  ;;  %v6673_v22 = vld [vmem:[%s8617_s1 + $0x5d8] sm:$0xff]  }
  0x7f   :  { %5884 = vmatpush3.bf16.msra.mxu0 %v6600_v21  ;;  %v6672_v21 = vld [vmem:[%s8617_s1 + $0x518] sm:$0xff]  }
  0x80   :  { %5925 = vmatprep.subr.bf16.mxu0 %v6606_v26  ;;  %v6677_v26 = vld [vmem:[%s8617_s1 + $0x5e0] sm:$0xff]  }
  0x81   :  { %5912 = vmatpush3.bf16.msra.mxu1 %v6605_v25  ;;  %v6676_v25 = vld [vmem:[%s8617_s1 + $0x520] sm:$0xff]  }
  0x82   :  { %4089 = vmatmul.mubr.bf16.vlgmr.msra.gmra.mrb[24].mxu0 %v6602_v23  ;;  %5953 = vmatprep.subr.bf16.mxu1 %v6611_v30  ;;  %v6674_v23 = vld [vmem:[%s8617_s1 + $0x598] sm:$0xff]   ;;  %v6681_v30 = vld [vmem:[%s8617_s1 + $0x5e8] sm:$0xff]  }
  0x83   :  { %5926 = vmatpush3.bf16.msra.mxu0 %v6610_v29  ;;  %4096 = vmatprep.mubr.bf16.mxu0 %v6616_v35  ;;  %v6680_v29 = vld [vmem:[%s8617_s1 + $0x528] sm:$0xff]   ;;  %v6686_v35 = vld [vmem:[%s8617_s1 + $0x5b0] sm:$0xff]  }
  0x84   :  { %4138 = vmatmul.mubr.bf16.vlgmr.msra.gmra.mrb[24].mxu1 %v6607_v27  ;;  %5927 = vmatprep.subr.bf16.mxu0 %v6613_v32  ;;  %v6678_v27 = vld [vmem:[%s8617_s1 + $0x5a0] sm:$0xff]   ;;  %v6683_v32 = vld [vmem:[%s8617_s1 + $0x570] sm:$0xff]  }
  0x85   :  { %5954 = vmatpush3.bf16.msra.mxu1 %v6612_v31  ;;  %4145 = vmatprep.mubr.bf16.mxu1 %v6621_v39  ;;  %v6682_v31 = vld [vmem:[%s8617_s1 + $0x5a8] sm:$0xff]   ;;  %v6690_v39 = vld [vmem:[%s8618_s0 + $0x50] ss:$196 sps:$4 sm:$0xff]  }
  0x86   :  { %5955 = vmatprep.subr.bf16.mxu1 %v6615_v34  ;;  %v6685_v34 = vld [vmem:[%s8617_s1 + $0x5f0] sm:$0xff]  }
  0x87   :  { %5928 = vmatpush3.bf16.msra.mxu0 %v6614_v33  ;;  %v6684_v33 = vld [vmem:[%s8617_s1 + $0x530] sm:$0xff]  }
  0x88   :  { %5929 = vmatprep.subr.bf16.mxu0 %v6620_v38  ;;  %v6689_v38 = vld [vmem:[%s8617_s1 + $0x5f8] sm:$0xff]  }
  0x89   :  { %5956 = vmatpush3.bf16.msra.mxu1 %v6618_v36  ;;  %v6687_v36 = vld [vmem:[%s8617_s1 + $0x578] sm:$0xff]  }
  0x8a   :  { %4097 = vmatmul.mubr.bf16.gmra.mrb[28].mxu0 %v6619_v37  ;;  %5957 = vmatprep.subr.bf16.mxu1 %v6625_v42  ;;  %v6688_v37 = vld [vmem:[%s8617_s1 + $0x538] sm:$0xff]   ;;  %v6694_v42 = vld [vmem:[%s8617_s1 + $0x640] sm:$0xff]  }
  0x8b   :  { %5930 = vmatpush3.bf16.msra.mxu0 %v6623_v40  ;;  %4186 = vmatprep.mubr.bf16.mxu0 %v6648_v0  ;;  %v6692_v40 = vld [vmem:[%s8618_s0 + $0x54] ss:$196 sps:$4 sm:$0xff]   ;;  %v6719_v0 = vld [vmem:[%s8617_s1 + $0x660] sm:$0xff]  }
  0x8c   :  { %4146 = vmatmul.mubr.bf16.gmra.mrb[28].mxu1 %v6624_v41  ;;  %5931 = vmatprep.subr.bf16.mxu0 %v6627_v44  ;;  %v6693_v41 = vld [vmem:[%s8617_s1 + $0x5b8] sm:$0xff]  }
  0x8d   :  { %5958 = vmatpush3.bf16.msra.mxu1 %v6626_v43  ;;  %4235 = vmatprep.mubr.bf16.mxu1 %v6653_v4  ;;  %v6695_v43 = vld [vmem:[%s8618_s0 + $0x58] ss:$196 sps:$4 sm:$0xff]   ;;  %v6723_v4 = vld [vmem:[%s8617_s1 + $0x668] sm:$0xff]  }
  0x8e   :  { %5959 = vmatprep.subr.bf16.mxu1 %v6629_v46  ;;  %v6697_v44 = vld [vmem:[%s8618_s0 + $0x5c] ss:$196 sps:$4 sm:$0xff]  }
  0x8f   :  { %5932 = vmatpush3.bf16.msra.mxu0 %v6628_v45  ;;  %v6698_v45 = vld [vmem:[%s8617_s1 + $0x600] sm:$0xff]  }
  0x90   :  { %5933 = vmatprep.subr.bf16.mxu0 %v6631_v48  ;;  %v6699_v46 = vld [vmem:[%s8617_s1 + $0x6c0] sm:$0xff]   ;;  %v6701_v48 = vld [vmem:[%s8617_s1 + $0x648] sm:$0xff]  }
  0x91   :  { %5960 = vmatpush3.bf16.msra.mxu1 %v6630_v47  ;;  %v6700_v47 = vld [vmem:[%s8617_s1 + $0x680] sm:$0xff]  }
  0x92   :  { %5961 = vmatprep.subr.bf16.mxu1 %v6633_v50  ;;  %v6703_v50 = vld [vmem:[%s8617_s1 + $0x6c8] sm:$0xff]  }
  0x93   :  { %5934 = vmatpush3.bf16.msra.mxu0 %v6632_v49  ;;  %v6702_v49 = vld [vmem:[%s8617_s1 + $0x608] sm:$0xff]  }
  0x94   :  { %5935 = vmatprep.subr.bf16.mxu0 %v6635_v52  ;;  %v6706_v52 = vld [vmem:[%s8617_s1 + $0x688] sm:$0xff]  }
  0x95   :  { %5962 = vmatpush3.bf16.msra.mxu1 %v6634_v51  ;;  %v6704_v51 = vld [vmem:[%s8618_s0 + $0x1dc] ss:$196 sps:$4 sm:$0xff]  }
  0x96   :  { %5963 = vmatprep.subr.bf16.mxu1 %v6637_v54  ;;  %v6708_v54 = vld [vmem:[%s8617_s1 + $0x650] sm:$0xff]  }
  0x97   :  { %5936 = vmatpush3.bf16.msra.mxu0 %v6636_v53  ;;  %v6707_v53 = vld [vmem:[%s8618_s0 + $0x1d8] ss:$196 sps:$4 sm:$0xff]  }
  0x98   :  { %5937 = vmatprep.subr.bf16.mxu0 %v6639_v56  ;;  %v6711_v56 = vld [vmem:[%s8617_s1 + $0x610] sm:$0xff]  }
  0x99   :  { %5964 = vmatpush3.bf16.msra.mxu1 %v6638_v55  ;;  %v6709_v55 = vld [vmem:[%s8618_s0 + $0x1e4] ss:$196 sps:$4 sm:$0xff]  }
  0x9a   :  { %5965 = vmatprep.subr.bf16.mxu1 %v6641_v58  ;;  %v6713_v58 = vld [vmem:[%s8617_s1 + $0x6d0] sm:$0xff]  }
  0x9b   :  { %5938 = vmatpush3.bf16.msra.mxu0 %v6640_v57  ;;  %v6712_v57 = vld [vmem:[%s8618_s0 + $0x1e0] ss:$196 sps:$4 sm:$0xff]  }
  0x9c   :  { %5939 = vmatprep.subr.bf16.mxu0 %v6643_v60  ;;  %v6715_v60 = vld [vmem:[%s8617_s1 + $0x658] sm:$0xff]  }
  0x9d   :  { %5966 = vmatpush3.bf16.msra.mxu1 %v6642_v59  ;;  %v6714_v59 = vld [vmem:[%s8617_s1 + $0x690] sm:$0xff]  }
  0x9e   :  { %5967 = vmatprep.subr.bf16.mxu1 %v6645_v62  ;;  %v6717_v62 = vld [vmem:[%s8617_s1 + $0x6d8] sm:$0xff]  }
  0x9f   :  { %5940 = vmatpush3.bf16.msra.mxu0 %v6644_v61  ;;  %v6716_v61 = vld [vmem:[%s8617_s1 + $0x618] sm:$0xff]  }
  0xa0   :  { %5981 = vmatprep.subr.bf16.mxu0 %v6650_v2  ;;  %v6721_v2 = vld [vmem:[%s8617_s1 + $0x6e0] sm:$0xff]  }
  0xa1   :  { %5968 = vmatpush3.bf16.msra.mxu1 %v6649_v1  ;;  %v6720_v1 = vld [vmem:[%s8617_s1 + $0x620] sm:$0xff]  }
  0xa2   :  { %4187 = vmatmul.mubr.bf16.vlgmr.msra.gmra.mrb[32].mxu0 %v6646_v63  ;;  %6009 = vmatprep.subr.bf16.mxu1 %v6655_v6  ;;  %v6718_v63 = vld [vmem:[%s8617_s1 + $0x698] sm:$0xff]   ;;  %v6725_v6 = vld [vmem:[%s8617_s1 + $0x6e8] sm:$0xff]  }
  0xa3   :  { %5982 = vmatpush3.bf16.msra.mxu0 %v6654_v5  ;;  %4194 = vmatprep.mubr.bf16.mxu0 %v6660_v11  ;;  %v6724_v5 = vld [vmem:[%s8617_s1 + $0x628] sm:$0xff]  }
  0xa4   :  { %4236 = vmatmul.mubr.bf16.vlgmr.msra.gmra.mrb[32].mxu1 %v6651_v3  ;;  %5983 = vmatprep.subr.bf16.mxu0 %v6657_v8  ;;  %v6722_v3 = vld [vmem:[%s8617_s1 + $0x6a0] sm:$0xff]   ;;  %v6726_v8 = vld [vmem:[%s8617_s1 + $0x6a8] sm:$0xff]  }
  0xa5   :  { %6010 = vmatpush3.bf16.msra.mxu1 %v6656_v7  ;;  %4243 = vmatprep.mubr.bf16.mxu1 %v6665_v15  ;;  %v6729_v15 = vld [vmem:[%s8617_s1 + $0x6f0] sm:$0xff]  }
  0xa6   :  { %6011 = vmatprep.subr.bf16.mxu1 %v6659_v10  ;;  %v6727_v10 = vld [vmem:[%s8617_s1 + $0x670] sm:$0xff]  }
  0xa7   :  { %5984 = vmatpush3.bf16.msra.mxu0 %v6658_v9 }
  0xa8   :  { %5985 = vmatprep.subr.bf16.mxu0 %v6664_v14 }
  0xa9   :  { %6012 = vmatpush3.bf16.msra.mxu1 %v6662_v12 }
  0xaa   :  { %4195 = vmatmul.mubr.bf16.gmra.mrb[36].mxu0 %v6663_v13  ;;  %6013 = vmatprep.subr.bf16.mxu1 %v6669_v18  ;;  %v6728_v13 = vld [vmem:[%s8617_s1 + $0x630] sm:$0xff]  }
  0xab   :  { %5986 = vmatpush3.bf16.msra.mxu0 %v6667_v16  ;;  %4284 = vmatprep.mubr.bf16.mxu0 %v6692_v40  ;;  %v6750_v40 = vld [vmem:[%s8617_s1 + $0x788] sm:$0xff]  }
  0xac   :  { %4244 = vmatmul.mubr.bf16.gmra.mrb[36].mxu1 %v6668_v17  ;;  %5987 = vmatprep.subr.bf16.mxu0 %v6671_v20  ;;  %v6730_v17 = vld [vmem:[%s8617_s1 + $0x6b0] sm:$0xff]   ;;  %v6731_v20 = vld [vmem:[%s8617_s1 + $0x678] sm:$0xff]  }
  0xad   :  { %6014 = vmatpush3.bf16.msra.mxu1 %v6670_v19  ;;  %4333 = vmatprep.mubr.bf16.mxu1 %v6697_v44  ;;  %v6755_v44 = vld [vmem:[%s8617_s1 + $0x710] sm:$0xff]  }
  0xae   :  { %6015 = vmatprep.subr.bf16.mxu1 %v6673_v22 }
  0xaf   :  { %5988 = vmatpush3.bf16.msra.mxu0 %v6672_v21 }
  0xb0   :  { %5989 = vmatprep.subr.bf16.mxu0 %v6675_v24 }
  0xb1   :  { %6016 = vmatpush3.bf16.msra.mxu1 %v6674_v23  ;;  %v6732_v23 = vld [vmem:[%s8617_s1 + $0x638] sm:$0xff]  }
  0xb2   :  { %6017 = vmatprep.subr.bf16.mxu1 %v6677_v26 }
  0xb3   :  { %5990 = vmatpush3.bf16.msra.mxu0 %v6676_v25  ;;  %v6733_v25 = vld [vmem:[%s8617_s1 + $0x6f8] sm:$0xff]  }
  0xb4   :  { %5991 = vmatprep.subr.bf16.mxu0 %v6679_v28  ;;  %v6736_v28 = vld [vmem:[%s8618_s0 + $0x64] ss:$196 sps:$4 sm:$0xff]  }
  0xb5   :  { %6018 = vmatpush3.bf16.msra.mxu1 %v6678_v27  ;;  %v6734_v27 = vld [vmem:[%s8618_s0 + $0x60] ss:$196 sps:$4 sm:$0xff]  }
  0xb6   :  { %6019 = vmatprep.subr.bf16.mxu1 %v6681_v30  ;;  %v6738_v30 = vld [vmem:[%s8617_s1 + $0x740] sm:$0xff]  }
  0xb7   :  { %5992 = vmatpush3.bf16.msra.mxu0 %v6680_v29  ;;  %v6737_v29 = vld [vmem:[%s8617_s1 + $0x6b8] sm:$0xff]  }
  0xb8   :  { %5993 = vmatprep.subr.bf16.mxu0 %v6683_v32  ;;  %v6741_v32 = vld [vmem:[%s8618_s0 + $0x6c] ss:$196 sps:$4 sm:$0xff]  }
  0xb9   :  { %6020 = vmatpush3.bf16.msra.mxu1 %v6682_v31  ;;  %v6739_v31 = vld [vmem:[%s8618_s0 + $0x68] ss:$196 sps:$4 sm:$0xff]  }
  0xba   :  { %6021 = vmatprep.subr.bf16.mxu1 %v6685_v34  ;;  %v6743_v34 = vld [vmem:[%s8617_s1 + $0x7c0] sm:$0xff]  }
  0xbb   :  { %5994 = vmatpush3.bf16.msra.mxu0 %v6684_v33  ;;  %v6742_v33 = vld [vmem:[%s8617_s1 + $0x700] sm:$0xff]  }
  0xbc   :  { %5995 = vmatprep.subr.bf16.mxu0 %v6687_v36  ;;  %v6745_v36 = vld [vmem:[%s8617_s1 + $0x748] sm:$0xff]  }
  0xbd   :  { %6022 = vmatpush3.bf16.msra.mxu1 %v6686_v35  ;;  %v6744_v35 = vld [vmem:[%s8617_s1 + $0x780] sm:$0xff]  }
  0xbe   :  { %6023 = vmatprep.subr.bf16.mxu1 %v6689_v38  ;;  %v6747_v38 = vld [vmem:[%s8617_s1 + $0x7c8] sm:$0xff]  }
  0xbf   :  { %5996 = vmatpush3.bf16.msra.mxu0 %v6688_v37  ;;  %v6746_v37 = vld [vmem:[%s8617_s1 + $0x708] sm:$0xff]  }
  0xc0   :  { %6037 = vmatprep.subr.bf16.mxu0 %v6694_v42  ;;  %v6752_v42 = vld [vmem:[%s8617_s1 + $0x750] sm:$0xff]  }
  0xc1   :  { %6024 = vmatpush3.bf16.msra.mxu1 %v6693_v41  ;;  %v6751_v41 = vld [vmem:[%s8618_s0 + $0x1e8] ss:$196 sps:$4 sm:$0xff]  }
  0xc2   :  { %4285 = vmatmul.mubr.bf16.vlgmr.msra.gmra.mrb[40].mxu0 %v6690_v39  ;;  %6065 = vmatprep.subr.bf16.mxu1 %v6699_v46  ;;  %v6748_v39 = vld [vmem:[%s8618_s0 + $0x1ec] ss:$196 sps:$4 sm:$0xff]  }
  0xc3   :  { %6038 = vmatpush3.bf16.msra.mxu0 %v6698_v45  ;;  %4292 = vmatprep.mubr.bf16.mxu0 %v6704_v51  ;;  %v6756_v45 = vld [vmem:[%s8618_s0 + $0x1f0] ss:$196 sps:$4 sm:$0xff]  }
  0xc4   :  { %4334 = vmatmul.mubr.bf16.vlgmr.msra.gmra.mrb[40].mxu1 %v6695_v43  ;;  %6039 = vmatprep.subr.bf16.mxu0 %v6701_v48  ;;  %v6753_v43 = vld [vmem:[%s8618_s0 + $0x1f4] ss:$196 sps:$4 sm:$0xff]  }
  0xc5   :  { %6066 = vmatpush3.bf16.msra.mxu1 %v6700_v47  ;;  %4341 = vmatprep.mubr.bf16.mxu1 %v6709_v55  ;;  %v6757_v46 = vld [vmem:[%s8617_s1 + $0x7d0] sm:$0xff]   ;;  %v6761_v55 = vld [vmem:[%s8617_s1 + $0x7d8] sm:$0xff]  }
  0xc6   :  { %6067 = vmatprep.subr.bf16.mxu1 %v6703_v50  ;;  %v6758_v48 = vld [vmem:[%s8617_s1 + $0x790] sm:$0xff]   ;;  %v6759_v50 = vld [vmem:[%s8617_s1 + $0x758] sm:$0xff]  }
  0xc7   :  { %6040 = vmatpush3.bf16.msra.mxu0 %v6702_v49 }
  0xc8   :  { %6041 = vmatprep.subr.bf16.mxu0 %v6708_v54 }
  0xc9   :  { %6068 = vmatpush3.bf16.msra.mxu1 %v6706_v52 }
  0xca   :  { %4293 = vmatmul.mubr.bf16.gmra.mrb[44].mxu0 %v6707_v53  ;;  %6069 = vmatprep.subr.bf16.mxu1 %v6713_v58  ;;  %v6760_v53 = vld [vmem:[%s8617_s1 + $0x718] sm:$0xff]  }
  0xcb   :  { %6042 = vmatpush3.bf16.msra.mxu0 %v6711_v56  ;;  %4382 = vmatprep.mubr.bf16.mxu0 %v6736_v28 }
  0xcc   :  { %4342 = vmatmul.mubr.bf16.gmra.mrb[44].mxu1 %v6712_v57  ;;  %6043 = vmatprep.subr.bf16.mxu0 %v6715_v60  ;;  %v6762_v57 = vld [vmem:[%s8617_s1 + $0x798] sm:$0xff]   ;;  %v6763_v60 = vld [vmem:[%s8617_s1 + $0x760] sm:$0xff]  }
  0xcd   :  { %6070 = vmatpush3.bf16.msra.mxu1 %v6714_v59  ;;  %4431 = vmatprep.mubr.bf16.mxu1 %v6741_v32  ;;  %v6775_v32 = vld [vmem:[%s8617_s1 + $0x778] sm:$0xff]  }
  0xce   :  { %6071 = vmatprep.subr.bf16.mxu1 %v6717_v62 }
  0xcf   :  { %6044 = vmatpush3.bf16.msra.mxu0 %v6716_v61 }
  0xd0   :  { %6045 = vmatprep.subr.bf16.mxu0 %v6719_v0 }
  0xd1   :  { %6072 = vmatpush3.bf16.msra.mxu1 %v6718_v63  ;;  %v6764_v63 = vld [vmem:[%s8617_s1 + $0x720] sm:$0xff]  }
  0xd2   :  { %6073 = vmatprep.subr.bf16.mxu1 %v6721_v2 }
  0xd3   :  { %6046 = vmatpush3.bf16.msra.mxu0 %v6720_v1  ;;  %v6765_v1 = vld [vmem:[%s8617_s1 + $0x7e0] sm:$0xff]  }
  0xd4   :  { %6047 = vmatprep.subr.bf16.mxu0 %v6723_v4  ;;  %v5196_v4 = vld [vmem:[%s8619_s2] ss:$0 sm:$0xff] }
  0xd5   :  { %6074 = vmatpush3.bf16.msra.mxu1 %v6722_v3  ;;  %v6766_v3 = vld [vmem:[%s8617_s1 + $0x7a0] sm:$0xff]  }
  0xd6   :  { %6075 = vmatprep.subr.bf16.mxu1 %v6725_v6  ;;  %v6767_v6 = vld [vmem:[%s8617_s1 + $0x768] sm:$0xff]  }
  0xd7   :  { %6048 = vmatpush3.bf16.msra.mxu0 %v6724_v5 }
  0xd8   :  { %6049 = vmatprep.subr.bf16.mxu0 %v6727_v10  ;;  %v6768_v10 = vld [vmem:[%s8617_s1 + $0x728] sm:$0xff]  }
  0xd9   :  { %6076 = vmatpush3.bf16.msra.mxu1 %v6726_v8 }
  0xda   :  { %6077 = vmatprep.subr.bf16.mxu1 %v6729_v15 }
  0xdb   :  { %6050 = vmatpush3.bf16.msra.mxu0 %v6728_v13 }
  0xdc   :  { %6051 = vmatprep.subr.bf16.mxu0 %v6731_v20 }
  0xdd   :  { %6078 = vmatpush3.bf16.msra.mxu1 %v6730_v17 }
  0xde   :  { %6079 = vmatprep.subr.bf16.mxu1 %v6733_v25 }
  0xdf   :  { %6052 = vmatpush3.bf16.msra.mxu0 %v6732_v23  ;;  %v6772_v23 = vld [vmem:[%s8617_s1 + $0x730] sm:$0xff]  }
  0xe0   :  { %6093 = vmatprep.subr.bf16.mxu0 %v6738_v30 }
  0xe1   :  { %6080 = vmatpush3.bf16.msra.mxu1 %v6737_v29  ;;  %v6774_v29 = vld [vmem:[%s8617_s1 + $0x7b0] sm:$0xff]  }
  0xe2   :  { %4383 = vmatmul.mubr.bf16.vlgmr.msra.gmra.mrb[48].mxu0 %v6734_v27  ;;  %6121 = vmatprep.subr.bf16.mxu1 %v6743_v34 }
  0xe3   :  { %6094 = vmatpush3.bf16.msra.mxu0 %v6742_v33  ;;  %4390 = vmatprep.mubr.bf16.mxu0 %v6748_v39  ;;  %v6778_v39 = vld [vmem:[%s8618_s0 + $0x70] ss:$196 sps:$4 sm:$0xff]  }
  0xe4   :  { %4432 = vmatmul.mubr.bf16.vlgmr.msra.gmra.mrb[48].mxu1 %v6739_v31  ;;  %6095 = vmatprep.subr.bf16.mxu0 %v6745_v36 }
  0xe5   :  { %6122 = vmatpush3.bf16.msra.mxu1 %v6744_v35  ;;  %4439 = vmatprep.mubr.bf16.mxu1 %v6753_v43  ;;  %v6776_v35 = vld [vmem:[%s8617_s1 + $0x738] sm:$0xff]  }
  0xe6   :  { %6123 = vmatprep.subr.bf16.mxu1 %v6747_v38  ;;  %v6777_v38 = vld [vmem:[%s8617_s1 + $0x7f8] sm:$0xff]  }
  0xe7   :  { %6096 = vmatpush3.bf16.msra.mxu0 %v6746_v37 }
  0xe8   :  { %6097 = vmatprep.subr.bf16.mxu0 %v6752_v42  ;;  %v6781_v42 = vld [vmem:[%s8617_s1 + $0x7b8] sm:$0xff]  }
  0xe9   :  { %6124 = vmatpush3.bf16.msra.mxu1 %v6750_v40  ;;  %v6780_v40 = vld [vmem:[%s8618_s0 + $0x74] ss:$196 sps:$4 sm:$0xff]  }
  0xea   :  { %4391 = vmatmul.mubr.bf16.gmra.mrb[52].mxu0 %v6751_v41  ;;  %6125 = vmatprep.subr.bf16.mxu1 %v6757_v46  ;;  %v6783_v46 = vld [vmem:[%s8618_s0 + $0x78] ss:$196 sps:$4 sm:$0xff]  }
  0xeb   :  { %6098 = vmatpush3.bf16.msra.mxu0 %v6755_v44  ;;  %4480 = vmatprep.mubr.bf16.mxu0 %v6780_v40  ;;  %v6782_v44 = vld [vmem:[%s8617_s1 + $0x840] sm:$0xff]  }
  0xec   :  { %4440 = vmatmul.mubr.bf16.gmra.mrb[52].mxu1 %v6756_v45  ;;  %6099 = vmatprep.subr.bf16.mxu0 %v6759_v50  ;;  %v6786_v50 = vld [vmem:[%s8617_s1 + $0x800] sm:$0xff]  }
  0xed   :  { %6126 = vmatpush3.bf16.msra.mxu1 %v6758_v48 }
  0xee   :  { %6127 = vmatprep.subr.bf16.mxu1 %v6761_v55  ;;  %v6788_v55 = vld [vmem:[%s8617_s1 + $0x880] sm:$0xff]  }
  0xef   :  { %6100 = vmatpush3.bf16.msra.mxu0 %v6760_v53  ;;  %v6787_v53 = vld [vmem:[%s8617_s1 + $0x8c0] sm:$0xff]  }
  0xf0   :  { %6101 = vmatprep.subr.bf16.mxu0 %v6763_v60 }
  0xf1   :  { %6128 = vmatpush3.bf16.msra.mxu1 %v6762_v57 }
  0xf2   :  { %6129 = vmatprep.subr.bf16.mxu1 %v6765_v1 }
  0xf3   :  { %6102 = vmatpush3.bf16.msra.mxu0 %v6764_v63 }
  0xf4   :  { %6103 = vmatprep.subr.bf16.mxu0 %v6767_v6 }
  0xf5   :  { %v5717_v7 = vpop.f32.mrb[0].mxu0  ;;  %6130 = vmatpush3.bf16.msra.mxu1 %v6766_v3  ;;  %v6792_v3 = vld [vmem:[%s8618_s0 + $0x1fc] ss:$196 sps:$4 sm:$0xff]  }
  0xf6   :  { %v5718_v9 = vpop.f32.mrb[1].mxu0 }
  0xf7   :  { %v7820_v11 = vadd.f32 %v5718_v9, %v5717_v7  ;;  %v5720_v12 = vpop.f32.mrb[2].mxu0  ;;  %v5745_v14 = vpop.f32.mrb[0].mxu1  ;;  %6104 = vmatpush3.bf16.msra.mxu0 %v6768_v10  ;;  %v6800_v10 = vld [vmem:[%s8618_s0 + $0x200] ss:$196 sps:$4 sm:$0xff]  }
  0xf8   :  { %v5721_v16 = vpop.f32.mrb[3].mxu0  ;;  %v5746_v19 = vpop.f32.mrb[1].mxu1 }
  0xf9   :  { %v7831_v18 = vadd.f32 %v5721_v16, %v5720_v12  ;;  %v7836_v21 = vadd.f32 %v5746_v19, %v5745_v14  ;;  %v5748_v22 = vpop.f32.mrb[2].mxu1  ;;  %v3797_v5 = vadd.f32 %v7820_v11, %v5196_v4  ;;  %v6769_v11 = vld [vmem:[%s8617_s1 + $0x7e8] sm:$0xff]  }
  0xfa   :  { %v5749_v24 = vpop.f32.mrb[3].mxu1  ;;  %6131 = vmatprep.subr.bf16.mxu1 %v6769_v11  ;;  %v6803_v11 = vld [vmem:[%s8617_s1 + $0x858] sm:$0xff]  }
  0xfb   :  { %v7844_v26 = vadd.f32 %v5749_v24, %v5748_v22  ;;  %v3800_v7 = vadd.f32 %v7831_v18, %v5196_v4  ;;  %v3846_v13 = vadd.f32 %v7836_v21, %v3797_v5  ;;  %v6770_v18 = vld [vmem:[%s8617_s1 + $0x7a8] sm:$0xff]   ;;  %v6771_v21 = vld [vmem:[%s8617_s1 + $0x770] sm:$0xff]   ;;  %v6795_v5 = vld [vmem:[%s8618_s0 + $0x1f8] ss:$196 sps:$4 sm:$0xff]  }
  0xfc   :  { %6132 = vmatpush3.bf16.msra.mxu1 %v6770_v18  ;;  %6105 = vmatprep.subr.bf16.mxu0 %v6771_v21  ;;  %v6808_v18 = vld [vmem:[%s8617_s1 + $0x820] sm:$0xff]   ;;  %v6811_v21 = vld [vmem:[%s8617_s1 + $0x868] sm:$0xff]  }
  0xfd   :  { %v5723_v47 = vpop.f32.mrb[4].mxu0  ;;  %v3849_v14 = vadd.f32 %v7844_v26, %v3800_v7  ;;  %v6773_v26 = vld [vmem:[%s8617_s1 + $0x7f0] sm:$0xff]   ;;  %6106 = vmatpush3.bf16.msra.mxu0 %v6772_v23 }
  0xfe   :  { %v5724_v49 = vpop.f32.mrb[5].mxu0  ;;  %6133 = vmatprep.subr.bf16.mxu1 %v6773_v26  ;;  %6107 = vmatprep.subr.bf16.mxu0 %v6775_v32  ;;  %v6796_v7 = vld [vmem:[%s8617_s1 + $0x850] sm:$0xff]   ;;  %v6814_v26 = vld [vmem:[%s8617_s1 + $0x8a8] sm:$0xff]  }
  0xff   :  { %v5725_v51 = vadd.f32 %v5724_v49, %v5723_v47  ;;  %v5726_v52 = vpop.f32.mrb[6].mxu0  ;;  %v5751_v54 = vpop.f32.mrb[4].mxu1  ;;  %v6785_v49 = vld [vmem:[%s8618_s0 + $0x7c] ss:$196 sps:$4 sm:$0xff]  }
 0x100   :  { %v5727_v56 = vpop.f32.mrb[7].mxu0  ;;  %v5752_v59 = vpop.f32.mrb[5].mxu1  ;;  %6134 = vmatpush3.bf16.msra.mxu1 %v6774_v29  ;;  %4529 = vmatprep.mubr.bf16.mxu1 %v6785_v49  ;;  %v6815_v29 = vld [vmem:[%s8617_s1 + $0x870] sm:$0xff]   ;;  %v6824_v49 = vld [vmem:[%s8618_s0 + $0x84] ss:$196 sps:$4 sm:$0xff]  }
 0x101   :  { %v5728_v58 = vadd.f32 %v5727_v56, %v5726_v52  ;;  %v5753_v61 = vadd.f32 %v5752_v59, %v5751_v54  ;;  %v5754_v62 = vpop.f32.mrb[6].mxu1  ;;  %v3805_v8 = vadd.f32 %v5725_v51, %v5196_v4  ;;  %6108 = vmatpush3.bf16.msra.mxu0 %v6776_v35  ;;  %6135 = vmatprep.subr.bf16.mxu1 %v6777_v38  ;;  %v6817_v35 = vld [vmem:[%s8617_s1 + $0x8f0] sm:$0xff]  }
 0x102   :  { %v5755_v0 = vpop.f32.mrb[7].mxu1  ;;  %6149 = vmatprep.subr.bf16.mxu0 %v6782_v44  ;;  %v6818_v38 = vld [vmem:[%s8617_s1 + $0x8b0] sm:$0xff]   ;;  %v6820_v44 = vld [vmem:[%s8617_s1 + $0x838] sm:$0xff]  }
 0x103   :  { %v5756_v2 = vadd.f32 %v5755_v0, %v5754_v62  ;;  %v3808_v9 = vadd.f32 %v5728_v58, %v5196_v4  ;;  %v3854_v15 = vadd.f32 %v5753_v61, %v3805_v8  ;;  %v6789_v58 = vld [vmem:[%s8617_s1 + $0x848] sm:$0xff]  }
 0x104   :  { %6136 = vmatpush3.bf16.msra.mxu1 %v6781_v42  ;;  %4481 = vmatmul.mubr.bf16.vlgmr.msra.gmra.mrb[56].mxu0 %v6778_v39  ;;  %v6790_v61 = vld [vmem:[%s8617_s1 + $0x808] sm:$0xff]  }
 0x105   :  { %v7949_v16 = vadd.f32 %v5756_v2, %v3808_v9  ;;  %6150 = vmatpush3.bf16.msra.mxu0 %v6786_v50  ;;  %6177 = vmatprep.subr.bf16.mxu1 %v6787_v53  ;;  %v6791_v0 = vld [vmem:[%s8617_s1 + $0x8c8] sm:$0xff]   ;;  %v6799_v9 = vld [vmem:[%s8617_s1 + $0x810] sm:$0xff]   ;;  %v6825_v50 = vld [vmem:[%s8617_s1 + $0x8b8] sm:$0xff]  }
 0x106   :  { %6151 = vmatprep.subr.bf16.mxu0 %v6789_v58  ;;  %v6794_v4 = vld [vmem:[%s8617_s1 + $0x888] sm:$0xff]   ;;  %4488 = vmatprep.mubr.bf16.mxu0 %v6792_v3 }
 0x107   :  { %4530 = vmatmul.mubr.bf16.vlgmr.msra.gmra.mrb[56].mxu1 %v6783_v46  ;;  %v6797_v8 = vld [vmem:[%s8618_s0 + $0x204] ss:$196 sps:$4 sm:$0xff]  }
 0x108   :  { %6178 = vmatpush3.bf16.msra.mxu1 %v6788_v55  ;;  %4537 = vmatprep.mubr.bf16.mxu1 %v6797_v8  ;;  %v6829_v55 = vld [vmem:[%s8618_s0 + $0x8c] ss:$196 sps:$4 sm:$0xff]  }
 0x109   :  { %6152 = vmatpush3.bf16.msra.mxu0 %v6790_v61  ;;  %6179 = vmatprep.subr.bf16.mxu1 %v6791_v0  ;;  %v6833_v0 = vld [vmem:[%s8617_s1 + $0x948] sm:$0xff]  }
 0x10a   :  { %6153 = vmatprep.subr.bf16.mxu0 %v6796_v7  ;;  %v6835_v7 = vld [vmem:[%s8617_s1 + $0x9c8] sm:$0xff]  }
 0x10c   :  { %6180 = vmatpush3.bf16.msra.mxu1 %v6794_v4  ;;  %4489 = vmatmul.mubr.bf16.gmra.mrb[60].mxu0 %v6795_v5 }
 0x10d   :  { %6154 = vmatpush3.bf16.msra.mxu0 %v6799_v9  ;;  %4578 = vmatprep.mubr.bf16.mxu0 %v6824_v49 }
 0x10e   :  { %6155 = vmatprep.subr.bf16.mxu0 %v6803_v11  ;;  %v6838_v11 = vld [vmem:[%s8617_s1 + $0x988] sm:$0xff]  }
 0x10f   :  { %4538 = vmatmul.mubr.bf16.gmra.mrb[60].mxu1 %v6800_v10  ;;  %v6836_v10 = vld [vmem:[%s8618_s0 + $0x20c] ss:$196 sps:$4 sm:$0xff]  }
 0x110   :  { %4627 = vmatprep.mubr.bf16.mxu1 %v6829_v55  ;;  %v6865_v55 = vld [vmem:[%s8617_s1 + $0x9f8] sm:$0xff]  }
 0x115   :  { %v5773_v12 = vpop.f32.mrb[8].mxu0 }
 0x116   :  { %v5774_v17 = vpop.f32.mrb[9].mxu0 }
 0x117   :  { %v5775_v19 = vadd.f32 %v5774_v17, %v5773_v12  ;;  %v5776_v20 = vpop.f32.mrb[10].mxu0  ;;  %v5801_v22 = vpop.f32.mrb[8].mxu1  ;;  %v6801_v12 = vld [vmem:[%s8617_s1 + $0x8d0] sm:$0xff]   ;;  %v6807_v17 = vld [vmem:[%s8617_s1 + $0x860] sm:$0xff]  }
 0x118   :  { %v5777_v25 = vpop.f32.mrb[11].mxu0  ;;  %v5802_v28 = vpop.f32.mrb[9].mxu1  ;;  %6181 = vmatprep.subr.bf16.mxu1 %v6801_v12 }
 0x119   :  { %v3895_v24 = vadd.f32 %v5775_v19, %v3846_v13  ;;  %v5778_v27 = vadd.f32 %v5777_v25, %v5776_v20  ;;  %v5803_v30 = vadd.f32 %v5802_v28, %v5801_v22  ;;  %v5804_v31 = vpop.f32.mrb[10].mxu1  ;;  %v6802_v13 = vld [vmem:[%s8617_s1 + $0x890] sm:$0xff]   ;;  %v6809_v19 = vld [vmem:[%s8617_s1 + $0x8e0] sm:$0xff]   ;;  %v6812_v22 = vld [vmem:[%s8617_s1 + $0x828] sm:$0xff]  }
 0x11a   :  { %v5805_v34 = vpop.f32.mrb[11].mxu1  ;;  %6182 = vmatpush3.bf16.msra.mxu1 %v6802_v13  ;;  %v6810_v20 = vld [vmem:[%s8617_s1 + $0x8a0] sm:$0xff]  }
 0x11b   :  { %v3898_v33 = vadd.f32 %v5778_v27, %v3849_v14  ;;  %v7972_v36 = vadd.f32 %v5803_v30, %v3895_v24  ;;  %v5806_v37 = vadd.f32 %v5805_v34, %v5804_v31  ;;  %v6804_v14 = vld [vmem:[%s8617_s1 + $0x818] sm:$0xff]   ;;  %v6813_v24 = vld [vmem:[%s8617_s1 + $0x8e8] sm:$0xff]   ;;  %v6816_v31 = vld [vmem:[%s8617_s1 + $0x830] sm:$0xff]  }
 0x11c   :  { %6156 = vmatpush3.bf16.msra.mxu0 %v6804_v14  ;;  %v6839_v14 = vld [vmem:[%s8618_s0 + $0x208] ss:$196 sps:$4 sm:$0xff]  }
 0x11d   :  { %v7983_v41 = vadd.f32 %v5806_v37, %v3898_v33  ;;  %v5779_v43 = vpop.f32.mrb[12].mxu0  ;;  %6157 = vmatprep.subr.bf16.mxu0 %v6807_v17  ;;  %v6843_v17 = vld [vmem:[%s8617_s1 + $0x910] sm:$0xff]  }
 0x11e   :  { %v5780_v45 = vpop.f32.mrb[13].mxu0 }
 0x11f   :  { %v5781_v47 = vadd.f32 %v5780_v45, %v5779_v43  ;;  %v5782_v48 = vpop.f32.mrb[14].mxu0  ;;  %v5807_v52 = vpop.f32.mrb[12].mxu1 }
 0x120   :  { %v5783_v54 = vpop.f32.mrb[15].mxu0  ;;  %v5808_v57 = vpop.f32.mrb[13].mxu1  ;;  %6158 = vmatpush3.bf16.msra.mxu0 %v6808_v18  ;;  %v6844_v18 = vld [vmem:[%s8618_s0 + $0x210] ss:$196 sps:$4 sm:$0xff]  }
 0x121   :  { %v3903_v51 = vadd.f32 %v5781_v47, %v3854_v15  ;;  %v5784_v56 = vadd.f32 %v5783_v54, %v5782_v48  ;;  %v5809_v59 = vadd.f32 %v5808_v57, %v5807_v52  ;;  %v5810_v60 = vpop.f32.mrb[14].mxu1  ;;  %v6805_v15 = vld [vmem:[%s8617_s1 + $0x8d8] sm:$0xff]   ;;  %6159 = vmatprep.subr.bf16.mxu0 %v6811_v21  ;;  %v6822_v47 = vld [vmem:[%s8618_s0 + $0x80] ss:$196 sps:$4 sm:$0xff]   ;;  %v6827_v54 = vld [vmem:[%s8618_s0 + $0x88] ss:$196 sps:$4 sm:$0xff]  }
 0x122   :  { %v5811_v63 = vpop.f32.mrb[15].mxu1  ;;  %6183 = vmatprep.subr.bf16.mxu1 %v6805_v15  ;;  %v6826_v52 = vld [vmem:[%s8617_s1 + $0x940] sm:$0xff]   ;;  %v6847_v21 = vld [vmem:[%s8617_s1 + $0x958] sm:$0xff]  }
 0x123   :  { %v3906_v62 = vadd.f32 %v5784_v56, %v7949_v16  ;;  %v8016_v1 = vadd.f32 %v5809_v59, %v3903_v51  ;;  %v5812_v2 = vadd.f32 %v5811_v63, %v5810_v60  ;;  %v6806_v16 = vld [vmem:[%s8617_s1 + $0x898] sm:$0xff]   ;;  %v6830_v57 = vld [vmem:[%s8617_s1 + $0x900] sm:$0xff]  }
 0x124   :  { %6184 = vmatpush3.bf16.msra.mxu1 %v6806_v16  ;;  %6160 = vmatpush3.bf16.msra.mxu0 %v6812_v22  ;;  %v6831_v59 = vld [vmem:[%s8617_s1 + $0x9c0] sm:$0xff]   ;;  %v6841_v16 = vld [vmem:[%s8618_s0 + $0x214] ss:$196 sps:$4 sm:$0xff]  }
 0x125   :  { %v8027_v6 = vadd.f32 %v5812_v2, %v3906_v62  ;;  %6185 = vmatprep.subr.bf16.mxu1 %v6809_v19  ;;  %6161 = vmatprep.subr.bf16.mxu0 %v6815_v29  ;;  %v6832_v62 = vld [vmem:[%s8617_s1 + $0x980] sm:$0xff]   ;;  %v6845_v19 = vld [vmem:[%s8617_s1 + $0x9d0] sm:$0xff]   ;;  %v6848_v22 = vld [vmem:[%s8617_s1 + $0x918] sm:$0xff]  }
 0x126   :  { %v6855_v29 = vld [vmem:[%s8617_s1 + $0x968] sm:$0xff]  }
 0x128   :  { %6186 = vmatpush3.bf16.msra.mxu1 %v6810_v20  ;;  %6162 = vmatpush3.bf16.msra.mxu0 %v6816_v31  ;;  %v6846_v20 = vld [vmem:[%s8617_s1 + $0x990] sm:$0xff]  }
 0x129   :  { %6187 = vmatprep.subr.bf16.mxu1 %v6813_v24  ;;  %v6850_v24 = vld [vmem:[%s8617_s1 + $0x998] sm:$0xff]  }
 0x12c   :  { %6188 = vmatpush3.bf16.msra.mxu1 %v6814_v26  ;;  %v6852_v26 = vld [vmem:[%s8617_s1 + $0x920] sm:$0xff]  }
 0x12d   :  { %6189 = vmatprep.subr.bf16.mxu1 %v6817_v35 }
 0x130   :  { %6190 = vmatpush3.bf16.msra.mxu1 %v6818_v38  ;;  %v6859_v38 = vld [vmem:[%s8617_s1 + $0x970] sm:$0xff]  }
 0x135   :  { %v5829_v23 = vpop.f32.mrb[16].mxu0 }
 0x136   :  { %v5830_v25 = vpop.f32.mrb[17].mxu0 }
 0x137   :  { %v5831_v27 = vadd.f32 %v5830_v25, %v5829_v23  ;;  %v5832_v28 = vpop.f32.mrb[18].mxu0  ;;  %v5857_v33 = vpop.f32.mrb[16].mxu1  ;;  %v6849_v23 = vld [vmem:[%s8617_s1 + $0x9d8] sm:$0xff]   ;;  %v6851_v25 = vld [vmem:[%s8617_s1 + $0x960] sm:$0xff]  }
 0x138   :  { %v5833_v30 = vpop.f32.mrb[19].mxu0  ;;  %v5858_v37 = vpop.f32.mrb[17].mxu1 }
 0x139   :  { %v3993_v32 = vadd.f32 %v5831_v27, %v7972_v36  ;;  %v5834_v34 = vadd.f32 %v5833_v30, %v5832_v28  ;;  %v5859_v40 = vadd.f32 %v5858_v37, %v5857_v33  ;;  %v5860_v42 = vpop.f32.mrb[18].mxu1  ;;  %v6819_v36 = vld [vmem:[%s8617_s1 + $0x878] sm:$0xff]   ;;  %v6853_v27 = vld [vmem:[%s8617_s1 + $0x9e0] sm:$0xff]   ;;  %v6856_v30 = vld [vmem:[%s8617_s1 + $0x928] sm:$0xff]  }
 0x13a   :  { %v5861_v43 = vpop.f32.mrb[19].mxu1  ;;  %6163 = vmatprep.subr.bf16.mxu0 %v6819_v36  ;;  %v6854_v28 = vld [vmem:[%s8617_s1 + $0x9a0] sm:$0xff]  }
 0x13b   :  { %v3996_v39 = vadd.f32 %v5834_v34, %v7983_v41  ;;  %v8103_v45 = vadd.f32 %v5859_v40, %v3993_v32  ;;  %v5862_v46 = vadd.f32 %v5861_v43, %v5860_v42  ;;  %v6821_v41 = vld [vmem:[%s8617_s1 + $0x8f8] sm:$0xff]   ;;  %6164 = vmatpush3.bf16.msra.mxu0 %v6820_v44  ;;  %v6857_v32 = vld [vmem:[%s8617_s1 + $0x9e8] sm:$0xff]   ;;  %v6860_v40 = vld [vmem:[%s8617_s1 + $0x930] sm:$0xff]  }
 0x13c   :  { %6191 = vmatprep.subr.bf16.mxu1 %v6821_v41  ;;  %6205 = vmatprep.subr.bf16.mxu0 %v6826_v52  ;;  %v6858_v34 = vld [vmem:[%s8617_s1 + $0x9a8] sm:$0xff]   ;;  %v6861_v43 = vld [vmem:[%s8617_s1 + $0x9f0] sm:$0xff]   ;;  %v6864_v52 = vld [vmem:[%s8617_s1 + $0x938] sm:$0xff]  }
 0x13d   :  { %v8111_v48 = vadd.f32 %v5862_v46, %v3996_v39  ;;  %v5835_v51 = vpop.f32.mrb[20].mxu0  ;;  %6192 = vmatpush3.bf16.msra.mxu1 %v6825_v50  ;;  %v6862_v41 = vld [vmem:[%s8617_s1 + $0x9b0] sm:$0xff]  }
 0x13e   :  { %v5836_v53 = vpop.f32.mrb[21].mxu0  ;;  %4579 = vmatmul.mubr.bf16.vlgmr.msra.gmra.mrb[64].mxu0 %v6822_v47  ;;  %6233 = vmatprep.subr.bf16.mxu1 %v6831_v59 }
 0x13f   :  { %v5837_v56 = vadd.f32 %v5836_v53, %v5835_v51  ;;  %v5838_v58 = vpop.f32.mrb[22].mxu0  ;;  %v5863_v61 = vpop.f32.mrb[20].mxu1  ;;  %6206 = vmatpush3.bf16.msra.mxu0 %v6830_v57  ;;  %4586 = vmatprep.mubr.bf16.mxu0 %v6836_v10 }
 0x140   :  { %4628 = vmatmul.mubr.bf16.vlgmr.msra.gmra.mrb[64].mxu1 %v6827_v54  ;;  %v5839_v63 = vpop.f32.mrb[23].mxu0  ;;  %v5864_v3 = vpop.f32.mrb[21].mxu1  ;;  %6207 = vmatprep.subr.bf16.mxu0 %v6833_v0 }
 0x141   :  { %v4001_v60 = vadd.f32 %v5837_v56, %v8016_v1  ;;  %v5840_v2 = vadd.f32 %v5839_v63, %v5838_v58  ;;  %6234 = vmatpush3.bf16.msra.mxu1 %v6832_v62  ;;  %v6834_v1 = vld [vmem:[%s8617_s1 + $0x908] sm:$0xff]   ;;  %v5865_v4 = vadd.f32 %v5864_v3, %v5863_v61  ;;  %v5866_v5 = vpop.f32.mrb[22].mxu1  ;;  %4635 = vmatprep.mubr.bf16.mxu1 %v6841_v16  ;;  %v6866_v56 = vld [vmem:[%s8618_s0 + $0x90] ss:$196 sps:$4 sm:$0xff]   ;;  %v6869_v58 = vld [vmem:[%s8617_s1 + $0x9b8] sm:$0xff]  }
 0x142   :  { %v5867_v9 = vpop.f32.mrb[23].mxu1  ;;  %6235 = vmatprep.subr.bf16.mxu1 %v6835_v7  ;;  %v6871_v62 = vld [vmem:[%s8618_s0 + $0x98] ss:$196 sps:$4 sm:$0xff]   ;;  %v6874_v3 = vld [vmem:[%s8617_s1 + $0xa00] sm:$0xff]  }
 0x143   :  { %v4004_v8 = vadd.f32 %v5840_v2, %v8027_v6  ;;  %6208 = vmatpush3.bf16.msra.mxu0 %v6834_v1  ;;  %v8151_v12 = vadd.f32 %v5865_v4, %v4001_v60  ;;  %v5868_v13 = vadd.f32 %v5867_v9, %v5866_v5  ;;  %v6840_v6 = vld [vmem:[%s8617_s1 + $0x950] sm:$0xff]   ;;  %v6870_v60 = vld [vmem:[%s8617_s1 + $0xa40] sm:$0xff]  }
 0x144   :  { %6209 = vmatprep.subr.bf16.mxu0 %v6840_v6  ;;  %v6873_v63 = vld [vmem:[%s8618_s0 + $0x9c] ss:$196 sps:$4 sm:$0xff]  }
 0x145   :  { %v8162_v15 = vadd.f32 %v5868_v13, %v4004_v8  ;;  %6236 = vmatpush3.bf16.msra.mxu1 %v6838_v11  ;;  %v6875_v4 = vld [vmem:[%s8617_s1 + $0xac0] sm:$0xff]   ;;  %v6877_v13 = vld [vmem:[%s8617_s1 + $0xa48] sm:$0xff]  }
 0x146   :  { %4587 = vmatmul.mubr.bf16.gmra.mrb[68].mxu0 %v6839_v14  ;;  %6237 = vmatprep.subr.bf16.mxu1 %v6845_v19  ;;  %v6876_v8 = vld [vmem:[%s8617_s1 + $0xa80] sm:$0xff]  }
 0x147   :  { %6210 = vmatpush3.bf16.msra.mxu0 %v6843_v17  ;;  %v6879_v17 = vld [vmem:[%s8617_s1 + $0xac8] sm:$0xff]  }
 0x148   :  { %4636 = vmatmul.mubr.bf16.gmra.mrb[68].mxu1 %v6844_v18  ;;  %6211 = vmatprep.subr.bf16.mxu0 %v6847_v21  ;;  %v6882_v21 = vld [vmem:[%s8617_s1 + $0xa88] sm:$0xff]  }
 0x149   :  { %6238 = vmatpush3.bf16.msra.mxu1 %v6846_v20  ;;  %4725 = vmatprep.mubr.bf16.mxu1 %v6873_v63  ;;  %v6880_v20 = vld [vmem:[%s8618_s0 + $0x21c] ss:$196 sps:$4 sm:$0xff]  }
 0x14a   :  { %6239 = vmatprep.subr.bf16.mxu1 %v6849_v23  ;;  %v6884_v23 = vld [vmem:[%s8617_s1 + $0xa50] sm:$0xff]   ;;  %v6909_v63 = vld [vmem:[%s8617_s1 + $0xaf8] sm:$0xff]  }
 0x14b   :  { %6212 = vmatpush3.bf16.msra.mxu0 %v6848_v22  ;;  %v6883_v22 = vld [vmem:[%s8618_s0 + $0x218] ss:$196 sps:$4 sm:$0xff]  }
 0x14c   :  { %6213 = vmatprep.subr.bf16.mxu0 %v6851_v25  ;;  %v6887_v25 = vld [vmem:[%s8617_s1 + $0xa10] sm:$0xff]  }
 0x14d   :  { %6240 = vmatpush3.bf16.msra.mxu1 %v6850_v24  ;;  %v6885_v24 = vld [vmem:[%s8618_s0 + $0x224] ss:$196 sps:$4 sm:$0xff]  }
 0x14e   :  { %6241 = vmatprep.subr.bf16.mxu1 %v6853_v27  ;;  %v6889_v27 = vld [vmem:[%s8617_s1 + $0xad0] sm:$0xff]  }
 0x14f   :  { %6214 = vmatpush3.bf16.msra.mxu0 %v6852_v26  ;;  %v6888_v26 = vld [vmem:[%s8618_s0 + $0x220] ss:$196 sps:$4 sm:$0xff]  }
 0x150   :  { %6215 = vmatprep.subr.bf16.mxu0 %v6855_v29  ;;  %v6891_v29 = vld [vmem:[%s8617_s1 + $0xa58] sm:$0xff]  }
 0x151   :  { %6242 = vmatpush3.bf16.msra.mxu1 %v6854_v28  ;;  %v6890_v28 = vld [vmem:[%s8617_s1 + $0xa90] sm:$0xff]  }
 0x152   :  { %6243 = vmatprep.subr.bf16.mxu1 %v6857_v32  ;;  %v6894_v32 = vld [vmem:[%s8617_s1 + $0xa98] sm:$0xff]  }
 0x153   :  { %6216 = vmatpush3.bf16.msra.mxu0 %v6856_v30  ;;  %v6892_v30 = vld [vmem:[%s8617_s1 + $0xa18] sm:$0xff]  }
 0x154   :  { %6217 = vmatprep.subr.bf16.mxu0 %v6859_v38  ;;  %v6899_v38 = vld [vmem:[%s8617_s1 + $0xa68] sm:$0xff]  }
 0x155   :  { %v5885_v31 = vpop.f32.mrb[24].mxu0  ;;  %6244 = vmatpush3.bf16.msra.mxu1 %v6858_v34  ;;  %v6896_v34 = vld [vmem:[%s8617_s1 + $0xa20] sm:$0xff]  }
 0x156   :  { %v5886_v33 = vpop.f32.mrb[25].mxu0  ;;  %6245 = vmatprep.subr.bf16.mxu1 %v6861_v43  ;;  %v6902_v43 = vld [vmem:[%s8617_s1 + $0xaa8] sm:$0xff]  }
 0x157   :  { %v5887_v35 = vadd.f32 %v5886_v33, %v5885_v31  ;;  %v5888_v37 = vpop.f32.mrb[26].mxu0  ;;  %v5913_v39 = vpop.f32.mrb[24].mxu1  ;;  %6218 = vmatpush3.bf16.msra.mxu0 %v6860_v40  ;;  %v6893_v31 = vld [vmem:[%s8617_s1 + $0xad8] sm:$0xff]   ;;  %v6895_v33 = vld [vmem:[%s8617_s1 + $0xa60] sm:$0xff]  }
 0x158   :  { %v5889_v36 = vpop.f32.mrb[27].mxu0  ;;  %v5914_v46 = vpop.f32.mrb[25].mxu1 }
 0x159   :  { %v4091_v42 = vadd.f32 %v5887_v35, %v8103_v45  ;;  %v5890_v44 = vadd.f32 %v5889_v36, %v5888_v37  ;;  %v5915_v47 = vadd.f32 %v5914_v46, %v5913_v39  ;;  %v5916_v49 = vpop.f32.mrb[26].mxu1  ;;  %v6863_v45 = vld [vmem:[%s8617_s1 + $0x978] sm:$0xff]   ;;  %6246 = vmatpush3.bf16.msra.mxu1 %v6862_v41  ;;  %v6897_v35 = vld [vmem:[%s8617_s1 + $0xae0] sm:$0xff]   ;;  %v6900_v39 = vld [vmem:[%s8617_s1 + $0xa28] sm:$0xff]  }
 0x15a   :  { %v5917_v51 = vpop.f32.mrb[27].mxu1  ;;  %6219 = vmatprep.subr.bf16.mxu0 %v6863_v45  ;;  %6247 = vmatprep.subr.bf16.mxu1 %v6865_v55  ;;  %v6898_v37 = vld [vmem:[%s8617_s1 + $0xaa0] sm:$0xff]   ;;  %v6903_v41 = vld [vmem:[%s8617_s1 + $0xa70] sm:$0xff]  }
 0x15b   :  { %v4094_v50 = vadd.f32 %v5890_v44, %v8111_v48  ;;  %v8235_v53 = vadd.f32 %v5915_v47, %v4091_v42  ;;  %v5918_v54 = vadd.f32 %v5917_v51, %v5916_v49  ;;  %6220 = vmatpush3.bf16.msra.mxu0 %v6864_v52  ;;  %v6868_v48 = vld [vmem:[%s8618_s0 + $0x94] ss:$196 sps:$4 sm:$0xff]   ;;  %v6901_v42 = vld [vmem:[%s8617_s1 + $0xae8] sm:$0xff]  }
 0x15c   :  { %4676 = vmatprep.mubr.bf16.mxu0 %v6868_v48  ;;  %6261 = vmatprep.subr.bf16.mxu0 %v6870_v60  ;;  %v6904_v49 = vld [vmem:[%s8617_s1 + $0xa30] sm:$0xff]   ;;  %v6908_v60 = vld [vmem:[%s8617_s1 + $0xa38] sm:$0xff]  }
 0x15d   :  { %v8246_v57 = vadd.f32 %v5918_v54, %v4094_v50  ;;  %v5891_v59 = vpop.f32.mrb[28].mxu0  ;;  %6248 = vmatpush3.bf16.msra.mxu1 %v6869_v58  ;;  %v6905_v51 = vld [vmem:[%s8617_s1 + $0xaf0] sm:$0xff]  }
 0x15e   :  { %v5892_v61 = vpop.f32.mrb[29].mxu0  ;;  %4677 = vmatmul.mubr.bf16.vlgmr.msra.gmra.mrb[72].mxu0 %v6866_v56  ;;  %6289 = vmatprep.subr.bf16.mxu1 %v6875_v4  ;;  %v6906_v55 = vld [vmem:[%s8617_s1 + $0xab0] sm:$0xff]   ;;  %v6914_v4 = vld [vmem:[%s8617_s1 + $0xb40] sm:$0xff]  }
 0x15f   :  { %v5893_v0 = vadd.f32 %v5892_v61, %v5891_v59  ;;  %v5894_v2 = vpop.f32.mrb[30].mxu0  ;;  %v5919_v1 = vpop.f32.mrb[28].mxu1  ;;  %6262 = vmatpush3.bf16.msra.mxu0 %v6874_v3  ;;  %4684 = vmatprep.mubr.bf16.mxu0 %v6880_v20  ;;  %v6913_v3 = vld [vmem:[%s8617_s1 + $0xab8] sm:$0xff]  }
 0x160   :  { %v5895_v7 = vpop.f32.mrb[31].mxu0  ;;  %4726 = vmatmul.mubr.bf16.vlgmr.msra.gmra.mrb[72].mxu1 %v6871_v62  ;;  %v5920_v10 = vpop.f32.mrb[29].mxu1  ;;  %6263 = vmatprep.subr.bf16.mxu0 %v6877_v13  ;;  %v6918_v13 = vld [vmem:[%s8617_s1 + $0xb00] sm:$0xff]  }
 0x161   :  { %v4099_v5 = vadd.f32 %v5893_v0, %v8151_v12  ;;  %v5896_v9 = vadd.f32 %v5895_v7, %v5894_v2  ;;  %v5921_v11 = vadd.f32 %v5920_v10, %v5919_v1  ;;  %v5922_v14 = vpop.f32.mrb[30].mxu1  ;;  %6290 = vmatpush3.bf16.msra.mxu1 %v6876_v8  ;;  %v6878_v12 = vld [vmem:[%s8617_s1 + $0xa08] sm:$0xff]   ;;  %4733 = vmatprep.mubr.bf16.mxu1 %v6885_v24  ;;  %v6910_v0 = vld [vmem:[%s8618_s0 + $0xa0] ss:$196 sps:$4 sm:$0xff]  }
 0x162   :  { %v5923_v16 = vpop.f32.mrb[31].mxu1  ;;  %6291 = vmatprep.subr.bf16.mxu1 %v6879_v17  ;;  %v6915_v7 = vld [vmem:[%s8618_s0 + $0xa8] ss:$196 sps:$4 sm:$0xff]  }
 0x163   :  { %v4102_v6 = vadd.f32 %v5896_v9, %v8162_v15  ;;  %v8280_v18 = vadd.f32 %v5921_v11, %v4099_v5  ;;  %v5924_v19 = vadd.f32 %v5923_v16, %v5922_v14  ;;  %6264 = vmatpush3.bf16.msra.mxu0 %v6878_v12  ;;  %v6917_v10 = vld [vmem:[%s8618_s0 + $0xac] ss:$196 sps:$4 sm:$0xff]   ;;  %v6919_v12 = vld [vmem:[%s8617_s1 + $0xbc0] sm:$0xff]  }
 0x164   :  { %6265 = vmatprep.subr.bf16.mxu0 %v6884_v23  ;;  %v6920_v16 = vld [vmem:[%s8617_s1 + $0xb80] sm:$0xff]  }
 0x165   :  { %v8288_v15 = vadd.f32 %v5924_v19, %v4102_v6  ;;  %6292 = vmatpush3.bf16.msra.mxu1 %v6882_v21 }
 0x166   :  { %4685 = vmatmul.mubr.bf16.gmra.mrb[76].mxu0 %v6883_v22  ;;  %6293 = vmatprep.subr.bf16.mxu1 %v6889_v27  ;;  %v6922_v22 = vld [vmem:[%s8617_s1 + $0xb08] sm:$0xff]  }
 0x167   :  { %6266 = vmatpush3.bf16.msra.mxu0 %v6887_v25  ;;  %v6923_v25 = vld [vmem:[%s8617_s1 + $0xbc8] sm:$0xff]  }
 0x168   :  { %4734 = vmatmul.mubr.bf16.gmra.mrb[76].mxu1 %v6888_v26  ;;  %6267 = vmatprep.subr.bf16.mxu0 %v6891_v29  ;;  %v6926_v29 = vld [vmem:[%s8617_s1 + $0xb88] sm:$0xff]  }
 0x169   :  { %6294 = vmatpush3.bf16.msra.mxu1 %v6890_v28  ;;  %4823 = vmatprep.mubr.bf16.mxu1 %v6917_v10  ;;  %v6924_v28 = vld [vmem:[%s8618_s0 + $0x22c] ss:$196 sps:$4 sm:$0xff]   ;;  %v6956_v10 = vld [vmem:[%s8618_s0 + $0xb4] ss:$196 sps:$4 sm:$0xff]  }
 0x16a   :  { %6295 = vmatprep.subr.bf16.mxu1 %v6893_v31  ;;  %v6928_v31 = vld [vmem:[%s8617_s1 + $0xb50] sm:$0xff]  }
 0x16b   :  { %6268 = vmatpush3.bf16.msra.mxu0 %v6892_v30 }
 0x16c   :  { %6269 = vmatprep.subr.bf16.mxu0 %v6895_v33  ;;  %v6931_v33 = vld [vmem:[%s8617_s1 + $0xb10] sm:$0xff]  }
 0x16d   :  { %6296 = vmatpush3.bf16.msra.mxu1 %v6894_v32  ;;  %v6929_v32 = vld [vmem:[%s8618_s0 + $0x234] ss:$196 sps:$4 sm:$0xff]  }
 0x16e   :  { %6297 = vmatprep.subr.bf16.mxu1 %v6897_v35  ;;  %v6933_v35 = vld [vmem:[%s8617_s1 + $0xbd0] sm:$0xff]  }
 0x16f   :  { %6270 = vmatpush3.bf16.msra.mxu0 %v6896_v34  ;;  %v6932_v34 = vld [vmem:[%s8618_s0 + $0x230] ss:$196 sps:$4 sm:$0xff]  }
 0x170   :  { %6271 = vmatprep.subr.bf16.mxu0 %v6899_v38  ;;  %v6935_v38 = vld [vmem:[%s8617_s1 + $0xb58] sm:$0xff]  }
 0x171   :  { %6298 = vmatpush3.bf16.msra.mxu1 %v6898_v37  ;;  %v6934_v37 = vld [vmem:[%s8617_s1 + $0xb90] sm:$0xff]  }
 0x172   :  { %6299 = vmatprep.subr.bf16.mxu1 %v6901_v42  ;;  %v6938_v42 = vld [vmem:[%s8617_s1 + $0xb98] sm:$0xff]  }
 0x173   :  { %6272 = vmatpush3.bf16.msra.mxu0 %v6900_v39  ;;  %v6936_v39 = vld [vmem:[%s8617_s1 + $0xb18] sm:$0xff]  }
 0x174   :  { %6273 = vmatprep.subr.bf16.mxu0 %v6903_v41  ;;  %v6943_v41 = vld [vmem:[%s8617_s1 + $0xb68] sm:$0xff]  }
 0x175   :  { %v5941_v40 = vpop.f32.mrb[32].mxu0  ;;  %6300 = vmatpush3.bf16.msra.mxu1 %v6902_v43  ;;  %v6940_v43 = vld [vmem:[%s8617_s1 + $0xb20] sm:$0xff]  }
 0x176   :  { %v5942_v36 = vpop.f32.mrb[33].mxu0  ;;  %6301 = vmatprep.subr.bf16.mxu1 %v6905_v51  ;;  %v6946_v51 = vld [vmem:[%s8617_s1 + $0xba8] sm:$0xff]  }
 0x177   :  { %v5943_v44 = vadd.f32 %v5942_v36, %v5941_v40  ;;  %v5944_v46 = vpop.f32.mrb[34].mxu0  ;;  %v5969_v47 = vpop.f32.mrb[32].mxu1  ;;  %6274 = vmatpush3.bf16.msra.mxu0 %v6904_v49  ;;  %v6937_v40 = vld [vmem:[%s8617_s1 + $0xbd8] sm:$0xff]   ;;  %v6939_v36 = vld [vmem:[%s8617_s1 + $0xb60] sm:$0xff]  }
 0x178   :  { %v5945_v50 = vpop.f32.mrb[35].mxu0  ;;  %v5970_v54 = vpop.f32.mrb[33].mxu1 }
 0x179   :  { %v4189_v45 = vadd.f32 %v5943_v44, %v8235_v53  ;;  %v5946_v52 = vadd.f32 %v5945_v50, %v5944_v46  ;;  %v5971_v56 = vadd.f32 %v5970_v54, %v5969_v47  ;;  %v5972_v48 = vpop.f32.mrb[34].mxu1  ;;  %v6907_v53 = vld [vmem:[%s8617_s1 + $0xa78] sm:$0xff]   ;;  %6302 = vmatpush3.bf16.msra.mxu1 %v6906_v55  ;;  %v6941_v44 = vld [vmem:[%s8617_s1 + $0xbe0] sm:$0xff]   ;;  %v6944_v47 = vld [vmem:[%s8617_s1 + $0xb28] sm:$0xff]  }
 0x17a   :  { %v5973_v59 = vpop.f32.mrb[35].mxu1  ;;  %6275 = vmatprep.subr.bf16.mxu0 %v6907_v53  ;;  %6303 = vmatprep.subr.bf16.mxu1 %v6909_v63  ;;  %v6942_v46 = vld [vmem:[%s8617_s1 + $0xba0] sm:$0xff]   ;;  %v6947_v55 = vld [vmem:[%s8617_s1 + $0xb70] sm:$0xff]  }
 0x17b   :  { %v4192_v58 = vadd.f32 %v5946_v52, %v8246_v57  ;;  %v8367_v61 = vadd.f32 %v5971_v56, %v4189_v45  ;;  %v5974_v62 = vadd.f32 %v5973_v59, %v5972_v48  ;;  %6276 = vmatpush3.bf16.msra.mxu0 %v6908_v60  ;;  %v6912_v57 = vld [vmem:[%s8618_s0 + $0xa4] ss:$196 sps:$4 sm:$0xff]   ;;  %v6948_v48 = vld [vmem:[%s8617_s1 + $0xb30] sm:$0xff]  }
 0x17c   :  { %4774 = vmatprep.mubr.bf16.mxu0 %v6912_v57  ;;  %6317 = vmatprep.subr.bf16.mxu0 %v6914_v4  ;;  %v6945_v45 = vld [vmem:[%s8617_s1 + $0xbe8] sm:$0xff]   ;;  %v6949_v60 = vld [vmem:[%s8617_s1 + $0xbf0] sm:$0xff]   ;;  %v6952_v4 = vld [vmem:[%s8617_s1 + $0xb38] sm:$0xff]  }
 0x17d   :  { %v8378_v2 = vadd.f32 %v5974_v62, %v4192_v58  ;;  %v5947_v1 = vpop.f32.mrb[36].mxu0  ;;  %6304 = vmatpush3.bf16.msra.mxu1 %v6913_v3  ;;  %v6950_v63 = vld [vmem:[%s8617_s1 + $0xbb0] sm:$0xff]  }
 0x17e   :  { %v5948_v5 = vpop.f32.mrb[37].mxu0  ;;  %4775 = vmatmul.mubr.bf16.vlgmr.msra.gmra.mrb[80].mxu0 %v6910_v0  ;;  %6345 = vmatprep.subr.bf16.mxu1 %v6919_v12 }
 0x17f   :  { %v5949_v8 = vadd.f32 %v5948_v5, %v5947_v1  ;;  %v5950_v9 = vpop.f32.mrb[38].mxu0  ;;  %v5975_v14 = vpop.f32.mrb[36].mxu1  ;;  %6318 = vmatpush3.bf16.msra.mxu0 %v6918_v13  ;;  %4782 = vmatprep.mubr.bf16.mxu0 %v6924_v28  ;;  %v6957_v13 = vld [vmem:[%s8617_s1 + $0xbb8] sm:$0xff]  }
 0x180   :  { %v5951_v6 = vpop.f32.mrb[39].mxu0  ;;  %4824 = vmatmul.mubr.bf16.vlgmr.msra.gmra.mrb[80].mxu1 %v6915_v7  ;;  %v5976_v19 = vpop.f32.mrb[37].mxu1 }
 0x181   :  { %v4197_v11 = vadd.f32 %v5949_v8, %v8280_v18  ;;  %v5952_v17 = vadd.f32 %v5951_v6, %v5950_v9  ;;  %v6921_v18 = vld [vmem:[%s8617_s1 + $0xb48] sm:$0xff]   ;;  %v5977_v20 = vadd.f32 %v5976_v19, %v5975_v14  ;;  %v5978_v21 = vpop.f32.mrb[38].mxu1  ;;  %6346 = vmatpush3.bf16.msra.mxu1 %v6920_v16  ;;  %4831 = vmatprep.mubr.bf16.mxu1 %v6929_v32  ;;  %v6954_v8 = vld [vmem:[%s8618_s0 + $0xb0] ss:$196 sps:$4 sm:$0xff]   ;;  %v6958_v14 = vld [vmem:[%s8617_s1 + $0xc00] sm:$0xff]  }
 0x182   :  { %v5979_v24 = vpop.f32.mrb[39].mxu1  ;;  %6319 = vmatprep.subr.bf16.mxu0 %v6921_v18  ;;  %6347 = vmatprep.subr.bf16.mxu1 %v6923_v25  ;;  %v6959_v6 = vld [vmem:[%s8618_s0 + $0xb8] ss:$196 sps:$4 sm:$0xff]   ;;  %v6962_v19 = vld [vmem:[%s8617_s1 + $0xc08] sm:$0xff]   ;;  %v6966_v25 = vld [vmem:[%s8617_s1 + $0xc10] sm:$0xff]  }
 0x183   :  { %v4200_v23 = vadd.f32 %v5952_v17, %v8288_v15  ;;  %v8412_v26 = vadd.f32 %v5977_v20, %v4197_v11  ;;  %v5980_v27 = vadd.f32 %v5979_v24, %v5978_v21  ;;  %6320 = vmatpush3.bf16.msra.mxu0 %v6922_v22  ;;  %v6927_v15 = vld [vmem:[%s8618_s0 + $0x228] ss:$196 sps:$4 sm:$0xff]   ;;  %v6961_v16 = vld [vmem:[%s8618_s0 + $0xbc] ss:$196 sps:$4 sm:$0xff]  }
 0x184   :  { %6321 = vmatprep.subr.bf16.mxu0 %v6928_v31  ;;  %v6963_v21 = vld [vmem:[%s8618_s0 + $0x23c] ss:$196 sps:$4 sm:$0xff]  }
 0x185   :  { %v8423_v30 = vadd.f32 %v5980_v27, %v4200_v23  ;;  %6348 = vmatpush3.bf16.msra.mxu1 %v6926_v29  ;;  %v6965_v22 = vld [vmem:[%s8618_s0 + $0x238] ss:$196 sps:$4 sm:$0xff]   ;;  %v6967_v29 = vld [vmem:[%s8618_s0 + $0x244] ss:$196 sps:$4 sm:$0xff]  }
 0x186   :  { %4783 = vmatmul.mubr.bf16.gmra.mrb[84].mxu0 %v6927_v15  ;;  %6349 = vmatprep.subr.bf16.mxu1 %v6933_v35  ;;  %v6970_v35 = vld [vmem:[%s8617_s1 + $0xc18] sm:$0xff]  }
 0x187   :  { %6322 = vmatpush3.bf16.msra.mxu0 %v6931_v33  ;;  %4872 = vmatprep.mubr.bf16.mxu0 %v6956_v10 }
 0x188   :  { %4832 = vmatmul.mubr.bf16.gmra.mrb[84].mxu1 %v6932_v34  ;;  %6323 = vmatprep.subr.bf16.mxu0 %v6935_v38 }
 0x189   :  { %6350 = vmatpush3.bf16.msra.mxu1 %v6934_v37  ;;  %4921 = vmatprep.mubr.bf16.mxu1 %v6961_v16 }
 0x18a   :  { %6351 = vmatprep.subr.bf16.mxu1 %v6937_v40  ;;  %v6972_v40 = vld [vmem:[%s8617_s1 + $0xc28] sm:$0xff]  }
 0x18b   :  { %6324 = vmatpush3.bf16.msra.mxu0 %v6936_v39  ;;  %v6971_v39 = vld [vmem:[%s8617_s1 + $0xc20] sm:$0xff]  }
 0x18c   :  { %6325 = vmatprep.subr.bf16.mxu0 %v6939_v36  ;;  %v6974_v36 = vld [vmem:[%s8617_s1 + $0xc38] sm:$0xff]  }
 0x18d   :  { %6352 = vmatpush3.bf16.msra.mxu1 %v6938_v42  ;;  %v6973_v42 = vld [vmem:[%s8617_s1 + $0xc30] sm:$0xff]  }
 0x18e   :  { %6353 = vmatprep.subr.bf16.mxu1 %v6941_v44 }
 0x18f   :  { %6326 = vmatpush3.bf16.msra.mxu0 %v6940_v43 }
 0x190   :  { %6327 = vmatprep.subr.bf16.mxu0 %v6943_v41 }
 0x191   :  { %6354 = vmatpush3.bf16.msra.mxu1 %v6942_v46 }
 0x192   :  { %6355 = vmatprep.subr.bf16.mxu1 %v6945_v45 }
 0x193   :  { %6328 = vmatpush3.bf16.msra.mxu0 %v6944_v47 }
 0x194   :  { %6329 = vmatprep.subr.bf16.mxu0 %v6947_v55 }
 0x195   :  { %v5997_v49 = vpop.f32.mrb[40].mxu0  ;;  %6356 = vmatpush3.bf16.msra.mxu1 %v6946_v51 }
 0x196   :  { %v5998_v50 = vpop.f32.mrb[41].mxu0  ;;  %6357 = vmatprep.subr.bf16.mxu1 %v6949_v60 }
 0x197   :  { %v5999_v52 = vadd.f32 %v5998_v50, %v5997_v49  ;;  %v6000_v54 = vpop.f32.mrb[42].mxu0  ;;  %v6025_v58 = vpop.f32.mrb[40].mxu1  ;;  %6330 = vmatpush3.bf16.msra.mxu0 %v6948_v48 }
 0x198   :  { %v6001_v56 = vpop.f32.mrb[43].mxu0  ;;  %v6026_v62 = vpop.f32.mrb[41].mxu1 }
 0x199   :  { %v4287_v53 = vadd.f32 %v5999_v52, %v8367_v61  ;;  %v6002_v59 = vadd.f32 %v6001_v56, %v6000_v54  ;;  %v6027_v57 = vadd.f32 %v6026_v62, %v6025_v58  ;;  %v6028_v3 = vpop.f32.mrb[42].mxu1  ;;  %v6951_v61 = vld [vmem:[%s8617_s1 + $0xb78] sm:$0xff]   ;;  %6358 = vmatpush3.bf16.msra.mxu1 %v6950_v63  ;;  %v6976_v52 = vld [vmem:[%s8618_s0 + $0x248] ss:$196 sps:$4 sm:$0xff]  }
 0x19a   :  { %v6029_v1 = vpop.f32.mrb[43].mxu1  ;;  %6331 = vmatprep.subr.bf16.mxu0 %v6951_v61 }
 0x19b   :  { %v4290_v0 = vadd.f32 %v6002_v59, %v8378_v2  ;;  %v8499_v5 = vadd.f32 %v6027_v57, %v4287_v53  ;;  %v6030_v7 = vadd.f32 %v6029_v1, %v6028_v3  ;;  %v6953_v2 = vld [vmem:[%s8617_s1 + $0xbf8] sm:$0xff]   ;;  %6332 = vmatpush3.bf16.msra.mxu0 %v6952_v4 }
 0x19c   :  { %6359 = vmatprep.subr.bf16.mxu1 %v6953_v2  ;;  %6395 = vmatprep.subr.bf16.mxu0 %v6958_v14 }
 0x19d   :  { %v8507_v9 = vadd.f32 %v6030_v7, %v4290_v0  ;;  %v6003_v11 = vpop.f32.mrb[44].mxu0  ;;  %6360 = vmatpush3.bf16.msra.mxu1 %v6957_v13 }
 0x19e   :  { %v6004_v12 = vpop.f32.mrb[45].mxu0  ;;  %4873 = vmatmul.mubr.bf16.vlgmr.msra.gmra.mrb[88].mxu0 %v6954_v8 }
 0x19f   :  { %v6005_v17 = vadd.f32 %v6004_v12, %v6003_v11  ;;  %v6006_v18 = vpop.f32.mrb[46].mxu0  ;;  %v6031_v20 = vpop.f32.mrb[44].mxu1  ;;  %6396 = vmatpush3.bf16.msra.mxu0 %v6958_v14  ;;  %4880 = vmatprep.mubr.bf16.mxu0 %v6963_v21 }
 0x1a0   :  { %v6007_v24 = vpop.f32.mrb[47].mxu0  ;;  %4922 = vmatmul.mubr.bf16.vlgmr.msra.gmra.mrb[88].mxu1 %v6959_v6  ;;  %6397 = vmatprep.subr.bf16.mxu0 %v6962_v19  ;;  %v6032_v28 = vpop.f32.mrb[45].mxu1 }
 0x1a1   :  { %v4295_v23 = vadd.f32 %v6005_v17, %v8412_v26  ;;  %v6008_v27 = vadd.f32 %v6007_v24, %v6006_v18  ;;  %v6033_v15 = vadd.f32 %v6032_v28, %v6031_v20  ;;  %v6034_v31 = vpop.f32.mrb[46].mxu1  ;;  %v6969_v26 = vld [vmem:[%s8618_s0 + $0x240] ss:$196 sps:$4 sm:$0xff]   ;;  %4929 = vmatprep.mubr.bf16.mxu1 %v6967_v29 }
 0x1a2   :  { %v6035_v34 = vpop.f32.mrb[47].mxu1 }
 0x1a3   :  { %v4298_v32 = vadd.f32 %v6008_v27, %v8423_v30  ;;  %6398 = vmatpush3.bf16.msra.mxu0 %v6962_v19  ;;  %v4344_v33 = vadd.f32 %v6033_v15, %v4295_v23  ;;  %v6036_v37 = vadd.f32 %v6035_v34, %v6034_v31  ;;  %v6975_v30 = vld [vmem:[%s8618_s0 + $0xc0] ss:$196 sps:$4 sm:$0xff]  }
 0x1a4   :  { %6399 = vmatprep.subr.bf16.mxu0 %v6966_v25 }
 0x1a5   :  { %v4347_v38 = vadd.f32 %v6036_v37, %v4298_v32 }
 0x1a6   :  { %4881 = vmatmul.mubr.bf16.gmra.mrb[92].mxu0 %v6965_v22 }
 0x1a7   :  { %6400 = vmatpush3.bf16.msra.mxu0 %v6966_v25  ;;  %6411 = vmatprep.mubr.bf16.mxu0 %v6975_v30 }
 0x1a8   :  { %4930 = vmatmul.mubr.bf16.gmra.mrb[92].mxu1 %v6969_v26  ;;  %6401 = vmatprep.subr.bf16.mxu0 %v6970_v35 }
 0x1ab   :  { %6402 = vmatpush3.bf16.msra.mxu0 %v6970_v35 }
 0x1ac   :  { %6403 = vmatprep.subr.bf16.mxu0 %v6971_v39 }
 0x1af   :  { %6404 = vmatpush3.bf16.msra.mxu0 %v6971_v39 }
 0x1b0   :  { %6405 = vmatprep.subr.bf16.mxu0 %v6972_v40 }
 0x1b3   :  { %6406 = vmatpush3.bf16.msra.mxu0 %v6972_v40 }
 0x1b4   :  { %6407 = vmatprep.subr.bf16.mxu0 %v6973_v42 }
 0x1b5   :  { %v6053_v43 = vpop.f32.mrb[48].mxu0 }
 0x1b6   :  { %v6054_v44 = vpop.f32.mrb[49].mxu0 }
 0x1b7   :  { %6408 = vmatpush3.bf16.msra.mxu0 %v6973_v42  ;;  %v6055_v46 = vadd.f32 %v6054_v44, %v6053_v43  ;;  %v6056_v41 = vpop.f32.mrb[50].mxu0  ;;  %v6081_v47 = vpop.f32.mrb[48].mxu1 }
 0x1b8   :  { %6409 = vmatprep.subr.bf16.mxu0 %v6974_v36  ;;  %v6057_v49 = vpop.f32.mrb[51].mxu0  ;;  %v6082_v51 = vpop.f32.mrb[49].mxu1 }
 0x1b9   :  { %v4385_v45 = vadd.f32 %v6055_v46, %v8499_v5  ;;  %v6058_v50 = vadd.f32 %v6057_v49, %v6056_v41  ;;  %v6083_v54 = vadd.f32 %v6082_v51, %v6081_v47  ;;  %v6084_v55 = vpop.f32.mrb[50].mxu1  ;;  %v6977_v46 = vld [vmem:[%s8620_s3] sm:$0xff]   ;;  %v6978_v47 = vld [vmem:[%s8620_s3 + $0x8] sm:$0xff]  }
 0x1ba   :  { %v6085_v48 = vpop.f32.mrb[51].mxu1  ;;  %6415 = vmatprep.subr.bf16.mxu1 %v6977_v46 }
 0x1bb   :  { %6410 = vmatpush3.bf16.msra.mxu0 %v6974_v36  ;;  %v4388_v56 = vadd.f32 %v6058_v50, %v8507_v9  ;;  %v4434_v53 = vadd.f32 %v6083_v54, %v4385_v45  ;;  %v6086_v58 = vadd.f32 %v6085_v48, %v6084_v55  ;;  %6416 = vmatpush3.bf16.msra.mxu1 %v6977_v46 }
 0x1bc   :  { %6417 = vmatprep.subr.bf16.mxu1 %v6978_v47 }
 0x1bd   :  { %v4437_v59 = vadd.f32 %v6086_v58, %v4388_v56  ;;  %v6059_v60 = vpop.f32.mrb[52].mxu0 }
 0x1be   :  { %6412 = vmatmul.mubr.bf16.vlgmr.msra.gmra.mrb[96].mxu0 %v6976_v52  ;;  %v6060_v62 = vpop.f32.mrb[53].mxu0 }
 0x1bf   :  { %v6061_v63 = vadd.f32 %v6060_v62, %v6059_v60  ;;  %v6062_v0 = vpop.f32.mrb[54].mxu0  ;;  %v6087_v61 = vpop.f32.mrb[52].mxu1  ;;  %6418 = vmatpush3.bf16.msra.mxu1 %v6978_v47 }
 0x1c0   :  { %v6063_v57 = vpop.f32.mrb[55].mxu0  ;;  %v6088_v4 = vpop.f32.mrb[53].mxu1 }
 0x1c1   :  { %v4393_v3 = vadd.f32 %v6061_v63, %v4344_v33  ;;  %v6064_v1 = vadd.f32 %v6063_v57, %v6062_v0  ;;  %v6089_v7 = vadd.f32 %v6088_v4, %v6087_v61  ;;  %v6090_v2 = vpop.f32.mrb[54].mxu1 }
 0x1c2   :  { %v6091_v8 = vpop.f32.mrb[55].mxu1 }
 0x1c3   :  { %v4396_v5 = vadd.f32 %v6064_v1, %v4347_v38  ;;  %v4442_v10 = vadd.f32 %v6089_v7, %v4393_v3  ;;  %v6092_v9 = vadd.f32 %v6091_v8, %v6090_v2 }
 0x1c5   :  { %v4445_v13 = vadd.f32 %v6092_v9, %v4396_v5 }
 0x1d7   :  { %v6109_v11 = vpop.f32.mrb[56].mxu0 }
 0x1d8   :  { %v6110_v14 = vpop.f32.mrb[57].mxu0 }
 0x1d9   :  { %v6111_v12 = vadd.f32 %v6110_v14, %v6109_v11  ;;  %v6112_v6 = vpop.f32.mrb[58].mxu0  ;;  %v6979_v14 = vld [vmem:[%s8620_s3 + $0x10] sm:$0xff]  }
 0x1da   :  { %v6113_v16 = vpop.f32.mrb[59].mxu0  ;;  %v6137_v19 = vpop.f32.mrb[56].mxu1  ;;  %6419 = vmatprep.subr.bf16.mxu1 %v6979_v14 }
 0x1db   :  { %v4483_v17 = vadd.f32 %v6111_v12, %v4434_v53  ;;  %v6114_v18 = vadd.f32 %v6113_v16, %v6112_v6  ;;  %v6138_v20 = vpop.f32.mrb[57].mxu1  ;;  %6420 = vmatpush3.bf16.msra.mxu1 %v6979_v14  ;;  %v6980_v6 = vld [vmem:[%s8620_s3 + $0x18] sm:$0xff]   ;;  %v8582_v16 = vld [vmem:[%s8621_s5] sm:$0xff]  }
 0x1dc   :  { %v6139_v22 = vadd.f32 %v6138_v20, %v6137_v19  ;;  %v6140_v23 = vpop.f32.mrb[58].mxu1  ;;  %6421 = vmatprep.subr.bf16.mxu1 %v6980_v6 }
 0x1dd   :  { %v4486_v21 = vadd.f32 %v6114_v18, %v4437_v59  ;;  %v6141_v24 = vpop.f32.mrb[59].mxu1 }
 0x1de   :  { %v4532_v25 = vadd.f32 %v6139_v22, %v4483_v17  ;;  %v6142_v27 = vadd.f32 %v6141_v24, %v6140_v23 }
 0x1df   :  { %v6115_v29 = vpop.f32.mrb[60].mxu0  ;;  %6422 = vmatpush3.bf16.msra.mxu1 %v6980_v6 }
 0x1e0   :  { %v4535_v28 = vadd.f32 %v6142_v27, %v4486_v21  ;;  %v6116_v15 = vpop.f32.mrb[61].mxu0  ;;  %6427 = vmatprep.subr.bf16.mxu1 %v8582_v16 }
 0x1e1   :  { %v6117_v31 = vadd.f32 %v6116_v15, %v6115_v29  ;;  %v6118_v26 = vpop.f32.mrb[62].mxu0 }
 0x1e2   :  { %v6143_v32 = vpop.f32.mrb[60].mxu1  ;;  %v6119_v33 = vpop.f32.mrb[63].mxu0 }
 0x1e3   :  { %v4491_v34 = vadd.f32 %v6117_v31, %v4442_v10  ;;  %v6120_v35 = vadd.f32 %v6119_v33, %v6118_v26  ;;  %v6144_v37 = vpop.f32.mrb[61].mxu1 }
 0x1e4   :  { %v6145_v38 = vadd.f32 %v6144_v37, %v6143_v32  ;;  %v6146_v39 = vpop.f32.mrb[62].mxu1 }
 0x1e5   :  { %v4494_v30 = vadd.f32 %v6120_v35, %v4445_v13  ;;  %v6147_v40 = vpop.f32.mrb[63].mxu1 }
 0x1e6   :  { %v4540_v42 = vadd.f32 %v6145_v38, %v4491_v34  ;;  %v6148_v36 = vadd.f32 %v6147_v40, %v6146_v39 }
 0x1e8   :  { %v4543_v43 = vadd.f32 %v6148_v36, %v4494_v30 }
 0x211   :  { %v6165_v44 = vpop.f32.mrb[64].mxu0 }
 0x212   :  { %v6166_v41 = vpop.f32.mrb[65].mxu0 }
 0x213   :  { %v6167_v49 = vadd.f32 %v6166_v41, %v6165_v44  ;;  %v6168_v45 = vpop.f32.mrb[66].mxu0  ;;  %v6193_v50 = vpop.f32.mrb[64].mxu1 }
 0x214   :  { %v6169_v51 = vpop.f32.mrb[67].mxu0  ;;  %v6194_v55 = vpop.f32.mrb[65].mxu1 }
 0x215   :  { %v4581_v52 = vadd.f32 %v6167_v49, %v4532_v25  ;;  %v6170_v54 = vadd.f32 %v6169_v51, %v6168_v45  ;;  %v6195_v56 = vadd.f32 %v6194_v55, %v6193_v50  ;;  %v6196_v48 = vpop.f32.mrb[66].mxu1 }
 0x216   :  { %v6197_v58 = vpop.f32.mrb[67].mxu1 }
 0x217   :  { %v4584_v53 = vadd.f32 %v6170_v54, %v4535_v28  ;;  %v4630_v59 = vadd.f32 %v6195_v56, %v4581_v52  ;;  %v6198_v60 = vadd.f32 %v6197_v58, %v6196_v48 }
 0x219   :  { %v4633_v62 = vadd.f32 %v6198_v60, %v4584_v53  ;;  %v6171_v63 = vpop.f32.mrb[68].mxu0 }
 0x21a   :  { %v6172_v0 = vpop.f32.mrb[69].mxu0 }
 0x21b   :  { %v6173_v57 = vadd.f32 %v6172_v0, %v6171_v63  ;;  %v6174_v3 = vpop.f32.mrb[70].mxu0  ;;  %v6199_v4 = vpop.f32.mrb[68].mxu1 }
 0x21c   :  { %v6175_v61 = vpop.f32.mrb[71].mxu0  ;;  %v6200_v7 = vpop.f32.mrb[69].mxu1 }
 0x21d   :  { %v4589_v1 = vadd.f32 %v6173_v57, %v4540_v42  ;;  %v6176_v5 = vadd.f32 %v6175_v61, %v6174_v3  ;;  %v6201_v8 = vadd.f32 %v6200_v7, %v6199_v4  ;;  %v6202_v10 = vpop.f32.mrb[70].mxu1 }
 0x21e   :  { %v6203_v9 = vpop.f32.mrb[71].mxu1 }
 0x21f   :  { %v4592_v2 = vadd.f32 %v6176_v5, %v4543_v43  ;;  %v4638_v13 = vadd.f32 %v6201_v8, %v4589_v1  ;;  %v6204_v11 = vadd.f32 %v6203_v9, %v6202_v10 }
 0x221   :  { %v4641_v12 = vadd.f32 %v6204_v11, %v4592_v2 }
 0x231   :  { %v6221_v17 = vpop.f32.mrb[72].mxu0 }
 0x232   :  { %v6222_v19 = vpop.f32.mrb[73].mxu0 }
 0x233   :  { %v6223_v18 = vadd.f32 %v6222_v19, %v6221_v17  ;;  %v6224_v20 = vpop.f32.mrb[74].mxu0  ;;  %v6249_v21 = vpop.f32.mrb[72].mxu1 }
 0x234   :  { %v6225_v22 = vpop.f32.mrb[75].mxu0  ;;  %v6250_v25 = vpop.f32.mrb[73].mxu1 }
 0x235   :  { %v4679_v23 = vadd.f32 %v6223_v18, %v4630_v59  ;;  %v6226_v24 = vadd.f32 %v6225_v22, %v6224_v20  ;;  %v6251_v27 = vadd.f32 %v6250_v25, %v6249_v21  ;;  %v6252_v28 = vpop.f32.mrb[74].mxu1 }
 0x236   :  { %v6253_v15 = vpop.f32.mrb[75].mxu1 }
 0x237   :  { %v4682_v29 = vadd.f32 %v6226_v24, %v4633_v62  ;;  %v4728_v31 = vadd.f32 %v6251_v27, %v4679_v23  ;;  %v6254_v26 = vadd.f32 %v6253_v15, %v6252_v28 }
 0x239   :  { %v4731_v32 = vadd.f32 %v6254_v26, %v4682_v29  ;;  %v6227_v33 = vpop.f32.mrb[76].mxu0 }
 0x23a   :  { %v6228_v34 = vpop.f32.mrb[77].mxu0 }
 0x23b   :  { %v6229_v35 = vadd.f32 %v6228_v34, %v6227_v33  ;;  %v6230_v37 = vpop.f32.mrb[78].mxu0  ;;  %v6255_v38 = vpop.f32.mrb[76].mxu1 }
 0x23c   :  { %v6231_v39 = vpop.f32.mrb[79].mxu0  ;;  %v6256_v42 = vpop.f32.mrb[77].mxu1 }
 0x23d   :  { %v4687_v30 = vadd.f32 %v6229_v35, %v4638_v13  ;;  %v6232_v40 = vadd.f32 %v6231_v39, %v6230_v37  ;;  %v6257_v36 = vadd.f32 %v6256_v42, %v6255_v38  ;;  %v6258_v43 = vpop.f32.mrb[78].mxu1 }
 0x23e   :  { %v6259_v46 = vpop.f32.mrb[79].mxu1 }
 0x23f   :  { %v4690_v44 = vadd.f32 %v6232_v40, %v4641_v12  ;;  %v4736_v41 = vadd.f32 %v6257_v36, %v4687_v30  ;;  %v6260_v47 = vadd.f32 %v6259_v46, %v6258_v43 }
 0x241   :  { %v4739_v49 = vadd.f32 %v6260_v47, %v4690_v44 }
 0x251   :  { %v6277_v45 = vpop.f32.mrb[80].mxu0 }
 0x252   :  { %v6278_v50 = vpop.f32.mrb[81].mxu0 }
 0x253   :  { %v6279_v51 = vadd.f32 %v6278_v50, %v6277_v45  ;;  %v6280_v52 = vpop.f32.mrb[82].mxu0  ;;  %v6305_v56 = vpop.f32.mrb[80].mxu1 }
 0x254   :  { %v6281_v54 = vpop.f32.mrb[83].mxu0  ;;  %v6306_v53 = vpop.f32.mrb[81].mxu1 }
 0x255   :  { %v4777_v55 = vadd.f32 %v6279_v51, %v4728_v31  ;;  %v6282_v48 = vadd.f32 %v6281_v54, %v6280_v52  ;;  %v6307_v59 = vadd.f32 %v6306_v53, %v6305_v56  ;;  %v6308_v60 = vpop.f32.mrb[82].mxu1 }
 0x256   :  { %v6309_v62 = vpop.f32.mrb[83].mxu1 }
 0x257   :  { %v4780_v58 = vadd.f32 %v6282_v48, %v4731_v32  ;;  %v4826_v63 = vadd.f32 %v6307_v59, %v4777_v55  ;;  %v6310_v0 = vadd.f32 %v6309_v62, %v6308_v60 }
 0x259   :  { %v4829_v57 = vadd.f32 %v6310_v0, %v4780_v58  ;;  %v6283_v3 = vpop.f32.mrb[84].mxu0 }
 0x25a   :  { %v6284_v61 = vpop.f32.mrb[85].mxu0 }
 0x25b   :  { %v6285_v1 = vadd.f32 %v6284_v61, %v6283_v3  ;;  %v6286_v4 = vpop.f32.mrb[86].mxu0  ;;  %v6311_v5 = vpop.f32.mrb[84].mxu1  ;;  %v6983_v3 = vld [vmem:[%s8621_s5 + $0x10] sm:$0xff]   ;;  %v6984_v61 = vld [vmem:[%s8621_s5 + $0x18] sm:$0xff]  }
 0x25c   :  { %v6287_v7 = vpop.f32.mrb[87].mxu0  ;;  %v6312_v10 = vpop.f32.mrb[85].mxu1 }
 0x25d   :  { %v4785_v2 = vadd.f32 %v6285_v1, %v4736_v41  ;;  %v6288_v8 = vadd.f32 %v6287_v7, %v6286_v4  ;;  %v6313_v9 = vadd.f32 %v6312_v10, %v6311_v5  ;;  %v6314_v13 = vpop.f32.mrb[86].mxu1  ;;  %v5687_v1 = vld [vmem:[%s8622_s4] ss:$0 sm:$0xff] }
 0x25e   :  { %v6315_v14 = vpop.f32.mrb[87].mxu1 }
 0x25f   :  { %v4788_v11 = vadd.f32 %v6288_v8, %v4739_v49  ;;  %v4834_v12 = vadd.f32 %v6313_v9, %v4785_v2  ;;  %v6316_v6 = vadd.f32 %v6315_v14, %v6314_v13 }
 0x261   :  { %v4837_v17 = vadd.f32 %v6316_v6, %v4788_v11 }
 0x271   :  { %v6333_v19 = vpop.f32.mrb[88].mxu0 }
 0x272   :  { %v6334_v18 = vpop.f32.mrb[89].mxu0 }
 0x273   :  { %v6335_v20 = vadd.f32 %v6334_v18, %v6333_v19  ;;  %v6336_v21 = vpop.f32.mrb[90].mxu0  ;;  %v6361_v22 = vpop.f32.mrb[88].mxu1  ;;  %v5694_v19 = vld [vmem:[%s8623_s6] ss:$0 sm:$0xff] }
 0x274   :  { %v6337_v23 = vpop.f32.mrb[91].mxu0  ;;  %v6362_v27 = vpop.f32.mrb[89].mxu1 }
 0x275   :  { %v4875_v24 = vadd.f32 %v6335_v20, %v4826_v63  ;;  %v6338_v25 = vadd.f32 %v6337_v23, %v6336_v21  ;;  %v6363_v28 = vadd.f32 %v6362_v27, %v6361_v22  ;;  %v6364_v29 = vpop.f32.mrb[90].mxu1 }
 0x276   :  { %v6365_v31 = vpop.f32.mrb[91].mxu1 }
 0x277   :  { %v4878_v15 = vadd.f32 %v6338_v25, %v4829_v57  ;;  %v6366_v26 = vadd.f32 %v6365_v31, %v6364_v29  ;;  %v4924_v32 = vadd.f32 %v6363_v28, %v4875_v24  ;;  %v6982_v57 = vld [vmem:[%s8621_s5 + $0x8] sm:$0xff]  }
 0x279   :  { %v6339_v33 = vpop.f32.mrb[92].mxu0  ;;  %v4927_v35 = vadd.f32 %v6366_v26, %v4878_v15 }
 0x27a   :  { %v6340_v34 = vpop.f32.mrb[93].mxu0 }
 0x27b   :  { %v6341_v37 = vadd.f32 %v6340_v34, %v6339_v33  ;;  %v6342_v38 = vpop.f32.mrb[94].mxu0  ;;  %v6367_v39 = vpop.f32.mrb[92].mxu1 }
 0x27c   :  { %v6343_v30 = vpop.f32.mrb[95].mxu0  ;;  %v6368_v36 = vpop.f32.mrb[93].mxu1 }
 0x27d   :  { %v4883_v40 = vadd.f32 %v6341_v37, %v4834_v12  ;;  %v6344_v42 = vadd.f32 %v6343_v30, %v6342_v38  ;;  %v6369_v43 = vadd.f32 %v6368_v36, %v6367_v39  ;;  %v6370_v44 = vpop.f32.mrb[94].mxu1 }
 0x27e   :  { %v6371_v41 = vpop.f32.mrb[95].mxu1 }
 0x27f   :  { %v4886_v46 = vadd.f32 %v6344_v42, %v4837_v17  ;;  %v6372_v47 = vadd.f32 %v6371_v41, %v6370_v44  ;;  %v4932_v49 = vadd.f32 %v6369_v43, %v4883_v40 }
 0x281   :  { %v4935_v45 = vadd.f32 %v6372_v47, %v4886_v46 }
 0x291   :  { %v6413_v50 = vpop.f32.mrb[96].mxu0 }
 0x292   :  { %v4981_v51 = vadd.f32 %v6413_v50, %v4932_v49  ;;  %v4972_v52 = vpop.f32.mrb[97].mxu0 }
 0x293   :  { %v4973_v54 = vadd.f32 %v4972_v52, %v4924_v32  ;;  %v6414_v55 = vpop.f32.mrb[98].mxu0 }
 0x294   :  { %v4984_v56 = vadd.f32 %v6414_v55, %v4935_v45  ;;  %v4975_v48 = vpop.f32.mrb[99].mxu0  ;;  %v4989_v58 = vmax.f32 %v4981_v51, 0.0 }
 0x295   :  { %v4976_v53 = vadd.f32 %v4975_v48, %v4927_v35  ;;  %v4987_v60 = vmax.f32 %v4973_v54, 0.0 }
 0x296   :  { %v4990_v59 = vmax.f32 %v4984_v56, 0.0 }
 0x297   :  { %v4988_v62 = vmax.f32 %v4976_v53, 0.0 }
 0x298   :  { %v4992_v63 = vpack.c.bf16 %v4990_v59, %v4989_v58 }
 0x299   :  { %v4991_v0 = vpack.c.bf16 %v4988_v62, %v4987_v60 }
 0x29b   :  { %6423 = vmatprep.mubr.msk.bf16.mxu1 %vm5032_vm0, %v4991_v0 }
 0x29c   :  { %6424 = vmatmul.mubr.msk.bf16.vlgmr.msra.gmra.mrb[96].mxu1 %vm5032_vm0, %v4992_v63 }
 0x29d   :  { %6428 = vmatpush3.bf16.msra.mxu1 %v8582_v16 }
 0x29e   :  { %6429 = vmatprep.subr.bf16.mxu1 %v6982_v57 }
 0x2a1   :  { %6430 = vmatpush3.bf16.msra.mxu1 %v6982_v57 }
 0x2a2   :  { %6431 = vmatprep.subr.bf16.mxu1 %v6983_v3 }
 0x2a5   :  { %6432 = vmatpush3.bf16.msra.mxu1 %v6983_v3 }
 0x2a6   :  { %6433 = vmatprep.subr.bf16.mxu1 %v6984_v61 }
 0x2a9   :  { %6434 = vmatpush3.bf16.msra.mxu1 %v6984_v61 }
 0x36f   :  { %v6425_v4 = vpop.f32.mrb[96].mxu1 }
 0x370   :  { %v5082_v16 = vadd.f32 %v6425_v4, %v5687_v1  ;;  %v5073_v5 = vpop.f32.mrb[97].mxu1 }
 0x371   :  { %v5074_v7 = vadd.f32 %v5687_v1, %v5073_v5  ;;  %v6426_v2 = vpop.f32.mrb[98].mxu1 }
 0x372   :  { %v5085_v8 = vadd.f32 %v6426_v2, %v5687_v1  ;;  %v5076_v10 = vpop.f32.mrb[99].mxu1  ;;  %v5090_v13 = vmax.f32 %v5082_v16, 0.0 }
 0x373   :  { %v5077_v9 = vadd.f32 %v5687_v1, %v5076_v10  ;;  %v5088_v14 = vmax.f32 %v5074_v7, 0.0 }
 0x374   :  { %v5091_v11 = vmax.f32 %v5085_v8, 0.0 }
 0x375   :  { %v5089_v12 = vmax.f32 %v5077_v9, 0.0 }
 0x376   :  { %v5093_v6 = vpack.c.bf16 %v5091_v11, %v5090_v13 }
 0x377   :  { %v5092_v17 = vpack.c.bf16 %v5089_v12, %v5088_v14 }
 0x379   :  { %6435 = vmatprep.mubr.msk.bf16.mxu1 %vm5032_vm0, %v5092_v17 }
 0x37a   :  { %6436 = vmatmul.mubr.msk.bf16.vlgmr.msra.gmra.mrb[100].mxu1 %vm5032_vm0, %v5093_v6 }
 0x44d   :  { %v6437_v18 = vpop.f32.mrb[100].mxu1 }
 0x44e   :  { %v5182_v20 = vadd.f32 %v6437_v18, %v5694_v19  ;;  %v5173_v21 = vpop.f32.mrb[101].mxu1 }
 0x44f   :  { %v5174_v22 = vadd.f32 %v5694_v19, %v5173_v21  ;;  %v6438_v23 = vpop.f32.mrb[102].mxu1 }
 0x450   :  { %5190 = vst [vmem:[%s8624_s7 + $0x10] sm:$0xff] %v5182_v20  ;;  %v5185_v24 = vadd.f32 %v6438_v23, %v5694_v19  ;;  %v5176_v25 = vpop.f32.mrb[103].mxu1 }
 0x451   :  { %5188 = vst [vmem:[%s8624_s7] sm:$0xff] %v5174_v22  ;;  %v5177_v27 = vadd.f32 %v5694_v19, %v5176_v25 }
 0x452   :  { %5191 = vst [vmem:[%s8624_s7 + $0x18] sm:$0xff] %v5185_v24 }
 0x453   :  { %5189 = vst [vmem:[%s8624_s7 + $0x8] sm:$0xff] %v5177_v27 }

</bundles_post_ra>
